<compile_context>
chip_gen: v7x
topology: tpu7x:2x2x1
jax: 0.10.0
libtpu: 0.0.40
codegen_flags: <defaults>
</compile_context>

<pallas_src>
import math

import jax
import jax.numpy as jnp
from jax.experimental import pallas as pl
from jax.experimental.pallas import tpu as pltpu


CPAD = 128  # lane-dense padded output-channel count for the final layer


# ----------------------------------------------------------------------------
# Architecture helpers (mirror the PyTorch __init__ exactly)
# ----------------------------------------------------------------------------
def prod(xs):
    out = 1
    for v in xs:
        out *= v
    return out


def conv_transpose_in_dim(h, w, kernel, stride=1, padding=0):
    # inverse of: out = (in - 1) * stride - 2 * padding + kernel
    return ((h - kernel + 2 * padding) // stride + 1,
            (w - kernel + 2 * padding) // stride + 1)


def build_arch(hidden_dim, output_dims):
    ngf = 64
    planes = [None, ngf * 4, ngf * 2, ngf, output_dims[0] * 2]
    kernels = [None, 3, 3, 3, 3]
    pads = [None, 0, 1, 1, 1] if output_dims[-1] >= 16 else [None, 1, 1, 1, 1]
    strides = [None, 1, 1, 1, 1]
    in_dims = [tuple(output_dims[1:])]
    for l in range(len(planes) - 1, 0, -1):
        in_dims = [conv_transpose_in_dim(*in_dims[0], kernels[l],
                                         stride=strides[l],
                                         padding=pads[l])] + in_dims
    planes[0] = math.ceil(hidden_dim / prod(in_dims[0]))
    return planes, kernels, pads, strides, in_dims


# ----------------------------------------------------------------------------
# ConvTranspose2d weight -> per-tap conv matrices
# ConvTranspose2d(stride=1, padding=p) == regular conv with the spatially flipped
# kernel and padding k-1-p.  Tap (a, b) of that conv is W[:, :, k-1-a, k-1-b],
# giving a (Cin, Cout) matrix per tap, stored tap-major: (k*k, Cin, Cout).
# ----------------------------------------------------------------------------
def convtranspose_weight_to_taps(w):
    # w: (Cin, Cout, k, k), PyTorch ConvTranspose2d layout
    k = w.shape[-1]
    wf = jnp.flip(w, axis=(2, 3))
    return jnp.transpose(wf, (2, 3, 0, 1)).reshape(k * k, w.shape[0], w.shape[1])


# ----------------------------------------------------------------------------
# Fused Pallas kernel
# ----------------------------------------------------------------------------
def _full_spec(shape):
    nd = len(shape)
    return pl.BlockSpec(shape, lambda i: (0,) * nd)


def _make_fused_kernel(arch, batch, cpad):
    planes, kernels, pads, _strides, in_dims = arch
    C0, C1, C2, C3, _C4 = planes
    (H0, W0), (H1, W1), (H2, W2), (H3, W3), (H4, W4) = [tuple(d) for d in in_dims]
    k = kernels[1]
    p1, p2, p3, p4 = (kernels[l] - 1 - pads[l] for l in range(1, 5))
    B = batch
    f32 = jnp.float32
    bf16 = jnp.bfloat16

    def bn_train(y, g, be):
        # BatchNorm2d, training-mode batch stats over (N, H, W) per channel, eps=1e-5.
        mean = jnp.mean(y, axis=0, keepdims=True)
        msq = jnp.mean(y * y, axis=0, keepdims=True)
        var = jnp.maximum(msq - mean * mean, 0.0)
        return g * (y - mean) * jax.lax.rsqrt(var + 1e-5) + be

    def kernel(xt_ref, lw_ref, lb_ref,
               w1_ref, b1_ref, g1_ref, be1_ref,
               w2_ref, b2_ref, g2_ref, be2_ref,
               w3_ref, b3_ref, g3_ref, be3_ref,
               w4_ref, b4_ref,
               o_ref,
               pad1_ref, y1_ref, pad2_ref, pad3_ref, pad4_ref):

        def conv3x3_mxu(a_flat, pad_ref, w_ref, Hin, Win, Hout, Wout, Cin, Cout, p):
            # a_flat: (B*Hin*Win, Cin) f32, pre-activation already applied.
            # Zero-pad into VMEM scratch, then 9 shifted bf16 matmuls, f32 accumulation.
            pad_ref[...] = jnp.zeros(pad_ref.shape, f32)
            pad_ref[:, p:p + Hin, p:p + Win, :] = a_flat.reshape(B, Hin, Win, Cin)
            M = B * Hout * Wout
            acc = jnp.zeros((M, Cout), f32)
            for a in range(k):
                for b in range(k):
                    tap = pad_ref[:, a:a + Hout, b:b + Wout, :].reshape(M, Cin)
                    acc = acc + jnp.dot(tap.astype(bf16), w_ref[a * k + b],
                                        preferred_element_type=f32)
            return acc

        # ---- Linear + ReLU, computed transposed: rows = (c, h, w), lanes = batch ----
        hT = jnp.dot(lw_ref[...], xt_ref[...].astype(bf16), preferred_element_type=f32)
        hT = jnp.maximum(hT + lb_ref[...], 0.0)                       # (C0*H0*W0, B)

        # ---- Conv 1 (degenerate Cin): VPU outer-product taps, per batch element ----
        pad1_ref[...] = jnp.zeros(pad1_ref.shape, f32)
        pad1_ref[:, p1:p1 + H0, p1:p1 + W0, :] = hT.reshape(C0, H0, W0, B)
        for n in range(B):
            acc = jnp.zeros((H1 * W1, C1), f32)
            for c in range(C0):
                for a in range(k):
                    for b in range(k):
                        col = pad1_ref[c, a:a + H1, b:b + W1, n:n + 1]
                        col = col.reshape(H1 * W1, 1)
                        acc = acc + col * w1_ref[a * k + b, c:c + 1, :].astype(f32)
            y1_ref[n * H1 * W1:(n + 1) * H1 * W1, :] = acc            # rows = (n, h, w)
        a1 = jnp.maximum(
            bn_train(y1_ref[...] + b1_ref[...], g1_ref[...], be1_ref[...]), 0.0)

        # ---- Conv 2, 3 (+ BN + ReLU) on the MXU ----
        y2 = conv3x3_mxu(a1, pad2_ref, w2_ref, H1, W1, H2, W2, C1, C2, p2) + b2_ref[...]
        a2 = jnp.maximum(bn_train(y2, g2_ref[...], be2_ref[...]), 0.0)
        y3 = conv3x3_mxu(a2, pad3_ref, w3_ref, H2, W2, H3, W3, C2, C3, p3) + b3_ref[...]
        a3 = jnp.maximum(bn_train(y3, g3_ref[...], be3_ref[...]), 0.0)

        # ---- Conv 4 (no BN) into a lane-dense padded slab + sigmoid ----
        y4 = conv3x3_mxu(a3, pad4_ref, w4_ref, H3, W3, H4, W4, C3, cpad, p4) + b4_ref[...]
        o_ref[...] = jax.nn.sigmoid(y4)

    return kernel


def _scratch_shapes(arch, batch):
    planes, kernels, pads, _strides, in_dims = arch
    C0, C1, C2, C3, _ = planes
    (H0, W0), (H1, W1), (H2, W2), (H3, W3), _ = [tuple(d) for d in in_dims]
    p1, p2, p3, p4 = (kernels[l] - 1 - pads[l] for l in range(1, 5))
    B = batch
    return [
        pltpu.VMEM((C0, H0 + 2 * p1, W0 + 2 * p1, B), jnp.float32),  # padded conv1 input
        pltpu.VMEM((B * H1 * W1, C1), jnp.float32),                  # conv1 output rows
        pltpu.VMEM((B, H1 + 2 * p2, W1 + 2 * p2, C1), jnp.float32),  # padded conv2 input
        pltpu.VMEM((B, H2 + 2 * p3, W2 + 2 * p3, C2), jnp.float32),  # padded conv3 input
        pltpu.VMEM((B, H3 + 2 * p4, W3 + 2 * p4, C3), jnp.float32),  # padded conv4 input
    ]


# ----------------------------------------------------------------------------
# Forward pass (one fused pallas_call; only tiny input/output plumbing in XLA)
# ----------------------------------------------------------------------------
def generator_forward(x, params, arch):
    planes, kernels, _pads, _strides, in_dims = arch
    B = x.shape[0]
    H4, W4 = in_dims[-1]
    cmu = planes[-1] // 2
    M4 = B * H4 * W4

    xt = jnp.transpose(x)  # (hidden, B): lets the in-kernel linear emit rows = (c,h,w)
    args = (
        xt, params['lin_w'], params['lin_b'],
        params['conv0_taps'], params['conv0_b'], params['bn0_g'], params['bn0_b'],
        params['conv1_taps'], params['conv1_b'], params['bn1_g'], params['bn1_b'],
        params['conv2_taps'], params['conv2_b'], params['bn2_g'], params['bn2_b'],
        params['conv3_taps'], params['conv3_b'],
    )

    flops = 2 * x.shape[1] * params['lin_w'].shape[0] * B
    for i in range(4):
        ci, co = params[f'conv{i}_taps'].shape[1], params[f'conv{i}_taps'].shape[2]
        hi, wi = in_dims[i + 1]
        flops += 2 * (B * hi * wi) * (kernels[i + 1] ** 2 * ci) * co
    bytes_accessed = sum(int(a.size) * a.dtype.itemsize for a in args) + M4 * CPAD * 4
    cost = pl.CostEstimate(flops=int(flops), transcendentals=int(M4 * CPAD),
                           bytes_accessed=int(bytes_accessed))

    out = pl.pallas_call(
        _make_fused_kernel(arch, B, CPAD),
        out_shape=jax.ShapeDtypeStruct((M4, CPAD), jnp.float32),
        grid=(1,),
        in_specs=[_full_spec(a.shape) for a in args],
        out_specs=_full_spec((M4, CPAD)),
        scratch_shapes=_scratch_shapes(arch, B),
        compiler_params=pltpu.CompilerParams(dimension_semantics=("arbitrary",)),
        cost_estimate=cost,
    )(*args)

    mu = out[:, :cmu].reshape(B, H4, W4, cmu)      # NHWC-flat rows -> NHWC
    return jnp.transpose(mu, (0, 3, 1, 2))         # NCHW, matching the PyTorch module


# ----------------------------------------------------------------------------
# Deterministic parameter initialization (synthetic; no checkpoint load)
# ----------------------------------------------------------------------------
def init_params(key, hidden_dim, arch):
    planes, kernels, _pads, _strides, in_dims = arch
    keys = jax.random.split(key, 32)
    p = {}
    L = planes[0] * prod(in_dims[0])
    p['lin_w'] = (0.05 * jax.random.normal(keys[0], (L, hidden_dim), jnp.float32)
                  ).astype(jnp.bfloat16)
    p['lin_b'] = 0.05 * jax.random.normal(keys[1], (L, 1), jnp.float32)
    ki = 2
    n_convs = len(planes) - 1
    for i in range(n_convs):
        l = i + 1
        cin, cout, kk = planes[l - 1], planes[l], kernels[l]
        w = 0.05 * jax.random.normal(keys[ki], (cin, cout, kk, kk), jnp.float32); ki += 1
        b = 0.05 * jax.random.normal(keys[ki], (1, cout), jnp.float32); ki += 1
        taps = convtranspose_weight_to_taps(w)                  # (k*k, cin, cout)
        if i == n_convs - 1:
            b = b + 0.5                                         # convs[-1].bias += 0.5
            taps = jnp.pad(taps, ((0, 0), (0, 0), (0, CPAD - cout)))
            b = jnp.pad(b, ((0, 0), (0, CPAD - cout)))
        p[f'conv{i}_taps'] = taps.astype(jnp.bfloat16)
        p[f'conv{i}_b'] = b
        if i < n_convs - 1:
            p[f'bn{i}_g'] = jnp.ones((1, cout), jnp.float32)
            p[f'bn{i}_b'] = jnp.zeros((1, cout), jnp.float32)
    return p


# ----------------------------------------------------------------------------
# Pure-JAX reference (same math, same bf16 operands) for correctness checking
# ----------------------------------------------------------------------------
def reference_forward(x, params, arch):
    planes, kernels, pads, _strides, in_dims = arch
    B = x.shape[0]
    C0 = planes[0]
    H0, W0 = in_dims[0]
    f32, bf16 = jnp.float32, jnp.bfloat16

    hT = jnp.dot(params['lin_w'], jnp.transpose(x).astype(bf16),
                 preferred_element_type=f32)
    hT = jnp.maximum(hT + params['lin_b'], 0.0)                       # (C0*H0*W0, B)
    a = jnp.transpose(hT.reshape(C0, H0, W0, B), (3, 1, 2, 0))        # NHWC

    def bn(y, g, be):
        mean = jnp.mean(y, axis=0, keepdims=True)
        msq = jnp.mean(y * y, axis=0, keepdims=True)
        var = jnp.maximum(msq - mean * mean, 0.0)
        return g * (y - mean) * jax.lax.rsqrt(var + 1e-5) + be

    n_convs = len(planes) - 1
    out = None
    for i in range(n_convs):
        l = i + 1
        Hout, Wout = in_dims[l]
        Cin = a.shape[-1]
        taps = params[f'conv{i}_taps']
        Cout = taps.shape[-1]
        kk = kernels[l]
        p = kk - 1 - pads[l]
        ap = jnp.pad(a, ((0, 0), (p, p), (p, p), (0, 0)))
        M = B * Hout * Wout
        acc = jnp.zeros((M, Cout), f32)
        for ai in range(kk):
            for bi in range(kk):
                tap = ap[:, ai:ai + Hout, bi:bi + Wout, :].reshape(M, Cin)
                w = taps[ai * kk + bi]
                if i == 0:
                    for c in range(Cin):                      # mirror the VPU f32 path
                        acc = acc + tap[:, c:c + 1] * w[c:c + 1, :].astype(f32)
                else:
                    acc = acc + jnp.dot(tap.astype(bf16), w, preferred_element_type=f32)
        y = acc + params[f'conv{i}_b']
        if i < n_convs - 1:
            a = jnp.maximum(bn(y, params[f'bn{i}_g'], params[f'bn{i}_b']),
                            0.0).reshape(B, Hout, Wout, Cout)
        else:
            out = jax.nn.sigmoid(y)
    cmu = planes[-1] // 2
    H4, W4 = in_dims[-1]
    return jnp.transpose(out[:, :cmu].reshape(B, H4, W4, cmu), (0, 3, 1, 2))


if __name__ == "__main__":
    hidden_dim = 32
    output_dims = (1, 8, 8)          # (C, H, W) of the generated image (small)
    B = 2
    arch = build_arch(hidden_dim, output_dims)

    key = jax.random.PRNGKey(0)
    pkey, xkey = jax.random.split(key)
    params = init_params(pkey, hidden_dim, arch)
    x = jax.random.normal(xkey, (B, hidden_dim), jnp.float32)

    fwd = jax.jit(lambda inp, prm: generator_forward(inp, prm, arch))
    mu = jax.block_until_ready(fwd(x, params))

    ref = jax.jit(lambda inp, prm: reference_forward(inp, prm, arch))
    mu_ref = jax.block_until_ready(ref(x, params))

    assert mu.shape == (B,) + tuple(output_dims), mu.shape
    assert bool(jnp.all(jnp.isfinite(mu)))
    assert bool(jnp.all((mu >= 0.0) & (mu <= 1.0)))
    max_err = float(jnp.max(jnp.abs(mu - mu_ref)))
    assert max_err < 2e-2, f"kernel/reference mismatch: {max_err}"
    print("KERNEL_OK")
</pallas_src>

<mosaic_0001>
module attributes {stable_mosaic.version = 11 : i64} {
  func.func @kernel(%arg0: i32, %arg1: memref<32x2xf32, #tpu.memory_space<vmem>>, %arg2: memref<64x32xbf16, #tpu.memory_space<vmem>>, %arg3: memref<64x1xf32, #tpu.memory_space<vmem>>, %arg4: memref<9x1x256xbf16, #tpu.memory_space<vmem>>, %arg5: memref<1x256xf32, #tpu.memory_space<vmem>>, %arg6: memref<1x256xf32, #tpu.memory_space<vmem>>, %arg7: memref<1x256xf32, #tpu.memory_space<vmem>>, %arg8: memref<9x256x128xbf16, #tpu.memory_space<vmem>>, %arg9: memref<1x128xf32, #tpu.memory_space<vmem>>, %arg10: memref<1x128xf32, #tpu.memory_space<vmem>>, %arg11: memref<1x128xf32, #tpu.memory_space<vmem>>, %arg12: memref<9x128x64xbf16, #tpu.memory_space<vmem>>, %arg13: memref<1x64xf32, #tpu.memory_space<vmem>>, %arg14: memref<1x64xf32, #tpu.memory_space<vmem>>, %arg15: memref<1x64xf32, #tpu.memory_space<vmem>>, %arg16: memref<9x64x128xbf16, #tpu.memory_space<vmem>>, %arg17: memref<1x128xf32, #tpu.memory_space<vmem>>, %arg18: memref<128x128xf32, #tpu.memory_space<vmem>>, %arg19: memref<1x10x10x2xf32, #tpu.memory_space<vmem>>, %arg20: memref<128x256xf32, #tpu.memory_space<vmem>>, %arg21: memref<2x10x10x256xf32, #tpu.memory_space<vmem>>, %arg22: memref<2x10x10x128xf32, #tpu.memory_space<vmem>>, %arg23: memref<2x10x10x64xf32, #tpu.memory_space<vmem>>) attributes {dimension_semantics = [#tpu.dimension_semantics<arbitrary>], iteration_bounds = array<i64: 1>, scalar_prefetch = 0 : i64, scratch_operands = 5 : i64, tpu.core_type = #tpu.core_type<tc>, window_params = [{pipeline_mode = #tpu.pipeline_mode<synchronous>, transform_indices = @transform_0, window_bounds = array<i64: 32, 2>}, {pipeline_mode = #tpu.pipeline_mode<synchronous>, transform_indices = @transform_1, window_bounds = array<i64: 64, 32>}, {pipeline_mode = #tpu.pipeline_mode<synchronous>, transform_indices = @transform_2, window_bounds = array<i64: 64, 1>}, {pipeline_mode = #tpu.pipeline_mode<synchronous>, transform_indices = @transform_3, window_bounds = array<i64: 9, 1, 256>}, {pipeline_mode = #tpu.pipeline_mode<synchronous>, transform_indices = @transform_4, window_bounds = array<i64: 1, 256>}, {pipeline_mode = #tpu.pipeline_mode<synchronous>, transform_indices = @transform_5, window_bounds = array<i64: 1, 256>}, {pipeline_mode = #tpu.pipeline_mode<synchronous>, transform_indices = @transform_6, window_bounds = array<i64: 1, 256>}, {pipeline_mode = #tpu.pipeline_mode<synchronous>, transform_indices = @transform_7, window_bounds = array<i64: 9, 256, 128>}, {pipeline_mode = #tpu.pipeline_mode<synchronous>, transform_indices = @transform_8, window_bounds = array<i64: 1, 128>}, {pipeline_mode = #tpu.pipeline_mode<synchronous>, transform_indices = @transform_9, window_bounds = array<i64: 1, 128>}, {pipeline_mode = #tpu.pipeline_mode<synchronous>, transform_indices = @transform_10, window_bounds = array<i64: 1, 128>}, {pipeline_mode = #tpu.pipeline_mode<synchronous>, transform_indices = @transform_11, window_bounds = array<i64: 9, 128, 64>}, {pipeline_mode = #tpu.pipeline_mode<synchronous>, transform_indices = @transform_12, window_bounds = array<i64: 1, 64>}, {pipeline_mode = #tpu.pipeline_mode<synchronous>, transform_indices = @transform_13, window_bounds = array<i64: 1, 64>}, {pipeline_mode = #tpu.pipeline_mode<synchronous>, transform_indices = @transform_14, window_bounds = array<i64: 1, 64>}, {pipeline_mode = #tpu.pipeline_mode<synchronous>, transform_indices = @transform_15, window_bounds = array<i64: 9, 64, 128>}, {pipeline_mode = #tpu.pipeline_mode<synchronous>, transform_indices = @transform_16, window_bounds = array<i64: 1, 128>}, {pipeline_mode = #tpu.pipeline_mode<synchronous>, transform_indices = @transform_17, window_bounds = array<i64: 128, 128>}]} {
    %c0 = arith.constant 0 : index
    %c0_0 = arith.constant 0 : index
    %0 = vector.load %arg2[%c0, %c0_0] : memref<64x32xbf16, #tpu.memory_space<vmem>>, vector<64x32xbf16>
    %c0_1 = arith.constant 0 : index
    %c0_2 = arith.constant 0 : index
    %1 = vector.load %arg1[%c0_1, %c0_2] : memref<32x2xf32, #tpu.memory_space<vmem>>, vector<32x2xf32>
    %2 = arith.truncf %1 : vector<32x2xf32> to vector<32x2xbf16>
    %cst = arith.constant dense<0.000000e+00> : vector<64x2xf32>
    %3 = tpu.matmul %0, %2, %cst {dimension_numbers = #tpu.dot_dimension_numbers<[1], [0], [0], [1], [0, 0, 1, 1], [], []>} : vector<64x32xbf16>, vector<32x2xbf16>, vector<64x2xf32> -> vector<64x2xf32>
    %c0_3 = arith.constant 0 : index
    %c0_4 = arith.constant 0 : index
    %4 = vector.load %arg3[%c0_3, %c0_4] : memref<64x1xf32, #tpu.memory_space<vmem>>, vector<64x1xf32>
    %5 = vector.broadcast %4 : vector<64x1xf32> to vector<64x2xf32>
    %6 = arith.addf %3, %5 : vector<64x2xf32>
    %cst_5 = arith.constant 0.000000e+00 : f32
    %7 = vector.broadcast %cst_5 : f32 to vector<64x2xf32>
    %8 = arith.maximumf %6, %7 : vector<64x2xf32>
    %cst_6 = arith.constant 0.000000e+00 : f32
    %9 = vector.broadcast %cst_6 : f32 to vector<1x10x10x2xf32>
    %c0_7 = arith.constant 0 : index
    %c0_8 = arith.constant 0 : index
    %c0_9 = arith.constant 0 : index
    %c0_10 = arith.constant 0 : index
    %10 = vector.load %arg19[%c0_7, %c0_8, %c0_9, %c0_10] : memref<1x10x10x2xf32, #tpu.memory_space<vmem>>, vector<1x10x10x2xf32>
    tpu.vector_store %arg19[%c0_7, %c0_8, %c0_9, %c0_10], %9 {strides = array<i32>} : memref<1x10x10x2xf32, #tpu.memory_space<vmem>>, vector<1x10x10x2xf32>,
    %11 = vector.shape_cast %8 : vector<64x2xf32> to vector<1x8x8x2xf32>
    %c0_11 = arith.constant 0 : index
    %c1 = arith.constant 1 : index
    %c1_12 = arith.constant 1 : index
    %c0_13 = arith.constant 0 : index
    %12 = vector.load %arg19[%c0_11, %c1, %c1_12, %c0_13] : memref<1x10x10x2xf32, #tpu.memory_space<vmem>>, vector<1x8x8x2xf32>
    tpu.vector_store %arg19[%c0_11, %c1, %c1_12, %c0_13], %11 {strides = array<i32>} : memref<1x10x10x2xf32, #tpu.memory_space<vmem>>, vector<1x8x8x2xf32>,
    %cst_14 = arith.constant 0.000000e+00 : f32
    %13 = vector.broadcast %cst_14 : f32 to vector<64x256xf32>
    %c0_15 = arith.constant 0 : index
    %c0_16 = arith.constant 0 : index
    %c0_17 = arith.constant 0 : index
    %c0_18 = arith.constant 0 : index
    %14 = vector.load %arg19[%c0_15, %c0_16, %c0_17, %c0_18] : memref<1x10x10x2xf32, #tpu.memory_space<vmem>>, vector<1x8x8x1xf32>
    %15 = vector.shape_cast %14 : vector<1x8x8x1xf32> to vector<8x8x1xf32>
    %16 = vector.shape_cast %15 : vector<8x8x1xf32> to vector<64x1xf32>
    %c0_19 = arith.constant 0 : index
    %c0_20 = arith.constant 0 : index
    %c0_21 = arith.constant 0 : index
    %17 = vector.load %arg4[%c0_19, %c0_20, %c0_21] : memref<9x1x256xbf16, #tpu.memory_space<vmem>>, vector<1x1x256xbf16>
    %18 = vector.shape_cast %17 : vector<1x1x256xbf16> to vector<1x256xbf16>
    %19 = arith.extf %18 : vector<1x256xbf16> to vector<1x256xf32>
    %20 = vector.broadcast %16 : vector<64x1xf32> to vector<64x256xf32>
    %21 = vector.broadcast %19 : vector<1x256xf32> to vector<64x256xf32>
    %22 = arith.mulf %20, %21 : vector<64x256xf32>
    %23 = arith.addf %13, %22 : vector<64x256xf32>
    %c0_22 = arith.constant 0 : index
    %c0_23 = arith.constant 0 : index
    %c1_24 = arith.constant 1 : index
    %c0_25 = arith.constant 0 : index
    %24 = vector.load %arg19[%c0_22, %c0_23, %c1_24, %c0_25] : memref<1x10x10x2xf32, #tpu.memory_space<vmem>>, vector<1x8x8x1xf32>
    %25 = vector.shape_cast %24 : vector<1x8x8x1xf32> to vector<8x8x1xf32>
    %26 = vector.shape_cast %25 : vector<8x8x1xf32> to vector<64x1xf32>
    %c1_26 = arith.constant 1 : index
    %c0_27 = arith.constant 0 : index
    %c0_28 = arith.constant 0 : index
    %27 = vector.load %arg4[%c1_26, %c0_27, %c0_28] : memref<9x1x256xbf16, #tpu.memory_space<vmem>>, vector<1x1x256xbf16>
    %28 = vector.shape_cast %27 : vector<1x1x256xbf16> to vector<1x256xbf16>
    %29 = arith.extf %28 : vector<1x256xbf16> to vector<1x256xf32>
    %30 = vector.broadcast %26 : vector<64x1xf32> to vector<64x256xf32>
    %31 = vector.broadcast %29 : vector<1x256xf32> to vector<64x256xf32>
    %32 = arith.mulf %30, %31 : vector<64x256xf32>
    %33 = arith.addf %23, %32 : vector<64x256xf32>
    %c0_29 = arith.constant 0 : index
    %c0_30 = arith.constant 0 : index
    %c2 = arith.constant 2 : index
    %c0_31 = arith.constant 0 : index
    %34 = vector.load %arg19[%c0_29, %c0_30, %c2, %c0_31] : memref<1x10x10x2xf32, #tpu.memory_space<vmem>>, vector<1x8x8x1xf32>
    %35 = vector.shape_cast %34 : vector<1x8x8x1xf32> to vector<8x8x1xf32>
    %36 = vector.shape_cast %35 : vector<8x8x1xf32> to vector<64x1xf32>
    %c2_32 = arith.constant 2 : index
    %c0_33 = arith.constant 0 : index
    %c0_34 = arith.constant 0 : index
    %37 = vector.load %arg4[%c2_32, %c0_33, %c0_34] : memref<9x1x256xbf16, #tpu.memory_space<vmem>>, vector<1x1x256xbf16>
    %38 = vector.shape_cast %37 : vector<1x1x256xbf16> to vector<1x256xbf16>
    %39 = arith.extf %38 : vector<1x256xbf16> to vector<1x256xf32>
    %40 = vector.broadcast %36 : vector<64x1xf32> to vector<64x256xf32>
    %41 = vector.broadcast %39 : vector<1x256xf32> to vector<64x256xf32>
    %42 = arith.mulf %40, %41 : vector<64x256xf32>
    %43 = arith.addf %33, %42 : vector<64x256xf32>
    %c0_35 = arith.constant 0 : index
    %c1_36 = arith.constant 1 : index
    %c0_37 = arith.constant 0 : index
    %c0_38 = arith.constant 0 : index
    %44 = vector.load %arg19[%c0_35, %c1_36, %c0_37, %c0_38] : memref<1x10x10x2xf32, #tpu.memory_space<vmem>>, vector<1x8x8x1xf32>
    %45 = vector.shape_cast %44 : vector<1x8x8x1xf32> to vector<8x8x1xf32>
    %46 = vector.shape_cast %45 : vector<8x8x1xf32> to vector<64x1xf32>
    %c3 = arith.constant 3 : index
    %c0_39 = arith.constant 0 : index
    %c0_40 = arith.constant 0 : index
    %47 = vector.load %arg4[%c3, %c0_39, %c0_40] : memref<9x1x256xbf16, #tpu.memory_space<vmem>>, vector<1x1x256xbf16>
    %48 = vector.shape_cast %47 : vector<1x1x256xbf16> to vector<1x256xbf16>
    %49 = arith.extf %48 : vector<1x256xbf16> to vector<1x256xf32>
    %50 = vector.broadcast %46 : vector<64x1xf32> to vector<64x256xf32>
    %51 = vector.broadcast %49 : vector<1x256xf32> to vector<64x256xf32>
    %52 = arith.mulf %50, %51 : vector<64x256xf32>
    %53 = arith.addf %43, %52 : vector<64x256xf32>
    %c0_41 = arith.constant 0 : index
    %c1_42 = arith.constant 1 : index
    %c1_43 = arith.constant 1 : index
    %c0_44 = arith.constant 0 : index
    %54 = vector.load %arg19[%c0_41, %c1_42, %c1_43, %c0_44] : memref<1x10x10x2xf32, #tpu.memory_space<vmem>>, vector<1x8x8x1xf32>
    %55 = vector.shape_cast %54 : vector<1x8x8x1xf32> to vector<8x8x1xf32>
    %56 = vector.shape_cast %55 : vector<8x8x1xf32> to vector<64x1xf32>
    %c4 = arith.constant 4 : index
    %c0_45 = arith.constant 0 : index
    %c0_46 = arith.constant 0 : index
    %57 = vector.load %arg4[%c4, %c0_45, %c0_46] : memref<9x1x256xbf16, #tpu.memory_space<vmem>>, vector<1x1x256xbf16>
    %58 = vector.shape_cast %57 : vector<1x1x256xbf16> to vector<1x256xbf16>
    %59 = arith.extf %58 : vector<1x256xbf16> to vector<1x256xf32>
    %60 = vector.broadcast %56 : vector<64x1xf32> to vector<64x256xf32>
    %61 = vector.broadcast %59 : vector<1x256xf32> to vector<64x256xf32>
    %62 = arith.mulf %60, %61 : vector<64x256xf32>
    %63 = arith.addf %53, %62 : vector<64x256xf32>
    %c0_47 = arith.constant 0 : index
    %c1_48 = arith.constant 1 : index
    %c2_49 = arith.constant 2 : index
    %c0_50 = arith.constant 0 : index
    %64 = vector.load %arg19[%c0_47, %c1_48, %c2_49, %c0_50] : memref<1x10x10x2xf32, #tpu.memory_space<vmem>>, vector<1x8x8x1xf32>
    %65 = vector.shape_cast %64 : vector<1x8x8x1xf32> to vector<8x8x1xf32>
    %66 = vector.shape_cast %65 : vector<8x8x1xf32> to vector<64x1xf32>
    %c5 = arith.constant 5 : index
    %c0_51 = arith.constant 0 : index
    %c0_52 = arith.constant 0 : index
    %67 = vector.load %arg4[%c5, %c0_51, %c0_52] : memref<9x1x256xbf16, #tpu.memory_space<vmem>>, vector<1x1x256xbf16>
    %68 = vector.shape_cast %67 : vector<1x1x256xbf16> to vector<1x256xbf16>
    %69 = arith.extf %68 : vector<1x256xbf16> to vector<1x256xf32>
    %70 = vector.broadcast %66 : vector<64x1xf32> to vector<64x256xf32>
    %71 = vector.broadcast %69 : vector<1x256xf32> to vector<64x256xf32>
    %72 = arith.mulf %70, %71 : vector<64x256xf32>
    %73 = arith.addf %63, %72 : vector<64x256xf32>
    %c0_53 = arith.constant 0 : index
    %c2_54 = arith.constant 2 : index
    %c0_55 = arith.constant 0 : index
    %c0_56 = arith.constant 0 : index
    %74 = vector.load %arg19[%c0_53, %c2_54, %c0_55, %c0_56] : memref<1x10x10x2xf32, #tpu.memory_space<vmem>>, vector<1x8x8x1xf32>
    %75 = vector.shape_cast %74 : vector<1x8x8x1xf32> to vector<8x8x1xf32>
    %76 = vector.shape_cast %75 : vector<8x8x1xf32> to vector<64x1xf32>
    %c6 = arith.constant 6 : index
    %c0_57 = arith.constant 0 : index
    %c0_58 = arith.constant 0 : index
    %77 = vector.load %arg4[%c6, %c0_57, %c0_58] : memref<9x1x256xbf16, #tpu.memory_space<vmem>>, vector<1x1x256xbf16>
    %78 = vector.shape_cast %77 : vector<1x1x256xbf16> to vector<1x256xbf16>
    %79 = arith.extf %78 : vector<1x256xbf16> to vector<1x256xf32>
    %80 = vector.broadcast %76 : vector<64x1xf32> to vector<64x256xf32>
    %81 = vector.broadcast %79 : vector<1x256xf32> to vector<64x256xf32>
    %82 = arith.mulf %80, %81 : vector<64x256xf32>
    %83 = arith.addf %73, %82 : vector<64x256xf32>
    %c0_59 = arith.constant 0 : index
    %c2_60 = arith.constant 2 : index
    %c1_61 = arith.constant 1 : index
    %c0_62 = arith.constant 0 : index
    %84 = vector.load %arg19[%c0_59, %c2_60, %c1_61, %c0_62] : memref<1x10x10x2xf32, #tpu.memory_space<vmem>>, vector<1x8x8x1xf32>
    %85 = vector.shape_cast %84 : vector<1x8x8x1xf32> to vector<8x8x1xf32>
    %86 = vector.shape_cast %85 : vector<8x8x1xf32> to vector<64x1xf32>
    %c7 = arith.constant 7 : index
    %c0_63 = arith.constant 0 : index
    %c0_64 = arith.constant 0 : index
    %87 = vector.load %arg4[%c7, %c0_63, %c0_64] : memref<9x1x256xbf16, #tpu.memory_space<vmem>>, vector<1x1x256xbf16>
    %88 = vector.shape_cast %87 : vector<1x1x256xbf16> to vector<1x256xbf16>
    %89 = arith.extf %88 : vector<1x256xbf16> to vector<1x256xf32>
    %90 = vector.broadcast %86 : vector<64x1xf32> to vector<64x256xf32>
    %91 = vector.broadcast %89 : vector<1x256xf32> to vector<64x256xf32>
    %92 = arith.mulf %90, %91 : vector<64x256xf32>
    %93 = arith.addf %83, %92 : vector<64x256xf32>
    %c0_65 = arith.constant 0 : index
    %c2_66 = arith.constant 2 : index
    %c2_67 = arith.constant 2 : index
    %c0_68 = arith.constant 0 : index
    %94 = vector.load %arg19[%c0_65, %c2_66, %c2_67, %c0_68] : memref<1x10x10x2xf32, #tpu.memory_space<vmem>>, vector<1x8x8x1xf32>
    %95 = vector.shape_cast %94 : vector<1x8x8x1xf32> to vector<8x8x1xf32>
    %96 = vector.shape_cast %95 : vector<8x8x1xf32> to vector<64x1xf32>
    %c8 = arith.constant 8 : index
    %c0_69 = arith.constant 0 : index
    %c0_70 = arith.constant 0 : index
    %97 = vector.load %arg4[%c8, %c0_69, %c0_70] : memref<9x1x256xbf16, #tpu.memory_space<vmem>>, vector<1x1x256xbf16>
    %98 = vector.shape_cast %97 : vector<1x1x256xbf16> to vector<1x256xbf16>
    %99 = arith.extf %98 : vector<1x256xbf16> to vector<1x256xf32>
    %100 = vector.broadcast %96 : vector<64x1xf32> to vector<64x256xf32>
    %101 = vector.broadcast %99 : vector<1x256xf32> to vector<64x256xf32>
    %102 = arith.mulf %100, %101 : vector<64x256xf32>
    %103 = arith.addf %93, %102 : vector<64x256xf32>
    %c0_71 = arith.constant 0 : index
    %c0_72 = arith.constant 0 : index
    %104 = vector.load %arg20[%c0_71, %c0_72] : memref<128x256xf32, #tpu.memory_space<vmem>>, vector<64x256xf32>
    tpu.vector_store %arg20[%c0_71, %c0_72], %103 {strides = array<i32>} : memref<128x256xf32, #tpu.memory_space<vmem>>, vector<64x256xf32>,
    %cst_73 = arith.constant 0.000000e+00 : f32
    %105 = vector.broadcast %cst_73 : f32 to vector<64x256xf32>
    %c0_74 = arith.constant 0 : index
    %c0_75 = arith.constant 0 : index
    %c0_76 = arith.constant 0 : index
    %c1_77 = arith.constant 1 : index
    %106 = vector.load %arg19[%c0_74, %c0_75, %c0_76, %c1_77] : memref<1x10x10x2xf32, #tpu.memory_space<vmem>>, vector<1x8x8x1xf32>
    %107 = vector.shape_cast %106 : vector<1x8x8x1xf32> to vector<8x8x1xf32>
    %108 = vector.shape_cast %107 : vector<8x8x1xf32> to vector<64x1xf32>
    %c0_78 = arith.constant 0 : index
    %c0_79 = arith.constant 0 : index
    %c0_80 = arith.constant 0 : index
    %109 = vector.load %arg4[%c0_78, %c0_79, %c0_80] : memref<9x1x256xbf16, #tpu.memory_space<vmem>>, vector<1x1x256xbf16>
    %110 = vector.shape_cast %109 : vector<1x1x256xbf16> to vector<1x256xbf16>
    %111 = arith.extf %110 : vector<1x256xbf16> to vector<1x256xf32>
    %112 = vector.broadcast %108 : vector<64x1xf32> to vector<64x256xf32>
    %113 = vector.broadcast %111 : vector<1x256xf32> to vector<64x256xf32>
    %114 = arith.mulf %112, %113 : vector<64x256xf32>
    %115 = arith.addf %105, %114 : vector<64x256xf32>
    %c0_81 = arith.constant 0 : index
    %c0_82 = arith.constant 0 : index
    %c1_83 = arith.constant 1 : index
    %c1_84 = arith.constant 1 : index
    %116 = vector.load %arg19[%c0_81, %c0_82, %c1_83, %c1_84] : memref<1x10x10x2xf32, #tpu.memory_space<vmem>>, vector<1x8x8x1xf32>
    %117 = vector.shape_cast %116 : vector<1x8x8x1xf32> to vector<8x8x1xf32>
    %118 = vector.shape_cast %117 : vector<8x8x1xf32> to vector<64x1xf32>
    %c1_85 = arith.constant 1 : index
    %c0_86 = arith.constant 0 : index
    %c0_87 = arith.constant 0 : index
    %119 = vector.load %arg4[%c1_85, %c0_86, %c0_87] : memref<9x1x256xbf16, #tpu.memory_space<vmem>>, vector<1x1x256xbf16>
    %120 = vector.shape_cast %119 : vector<1x1x256xbf16> to vector<1x256xbf16>
    %121 = arith.extf %120 : vector<1x256xbf16> to vector<1x256xf32>
    %122 = vector.broadcast %118 : vector<64x1xf32> to vector<64x256xf32>
    %123 = vector.broadcast %121 : vector<1x256xf32> to vector<64x256xf32>
    %124 = arith.mulf %122, %123 : vector<64x256xf32>
    %125 = arith.addf %115, %124 : vector<64x256xf32>
    %c0_88 = arith.constant 0 : index
    %c0_89 = arith.constant 0 : index
    %c2_90 = arith.constant 2 : index
    %c1_91 = arith.constant 1 : index
    %126 = vector.load %arg19[%c0_88, %c0_89, %c2_90, %c1_91] : memref<1x10x10x2xf32, #tpu.memory_space<vmem>>, vector<1x8x8x1xf32>
    %127 = vector.shape_cast %126 : vector<1x8x8x1xf32> to vector<8x8x1xf32>
    %128 = vector.shape_cast %127 : vector<8x8x1xf32> to vector<64x1xf32>
    %c2_92 = arith.constant 2 : index
    %c0_93 = arith.constant 0 : index
    %c0_94 = arith.constant 0 : index
    %129 = vector.load %arg4[%c2_92, %c0_93, %c0_94] : memref<9x1x256xbf16, #tpu.memory_space<vmem>>, vector<1x1x256xbf16>
    %130 = vector.shape_cast %129 : vector<1x1x256xbf16> to vector<1x256xbf16>
    %131 = arith.extf %130 : vector<1x256xbf16> to vector<1x256xf32>
    %132 = vector.broadcast %128 : vector<64x1xf32> to vector<64x256xf32>
    %133 = vector.broadcast %131 : vector<1x256xf32> to vector<64x256xf32>
    %134 = arith.mulf %132, %133 : vector<64x256xf32>
    %135 = arith.addf %125, %134 : vector<64x256xf32>
    %c0_95 = arith.constant 0 : index
    %c1_96 = arith.constant 1 : index
    %c0_97 = arith.constant 0 : index
    %c1_98 = arith.constant 1 : index
    %136 = vector.load %arg19[%c0_95, %c1_96, %c0_97, %c1_98] : memref<1x10x10x2xf32, #tpu.memory_space<vmem>>, vector<1x8x8x1xf32>
    %137 = vector.shape_cast %136 : vector<1x8x8x1xf32> to vector<8x8x1xf32>
    %138 = vector.shape_cast %137 : vector<8x8x1xf32> to vector<64x1xf32>
    %c3_99 = arith.constant 3 : index
    %c0_100 = arith.constant 0 : index
    %c0_101 = arith.constant 0 : index
    %139 = vector.load %arg4[%c3_99, %c0_100, %c0_101] : memref<9x1x256xbf16, #tpu.memory_space<vmem>>, vector<1x1x256xbf16>
    %140 = vector.shape_cast %139 : vector<1x1x256xbf16> to vector<1x256xbf16>
    %141 = arith.extf %140 : vector<1x256xbf16> to vector<1x256xf32>
    %142 = vector.broadcast %138 : vector<64x1xf32> to vector<64x256xf32>
    %143 = vector.broadcast %141 : vector<1x256xf32> to vector<64x256xf32>
    %144 = arith.mulf %142, %143 : vector<64x256xf32>
    %145 = arith.addf %135, %144 : vector<64x256xf32>
    %c0_102 = arith.constant 0 : index
    %c1_103 = arith.constant 1 : index
    %c1_104 = arith.constant 1 : index
    %c1_105 = arith.constant 1 : index
    %146 = vector.load %arg19[%c0_102, %c1_103, %c1_104, %c1_105] : memref<1x10x10x2xf32, #tpu.memory_space<vmem>>, vector<1x8x8x1xf32>
    %147 = vector.shape_cast %146 : vector<1x8x8x1xf32> to vector<8x8x1xf32>
    %148 = vector.shape_cast %147 : vector<8x8x1xf32> to vector<64x1xf32>
    %c4_106 = arith.constant 4 : index
    %c0_107 = arith.constant 0 : index
    %c0_108 = arith.constant 0 : index
    %149 = vector.load %arg4[%c4_106, %c0_107, %c0_108] : memref<9x1x256xbf16, #tpu.memory_space<vmem>>, vector<1x1x256xbf16>
    %150 = vector.shape_cast %149 : vector<1x1x256xbf16> to vector<1x256xbf16>
    %151 = arith.extf %150 : vector<1x256xbf16> to vector<1x256xf32>
    %152 = vector.broadcast %148 : vector<64x1xf32> to vector<64x256xf32>
    %153 = vector.broadcast %151 : vector<1x256xf32> to vector<64x256xf32>
    %154 = arith.mulf %152, %153 : vector<64x256xf32>
    %155 = arith.addf %145, %154 : vector<64x256xf32>
    %c0_109 = arith.constant 0 : index
    %c1_110 = arith.constant 1 : index
    %c2_111 = arith.constant 2 : index
    %c1_112 = arith.constant 1 : index
    %156 = vector.load %arg19[%c0_109, %c1_110, %c2_111, %c1_112] : memref<1x10x10x2xf32, #tpu.memory_space<vmem>>, vector<1x8x8x1xf32>
    %157 = vector.shape_cast %156 : vector<1x8x8x1xf32> to vector<8x8x1xf32>
    %158 = vector.shape_cast %157 : vector<8x8x1xf32> to vector<64x1xf32>
    %c5_113 = arith.constant 5 : index
    %c0_114 = arith.constant 0 : index
    %c0_115 = arith.constant 0 : index
    %159 = vector.load %arg4[%c5_113, %c0_114, %c0_115] : memref<9x1x256xbf16, #tpu.memory_space<vmem>>, vector<1x1x256xbf16>
    %160 = vector.shape_cast %159 : vector<1x1x256xbf16> to vector<1x256xbf16>
    %161 = arith.extf %160 : vector<1x256xbf16> to vector<1x256xf32>
    %162 = vector.broadcast %158 : vector<64x1xf32> to vector<64x256xf32>
    %163 = vector.broadcast %161 : vector<1x256xf32> to vector<64x256xf32>
    %164 = arith.mulf %162, %163 : vector<64x256xf32>
    %165 = arith.addf %155, %164 : vector<64x256xf32>
    %c0_116 = arith.constant 0 : index
    %c2_117 = arith.constant 2 : index
    %c0_118 = arith.constant 0 : index
    %c1_119 = arith.constant 1 : index
    %166 = vector.load %arg19[%c0_116, %c2_117, %c0_118, %c1_119] : memref<1x10x10x2xf32, #tpu.memory_space<vmem>>, vector<1x8x8x1xf32>
    %167 = vector.shape_cast %166 : vector<1x8x8x1xf32> to vector<8x8x1xf32>
    %168 = vector.shape_cast %167 : vector<8x8x1xf32> to vector<64x1xf32>
    %c6_120 = arith.constant 6 : index
    %c0_121 = arith.constant 0 : index
    %c0_122 = arith.constant 0 : index
    %169 = vector.load %arg4[%c6_120, %c0_121, %c0_122] : memref<9x1x256xbf16, #tpu.memory_space<vmem>>, vector<1x1x256xbf16>
    %170 = vector.shape_cast %169 : vector<1x1x256xbf16> to vector<1x256xbf16>
    %171 = arith.extf %170 : vector<1x256xbf16> to vector<1x256xf32>
    %172 = vector.broadcast %168 : vector<64x1xf32> to vector<64x256xf32>
    %173 = vector.broadcast %171 : vector<1x256xf32> to vector<64x256xf32>
    %174 = arith.mulf %172, %173 : vector<64x256xf32>
    %175 = arith.addf %165, %174 : vector<64x256xf32>
    %c0_123 = arith.constant 0 : index
    %c2_124 = arith.constant 2 : index
    %c1_125 = arith.constant 1 : index
    %c1_126 = arith.constant 1 : index
    %176 = vector.load %arg19[%c0_123, %c2_124, %c1_125, %c1_126] : memref<1x10x10x2xf32, #tpu.memory_space<vmem>>, vector<1x8x8x1xf32>
    %177 = vector.shape_cast %176 : vector<1x8x8x1xf32> to vector<8x8x1xf32>
    %178 = vector.shape_cast %177 : vector<8x8x1xf32> to vector<64x1xf32>
    %c7_127 = arith.constant 7 : index
    %c0_128 = arith.constant 0 : index
    %c0_129 = arith.constant 0 : index
    %179 = vector.load %arg4[%c7_127, %c0_128, %c0_129] : memref<9x1x256xbf16, #tpu.memory_space<vmem>>, vector<1x1x256xbf16>
    %180 = vector.shape_cast %179 : vector<1x1x256xbf16> to vector<1x256xbf16>
    %181 = arith.extf %180 : vector<1x256xbf16> to vector<1x256xf32>
    %182 = vector.broadcast %178 : vector<64x1xf32> to vector<64x256xf32>
    %183 = vector.broadcast %181 : vector<1x256xf32> to vector<64x256xf32>
    %184 = arith.mulf %182, %183 : vector<64x256xf32>
    %185 = arith.addf %175, %184 : vector<64x256xf32>
    %c0_130 = arith.constant 0 : index
    %c2_131 = arith.constant 2 : index
    %c2_132 = arith.constant 2 : index
    %c1_133 = arith.constant 1 : index
    %186 = vector.load %arg19[%c0_130, %c2_131, %c2_132, %c1_133] : memref<1x10x10x2xf32, #tpu.memory_space<vmem>>, vector<1x8x8x1xf32>
    %187 = vector.shape_cast %186 : vector<1x8x8x1xf32> to vector<8x8x1xf32>
    %188 = vector.shape_cast %187 : vector<8x8x1xf32> to vector<64x1xf32>
    %c8_134 = arith.constant 8 : index
    %c0_135 = arith.constant 0 : index
    %c0_136 = arith.constant 0 : index
    %189 = vector.load %arg4[%c8_134, %c0_135, %c0_136] : memref<9x1x256xbf16, #tpu.memory_space<vmem>>, vector<1x1x256xbf16>
    %190 = vector.shape_cast %189 : vector<1x1x256xbf16> to vector<1x256xbf16>
    %191 = arith.extf %190 : vector<1x256xbf16> to vector<1x256xf32>
    %192 = vector.broadcast %188 : vector<64x1xf32> to vector<64x256xf32>
    %193 = vector.broadcast %191 : vector<1x256xf32> to vector<64x256xf32>
    %194 = arith.mulf %192, %193 : vector<64x256xf32>
    %195 = arith.addf %185, %194 : vector<64x256xf32>
    %c64 = arith.constant 64 : index
    %c0_137 = arith.constant 0 : index
    %196 = vector.load %arg20[%c64, %c0_137] : memref<128x256xf32, #tpu.memory_space<vmem>>, vector<64x256xf32>
    tpu.vector_store %arg20[%c64, %c0_137], %195 {strides = array<i32>} : memref<128x256xf32, #tpu.memory_space<vmem>>, vector<64x256xf32>,
    %c0_138 = arith.constant 0 : index
    %c0_139 = arith.constant 0 : index
    %197 = vector.load %arg20[%c0_138, %c0_139] : memref<128x256xf32, #tpu.memory_space<vmem>>, vector<128x256xf32>
    %c0_140 = arith.constant 0 : index
    %c0_141 = arith.constant 0 : index
    %198 = vector.load %arg5[%c0_140, %c0_141] : memref<1x256xf32, #tpu.memory_space<vmem>>, vector<1x256xf32>
    %199 = vector.broadcast %198 : vector<1x256xf32> to vector<128x256xf32>
    %200 = arith.addf %197, %199 : vector<128x256xf32>
    %c0_142 = arith.constant 0 : index
    %c0_143 = arith.constant 0 : index
    %201 = vector.load %arg6[%c0_142, %c0_143] : memref<1x256xf32, #tpu.memory_space<vmem>>, vector<1x256xf32>
    %c0_144 = arith.constant 0 : index
    %c0_145 = arith.constant 0 : index
    %202 = vector.load %arg7[%c0_144, %c0_145] : memref<1x256xf32, #tpu.memory_space<vmem>>, vector<1x256xf32>
    %cst_146 = arith.constant dense<0.000000e+00> : vector<256xf32>
    %203 = vector.multi_reduction <add>, %200, %cst_146 [0] : vector<128x256xf32> to vector<256xf32>
    %204 = vector.shape_cast %203 : vector<256xf32> to vector<1x256xf32>
    %cst_147 = arith.constant 1.280000e+02 : f32
    %205 = vector.broadcast %cst_147 : f32 to vector<1x256xf32>
    %206 = arith.divf %204, %205 : vector<1x256xf32>
    %207 = arith.mulf %200, %200 : vector<128x256xf32>
    %cst_148 = arith.constant dense<0.000000e+00> : vector<256xf32>
    %208 = vector.multi_reduction <add>, %207, %cst_148 [0] : vector<128x256xf32> to vector<256xf32>
    %209 = vector.shape_cast %208 : vector<256xf32> to vector<1x256xf32>
    %cst_149 = arith.constant 1.280000e+02 : f32
    %210 = vector.broadcast %cst_149 : f32 to vector<1x256xf32>
    %211 = arith.divf %209, %210 : vector<1x256xf32>
    %212 = arith.mulf %206, %206 : vector<1x256xf32>
    %213 = arith.subf %211, %212 : vector<1x256xf32>
    %cst_150 = arith.constant 0.000000e+00 : f32
    %214 = vector.broadcast %cst_150 : f32 to vector<1x256xf32>
    %215 = arith.maximumf %213, %214 : vector<1x256xf32>
    %216 = vector.broadcast %206 : vector<1x256xf32> to vector<128x256xf32>
    %217 = arith.subf %200, %216 : vector<128x256xf32>
    %218 = vector.broadcast %201 : vector<1x256xf32> to vector<128x256xf32>
    %219 = arith.mulf %218, %217 : vector<128x256xf32>
    %cst_151 = arith.constant 9.99999974E-6 : f32
    %220 = vector.broadcast %cst_151 : f32 to vector<1x256xf32>
    %221 = arith.addf %215, %220 : vector<1x256xf32>
    %222 = math.rsqrt %221 : vector<1x256xf32>
    %223 = vector.broadcast %222 : vector<1x256xf32> to vector<128x256xf32>
    %224 = arith.mulf %219, %223 : vector<128x256xf32>
    %225 = vector.broadcast %202 : vector<1x256xf32> to vector<128x256xf32>
    %226 = arith.addf %224, %225 : vector<128x256xf32>
    %cst_152 = arith.constant 0.000000e+00 : f32
    %227 = vector.broadcast %cst_152 : f32 to vector<128x256xf32>
    %228 = arith.maximumf %226, %227 : vector<128x256xf32>
    %cst_153 = arith.constant 0.000000e+00 : f32
    %229 = vector.broadcast %cst_153 : f32 to vector<2x10x10x256xf32>
    %c0_154 = arith.constant 0 : index
    %c0_155 = arith.constant 0 : index
    %c0_156 = arith.constant 0 : index
    %c0_157 = arith.constant 0 : index
    %230 = vector.load %arg21[%c0_154, %c0_155, %c0_156, %c0_157] : memref<2x10x10x256xf32, #tpu.memory_space<vmem>>, vector<2x10x10x256xf32>
    tpu.vector_store %arg21[%c0_154, %c0_155, %c0_156, %c0_157], %229 {strides = array<i32>} : memref<2x10x10x256xf32, #tpu.memory_space<vmem>>, vector<2x10x10x256xf32>,
    %231 = vector.shape_cast %228 : vector<128x256xf32> to vector<2x8x8x256xf32>
    %c0_158 = arith.constant 0 : index
    %c1_159 = arith.constant 1 : index
    %c1_160 = arith.constant 1 : index
    %c0_161 = arith.constant 0 : index
    %232 = vector.load %arg21[%c0_158, %c1_159, %c1_160, %c0_161] : memref<2x10x10x256xf32, #tpu.memory_space<vmem>>, vector<2x8x8x256xf32>
    tpu.vector_store %arg21[%c0_158, %c1_159, %c1_160, %c0_161], %231 {strides = array<i32>} : memref<2x10x10x256xf32, #tpu.memory_space<vmem>>, vector<2x8x8x256xf32>,
    %cst_162 = arith.constant 0.000000e+00 : f32
    %233 = vector.broadcast %cst_162 : f32 to vector<128x128xf32>
    %c0_163 = arith.constant 0 : index
    %c0_164 = arith.constant 0 : index
    %c0_165 = arith.constant 0 : index
    %c0_166 = arith.constant 0 : index
    %234 = vector.load %arg21[%c0_163, %c0_164, %c0_165, %c0_166] : memref<2x10x10x256xf32, #tpu.memory_space<vmem>>, vector<2x8x8x256xf32>
    %235 = vector.shape_cast %234 : vector<2x8x8x256xf32> to vector<128x256xf32>
    %236 = arith.truncf %235 : vector<128x256xf32> to vector<128x256xbf16>
    %c0_167 = arith.constant 0 : index
    %c0_168 = arith.constant 0 : index
    %c0_169 = arith.constant 0 : index
    %237 = vector.load %arg8[%c0_167, %c0_168, %c0_169] : memref<9x256x128xbf16, #tpu.memory_space<vmem>>, vector<1x256x128xbf16>
    %238 = vector.shape_cast %237 : vector<1x256x128xbf16> to vector<256x128xbf16>
    %cst_170 = arith.constant dense<0.000000e+00> : vector<128x128xf32>
    %239 = tpu.matmul %236, %238, %cst_170 {dimension_numbers = #tpu.dot_dimension_numbers<[1], [0], [0], [1], [0, 0, 1, 1], [], []>} : vector<128x256xbf16>, vector<256x128xbf16>, vector<128x128xf32> -> vector<128x128xf32>
    %240 = arith.addf %233, %239 : vector<128x128xf32>
    %c0_171 = arith.constant 0 : index
    %c0_172 = arith.constant 0 : index
    %c1_173 = arith.constant 1 : index
    %c0_174 = arith.constant 0 : index
    %241 = vector.load %arg21[%c0_171, %c0_172, %c1_173, %c0_174] : memref<2x10x10x256xf32, #tpu.memory_space<vmem>>, vector<2x8x8x256xf32>
    %242 = vector.shape_cast %241 : vector<2x8x8x256xf32> to vector<128x256xf32>
    %243 = arith.truncf %242 : vector<128x256xf32> to vector<128x256xbf16>
    %c1_175 = arith.constant 1 : index
    %c0_176 = arith.constant 0 : index
    %c0_177 = arith.constant 0 : index
    %244 = vector.load %arg8[%c1_175, %c0_176, %c0_177] : memref<9x256x128xbf16, #tpu.memory_space<vmem>>, vector<1x256x128xbf16>
    %245 = vector.shape_cast %244 : vector<1x256x128xbf16> to vector<256x128xbf16>
    %cst_178 = arith.constant dense<0.000000e+00> : vector<128x128xf32>
    %246 = tpu.matmul %243, %245, %cst_178 {dimension_numbers = #tpu.dot_dimension_numbers<[1], [0], [0], [1], [0, 0, 1, 1], [], []>} : vector<128x256xbf16>, vector<256x128xbf16>, vector<128x128xf32> -> vector<128x128xf32>
    %247 = arith.addf %240, %246 : vector<128x128xf32>
    %c0_179 = arith.constant 0 : index
    %c0_180 = arith.constant 0 : index
    %c2_181 = arith.constant 2 : index
    %c0_182 = arith.constant 0 : index
    %248 = vector.load %arg21[%c0_179, %c0_180, %c2_181, %c0_182] : memref<2x10x10x256xf32, #tpu.memory_space<vmem>>, vector<2x8x8x256xf32>
    %249 = vector.shape_cast %248 : vector<2x8x8x256xf32> to vector<128x256xf32>
    %250 = arith.truncf %249 : vector<128x256xf32> to vector<128x256xbf16>
    %c2_183 = arith.constant 2 : index
    %c0_184 = arith.constant 0 : index
    %c0_185 = arith.constant 0 : index
    %251 = vector.load %arg8[%c2_183, %c0_184, %c0_185] : memref<9x256x128xbf16, #tpu.memory_space<vmem>>, vector<1x256x128xbf16>
    %252 = vector.shape_cast %251 : vector<1x256x128xbf16> to vector<256x128xbf16>
    %cst_186 = arith.constant dense<0.000000e+00> : vector<128x128xf32>
    %253 = tpu.matmul %250, %252, %cst_186 {dimension_numbers = #tpu.dot_dimension_numbers<[1], [0], [0], [1], [0, 0, 1, 1], [], []>} : vector<128x256xbf16>, vector<256x128xbf16>, vector<128x128xf32> -> vector<128x128xf32>
    %254 = arith.addf %247, %253 : vector<128x128xf32>
    %c0_187 = arith.constant 0 : index
    %c1_188 = arith.constant 1 : index
    %c0_189 = arith.constant 0 : index
    %c0_190 = arith.constant 0 : index
    %255 = vector.load %arg21[%c0_187, %c1_188, %c0_189, %c0_190] : memref<2x10x10x256xf32, #tpu.memory_space<vmem>>, vector<2x8x8x256xf32>
    %256 = vector.shape_cast %255 : vector<2x8x8x256xf32> to vector<128x256xf32>
    %257 = arith.truncf %256 : vector<128x256xf32> to vector<128x256xbf16>
    %c3_191 = arith.constant 3 : index
    %c0_192 = arith.constant 0 : index
    %c0_193 = arith.constant 0 : index
    %258 = vector.load %arg8[%c3_191, %c0_192, %c0_193] : memref<9x256x128xbf16, #tpu.memory_space<vmem>>, vector<1x256x128xbf16>
    %259 = vector.shape_cast %258 : vector<1x256x128xbf16> to vector<256x128xbf16>
    %cst_194 = arith.constant dense<0.000000e+00> : vector<128x128xf32>
    %260 = tpu.matmul %257, %259, %cst_194 {dimension_numbers = #tpu.dot_dimension_numbers<[1], [0], [0], [1], [0, 0, 1, 1], [], []>} : vector<128x256xbf16>, vector<256x128xbf16>, vector<128x128xf32> -> vector<128x128xf32>
    %261 = arith.addf %254, %260 : vector<128x128xf32>
    %c0_195 = arith.constant 0 : index
    %c1_196 = arith.constant 1 : index
    %c1_197 = arith.constant 1 : index
    %c0_198 = arith.constant 0 : index
    %262 = vector.load %arg21[%c0_195, %c1_196, %c1_197, %c0_198] : memref<2x10x10x256xf32, #tpu.memory_space<vmem>>, vector<2x8x8x256xf32>
    %263 = vector.shape_cast %262 : vector<2x8x8x256xf32> to vector<128x256xf32>
    %264 = arith.truncf %263 : vector<128x256xf32> to vector<128x256xbf16>
    %c4_199 = arith.constant 4 : index
    %c0_200 = arith.constant 0 : index
    %c0_201 = arith.constant 0 : index
    %265 = vector.load %arg8[%c4_199, %c0_200, %c0_201] : memref<9x256x128xbf16, #tpu.memory_space<vmem>>, vector<1x256x128xbf16>
    %266 = vector.shape_cast %265 : vector<1x256x128xbf16> to vector<256x128xbf16>
    %cst_202 = arith.constant dense<0.000000e+00> : vector<128x128xf32>
    %267 = tpu.matmul %264, %266, %cst_202 {dimension_numbers = #tpu.dot_dimension_numbers<[1], [0], [0], [1], [0, 0, 1, 1], [], []>} : vector<128x256xbf16>, vector<256x128xbf16>, vector<128x128xf32> -> vector<128x128xf32>
    %268 = arith.addf %261, %267 : vector<128x128xf32>
    %c0_203 = arith.constant 0 : index
    %c1_204 = arith.constant 1 : index
    %c2_205 = arith.constant 2 : index
    %c0_206 = arith.constant 0 : index
    %269 = vector.load %arg21[%c0_203, %c1_204, %c2_205, %c0_206] : memref<2x10x10x256xf32, #tpu.memory_space<vmem>>, vector<2x8x8x256xf32>
    %270 = vector.shape_cast %269 : vector<2x8x8x256xf32> to vector<128x256xf32>
    %271 = arith.truncf %270 : vector<128x256xf32> to vector<128x256xbf16>
    %c5_207 = arith.constant 5 : index
    %c0_208 = arith.constant 0 : index
    %c0_209 = arith.constant 0 : index
    %272 = vector.load %arg8[%c5_207, %c0_208, %c0_209] : memref<9x256x128xbf16, #tpu.memory_space<vmem>>, vector<1x256x128xbf16>
    %273 = vector.shape_cast %272 : vector<1x256x128xbf16> to vector<256x128xbf16>
    %cst_210 = arith.constant dense<0.000000e+00> : vector<128x128xf32>
    %274 = tpu.matmul %271, %273, %cst_210 {dimension_numbers = #tpu.dot_dimension_numbers<[1], [0], [0], [1], [0, 0, 1, 1], [], []>} : vector<128x256xbf16>, vector<256x128xbf16>, vector<128x128xf32> -> vector<128x128xf32>
    %275 = arith.addf %268, %274 : vector<128x128xf32>
    %c0_211 = arith.constant 0 : index
    %c2_212 = arith.constant 2 : index
    %c0_213 = arith.constant 0 : index
    %c0_214 = arith.constant 0 : index
    %276 = vector.load %arg21[%c0_211, %c2_212, %c0_213, %c0_214] : memref<2x10x10x256xf32, #tpu.memory_space<vmem>>, vector<2x8x8x256xf32>
    %277 = vector.shape_cast %276 : vector<2x8x8x256xf32> to vector<128x256xf32>
    %278 = arith.truncf %277 : vector<128x256xf32> to vector<128x256xbf16>
    %c6_215 = arith.constant 6 : index
    %c0_216 = arith.constant 0 : index
    %c0_217 = arith.constant 0 : index
    %279 = vector.load %arg8[%c6_215, %c0_216, %c0_217] : memref<9x256x128xbf16, #tpu.memory_space<vmem>>, vector<1x256x128xbf16>
    %280 = vector.shape_cast %279 : vector<1x256x128xbf16> to vector<256x128xbf16>
    %cst_218 = arith.constant dense<0.000000e+00> : vector<128x128xf32>
    %281 = tpu.matmul %278, %280, %cst_218 {dimension_numbers = #tpu.dot_dimension_numbers<[1], [0], [0], [1], [0, 0, 1, 1], [], []>} : vector<128x256xbf16>, vector<256x128xbf16>, vector<128x128xf32> -> vector<128x128xf32>
    %282 = arith.addf %275, %281 : vector<128x128xf32>
    %c0_219 = arith.constant 0 : index
    %c2_220 = arith.constant 2 : index
    %c1_221 = arith.constant 1 : index
    %c0_222 = arith.constant 0 : index
    %283 = vector.load %arg21[%c0_219, %c2_220, %c1_221, %c0_222] : memref<2x10x10x256xf32, #tpu.memory_space<vmem>>, vector<2x8x8x256xf32>
    %284 = vector.shape_cast %283 : vector<2x8x8x256xf32> to vector<128x256xf32>
    %285 = arith.truncf %284 : vector<128x256xf32> to vector<128x256xbf16>
    %c7_223 = arith.constant 7 : index
    %c0_224 = arith.constant 0 : index
    %c0_225 = arith.constant 0 : index
    %286 = vector.load %arg8[%c7_223, %c0_224, %c0_225] : memref<9x256x128xbf16, #tpu.memory_space<vmem>>, vector<1x256x128xbf16>
    %287 = vector.shape_cast %286 : vector<1x256x128xbf16> to vector<256x128xbf16>
    %cst_226 = arith.constant dense<0.000000e+00> : vector<128x128xf32>
    %288 = tpu.matmul %285, %287, %cst_226 {dimension_numbers = #tpu.dot_dimension_numbers<[1], [0], [0], [1], [0, 0, 1, 1], [], []>} : vector<128x256xbf16>, vector<256x128xbf16>, vector<128x128xf32> -> vector<128x128xf32>
    %289 = arith.addf %282, %288 : vector<128x128xf32>
    %c0_227 = arith.constant 0 : index
    %c2_228 = arith.constant 2 : index
    %c2_229 = arith.constant 2 : index
    %c0_230 = arith.constant 0 : index
    %290 = vector.load %arg21[%c0_227, %c2_228, %c2_229, %c0_230] : memref<2x10x10x256xf32, #tpu.memory_space<vmem>>, vector<2x8x8x256xf32>
    %291 = vector.shape_cast %290 : vector<2x8x8x256xf32> to vector<128x256xf32>
    %292 = arith.truncf %291 : vector<128x256xf32> to vector<128x256xbf16>
    %c8_231 = arith.constant 8 : index
    %c0_232 = arith.constant 0 : index
    %c0_233 = arith.constant 0 : index
    %293 = vector.load %arg8[%c8_231, %c0_232, %c0_233] : memref<9x256x128xbf16, #tpu.memory_space<vmem>>, vector<1x256x128xbf16>
    %294 = vector.shape_cast %293 : vector<1x256x128xbf16> to vector<256x128xbf16>
    %cst_234 = arith.constant dense<0.000000e+00> : vector<128x128xf32>
    %295 = tpu.matmul %292, %294, %cst_234 {dimension_numbers = #tpu.dot_dimension_numbers<[1], [0], [0], [1], [0, 0, 1, 1], [], []>} : vector<128x256xbf16>, vector<256x128xbf16>, vector<128x128xf32> -> vector<128x128xf32>
    %296 = arith.addf %289, %295 : vector<128x128xf32>
    %c0_235 = arith.constant 0 : index
    %c0_236 = arith.constant 0 : index
    %297 = vector.load %arg9[%c0_235, %c0_236] : memref<1x128xf32, #tpu.memory_space<vmem>>, vector<1x128xf32>
    %298 = vector.broadcast %297 : vector<1x128xf32> to vector<128x128xf32>
    %299 = arith.addf %296, %298 : vector<128x128xf32>
    %c0_237 = arith.constant 0 : index
    %c0_238 = arith.constant 0 : index
    %300 = vector.load %arg10[%c0_237, %c0_238] : memref<1x128xf32, #tpu.memory_space<vmem>>, vector<1x128xf32>
    %c0_239 = arith.constant 0 : index
    %c0_240 = arith.constant 0 : index
    %301 = vector.load %arg11[%c0_239, %c0_240] : memref<1x128xf32, #tpu.memory_space<vmem>>, vector<1x128xf32>
    %cst_241 = arith.constant dense<0.000000e+00> : vector<128xf32>
    %302 = vector.multi_reduction <add>, %299, %cst_241 [0] : vector<128x128xf32> to vector<128xf32>
    %303 = vector.shape_cast %302 : vector<128xf32> to vector<1x128xf32>
    %cst_242 = arith.constant 1.280000e+02 : f32
    %304 = vector.broadcast %cst_242 : f32 to vector<1x128xf32>
    %305 = arith.divf %303, %304 : vector<1x128xf32>
    %306 = arith.mulf %299, %299 : vector<128x128xf32>
    %cst_243 = arith.constant dense<0.000000e+00> : vector<128xf32>
    %307 = vector.multi_reduction <add>, %306, %cst_243 [0] : vector<128x128xf32> to vector<128xf32>
    %308 = vector.shape_cast %307 : vector<128xf32> to vector<1x128xf32>
    %cst_244 = arith.constant 1.280000e+02 : f32
    %309 = vector.broadcast %cst_244 : f32 to vector<1x128xf32>
    %310 = arith.divf %308, %309 : vector<1x128xf32>
    %311 = arith.mulf %305, %305 : vector<1x128xf32>
    %312 = arith.subf %310, %311 : vector<1x128xf32>
    %cst_245 = arith.constant 0.000000e+00 : f32
    %313 = vector.broadcast %cst_245 : f32 to vector<1x128xf32>
    %314 = arith.maximumf %312, %313 : vector<1x128xf32>
    %315 = vector.broadcast %305 : vector<1x128xf32> to vector<128x128xf32>
    %316 = arith.subf %299, %315 : vector<128x128xf32>
    %317 = vector.broadcast %300 : vector<1x128xf32> to vector<128x128xf32>
    %318 = arith.mulf %317, %316 : vector<128x128xf32>
    %cst_246 = arith.constant 9.99999974E-6 : f32
    %319 = vector.broadcast %cst_246 : f32 to vector<1x128xf32>
    %320 = arith.addf %314, %319 : vector<1x128xf32>
    %321 = math.rsqrt %320 : vector<1x128xf32>
    %322 = vector.broadcast %321 : vector<1x128xf32> to vector<128x128xf32>
    %323 = arith.mulf %318, %322 : vector<128x128xf32>
    %324 = vector.broadcast %301 : vector<1x128xf32> to vector<128x128xf32>
    %325 = arith.addf %323, %324 : vector<128x128xf32>
    %cst_247 = arith.constant 0.000000e+00 : f32
    %326 = vector.broadcast %cst_247 : f32 to vector<128x128xf32>
    %327 = arith.maximumf %325, %326 : vector<128x128xf32>
    %cst_248 = arith.constant 0.000000e+00 : f32
    %328 = vector.broadcast %cst_248 : f32 to vector<2x10x10x128xf32>
    %c0_249 = arith.constant 0 : index
    %c0_250 = arith.constant 0 : index
    %c0_251 = arith.constant 0 : index
    %c0_252 = arith.constant 0 : index
    %329 = vector.load %arg22[%c0_249, %c0_250, %c0_251, %c0_252] : memref<2x10x10x128xf32, #tpu.memory_space<vmem>>, vector<2x10x10x128xf32>
    tpu.vector_store %arg22[%c0_249, %c0_250, %c0_251, %c0_252], %328 {strides = array<i32>} : memref<2x10x10x128xf32, #tpu.memory_space<vmem>>, vector<2x10x10x128xf32>,
    %330 = vector.shape_cast %327 : vector<128x128xf32> to vector<2x8x8x128xf32>
    %c0_253 = arith.constant 0 : index
    %c1_254 = arith.constant 1 : index
    %c1_255 = arith.constant 1 : index
    %c0_256 = arith.constant 0 : index
    %331 = vector.load %arg22[%c0_253, %c1_254, %c1_255, %c0_256] : memref<2x10x10x128xf32, #tpu.memory_space<vmem>>, vector<2x8x8x128xf32>
    tpu.vector_store %arg22[%c0_253, %c1_254, %c1_255, %c0_256], %330 {strides = array<i32>} : memref<2x10x10x128xf32, #tpu.memory_space<vmem>>, vector<2x8x8x128xf32>,
    %cst_257 = arith.constant 0.000000e+00 : f32
    %332 = vector.broadcast %cst_257 : f32 to vector<128x64xf32>
    %c0_258 = arith.constant 0 : index
    %c0_259 = arith.constant 0 : index
    %c0_260 = arith.constant 0 : index
    %c0_261 = arith.constant 0 : index
    %333 = vector.load %arg22[%c0_258, %c0_259, %c0_260, %c0_261] : memref<2x10x10x128xf32, #tpu.memory_space<vmem>>, vector<2x8x8x128xf32>
    %334 = vector.shape_cast %333 : vector<2x8x8x128xf32> to vector<128x128xf32>
    %335 = arith.truncf %334 : vector<128x128xf32> to vector<128x128xbf16>
    %c0_262 = arith.constant 0 : index
    %c0_263 = arith.constant 0 : index
    %c0_264 = arith.constant 0 : index
    %336 = vector.load %arg12[%c0_262, %c0_263, %c0_264] : memref<9x128x64xbf16, #tpu.memory_space<vmem>>, vector<1x128x64xbf16>
    %337 = vector.shape_cast %336 : vector<1x128x64xbf16> to vector<128x64xbf16>
    %cst_265 = arith.constant dense<0.000000e+00> : vector<128x64xf32>
    %338 = tpu.matmul %335, %337, %cst_265 {dimension_numbers = #tpu.dot_dimension_numbers<[1], [0], [0], [1], [0, 0, 1, 1], [], []>} : vector<128x128xbf16>, vector<128x64xbf16>, vector<128x64xf32> -> vector<128x64xf32>
    %339 = arith.addf %332, %338 : vector<128x64xf32>
    %c0_266 = arith.constant 0 : index
    %c0_267 = arith.constant 0 : index
    %c1_268 = arith.constant 1 : index
    %c0_269 = arith.constant 0 : index
    %340 = vector.load %arg22[%c0_266, %c0_267, %c1_268, %c0_269] : memref<2x10x10x128xf32, #tpu.memory_space<vmem>>, vector<2x8x8x128xf32>
    %341 = vector.shape_cast %340 : vector<2x8x8x128xf32> to vector<128x128xf32>
    %342 = arith.truncf %341 : vector<128x128xf32> to vector<128x128xbf16>
    %c1_270 = arith.constant 1 : index
    %c0_271 = arith.constant 0 : index
    %c0_272 = arith.constant 0 : index
    %343 = vector.load %arg12[%c1_270, %c0_271, %c0_272] : memref<9x128x64xbf16, #tpu.memory_space<vmem>>, vector<1x128x64xbf16>
    %344 = vector.shape_cast %343 : vector<1x128x64xbf16> to vector<128x64xbf16>
    %cst_273 = arith.constant dense<0.000000e+00> : vector<128x64xf32>
    %345 = tpu.matmul %342, %344, %cst_273 {dimension_numbers = #tpu.dot_dimension_numbers<[1], [0], [0], [1], [0, 0, 1, 1], [], []>} : vector<128x128xbf16>, vector<128x64xbf16>, vector<128x64xf32> -> vector<128x64xf32>
    %346 = arith.addf %339, %345 : vector<128x64xf32>
    %c0_274 = arith.constant 0 : index
    %c0_275 = arith.constant 0 : index
    %c2_276 = arith.constant 2 : index
    %c0_277 = arith.constant 0 : index
    %347 = vector.load %arg22[%c0_274, %c0_275, %c2_276, %c0_277] : memref<2x10x10x128xf32, #tpu.memory_space<vmem>>, vector<2x8x8x128xf32>
    %348 = vector.shape_cast %347 : vector<2x8x8x128xf32> to vector<128x128xf32>
    %349 = arith.truncf %348 : vector<128x128xf32> to vector<128x128xbf16>
    %c2_278 = arith.constant 2 : index
    %c0_279 = arith.constant 0 : index
    %c0_280 = arith.constant 0 : index
    %350 = vector.load %arg12[%c2_278, %c0_279, %c0_280] : memref<9x128x64xbf16, #tpu.memory_space<vmem>>, vector<1x128x64xbf16>
    %351 = vector.shape_cast %350 : vector<1x128x64xbf16> to vector<128x64xbf16>
    %cst_281 = arith.constant dense<0.000000e+00> : vector<128x64xf32>
    %352 = tpu.matmul %349, %351, %cst_281 {dimension_numbers = #tpu.dot_dimension_numbers<[1], [0], [0], [1], [0, 0, 1, 1], [], []>} : vector<128x128xbf16>, vector<128x64xbf16>, vector<128x64xf32> -> vector<128x64xf32>
    %353 = arith.addf %346, %352 : vector<128x64xf32>
    %c0_282 = arith.constant 0 : index
    %c1_283 = arith.constant 1 : index
    %c0_284 = arith.constant 0 : index
    %c0_285 = arith.constant 0 : index
    %354 = vector.load %arg22[%c0_282, %c1_283, %c0_284, %c0_285] : memref<2x10x10x128xf32, #tpu.memory_space<vmem>>, vector<2x8x8x128xf32>
    %355 = vector.shape_cast %354 : vector<2x8x8x128xf32> to vector<128x128xf32>
    %356 = arith.truncf %355 : vector<128x128xf32> to vector<128x128xbf16>
    %c3_286 = arith.constant 3 : index
    %c0_287 = arith.constant 0 : index
    %c0_288 = arith.constant 0 : index
    %357 = vector.load %arg12[%c3_286, %c0_287, %c0_288] : memref<9x128x64xbf16, #tpu.memory_space<vmem>>, vector<1x128x64xbf16>
    %358 = vector.shape_cast %357 : vector<1x128x64xbf16> to vector<128x64xbf16>
    %cst_289 = arith.constant dense<0.000000e+00> : vector<128x64xf32>
    %359 = tpu.matmul %356, %358, %cst_289 {dimension_numbers = #tpu.dot_dimension_numbers<[1], [0], [0], [1], [0, 0, 1, 1], [], []>} : vector<128x128xbf16>, vector<128x64xbf16>, vector<128x64xf32> -> vector<128x64xf32>
    %360 = arith.addf %353, %359 : vector<128x64xf32>
    %c0_290 = arith.constant 0 : index
    %c1_291 = arith.constant 1 : index
    %c1_292 = arith.constant 1 : index
    %c0_293 = arith.constant 0 : index
    %361 = vector.load %arg22[%c0_290, %c1_291, %c1_292, %c0_293] : memref<2x10x10x128xf32, #tpu.memory_space<vmem>>, vector<2x8x8x128xf32>
    %362 = vector.shape_cast %361 : vector<2x8x8x128xf32> to vector<128x128xf32>
    %363 = arith.truncf %362 : vector<128x128xf32> to vector<128x128xbf16>
    %c4_294 = arith.constant 4 : index
    %c0_295 = arith.constant 0 : index
    %c0_296 = arith.constant 0 : index
    %364 = vector.load %arg12[%c4_294, %c0_295, %c0_296] : memref<9x128x64xbf16, #tpu.memory_space<vmem>>, vector<1x128x64xbf16>
    %365 = vector.shape_cast %364 : vector<1x128x64xbf16> to vector<128x64xbf16>
    %cst_297 = arith.constant dense<0.000000e+00> : vector<128x64xf32>
    %366 = tpu.matmul %363, %365, %cst_297 {dimension_numbers = #tpu.dot_dimension_numbers<[1], [0], [0], [1], [0, 0, 1, 1], [], []>} : vector<128x128xbf16>, vector<128x64xbf16>, vector<128x64xf32> -> vector<128x64xf32>
    %367 = arith.addf %360, %366 : vector<128x64xf32>
    %c0_298 = arith.constant 0 : index
    %c1_299 = arith.constant 1 : index
    %c2_300 = arith.constant 2 : index
    %c0_301 = arith.constant 0 : index
    %368 = vector.load %arg22[%c0_298, %c1_299, %c2_300, %c0_301] : memref<2x10x10x128xf32, #tpu.memory_space<vmem>>, vector<2x8x8x128xf32>
    %369 = vector.shape_cast %368 : vector<2x8x8x128xf32> to vector<128x128xf32>
    %370 = arith.truncf %369 : vector<128x128xf32> to vector<128x128xbf16>
    %c5_302 = arith.constant 5 : index
    %c0_303 = arith.constant 0 : index
    %c0_304 = arith.constant 0 : index
    %371 = vector.load %arg12[%c5_302, %c0_303, %c0_304] : memref<9x128x64xbf16, #tpu.memory_space<vmem>>, vector<1x128x64xbf16>
    %372 = vector.shape_cast %371 : vector<1x128x64xbf16> to vector<128x64xbf16>
    %cst_305 = arith.constant dense<0.000000e+00> : vector<128x64xf32>
    %373 = tpu.matmul %370, %372, %cst_305 {dimension_numbers = #tpu.dot_dimension_numbers<[1], [0], [0], [1], [0, 0, 1, 1], [], []>} : vector<128x128xbf16>, vector<128x64xbf16>, vector<128x64xf32> -> vector<128x64xf32>
    %374 = arith.addf %367, %373 : vector<128x64xf32>
    %c0_306 = arith.constant 0 : index
    %c2_307 = arith.constant 2 : index
    %c0_308 = arith.constant 0 : index
    %c0_309 = arith.constant 0 : index
    %375 = vector.load %arg22[%c0_306, %c2_307, %c0_308, %c0_309] : memref<2x10x10x128xf32, #tpu.memory_space<vmem>>, vector<2x8x8x128xf32>
    %376 = vector.shape_cast %375 : vector<2x8x8x128xf32> to vector<128x128xf32>
    %377 = arith.truncf %376 : vector<128x128xf32> to vector<128x128xbf16>
    %c6_310 = arith.constant 6 : index
    %c0_311 = arith.constant 0 : index
    %c0_312 = arith.constant 0 : index
    %378 = vector.load %arg12[%c6_310, %c0_311, %c0_312] : memref<9x128x64xbf16, #tpu.memory_space<vmem>>, vector<1x128x64xbf16>
    %379 = vector.shape_cast %378 : vector<1x128x64xbf16> to vector<128x64xbf16>
    %cst_313 = arith.constant dense<0.000000e+00> : vector<128x64xf32>
    %380 = tpu.matmul %377, %379, %cst_313 {dimension_numbers = #tpu.dot_dimension_numbers<[1], [0], [0], [1], [0, 0, 1, 1], [], []>} : vector<128x128xbf16>, vector<128x64xbf16>, vector<128x64xf32> -> vector<128x64xf32>
    %381 = arith.addf %374, %380 : vector<128x64xf32>
    %c0_314 = arith.constant 0 : index
    %c2_315 = arith.constant 2 : index
    %c1_316 = arith.constant 1 : index
    %c0_317 = arith.constant 0 : index
    %382 = vector.load %arg22[%c0_314, %c2_315, %c1_316, %c0_317] : memref<2x10x10x128xf32, #tpu.memory_space<vmem>>, vector<2x8x8x128xf32>
    %383 = vector.shape_cast %382 : vector<2x8x8x128xf32> to vector<128x128xf32>
    %384 = arith.truncf %383 : vector<128x128xf32> to vector<128x128xbf16>
    %c7_318 = arith.constant 7 : index
    %c0_319 = arith.constant 0 : index
    %c0_320 = arith.constant 0 : index
    %385 = vector.load %arg12[%c7_318, %c0_319, %c0_320] : memref<9x128x64xbf16, #tpu.memory_space<vmem>>, vector<1x128x64xbf16>
    %386 = vector.shape_cast %385 : vector<1x128x64xbf16> to vector<128x64xbf16>
    %cst_321 = arith.constant dense<0.000000e+00> : vector<128x64xf32>
    %387 = tpu.matmul %384, %386, %cst_321 {dimension_numbers = #tpu.dot_dimension_numbers<[1], [0], [0], [1], [0, 0, 1, 1], [], []>} : vector<128x128xbf16>, vector<128x64xbf16>, vector<128x64xf32> -> vector<128x64xf32>
    %388 = arith.addf %381, %387 : vector<128x64xf32>
    %c0_322 = arith.constant 0 : index
    %c2_323 = arith.constant 2 : index
    %c2_324 = arith.constant 2 : index
    %c0_325 = arith.constant 0 : index
    %389 = vector.load %arg22[%c0_322, %c2_323, %c2_324, %c0_325] : memref<2x10x10x128xf32, #tpu.memory_space<vmem>>, vector<2x8x8x128xf32>
    %390 = vector.shape_cast %389 : vector<2x8x8x128xf32> to vector<128x128xf32>
    %391 = arith.truncf %390 : vector<128x128xf32> to vector<128x128xbf16>
    %c8_326 = arith.constant 8 : index
    %c0_327 = arith.constant 0 : index
    %c0_328 = arith.constant 0 : index
    %392 = vector.load %arg12[%c8_326, %c0_327, %c0_328] : memref<9x128x64xbf16, #tpu.memory_space<vmem>>, vector<1x128x64xbf16>
    %393 = vector.shape_cast %392 : vector<1x128x64xbf16> to vector<128x64xbf16>
    %cst_329 = arith.constant dense<0.000000e+00> : vector<128x64xf32>
    %394 = tpu.matmul %391, %393, %cst_329 {dimension_numbers = #tpu.dot_dimension_numbers<[1], [0], [0], [1], [0, 0, 1, 1], [], []>} : vector<128x128xbf16>, vector<128x64xbf16>, vector<128x64xf32> -> vector<128x64xf32>
    %395 = arith.addf %388, %394 : vector<128x64xf32>
    %c0_330 = arith.constant 0 : index
    %c0_331 = arith.constant 0 : index
    %396 = vector.load %arg13[%c0_330, %c0_331] : memref<1x64xf32, #tpu.memory_space<vmem>>, vector<1x64xf32>
    %397 = vector.broadcast %396 : vector<1x64xf32> to vector<128x64xf32>
    %398 = arith.addf %395, %397 : vector<128x64xf32>
    %c0_332 = arith.constant 0 : index
    %c0_333 = arith.constant 0 : index
    %399 = vector.load %arg14[%c0_332, %c0_333] : memref<1x64xf32, #tpu.memory_space<vmem>>, vector<1x64xf32>
    %c0_334 = arith.constant 0 : index
    %c0_335 = arith.constant 0 : index
    %400 = vector.load %arg15[%c0_334, %c0_335] : memref<1x64xf32, #tpu.memory_space<vmem>>, vector<1x64xf32>
    %cst_336 = arith.constant dense<0.000000e+00> : vector<64xf32>
    %401 = vector.multi_reduction <add>, %398, %cst_336 [0] : vector<128x64xf32> to vector<64xf32>
    %402 = vector.shape_cast %401 : vector<64xf32> to vector<1x64xf32>
    %cst_337 = arith.constant 1.280000e+02 : f32
    %403 = vector.broadcast %cst_337 : f32 to vector<1x64xf32>
    %404 = arith.divf %402, %403 : vector<1x64xf32>
    %405 = arith.mulf %398, %398 : vector<128x64xf32>
    %cst_338 = arith.constant dense<0.000000e+00> : vector<64xf32>
    %406 = vector.multi_reduction <add>, %405, %cst_338 [0] : vector<128x64xf32> to vector<64xf32>
    %407 = vector.shape_cast %406 : vector<64xf32> to vector<1x64xf32>
    %cst_339 = arith.constant 1.280000e+02 : f32
    %408 = vector.broadcast %cst_339 : f32 to vector<1x64xf32>
    %409 = arith.divf %407, %408 : vector<1x64xf32>
    %410 = arith.mulf %404, %404 : vector<1x64xf32>
    %411 = arith.subf %409, %410 : vector<1x64xf32>
    %cst_340 = arith.constant 0.000000e+00 : f32
    %412 = vector.broadcast %cst_340 : f32 to vector<1x64xf32>
    %413 = arith.maximumf %411, %412 : vector<1x64xf32>
    %414 = vector.broadcast %404 : vector<1x64xf32> to vector<128x64xf32>
    %415 = arith.subf %398, %414 : vector<128x64xf32>
    %416 = vector.broadcast %399 : vector<1x64xf32> to vector<128x64xf32>
    %417 = arith.mulf %416, %415 : vector<128x64xf32>
    %cst_341 = arith.constant 9.99999974E-6 : f32
    %418 = vector.broadcast %cst_341 : f32 to vector<1x64xf32>
    %419 = arith.addf %413, %418 : vector<1x64xf32>
    %420 = math.rsqrt %419 : vector<1x64xf32>
    %421 = vector.broadcast %420 : vector<1x64xf32> to vector<128x64xf32>
    %422 = arith.mulf %417, %421 : vector<128x64xf32>
    %423 = vector.broadcast %400 : vector<1x64xf32> to vector<128x64xf32>
    %424 = arith.addf %422, %423 : vector<128x64xf32>
    %cst_342 = arith.constant 0.000000e+00 : f32
    %425 = vector.broadcast %cst_342 : f32 to vector<128x64xf32>
    %426 = arith.maximumf %424, %425 : vector<128x64xf32>
    %cst_343 = arith.constant 0.000000e+00 : f32
    %427 = vector.broadcast %cst_343 : f32 to vector<2x10x10x64xf32>
    %c0_344 = arith.constant 0 : index
    %c0_345 = arith.constant 0 : index
    %c0_346 = arith.constant 0 : index
    %c0_347 = arith.constant 0 : index
    %428 = vector.load %arg23[%c0_344, %c0_345, %c0_346, %c0_347] : memref<2x10x10x64xf32, #tpu.memory_space<vmem>>, vector<2x10x10x64xf32>
    tpu.vector_store %arg23[%c0_344, %c0_345, %c0_346, %c0_347], %427 {strides = array<i32>} : memref<2x10x10x64xf32, #tpu.memory_space<vmem>>, vector<2x10x10x64xf32>,
    %429 = vector.shape_cast %426 : vector<128x64xf32> to vector<2x8x8x64xf32>
    %c0_348 = arith.constant 0 : index
    %c1_349 = arith.constant 1 : index
    %c1_350 = arith.constant 1 : index
    %c0_351 = arith.constant 0 : index
    %430 = vector.load %arg23[%c0_348, %c1_349, %c1_350, %c0_351] : memref<2x10x10x64xf32, #tpu.memory_space<vmem>>, vector<2x8x8x64xf32>
    tpu.vector_store %arg23[%c0_348, %c1_349, %c1_350, %c0_351], %429 {strides = array<i32>} : memref<2x10x10x64xf32, #tpu.memory_space<vmem>>, vector<2x8x8x64xf32>,
    %cst_352 = arith.constant 0.000000e+00 : f32
    %431 = vector.broadcast %cst_352 : f32 to vector<128x128xf32>
    %c0_353 = arith.constant 0 : index
    %c0_354 = arith.constant 0 : index
    %c0_355 = arith.constant 0 : index
    %c0_356 = arith.constant 0 : index
    %432 = vector.load %arg23[%c0_353, %c0_354, %c0_355, %c0_356] : memref<2x10x10x64xf32, #tpu.memory_space<vmem>>, vector<2x8x8x64xf32>
    %433 = vector.shape_cast %432 : vector<2x8x8x64xf32> to vector<128x64xf32>
    %434 = arith.truncf %433 : vector<128x64xf32> to vector<128x64xbf16>
    %c0_357 = arith.constant 0 : index
    %c0_358 = arith.constant 0 : index
    %c0_359 = arith.constant 0 : index
    %435 = vector.load %arg16[%c0_357, %c0_358, %c0_359] : memref<9x64x128xbf16, #tpu.memory_space<vmem>>, vector<1x64x128xbf16>
    %436 = vector.shape_cast %435 : vector<1x64x128xbf16> to vector<64x128xbf16>
    %cst_360 = arith.constant dense<0.000000e+00> : vector<128x128xf32>
    %437 = tpu.matmul %434, %436, %cst_360 {dimension_numbers = #tpu.dot_dimension_numbers<[1], [0], [0], [1], [0, 0, 1, 1], [], []>} : vector<128x64xbf16>, vector<64x128xbf16>, vector<128x128xf32> -> vector<128x128xf32>
    %438 = arith.addf %431, %437 : vector<128x128xf32>
    %c0_361 = arith.constant 0 : index
    %c0_362 = arith.constant 0 : index
    %c1_363 = arith.constant 1 : index
    %c0_364 = arith.constant 0 : index
    %439 = vector.load %arg23[%c0_361, %c0_362, %c1_363, %c0_364] : memref<2x10x10x64xf32, #tpu.memory_space<vmem>>, vector<2x8x8x64xf32>
    %440 = vector.shape_cast %439 : vector<2x8x8x64xf32> to vector<128x64xf32>
    %441 = arith.truncf %440 : vector<128x64xf32> to vector<128x64xbf16>
    %c1_365 = arith.constant 1 : index
    %c0_366 = arith.constant 0 : index
    %c0_367 = arith.constant 0 : index
    %442 = vector.load %arg16[%c1_365, %c0_366, %c0_367] : memref<9x64x128xbf16, #tpu.memory_space<vmem>>, vector<1x64x128xbf16>
    %443 = vector.shape_cast %442 : vector<1x64x128xbf16> to vector<64x128xbf16>
    %cst_368 = arith.constant dense<0.000000e+00> : vector<128x128xf32>
    %444 = tpu.matmul %441, %443, %cst_368 {dimension_numbers = #tpu.dot_dimension_numbers<[1], [0], [0], [1], [0, 0, 1, 1], [], []>} : vector<128x64xbf16>, vector<64x128xbf16>, vector<128x128xf32> -> vector<128x128xf32>
    %445 = arith.addf %438, %444 : vector<128x128xf32>
    %c0_369 = arith.constant 0 : index
    %c0_370 = arith.constant 0 : index
    %c2_371 = arith.constant 2 : index
    %c0_372 = arith.constant 0 : index
    %446 = vector.load %arg23[%c0_369, %c0_370, %c2_371, %c0_372] : memref<2x10x10x64xf32, #tpu.memory_space<vmem>>, vector<2x8x8x64xf32>
    %447 = vector.shape_cast %446 : vector<2x8x8x64xf32> to vector<128x64xf32>
    %448 = arith.truncf %447 : vector<128x64xf32> to vector<128x64xbf16>
    %c2_373 = arith.constant 2 : index
    %c0_374 = arith.constant 0 : index
    %c0_375 = arith.constant 0 : index
    %449 = vector.load %arg16[%c2_373, %c0_374, %c0_375] : memref<9x64x128xbf16, #tpu.memory_space<vmem>>, vector<1x64x128xbf16>
    %450 = vector.shape_cast %449 : vector<1x64x128xbf16> to vector<64x128xbf16>
    %cst_376 = arith.constant dense<0.000000e+00> : vector<128x128xf32>
    %451 = tpu.matmul %448, %450, %cst_376 {dimension_numbers = #tpu.dot_dimension_numbers<[1], [0], [0], [1], [0, 0, 1, 1], [], []>} : vector<128x64xbf16>, vector<64x128xbf16>, vector<128x128xf32> -> vector<128x128xf32>
    %452 = arith.addf %445, %451 : vector<128x128xf32>
    %c0_377 = arith.constant 0 : index
    %c1_378 = arith.constant 1 : index
    %c0_379 = arith.constant 0 : index
    %c0_380 = arith.constant 0 : index
    %453 = vector.load %arg23[%c0_377, %c1_378, %c0_379, %c0_380] : memref<2x10x10x64xf32, #tpu.memory_space<vmem>>, vector<2x8x8x64xf32>
    %454 = vector.shape_cast %453 : vector<2x8x8x64xf32> to vector<128x64xf32>
    %455 = arith.truncf %454 : vector<128x64xf32> to vector<128x64xbf16>
    %c3_381 = arith.constant 3 : index
    %c0_382 = arith.constant 0 : index
    %c0_383 = arith.constant 0 : index
    %456 = vector.load %arg16[%c3_381, %c0_382, %c0_383] : memref<9x64x128xbf16, #tpu.memory_space<vmem>>, vector<1x64x128xbf16>
    %457 = vector.shape_cast %456 : vector<1x64x128xbf16> to vector<64x128xbf16>
    %cst_384 = arith.constant dense<0.000000e+00> : vector<128x128xf32>
    %458 = tpu.matmul %455, %457, %cst_384 {dimension_numbers = #tpu.dot_dimension_numbers<[1], [0], [0], [1], [0, 0, 1, 1], [], []>} : vector<128x64xbf16>, vector<64x128xbf16>, vector<128x128xf32> -> vector<128x128xf32>
    %459 = arith.addf %452, %458 : vector<128x128xf32>
    %c0_385 = arith.constant 0 : index
    %c1_386 = arith.constant 1 : index
    %c1_387 = arith.constant 1 : index
    %c0_388 = arith.constant 0 : index
    %460 = vector.load %arg23[%c0_385, %c1_386, %c1_387, %c0_388] : memref<2x10x10x64xf32, #tpu.memory_space<vmem>>, vector<2x8x8x64xf32>
    %461 = vector.shape_cast %460 : vector<2x8x8x64xf32> to vector<128x64xf32>
    %462 = arith.truncf %461 : vector<128x64xf32> to vector<128x64xbf16>
    %c4_389 = arith.constant 4 : index
    %c0_390 = arith.constant 0 : index
    %c0_391 = arith.constant 0 : index
    %463 = vector.load %arg16[%c4_389, %c0_390, %c0_391] : memref<9x64x128xbf16, #tpu.memory_space<vmem>>, vector<1x64x128xbf16>
    %464 = vector.shape_cast %463 : vector<1x64x128xbf16> to vector<64x128xbf16>
    %cst_392 = arith.constant dense<0.000000e+00> : vector<128x128xf32>
    %465 = tpu.matmul %462, %464, %cst_392 {dimension_numbers = #tpu.dot_dimension_numbers<[1], [0], [0], [1], [0, 0, 1, 1], [], []>} : vector<128x64xbf16>, vector<64x128xbf16>, vector<128x128xf32> -> vector<128x128xf32>
    %466 = arith.addf %459, %465 : vector<128x128xf32>
    %c0_393 = arith.constant 0 : index
    %c1_394 = arith.constant 1 : index
    %c2_395 = arith.constant 2 : index
    %c0_396 = arith.constant 0 : index
    %467 = vector.load %arg23[%c0_393, %c1_394, %c2_395, %c0_396] : memref<2x10x10x64xf32, #tpu.memory_space<vmem>>, vector<2x8x8x64xf32>
    %468 = vector.shape_cast %467 : vector<2x8x8x64xf32> to vector<128x64xf32>
    %469 = arith.truncf %468 : vector<128x64xf32> to vector<128x64xbf16>
    %c5_397 = arith.constant 5 : index
    %c0_398 = arith.constant 0 : index
    %c0_399 = arith.constant 0 : index
    %470 = vector.load %arg16[%c5_397, %c0_398, %c0_399] : memref<9x64x128xbf16, #tpu.memory_space<vmem>>, vector<1x64x128xbf16>
    %471 = vector.shape_cast %470 : vector<1x64x128xbf16> to vector<64x128xbf16>
    %cst_400 = arith.constant dense<0.000000e+00> : vector<128x128xf32>
    %472 = tpu.matmul %469, %471, %cst_400 {dimension_numbers = #tpu.dot_dimension_numbers<[1], [0], [0], [1], [0, 0, 1, 1], [], []>} : vector<128x64xbf16>, vector<64x128xbf16>, vector<128x128xf32> -> vector<128x128xf32>
    %473 = arith.addf %466, %472 : vector<128x128xf32>
    %c0_401 = arith.constant 0 : index
    %c2_402 = arith.constant 2 : index
    %c0_403 = arith.constant 0 : index
    %c0_404 = arith.constant 0 : index
    %474 = vector.load %arg23[%c0_401, %c2_402, %c0_403, %c0_404] : memref<2x10x10x64xf32, #tpu.memory_space<vmem>>, vector<2x8x8x64xf32>
    %475 = vector.shape_cast %474 : vector<2x8x8x64xf32> to vector<128x64xf32>
    %476 = arith.truncf %475 : vector<128x64xf32> to vector<128x64xbf16>
    %c6_405 = arith.constant 6 : index
    %c0_406 = arith.constant 0 : index
    %c0_407 = arith.constant 0 : index
    %477 = vector.load %arg16[%c6_405, %c0_406, %c0_407] : memref<9x64x128xbf16, #tpu.memory_space<vmem>>, vector<1x64x128xbf16>
    %478 = vector.shape_cast %477 : vector<1x64x128xbf16> to vector<64x128xbf16>
    %cst_408 = arith.constant dense<0.000000e+00> : vector<128x128xf32>
    %479 = tpu.matmul %476, %478, %cst_408 {dimension_numbers = #tpu.dot_dimension_numbers<[1], [0], [0], [1], [0, 0, 1, 1], [], []>} : vector<128x64xbf16>, vector<64x128xbf16>, vector<128x128xf32> -> vector<128x128xf32>
    %480 = arith.addf %473, %479 : vector<128x128xf32>
    %c0_409 = arith.constant 0 : index
    %c2_410 = arith.constant 2 : index
    %c1_411 = arith.constant 1 : index
    %c0_412 = arith.constant 0 : index
    %481 = vector.load %arg23[%c0_409, %c2_410, %c1_411, %c0_412] : memref<2x10x10x64xf32, #tpu.memory_space<vmem>>, vector<2x8x8x64xf32>
    %482 = vector.shape_cast %481 : vector<2x8x8x64xf32> to vector<128x64xf32>
    %483 = arith.truncf %482 : vector<128x64xf32> to vector<128x64xbf16>
    %c7_413 = arith.constant 7 : index
    %c0_414 = arith.constant 0 : index
    %c0_415 = arith.constant 0 : index
    %484 = vector.load %arg16[%c7_413, %c0_414, %c0_415] : memref<9x64x128xbf16, #tpu.memory_space<vmem>>, vector<1x64x128xbf16>
    %485 = vector.shape_cast %484 : vector<1x64x128xbf16> to vector<64x128xbf16>
    %cst_416 = arith.constant dense<0.000000e+00> : vector<128x128xf32>
    %486 = tpu.matmul %483, %485, %cst_416 {dimension_numbers = #tpu.dot_dimension_numbers<[1], [0], [0], [1], [0, 0, 1, 1], [], []>} : vector<128x64xbf16>, vector<64x128xbf16>, vector<128x128xf32> -> vector<128x128xf32>
    %487 = arith.addf %480, %486 : vector<128x128xf32>
    %c0_417 = arith.constant 0 : index
    %c2_418 = arith.constant 2 : index
    %c2_419 = arith.constant 2 : index
    %c0_420 = arith.constant 0 : index
    %488 = vector.load %arg23[%c0_417, %c2_418, %c2_419, %c0_420] : memref<2x10x10x64xf32, #tpu.memory_space<vmem>>, vector<2x8x8x64xf32>
    %489 = vector.shape_cast %488 : vector<2x8x8x64xf32> to vector<128x64xf32>
    %490 = arith.truncf %489 : vector<128x64xf32> to vector<128x64xbf16>
    %c8_421 = arith.constant 8 : index
    %c0_422 = arith.constant 0 : index
    %c0_423 = arith.constant 0 : index
    %491 = vector.load %arg16[%c8_421, %c0_422, %c0_423] : memref<9x64x128xbf16, #tpu.memory_space<vmem>>, vector<1x64x128xbf16>
    %492 = vector.shape_cast %491 : vector<1x64x128xbf16> to vector<64x128xbf16>
    %cst_424 = arith.constant dense<0.000000e+00> : vector<128x128xf32>
    %493 = tpu.matmul %490, %492, %cst_424 {dimension_numbers = #tpu.dot_dimension_numbers<[1], [0], [0], [1], [0, 0, 1, 1], [], []>} : vector<128x64xbf16>, vector<64x128xbf16>, vector<128x128xf32> -> vector<128x128xf32>
    %494 = arith.addf %487, %493 : vector<128x128xf32>
    %c0_425 = arith.constant 0 : index
    %c0_426 = arith.constant 0 : index
    %495 = vector.load %arg17[%c0_425, %c0_426] : memref<1x128xf32, #tpu.memory_space<vmem>>, vector<1x128xf32>
    %496 = vector.broadcast %495 : vector<1x128xf32> to vector<128x128xf32>
    %497 = arith.addf %494, %496 : vector<128x128xf32>
    %498 = arith.negf %497 : vector<128x128xf32>
    %499 = math.exp %498 : vector<128x128xf32>
    %cst_427 = arith.constant 1.000000e+00 : f32
    %500 = vector.broadcast %cst_427 : f32 to vector<128x128xf32>
    %501 = arith.addf %500, %499 : vector<128x128xf32>
    %502 = arith.divf %500, %501 : vector<128x128xf32>
    %c0_428 = arith.constant 0 : index
    %c0_429 = arith.constant 0 : index
    %503 = vector.load %arg18[%c0_428, %c0_429] : memref<128x128xf32, #tpu.memory_space<vmem>>, vector<128x128xf32>
    tpu.vector_store %arg18[%c0_428, %c0_429], %502 {strides = array<i32>} : memref<128x128xf32, #tpu.memory_space<vmem>>, vector<128x128xf32>,
    return
  }
  func.func @transform_0(%arg0: i32) -> (i32, i32) {
    %c0_i32 = arith.constant 0 : i32
    %c0_i32_0 = arith.constant 0 : i32
    %c0_i32_1 = arith.constant 0 : i32
    return %c0_i32, %c0_i32_0 : i32, i32
  }
  func.func @transform_1(%arg0: i32) -> (i32, i32) {
    %c0_i32 = arith.constant 0 : i32
    %c0_i32_0 = arith.constant 0 : i32
    %c0_i32_1 = arith.constant 0 : i32
    return %c0_i32, %c0_i32_0 : i32, i32
  }
  func.func @transform_2(%arg0: i32) -> (i32, i32) {
    %c0_i32 = arith.constant 0 : i32
    %c0_i32_0 = arith.constant 0 : i32
    %c0_i32_1 = arith.constant 0 : i32
    return %c0_i32, %c0_i32_0 : i32, i32
  }
  func.func @transform_3(%arg0: i32) -> (i32, i32, i32) {
    %c0_i32 = arith.constant 0 : i32
    %c0_i32_0 = arith.constant 0 : i32
    %c0_i32_1 = arith.constant 0 : i32
    %c0_i32_2 = arith.constant 0 : i32
    return %c0_i32, %c0_i32_0, %c0_i32_1 : i32, i32, i32
  }
  func.func @transform_4(%arg0: i32) -> (i32, i32) {
    %c0_i32 = arith.constant 0 : i32
    %c0_i32_0 = arith.constant 0 : i32
    %c0_i32_1 = arith.constant 0 : i32
    return %c0_i32, %c0_i32_0 : i32, i32
  }
  func.func @transform_5(%arg0: i32) -> (i32, i32) {
    %c0_i32 = arith.constant 0 : i32
    %c0_i32_0 = arith.constant 0 : i32
    %c0_i32_1 = arith.constant 0 : i32
    return %c0_i32, %c0_i32_0 : i32, i32
  }
  func.func @transform_6(%arg0: i32) -> (i32, i32) {
    %c0_i32 = arith.constant 0 : i32
    %c0_i32_0 = arith.constant 0 : i32
    %c0_i32_1 = arith.constant 0 : i32
    return %c0_i32, %c0_i32_0 : i32, i32
  }
  func.func @transform_7(%arg0: i32) -> (i32, i32, i32) {
    %c0_i32 = arith.constant 0 : i32
    %c0_i32_0 = arith.constant 0 : i32
    %c0_i32_1 = arith.constant 0 : i32
    %c0_i32_2 = arith.constant 0 : i32
    return %c0_i32, %c0_i32_0, %c0_i32_1 : i32, i32, i32
  }
  func.func @transform_8(%arg0: i32) -> (i32, i32) {
    %c0_i32 = arith.constant 0 : i32
    %c0_i32_0 = arith.constant 0 : i32
    %c0_i32_1 = arith.constant 0 : i32
    return %c0_i32, %c0_i32_0 : i32, i32
  }
  func.func @transform_9(%arg0: i32) -> (i32, i32) {
    %c0_i32 = arith.constant 0 : i32
    %c0_i32_0 = arith.constant 0 : i32
    %c0_i32_1 = arith.constant 0 : i32
    return %c0_i32, %c0_i32_0 : i32, i32
  }
  func.func @transform_10(%arg0: i32) -> (i32, i32) {
    %c0_i32 = arith.constant 0 : i32
    %c0_i32_0 = arith.constant 0 : i32
    %c0_i32_1 = arith.constant 0 : i32
    return %c0_i32, %c0_i32_0 : i32, i32
  }
  func.func @transform_11(%arg0: i32) -> (i32, i32, i32) {
    %c0_i32 = arith.constant 0 : i32
    %c0_i32_0 = arith.constant 0 : i32
    %c0_i32_1 = arith.constant 0 : i32
    %c0_i32_2 = arith.constant 0 : i32
    return %c0_i32, %c0_i32_0, %c0_i32_1 : i32, i32, i32
  }
  func.func @transform_12(%arg0: i32) -> (i32, i32) {
    %c0_i32 = arith.constant 0 : i32
    %c0_i32_0 = arith.constant 0 : i32
    %c0_i32_1 = arith.constant 0 : i32
    return %c0_i32, %c0_i32_0 : i32, i32
  }
  func.func @transform_13(%arg0: i32) -> (i32, i32) {
    %c0_i32 = arith.constant 0 : i32
    %c0_i32_0 = arith.constant 0 : i32
    %c0_i32_1 = arith.constant 0 : i32
    return %c0_i32, %c0_i32_0 : i32, i32
  }
  func.func @transform_14(%arg0: i32) -> (i32, i32) {
    %c0_i32 = arith.constant 0 : i32
    %c0_i32_0 = arith.constant 0 : i32
    %c0_i32_1 = arith.constant 0 : i32
    return %c0_i32, %c0_i32_0 : i32, i32
  }
  func.func @transform_15(%arg0: i32) -> (i32, i32, i32) {
    %c0_i32 = arith.constant 0 : i32
    %c0_i32_0 = arith.constant 0 : i32
    %c0_i32_1 = arith.constant 0 : i32
    %c0_i32_2 = arith.constant 0 : i32
    return %c0_i32, %c0_i32_0, %c0_i32_1 : i32, i32, i32
  }
  func.func @transform_16(%arg0: i32) -> (i32, i32) {
    %c0_i32 = arith.constant 0 : i32
    %c0_i32_0 = arith.constant 0 : i32
    %c0_i32_1 = arith.constant 0 : i32
    return %c0_i32, %c0_i32_0 : i32, i32
  }
  func.func @transform_17(%arg0: i32) -> (i32, i32) {
    %c0_i32 = arith.constant 0 : i32
    %c0_i32_0 = arith.constant 0 : i32
    %c0_i32_1 = arith.constant 0 : i32
    return %c0_i32, %c0_i32_0 : i32, i32
  }
}

</mosaic_0001>

<bundles_post_ra>
// kernel: _lambda_.1
= control target key start
LH: loop header
LB: loop body
LE: loop exit
PB: predicated region body
PF: predicated region fallthrough
CT: control target
= control target key end

     0   :  { %s18164_s0 = inlined_call_operand.vmem [shape: f32[32,2], index: 0, kind: input, shape index: {}]   ;;  %s18165_s1 = inlined_call_operand.vmem [shape: bf16[64,32], index: 1, kind: input, shape index: {}]   ;;  %s18166_s2 = inlined_call_operand.vmem [shape: f32[64,1], index: 2, kind: input, shape index: {}]   ;;  %s18167_s3 = inlined_call_operand.vmem [shape: bf16[9,1,256], index: 3, kind: input, shape index: {}]   ;;  %s18168_s4 = inlined_call_operand.vmem [shape: f32[1,256], index: 4, kind: input, shape index: {}]   ;;  %s18169_s5 = inlined_call_operand.vmem [shape: f32[1,256], index: 5, kind: input, shape index: {}]   ;;  %s18170_s6 = inlined_call_operand.vmem [shape: f32[1,256], index: 6, kind: input, shape index: {}]   ;;  %s18171_s7 = inlined_call_operand.hbm [shape: bf16[9,256,128], index: 7, kind: input, shape index: {}]   ;;  %s18172_s8 = inlined_call_operand.vmem [shape: f32[1,128], index: 8, kind: input, shape index: {}]   ;;  %s18173_s9 = inlined_call_operand.vmem [shape: f32[1,128], index: 9, kind: input, shape index: {}]   ;;  %s18174_s10 = inlined_call_operand.vmem [shape: f32[1,128], index: 10, kind: input, shape index: {}]   ;;  %s18175_s11 = inlined_call_operand.vmem [shape: bf16[9,128,64], index: 11, kind: input, shape index: {}]   ;;  %s18176_s12 = inlined_call_operand.vmem [shape: f32[1,64], index: 12, kind: input, shape index: {}]   ;;  %s18177_s13 = inlined_call_operand.vmem [shape: f32[1,64], index: 13, kind: input, shape index: {}]   ;;  %s18178_s14 = inlined_call_operand.vmem [shape: f32[1,64], index: 14, kind: input, shape index: {}]   ;;  %s18179_s15 = inlined_call_operand.vmem [shape: bf16[9,64,128], index: 15, kind: input, shape index: {}]   ;;  %s18180_s16 = inlined_call_operand.vmem [shape: f32[1,128], index: 16, kind: input, shape index: {}]   ;;  %s18181_s17 = inlined_call_operand.vmem [shape: f32[128,128], index: 17, kind: output, shape index: {}]  }
   0x1   :  { %18325 = sst [smem:[#allocation82_spill]] %s18164_s0 }
   0x2   :  { %18326 = sst [smem:[#allocation83_spill]] %s18165_s1 }
   0x3   :  { %22 = vsyncpa [#allocation8], 0  ;;  %s13415_s24 = smov [#allocation7]   ;;  %s13391_s28 = scalar_lea.hbm %s18171_s7, 18432 }
   0x4   :  { %s42_s25 = sshll.u32 %s13415_s24, 4  ;;  %p13392_p0 = scmp.ne.s32.totalorder %s18171_s7, %s13391_s28  ;;  %s43_s25 = int_to_ptr.vmem [resolvable:$true] %s42_s25 }
   0x5   :  { %p13395_p1 = scmp.lt.u32.totalorder %s13391_s28, %s18171_s7 }
   0x7   :  { %p13397_p2 = pnand %p13395_p1, %p13392_p0 }
   0x9   :  { %13400 = shalt.err (!%p13397_p2)
}
   0xa   :  { %s13401_s19 = scalar_lea.vmem %s43_s25, 18432  ;;  %p13406_p4 = scmp.lt.s32.totalorder %s43_s25, %s43_s25 }
   0xb   :  { %p13402_p3 = scmp.ne.s32.totalorder %s43_s25, %s13401_s19  ;;  %p13407_p5 = scmp.lt.s32.totalorder %s13401_s19, %s13401_s19 }
   0xd   :  { %p13408_p6 = por %p13407_p5, %p13406_p4 }
   0xf   :  { %p13409_p7 = pnand %p13408_p6, %p13402_p3 }
  0x11   :  { %13412 = shalt.err (!%p13409_p7)
}
  0x12   :  { %s13416_s1 = smov 64   ;;  %s13417_s20 = smov 4  }
  0x13   :  { %48 = dma.hbm_to_vmem [thread:$0]  %s18171_s7, 18432, %s43_s25, [#allocation8], %s13416_s1, %s13416_s1, %s13417_s20  }
  0x14   :  { %13413 = dma.done.wait [#allocation8], 18432  }
  0x15   :  { %13414 = vsyncadd [#allocation8], 4294948864  ;;  %vm239_vm0 = vcmask 15360   ;;  %v18185_v0 = vmov 0   ;;  %vm241_vm1 = vcmask 9216   ;;  %v13419_v1 = vmov 0.0  }
  0x16   :  { %13029 = vset.pattern.permute.xlu1 %v18185_v0  ;;  %13028 = vset.pattern.permute.xlu0 %v18185_v0  ;;  %240 = vst.msk [vmem:[#allocation2] sm:$0xff] %vm239_vm0, %v13419_v1  ;;  %243 = vst.msk [vmem:[#allocation2 + $0x10] sm:$0xff] %vm239_vm0, %v13419_v1  ;;  %s18327_s24 = sld [smem:[#allocation82_spill]]  ;;  %vm153_vm2 = vcmask 261120   ;;  %s18328_s19 = sld [smem:[#allocation83_spill]]  ;;  %v87_v9 = vld [vmem:[%s18166_s2 + $0x10] sm:$0xff] }
  0x17   :  { %242 = vst.msk [vmem:[#allocation2 + $0x8] sm:$0x3] %vm241_vm1, %v13419_v1  ;;  %244 = vst.msk [vmem:[#allocation2 + $0x18] sm:$0x3] %vm241_vm1, %v13419_v1  ;;  %105 = vperm.xlu1 %13029, %v87_v9   ;;  %v85_v10 = vld [vmem:[%s18166_s2] sm:$0xff]  ;;  %v88_v12 = vld [vmem:[%s18166_s2 + $0x18] sm:$0xff] }
  0x18   :  { %245 = vst.msk [vmem:[#allocation2 + $0x20] sm:$0xff] %vm239_vm0, %v13419_v1  ;;  %247 = vst.msk [vmem:[#allocation2 + $0x30] sm:$0xff] %vm239_vm0, %v13419_v1  ;;  %95 = vperm.xlu0 %13028, %v85_v10   ;;  %v90_v14 = vld [vmem:[%s18166_s2 + $0x28] sm:$0xff]  ;;  %v18184_v16 = vmov 1   ;;  %v92_v19 = vld [vmem:[%s18166_s2 + $0x38] sm:$0xff]  ;;  %vm2969_vm3 = vcmask 1046528  }
  0x19   :  { %246 = vst.msk [vmem:[#allocation2 + $0x28] sm:$0x3] %vm241_vm1, %v13419_v1  ;;  %248 = vst.msk [vmem:[#allocation2 + $0x38] sm:$0x3] %vm241_vm1, %v13419_v1  ;;  %v86_v18 = vld [vmem:[%s18166_s2 + $0x8] sm:$0xff]  ;;  %v89_v20 = vld [vmem:[%s18166_s2 + $0x20] sm:$0xff] }
  0x1a   :  { %249 = vst.msk [vmem:[#allocation2 + $0x40] sm:$0xff] %vm239_vm0, %v13419_v1  ;;  %251 = vst.msk [vmem:[#allocation2 + $0x50] sm:$0xff] %vm239_vm0, %v13419_v1  ;;  %v91_v21 = vld [vmem:[%s18166_s2 + $0x30] sm:$0xff]  ;;  %vm3661_vm4 = vcmask 1045504   ;;  %vm8735_vm5 = vcmask 523264   ;;  %vm8926_vm6 = vcmask 517120  }
  0x1b   :  { %250 = vst.msk [vmem:[#allocation2 + $0x48] sm:$0x3] %vm241_vm1, %v13419_v1  ;;  %252 = vst.msk [vmem:[#allocation2 + $0x58] sm:$0x3] %vm241_vm1, %v13419_v1  ;;  %110 = vperm.xlu1 %13029, %v88_v12  }
  0x1c   :  { %253 = vst.msk [vmem:[#allocation2 + $0x60] sm:$0xff] %vm239_vm0, %v13419_v1  ;;  %255 = vst.msk [vmem:[#allocation2 + $0x70] sm:$0xff] %vm239_vm0, %v13419_v1  ;;  %v79_v2 = vld [vmem:[%s18327_s24] sm:$0xff]  ;;  %v80_v3 = vld [vmem:[%s18327_s24 + $0x8] sm:$0xff]  ;;  %13031 = vset.pattern.permute.xlu0 %v18184_v16 }
  0x1d   :  { %254 = vst.msk [vmem:[#allocation2 + $0x68] sm:$0x3] %vm241_vm1, %v13419_v1  ;;  %256 = vst.msk [vmem:[#allocation2 + $0x78] sm:$0x3] %vm241_vm1, %v13419_v1  ;;  %v81_v4 = vld [vmem:[%s18327_s24 + $0x10] sm:$0xff]  ;;  %v83_v5 = vpack.c.bf16 %v80_v3, %v79_v2  ;;  %v82_v6 = vld [vmem:[%s18327_s24 + $0x18] sm:$0xff] }
  0x1e   :  { %257 = vst.msk [vmem:[#allocation2 + $0x80] sm:$0xff] %vm239_vm0, %v13419_v1  ;;  %259 = vst.msk [vmem:[#allocation2 + $0x90] sm:$0xff] %vm239_vm0, %v13419_v1  ;;  %v84_v7 = vpack.c.bf16 %v82_v6, %v81_v4  ;;  %v13060_v8 = vld [vmem:[%s18328_s19] sm:$0xff]   ;;  %v13061_v11 = vld [vmem:[%s18328_s19 + $0x8] sm:$0xff]  }
  0x1f   :  { %258 = vst.msk [vmem:[#allocation2 + $0x88] sm:$0x3] %vm241_vm1, %v13419_v1  ;;  %260 = vst.msk [vmem:[#allocation2 + $0x98] sm:$0x3] %vm241_vm1, %v13419_v1  ;;  %12234 = vmatprep.subr.bf16.mxu0 %v83_v5  ;;  %12238 = vmatprep.mubr.msk.bf16.mxu0 %vm153_vm2, %v13060_v8  ;;  %v13062_v13 = vld [vmem:[%s18328_s19 + $0x10] sm:$0xff]   ;;  %v1305_v15 = vld [vmem:[#allocation2 + $0x1] sm:$0xff] }
  0x20   :  { %2520 = vst [vmem:[#allocation4] sm:$0xff] %v13419_v1  ;;  %2521 = vst [vmem:[#allocation4 + $0x8] sm:$0xff] %v13419_v1  ;;  %12235 = vmatpush3.bf16.msra.mxu0 %v83_v5  ;;  %1317 = vperm.xlu0 %13031, %v1305_v15   ;;  %v13063_v17 = vld [vmem:[%s18328_s19 + $0x18] sm:$0xff]   ;;  %v270_v22 = vld [vmem:[#allocation2] sm:$0xff] }
  0x21   :  { %2522 = vst [vmem:[#allocation4 + $0x10] sm:$0x3] %v13419_v1  ;;  %2523 = vst [vmem:[#allocation4 + $0x18] sm:$0x3] %v13419_v1  ;;  %12236 = vmatprep.subr.bf16.mxu0 %v84_v7  ;;  %120 = vperm.xlu1 %13029, %v90_v14   ;;  %v473_v23 = vld [vmem:[#allocation2 + $0x2] sm:$0xff] }
  0x22   :  { %2524 = vst [vmem:[#allocation4 + $0x20] sm:$0xff] %v13419_v1  ;;  %2525 = vst [vmem:[#allocation4 + $0x28] sm:$0xff] %v13419_v1 }
  0x23   :  { %2526 = vst [vmem:[#allocation4 + $0x30] sm:$0x3] %v13419_v1  ;;  %2527 = vst [vmem:[#allocation4 + $0x38] sm:$0x3] %v13419_v1 }
  0x24   :  { %2528 = vst [vmem:[#allocation4 + $0x40] sm:$0xff] %v13419_v1  ;;  %2529 = vst [vmem:[#allocation4 + $0x48] sm:$0xff] %v13419_v1  ;;  %12237 = vmatpush3.bf16.msra.mxu0 %v84_v7  ;;  %13032 = vset.pattern.permute.xlu0 %v18185_v0 }
  0x25   :  { %2530 = vst [vmem:[#allocation4 + $0x50] sm:$0x3] %v13419_v1  ;;  %2531 = vst [vmem:[#allocation4 + $0x58] sm:$0x3] %v13419_v1  ;;  %100 = vperm.xlu0 %13032, %v86_v18   ;;  %130 = vperm.xlu1 %13029, %v92_v19   ;;  %v889_v25 = vld [vmem:[#allocation2 + $0x90] sm:$0xff] }
  0x26   :  { %2532 = vst [vmem:[#allocation4 + $0x60] sm:$0xff] %v13419_v1  ;;  %2533 = vst [vmem:[#allocation4 + $0x68] sm:$0xff] %v13419_v1  ;;  %v991_v24 = vld [vmem:[#allocation2 + $0x91] sm:$0xff] }
  0x27   :  { %2534 = vst [vmem:[#allocation4 + $0x70] sm:$0x3] %v13419_v1  ;;  %2535 = vst [vmem:[#allocation4 + $0x78] sm:$0x3] %v13419_v1  ;;  %12239 = vmatmul.mubr.msk.bf16.vlgmr.msra.gmra.mrb[0].mxu0 %vm153_vm2, %v13061_v11  ;;  %v1093_v26 = vld [vmem:[#allocation2 + $0x92] sm:$0xff] }
  0x28   :  { %2536 = vst [vmem:[#allocation4 + $0x80] sm:$0xff] %v13419_v1  ;;  %2537 = vst [vmem:[#allocation4 + $0x88] sm:$0xff] %v13419_v1  ;;  %12242 = vmatprep.mubr.msk.bf16.mxu0 %vm153_vm2, %v13062_v13 }
  0x29   :  { %2538 = vst [vmem:[#allocation4 + $0x90] sm:$0x3] %v13419_v1  ;;  %2539 = vst [vmem:[#allocation4 + $0x98] sm:$0x3] %v13419_v1  ;;  %115 = vperm.xlu0 %13032, %v89_v20   ;;  %13030 = vset.pattern.permute.xlu1 %v18184_v16 }
  0x2a   :  { %2540 = vst [vmem:[#allocation4 + $0xa0] sm:$0xff] %v13419_v1  ;;  %2541 = vst [vmem:[#allocation4 + $0xa8] sm:$0xff] %v13419_v1  ;;  %1216 = vperm.xlu1 %13030, %v270_v22  }
  0x2b   :  { %2542 = vst [vmem:[#allocation4 + $0xb0] sm:$0x3] %v13419_v1  ;;  %2543 = vst [vmem:[#allocation4 + $0xb8] sm:$0x3] %v13419_v1 }
  0x2c   :  { %2544 = vst [vmem:[#allocation4 + $0xc0] sm:$0xff] %v13419_v1  ;;  %2545 = vst [vmem:[#allocation4 + $0xc8] sm:$0xff] %v13419_v1 }
  0x2d   :  { %2546 = vst [vmem:[#allocation4 + $0xd0] sm:$0x3] %v13419_v1  ;;  %2547 = vst [vmem:[#allocation4 + $0xd8] sm:$0x3] %v13419_v1  ;;  %125 = vperm.xlu0 %13032, %v91_v21  }
  0x2e   :  { %2548 = vst [vmem:[#allocation4 + $0xe0] sm:$0xff] %v13419_v1  ;;  %2549 = vst [vmem:[#allocation4 + $0xe8] sm:$0xff] %v13419_v1  ;;  %1418 = vperm.xlu1 %13030, %v473_v23  }
  0x2f   :  { %2550 = vst [vmem:[#allocation4 + $0xf0] sm:$0x3] %v13419_v1  ;;  %2551 = vst [vmem:[#allocation4 + $0xf8] sm:$0x3] %v13419_v1  ;;  %12243 = vmatmul.mubr.msk.bf16.gmra.mrb[4].mxu0 %vm153_vm2, %v13063_v17 }
  0x30   :  { %2552 = vst [vmem:[#allocation4 + $0x100] sm:$0xff] %v13419_v1  ;;  %2553 = vst [vmem:[#allocation4 + $0x108] sm:$0xff] %v13419_v1 }
  0x31   :  { %2554 = vst [vmem:[#allocation4 + $0x110] sm:$0x3] %v13419_v1  ;;  %2555 = vst [vmem:[#allocation4 + $0x118] sm:$0x3] %v13419_v1  ;;  %282 = vperm.xlu0 %13032, %v270_v22  }
  0x32   :  { %2556 = vst [vmem:[#allocation4 + $0x120] sm:$0xff] %v13419_v1  ;;  %2557 = vst [vmem:[#allocation4 + $0x128] sm:$0xff] %v13419_v1  ;;  %13033 = vset.pattern.permute.xlu1 %v18185_v0 }
  0x33   :  { %2558 = vst [vmem:[#allocation4 + $0x130] sm:$0x3] %v13419_v1  ;;  %2559 = vst [vmem:[#allocation4 + $0x138] sm:$0x3] %v13419_v1  ;;  %930 = vperm.xlu1 %13033, %v889_v25  }
  0x34   :  { %2560 = vst [vmem:[#allocation4 + $0x140] sm:$0xff] %v13419_v1  ;;  %2561 = vst [vmem:[#allocation4 + $0x148] sm:$0xff] %v13419_v1 }
  0x35   :  { %2562 = vst [vmem:[#allocation4 + $0x150] sm:$0x3] %v13419_v1  ;;  %2563 = vst [vmem:[#allocation4 + $0x158] sm:$0x3] %v13419_v1  ;;  %384 = vperm.xlu0 %13032, %v1305_v15  }
  0x36   :  { %2564 = vst [vmem:[#allocation4 + $0x160] sm:$0xff] %v13419_v1  ;;  %2565 = vst [vmem:[#allocation4 + $0x168] sm:$0xff] %v13419_v1 }
  0x37   :  { %2566 = vst [vmem:[#allocation4 + $0x170] sm:$0x3] %v13419_v1  ;;  %2567 = vst [vmem:[#allocation4 + $0x178] sm:$0x3] %v13419_v1  ;;  %1134 = vperm.xlu1 %13033, %v1093_v26  }
  0x38   :  { %2568 = vst [vmem:[#allocation4 + $0x180] sm:$0xff] %v13419_v1  ;;  %2569 = vst [vmem:[#allocation4 + $0x188] sm:$0xff] %v13419_v1 }
  0x39   :  { %2570 = vst [vmem:[#allocation4 + $0x190] sm:$0x3] %v13419_v1  ;;  %2571 = vst [vmem:[#allocation4 + $0x198] sm:$0x3] %v13419_v1  ;;  %486 = vperm.xlu0 %13032, %v473_v23  }
  0x3a   :  { %2572 = vst [vmem:[#allocation4 + $0x1a0] sm:$0xff] %v13419_v1  ;;  %2573 = vst [vmem:[#allocation4 + $0x1a8] sm:$0xff] %v13419_v1 }
  0x3b   :  { %2574 = vst [vmem:[#allocation4 + $0x1b0] sm:$0x3] %v13419_v1  ;;  %2575 = vst [vmem:[#allocation4 + $0x1b8] sm:$0x3] %v13419_v1 }
  0x3c   :  { %2576 = vst [vmem:[#allocation4 + $0x1c0] sm:$0xff] %v13419_v1  ;;  %2577 = vst [vmem:[#allocation4 + $0x1c8] sm:$0xff] %v13419_v1 }
  0x3d   :  { %2578 = vst [vmem:[#allocation4 + $0x1d0] sm:$0x3] %v13419_v1  ;;  %2579 = vst [vmem:[#allocation4 + $0x1d8] sm:$0x3] %v13419_v1  ;;  %1032 = vperm.xlu0 %13032, %v991_v24  }
  0x3e   :  { %2580 = vst [vmem:[#allocation4 + $0x1e0] sm:$0xff] %v13419_v1  ;;  %2581 = vst [vmem:[#allocation4 + $0x1e8] sm:$0xff] %v13419_v1 }
  0x3f   :  { %2582 = vst [vmem:[#allocation4 + $0x1f0] sm:$0x3] %v13419_v1  ;;  %2583 = vst [vmem:[#allocation4 + $0x1f8] sm:$0x3] %v13419_v1 }
  0x40   :  { %2584 = vst [vmem:[#allocation4 + $0x200] sm:$0xff] %v13419_v1  ;;  %2585 = vst [vmem:[#allocation4 + $0x208] sm:$0xff] %v13419_v1 }
  0x41   :  { %2586 = vst [vmem:[#allocation4 + $0x210] sm:$0x3] %v13419_v1  ;;  %2587 = vst [vmem:[#allocation4 + $0x218] sm:$0x3] %v13419_v1 }
  0x42   :  { %2588 = vst [vmem:[#allocation4 + $0x220] sm:$0xff] %v13419_v1  ;;  %2589 = vst [vmem:[#allocation4 + $0x228] sm:$0xff] %v13419_v1 }
  0x43   :  { %2590 = vst [vmem:[#allocation4 + $0x230] sm:$0x3] %v13419_v1  ;;  %2591 = vst [vmem:[#allocation4 + $0x238] sm:$0x3] %v13419_v1 }
  0x44   :  { %2592 = vst [vmem:[#allocation4 + $0x240] sm:$0xff] %v13419_v1  ;;  %2593 = vst [vmem:[#allocation4 + $0x248] sm:$0xff] %v13419_v1 }
  0x45   :  { %2594 = vst [vmem:[#allocation4 + $0x250] sm:$0x3] %v13419_v1  ;;  %2595 = vst [vmem:[#allocation4 + $0x258] sm:$0x3] %v13419_v1 }
  0x46   :  { %2596 = vst [vmem:[#allocation4 + $0x260] sm:$0xff] %v13419_v1  ;;  %2597 = vst [vmem:[#allocation4 + $0x268] sm:$0xff] %v13419_v1 }
  0x47   :  { %2598 = vst [vmem:[#allocation4 + $0x270] sm:$0x3] %v13419_v1  ;;  %2599 = vst [vmem:[#allocation4 + $0x278] sm:$0x3] %v13419_v1 }
  0x48   :  { %6867 = vst [vmem:[#allocation5] sm:$0xff] %v13419_v1  ;;  %6868 = vst [vmem:[#allocation5 + $0x8] sm:$0x3] %v13419_v1 }
  0x49   :  { %6869 = vst [vmem:[#allocation5 + $0x10] sm:$0xff] %v13419_v1  ;;  %6870 = vst [vmem:[#allocation5 + $0x18] sm:$0x3] %v13419_v1 }
  0x4a   :  { %6871 = vst [vmem:[#allocation5 + $0x20] sm:$0xff] %v13419_v1  ;;  %6872 = vst [vmem:[#allocation5 + $0x28] sm:$0x3] %v13419_v1 }
  0x4b   :  { %6873 = vst [vmem:[#allocation5 + $0x30] sm:$0xff] %v13419_v1  ;;  %6874 = vst [vmem:[#allocation5 + $0x38] sm:$0x3] %v13419_v1 }
  0x4c   :  { %6875 = vst [vmem:[#allocation5 + $0x40] sm:$0xff] %v13419_v1  ;;  %6876 = vst [vmem:[#allocation5 + $0x48] sm:$0x3] %v13419_v1 }
  0x4d   :  { %6877 = vst [vmem:[#allocation5 + $0x50] sm:$0xff] %v13419_v1  ;;  %6878 = vst [vmem:[#allocation5 + $0x58] sm:$0x3] %v13419_v1 }
  0x4e   :  { %6879 = vst [vmem:[#allocation5 + $0x60] sm:$0xff] %v13419_v1  ;;  %6880 = vst [vmem:[#allocation5 + $0x68] sm:$0x3] %v13419_v1 }
  0x4f   :  { %6881 = vst [vmem:[#allocation5 + $0x70] sm:$0xff] %v13419_v1  ;;  %6882 = vst [vmem:[#allocation5 + $0x78] sm:$0x3] %v13419_v1 }
  0x50   :  { %6883 = vst [vmem:[#allocation5 + $0x80] sm:$0xff] %v13419_v1  ;;  %6884 = vst [vmem:[#allocation5 + $0x88] sm:$0x3] %v13419_v1 }
  0x51   :  { %6885 = vst [vmem:[#allocation5 + $0x90] sm:$0xff] %v13419_v1  ;;  %6886 = vst [vmem:[#allocation5 + $0x98] sm:$0x3] %v13419_v1 }
  0x52   :  { %6887 = vst [vmem:[#allocation5 + $0xa0] sm:$0xff] %v13419_v1  ;;  %6888 = vst [vmem:[#allocation5 + $0xa8] sm:$0x3] %v13419_v1 }
  0x53   :  { %6889 = vst [vmem:[#allocation5 + $0xb0] sm:$0xff] %v13419_v1  ;;  %6890 = vst [vmem:[#allocation5 + $0xb8] sm:$0x3] %v13419_v1 }
  0x54   :  { %6891 = vst [vmem:[#allocation5 + $0xc0] sm:$0xff] %v13419_v1  ;;  %6892 = vst [vmem:[#allocation5 + $0xc8] sm:$0x3] %v13419_v1 }
  0x55   :  { %6893 = vst [vmem:[#allocation5 + $0xd0] sm:$0xff] %v13419_v1  ;;  %6894 = vst [vmem:[#allocation5 + $0xd8] sm:$0x3] %v13419_v1 }
  0x56   :  { %6895 = vst [vmem:[#allocation5 + $0xe0] sm:$0xff] %v13419_v1  ;;  %6896 = vst [vmem:[#allocation5 + $0xe8] sm:$0x3] %v13419_v1 }
  0x57   :  { %6897 = vst [vmem:[#allocation5 + $0xf0] sm:$0xff] %v13419_v1  ;;  %6898 = vst [vmem:[#allocation5 + $0xf8] sm:$0x3] %v13419_v1 }
  0x58   :  { %6899 = vst [vmem:[#allocation5 + $0x100] sm:$0xff] %v13419_v1  ;;  %6900 = vst [vmem:[#allocation5 + $0x108] sm:$0x3] %v13419_v1 }
  0x59   :  { %6901 = vst [vmem:[#allocation5 + $0x110] sm:$0xff] %v13419_v1  ;;  %6902 = vst [vmem:[#allocation5 + $0x118] sm:$0x3] %v13419_v1 }
  0x5a   :  { %6903 = vst [vmem:[#allocation5 + $0x120] sm:$0xff] %v13419_v1  ;;  %6904 = vst [vmem:[#allocation5 + $0x128] sm:$0x3] %v13419_v1 }
  0x5b   :  { %6905 = vst [vmem:[#allocation5 + $0x130] sm:$0xff] %v13419_v1  ;;  %6906 = vst [vmem:[#allocation5 + $0x138] sm:$0x3] %v13419_v1 }
  0x96   :  { %v106_v28 = vpop.permute.xlu1 %105 }
  0x97   :  { %v96_v27 = vpop.permute.xlu0 %95 }
  0x9a   :  { %v111_v30 = vpop.permute.xlu1 %110 }
  0x9f   :  { %v13741_v29 = vpop.permute.xlu0 %1317 }
  0xa0   :  { %v121_v41 = vpop.permute.xlu1 %120 }
  0xa4   :  { %v101_v31 = vpop.permute.xlu0 %100  ;;  %v131_v50 = vpop.permute.xlu1 %130 }
  0xa8   :  { %v116_v37 = vpop.permute.xlu0 %115 }
  0xa9   :  { %v13784_v10 = vpop.permute.xlu1 %1216 }
  0xac   :  { %v126_v47 = vpop.permute.xlu0 %125 }
  0xad   :  { %v13792_v13 = vpop.permute.xlu1 %1418 }
  0xb0   :  { %v13781_v9 = vpop.permute.xlu0 %282 }
  0xb2   :  { %v13798_v15 = vpop.permute.xlu1 %930 }
  0xb3   :  { %18329 = vst [vmem:[#allocation10_spill] sm:$0xff] %v13798_v15 }
  0xb4   :  { %v13786_v11 = vpop.permute.xlu0 %384 }
  0xb6   :  { %v13806_v19 = vpop.permute.xlu1 %1134 }
  0xb7   :  { %18332 = vst [vmem:[#allocation13_spill] sm:$0xff] %v13806_v19 }
  0xb8   :  { %v13796_v14 = vpop.permute.xlu0 %486 }
  0xbc   :  { %v13804_v18 = vpop.permute.xlu0 %1032 }
  0xbd   :  { %18331 = vst [vmem:[#allocation12_spill] sm:$0xff] %v13804_v18 }
  0xfa   :  { %v12240_v32 = vpop.f32.mrb[0].mxu0 }
  0xfb   :  { %v209_v33 = vadd.f32 %v12240_v32, %v106_v28  ;;  %v200_v34 = vpop.f32.mrb[1].mxu0 }
  0xfc   :  { %v201_v35 = vadd.f32 %v200_v34, %v96_v27  ;;  %v12241_v36 = vpop.f32.mrb[2].mxu0 }
  0xfd   :  { %v233_v38 = vmax.f32 %v209_v33, 0.0  ;;  %v212_v39 = vadd.f32 %v12241_v36, %v111_v30  ;;  %v203_v40 = vpop.f32.mrb[3].mxu0 }
  0xfe   :  { %v231_v42 = vmax.f32 %v201_v35, 0.0  ;;  %v204_v43 = vadd.f32 %v203_v40, %v101_v31 }
  0xff   :  { %264 = vst.msk [vmem:[#allocation2 + $0x31] sm:$0xff] %vm239_vm0, %v233_v38  ;;  %v234_v44 = vmax.f32 %v212_v39, 0.0 }
 0x100   :  { %262 = vst.msk [vmem:[#allocation2 + $0x11] sm:$0xff] %vm239_vm0, %v231_v42  ;;  %v232_v45 = vmax.f32 %v204_v43, 0.0 }
 0x101   :  { %265 = vst.msk [vmem:[#allocation2 + $0x41] sm:$0xff] %vm239_vm0, %v234_v44 }
 0x102   :  { %263 = vst.msk [vmem:[#allocation2 + $0x21] sm:$0xff] %vm239_vm0, %v232_v45  ;;  %v12244_v46 = vpop.f32.mrb[4].mxu0 }
 0x103   :  { %v216_v48 = vpop.f32.mrb[5].mxu0  ;;  %v225_v49 = vadd.f32 %v12244_v46, %v126_v47 }
 0x104   :  { %v12245_v51 = vpop.f32.mrb[6].mxu0  ;;  %v217_v52 = vadd.f32 %v216_v48, %v116_v37 }
 0x105   :  { %v228_v53 = vadd.f32 %v12245_v51, %v131_v50  ;;  %v219_v54 = vpop.f32.mrb[7].mxu0  ;;  %v237_v55 = vmax.f32 %v225_v49, 0.0 }
 0x106   :  { %v220_v56 = vadd.f32 %v219_v54, %v121_v41  ;;  %v374_v57 = vld [vmem:[#allocation2 + $0x31] sm:$0xff]  ;;  %v235_v59 = vmax.f32 %v217_v52, 0.0 }
 0x107   :  { %v273_v58 = vld [vmem:[#allocation2 + $0x30] sm:$0xff]  ;;  %v238_v60 = vmax.f32 %v228_v53, 0.0  ;;  %399 = vperm.xlu1 %13033, %v374_v57   ;;  %268 = vst.msk [vmem:[#allocation2 + $0x71] sm:$0xff] %vm239_vm0, %v237_v55 }
 0x108   :  { %297 = vperm.xlu0 %13032, %v273_v58   ;;  %v236_v61 = vmax.f32 %v220_v56, 0.0  ;;  %266 = vst.msk [vmem:[#allocation2 + $0x51] sm:$0xff] %vm239_vm0, %v235_v59  ;;  %v476_v62 = vld [vmem:[#allocation2 + $0x32] sm:$0xff]  ;;  %v13757_v3 = vld [vmem:[#allocation2 + $0x41] sm:$0xff]  ;;  %v321_v56 = vlaneseq }
 0x109   :  { %269 = vst.msk [vmem:[#allocation2 + $0x81] sm:$0xff] %vm239_vm0, %v238_v60  ;;  %v779_v63 = vld [vmem:[#allocation2 + $0x12] sm:$0xff]  ;;  %v13760_v4 = vld [vmem:[#allocation2 + $0x40] sm:$0xff] }
 0x10a   :  { %267 = vst.msk [vmem:[#allocation2 + $0x61] sm:$0xff] %vm239_vm0, %v236_v61  ;;  %v1306_v1 = vld [vmem:[#allocation2 + $0x11] sm:$0xff]  ;;  %v1088_v5 = vld [vmem:[#allocation2 + $0x42] sm:$0xff]  ;;  %v13919_v59 = vshrl.u32 %v321_v56, 7 }
 0x10b   :  { %501 = vperm.xlu1 %13033, %v476_v62   ;;  %v271_v2 = vld [vmem:[#allocation2 + $0x10] sm:$0xff]  ;;  %v272_v6 = vld [vmem:[#allocation2 + $0x20] sm:$0xff] }
 0x10c   :  { %598 = vperm.xlu0 %13032, %v273_v58   ;;  %v13773_v7 = vld [vmem:[#allocation2 + $0x22] sm:$0xff] }
 0x10d   :  { %v678_v8 = vld [vmem:[#allocation2 + $0x21] sm:$0xff] }
 0x10e   :  { %v13789_v12 = vld [vmem:[#allocation2 + $0x70] sm:$0xff]  ;;  %v10853_v61 = vld [vmem:[%s18167_s3 + $0x2] sm:$0x3] }
 0x10f   :  { %700 = vperm.xlu1 %13033, %v374_v57   ;;  %v13801_v17 = vld [vmem:[#allocation2 + $0x72] sm:$0xff] }
 0x110   :  { %1002 = vperm.xlu0 %13032, %v374_v57   ;;  %18330 = vst [vmem:[#allocation11_spill] sm:$0xff] %v13801_v17  ;;  %v13816_v22 = vld [vmem:[#allocation2 + $0x51] sm:$0xff]  ;;  %v13866_v40 = vld [vmem:[#allocation2 + $0x82] sm:$0xff] }
 0x111   :  { %v13824_v25 = vld [vmem:[#allocation2 + $0x52] sm:$0xff]  ;;  %18348 = vst [vmem:[#allocation29_spill] sm:$0xff] %v13866_v40  ;;  %v13874_v43 = vld [vmem:[#allocation2 + $0x81] sm:$0xff] }
 0x112   :  { %18336 = vst [vmem:[#allocation17_spill] sm:$0xff] %v13824_v25  ;;  %v13837_v31 = vld [vmem:[#allocation2 + $0x71] sm:$0xff]  ;;  %v13883_v46 = vld [vmem:[#allocation2 + $0x60] sm:$0xff] }
 0x113   :  { %802 = vperm.xlu1 %13033, %v476_v62   ;;  %18339 = vst [vmem:[#allocation20_spill] sm:$0xff] %v13837_v31  ;;  %v13889_v48 = vld [vmem:[#allocation2 + $0x50] sm:$0xff]  ;;  %v13894_v50 = vld [vmem:[#allocation2 + $0x62] sm:$0xff] }
 0x114   :  { %1104 = vperm.xlu0 %13032, %v476_v62   ;;  %18352 = vst [vmem:[#allocation33_spill] sm:$0xff] %v13889_v48 }
 0x117   :  { %900 = vperm.xlu1 %13033, %v273_v58  }
 0x118   :  { %13035 = vset.pattern.permute.xlu0 %v18184_v16 }
 0x119   :  { %1332 = vperm.xlu0 %13035, %v374_v57  }
 0x11b   :  { %13034 = vset.pattern.permute.xlu1 %v18184_v16 }
 0x11c   :  { %1231 = vperm.xlu1 %13034, %v273_v58  }
 0x11d   :  { %1630 = vperm.xlu0 %13035, %v374_v57  }
 0x120   :  { %1433 = vperm.xlu1 %13034, %v476_v62  }
 0x121   :  { %1827 = vperm.xlu0 %13035, %v273_v58  }
 0x124   :  { %1529 = vperm.xlu1 %13034, %v273_v58  }
 0x125   :  { %13037 = vset.pattern.permute.xlu0 %v18185_v0 }
 0x126   :  { %792 = vperm.xlu0 %13037, %v779_v63  }
 0x128   :  { %1731 = vperm.xlu1 %13034, %v476_v62   ;;  %v278_v62 = vld [vmem:[%s18167_s3] sm:$0x3] }
 0x12a   :  { %13039 = vset.pattern.permute.xlu0 %v18184_v16 }
 0x12b   :  { %1322 = vperm.xlu0 %13039, %v1306_v1  }
 0x12c   :  { %13036 = vset.pattern.permute.xlu1 %v18185_v0 }
 0x12d   :  { %287 = vperm.xlu1 %13036, %v271_v2  }
 0x12f   :  { %1620 = vperm.xlu0 %13039, %v1306_v1  }
 0x131   :  { %389 = vperm.xlu1 %13036, %v1306_v1  }
 0x133   :  { %13041 = vset.pattern.permute.xlu0 %v18185_v0 }
 0x134   :  { %404 = vperm.xlu0 %13041, %v13757_v3  }
 0x135   :  { %491 = vperm.xlu1 %13036, %v779_v63  }
 0x138   :  { %603 = vperm.xlu0 %13041, %v13760_v4  }
 0x139   :  { %588 = vperm.xlu1 %13036, %v271_v2  }
 0x13c   :  { %705 = vperm.xlu0 %13041, %v13757_v3  }
 0x13d   :  { %690 = vperm.xlu1 %13036, %v1306_v1   ;;  %v10845_v1 = vld [vmem:[%s18167_s3 + $0x2] sm:$0x3] }
 0x140   :  { %905 = vperm.xlu0 %13041, %v13760_v4  }
 0x141   :  { %13038 = vset.pattern.permute.xlu1 %v18184_v16 }
 0x142   :  { %1221 = vperm.xlu1 %13038, %v271_v2  }
 0x144   :  { %1007 = vperm.xlu0 %13041, %v13757_v3  }
 0x146   :  { %1423 = vperm.xlu1 %13038, %v779_v63  }
 0x148   :  { %1109 = vperm.xlu0 %13041, %v1088_v5  }
 0x14a   :  { %1519 = vperm.xlu1 %13038, %v271_v2  }
 0x14c   :  { %13043 = vset.pattern.permute.xlu0 %v18184_v16 }
 0x14d   :  { %1337 = vperm.xlu0 %13043, %v13757_v3  }
 0x14e   :  { %1721 = vperm.xlu1 %13038, %v779_v63   ;;  %v1212_v63 = vld [vmem:[%s18167_s3] sm:$0x3] }
 0x151   :  { %1635 = vperm.xlu0 %13043, %v13757_v3  }
 0x152   :  { %13040 = vset.pattern.permute.xlu1 %v18185_v0 }
 0x153   :  { %302 = vperm.xlu1 %13040, %v13760_v4  }
 0x155   :  { %13044 = vset.pattern.permute.xlu0 %v18185_v0 }
 0x156   :  { %292 = vperm.xlu0 %13044, %v272_v6  }
 0x157   :  { %506 = vperm.xlu1 %13040, %v1088_v5  }
 0x15a   :  { %496 = vperm.xlu0 %13044, %v13773_v7  }
 0x15b   :  { %807 = vperm.xlu1 %13040, %v1088_v5  }
 0x15e   :  { %593 = vperm.xlu0 %13044, %v272_v6  }
 0x15f   :  { %13042 = vset.pattern.permute.xlu1 %v18184_v16 }
 0x160   :  { %1236 = vperm.xlu1 %13042, %v13760_v4  }
 0x162   :  { %695 = vperm.xlu0 %13044, %v678_v8  }
 0x164   :  { %1438 = vperm.xlu1 %13042, %v1088_v5   ;;  %v13940_v5 = vsub.s32 0, %v13919_v59 }
 0x166   :  { %895 = vperm.xlu0 %13044, %v272_v6   ;;  %18360 = vst [vmem:[#allocation41_spill] sm:$0xff] %v13940_v5 }
 0x168   :  { %1534 = vperm.xlu1 %13042, %v13760_v4  }
 0x16a   :  { %13047 = vset.pattern.permute.xlu0 %v18184_v16 }
 0x16b   :  { %1327 = vperm.xlu0 %13047, %v678_v8  }
 0x16c   :  { %13045 = vset.pattern.permute.xlu1 %v18185_v0 }
 0x16d   :  { %394 = vperm.xlu1 %13045, %v678_v8  }
 0x16f   :  { %1625 = vperm.xlu0 %13047, %v678_v8  }
 0x171   :  { %797 = vperm.xlu1 %13045, %v13773_v7  }
 0x173   :  { %1822 = vperm.xlu0 %13047, %v272_v6  }
 0x175   :  { %997 = vperm.xlu1 %13045, %v678_v8  }
 0x177   :  { %13048 = vset.pattern.permute.xlu0 %v18185_v0 }
 0x178   :  { %317 = vperm.xlu0 %13048, %v13789_v12  }
 0x179   :  { %1099 = vperm.xlu1 %13045, %v13773_v7  }
 0x17c   :  { %618 = vperm.xlu0 %13048, %v13789_v12  }
 0x17d   :  { %13046 = vset.pattern.permute.xlu1 %v18184_v16 }
 0x17e   :  { %1226 = vperm.xlu1 %13046, %v272_v6  }
 0x180   :  { %822 = vperm.xlu0 %13048, %v13801_v17  }
 0x182   :  { %1428 = vperm.xlu1 %13046, %v13773_v7  }
 0x184   :  { %13050 = vset.pattern.permute.xlu0 %v18184_v16 }
 0x185   :  { %1251 = vperm.xlu0 %13050, %v13789_v12  }
 0x186   :  { %v13811_v20 = vpop.permute.xlu1 %399  ;;  %1524 = vperm.xlu1 %13046, %v272_v6   ;;  %v13943_v6 = vsub.s32 2, %v13919_v59 }
 0x187   :  { %18333 = vst [vmem:[#allocation14_spill] sm:$0xff] %v13811_v20  ;;  %v13813_v21 = vpop.permute.xlu0 %297 }
 0x188   :  { %18334 = vst [vmem:[#allocation15_spill] sm:$0xff] %v13813_v21 }
 0x189   :  { %13053 = vset.pattern.permute.xlu0 %v18185_v0 }
 0x18a   :  { %409 = vperm.xlu0 %13053, %v13816_v22   ;;  %v13819_v23 = vpop.permute.xlu1 %501  ;;  %1726 = vperm.xlu1 %13046, %v13773_v7  }
 0x18b   :  { %18335 = vst [vmem:[#allocation16_spill] sm:$0xff] %v13819_v23  ;;  %v13821_v24 = vpop.permute.xlu0 %598 }
 0x18e   :  { %511 = vperm.xlu0 %13053, %v13824_v25   ;;  %v13827_v26 = vpop.permute.xlu1 %700  ;;  %1923 = vperm.xlu1 %13046, %v678_v8   ;;  %v1314_v8 = vunpack.c.l.bf16 %v10853_v61  ;;  %v18363_v61 = vmov 0  }
 0x18f   :  { %v13829_v27 = vpop.permute.xlu0 %1002 }
 0x190   :  { %18337 = vst [vmem:[#allocation18_spill] sm:$0xff] %v13829_v27 }
 0x192   :  { %710 = vperm.xlu0 %13053, %v13816_v22   ;;  %v13832_v28 = vpop.permute.xlu1 %802  ;;  %13049 = vset.pattern.permute.xlu1 %v18185_v0 }
 0x193   :  { %v13834_v30 = vpop.permute.xlu0 %1104  ;;  %419 = vperm.xlu1 %13049, %v13837_v31  }
 0x194   :  { %18338 = vst [vmem:[#allocation19_spill] sm:$0xff] %v13834_v30 }
 0x196   :  { %812 = vperm.xlu0 %13053, %v13824_v25   ;;  %v13841_v32 = vpop.permute.xlu1 %900 }
 0x197   :  { %18340 = vst [vmem:[#allocation21_spill] sm:$0xff] %v13841_v32  ;;  %521 = vperm.xlu1 %13049, %v13801_v17  }
 0x198   :  { %v13843_v33 = vpop.permute.xlu0 %1332 }
 0x199   :  { %18341 = vst [vmem:[#allocation22_spill] sm:$0xff] %v13843_v33  ;;  %v13957_v33 = vld [vmem:[#allocation2 + $0x80] sm:$0xff] }
 0x19a   :  { %1114 = vperm.xlu0 %13053, %v13824_v25  }
 0x19b   :  { %v13847_v34 = vpop.permute.xlu1 %1231  ;;  %720 = vperm.xlu1 %13049, %v13837_v31  }
 0x19c   :  { %18342 = vst [vmem:[#allocation23_spill] sm:$0xff] %v13847_v34  ;;  %v13849_v35 = vpop.permute.xlu0 %1630 }
 0x19d   :  { %18343 = vst [vmem:[#allocation24_spill] sm:$0xff] %v13849_v35  ;;  %v1359_v35 = vrot.slane %v1314_v8, %v13940_v5 }
 0x19e   :  { %13055 = vset.pattern.permute.xlu0 %v18184_v16 }
 0x19f   :  { %1342 = vperm.xlu0 %13055, %v13816_v22   ;;  %v13854_v36 = vpop.permute.xlu1 %1433  ;;  %920 = vperm.xlu1 %13049, %v13789_v12  }
 0x1a0   :  { %18344 = vst [vmem:[#allocation25_spill] sm:$0xff] %v13854_v36  ;;  %v13856_v37 = vpop.permute.xlu0 %1827  ;;  %v10854_v36 = vld [vmem:[%s18167_s3 + $0x4] sm:$0x3] }
 0x1a1   :  { %18345 = vst [vmem:[#allocation26_spill] sm:$0xff] %v13856_v37  ;;  %v1415_v18 = vunpack.c.l.bf16 %v10854_v36 }
 0x1a3   :  { %1443 = vperm.xlu0 %13055, %v13824_v25   ;;  %v13860_v38 = vpop.permute.xlu1 %1529  ;;  %1022 = vperm.xlu1 %13049, %v13837_v31  }
 0x1a4   :  { %18346 = vst [vmem:[#allocation27_spill] sm:$0xff] %v13860_v38  ;;  %v1363_v38 = vrot.slane %v1314_v8, %v13943_v6 }
 0x1a5   :  { %v13863_v39 = vpop.permute.xlu0 %792 }
 0x1a6   :  { %18347 = vst [vmem:[#allocation28_spill] sm:$0xff] %v13863_v39 }
 0x1a7   :  { %13057 = vset.pattern.permute.xlu0 %v18185_v0  ;;  %v13868_v41 = vpop.permute.xlu1 %1731  ;;  %1124 = vperm.xlu1 %13049, %v13801_v17  }
 0x1a8   :  { %18349 = vst [vmem:[#allocation30_spill] sm:$0xff] %v13868_v41  ;;  %827 = vperm.xlu0 %13057, %v13866_v40   ;;  %v381_v41 = vunpack.c.l.bf16 %v10845_v1 }
 0x1aa   :  { %v13872_v42 = vpop.permute.xlu0 %1322  ;;  %v426_v8 = vrot.slane %v381_v41, %v13940_v5  ;;  %v430_v15 = vrot.slane %v381_v41, %v13943_v6 }
 0x1ab   :  { %18350 = vst [vmem:[#allocation31_spill] sm:$0xff] %v13872_v42  ;;  %13051 = vset.pattern.permute.xlu1 %v18184_v16 }
 0x1ac   :  { %1027 = vperm.xlu0 %13057, %v13874_v43   ;;  %1352 = vperm.xlu1 %13051, %v13837_v31   ;;  %v13879_v44 = vpop.permute.xlu1 %287 }
 0x1ae   :  { %v13881_v45 = vpop.permute.xlu0 %1620 }
 0x1af   :  { %18351 = vst [vmem:[#allocation32_spill] sm:$0xff] %v13881_v45 }
 0x1b0   :  { %312 = vperm.xlu0 %13057, %v13883_v46   ;;  %13052 = vset.pattern.permute.xlu1 %v18185_v0  ;;  %v13887_v47 = vpop.permute.xlu1 %389  ;;  %v1213_v0 = vunpack.c.l.bf16 %v1212_v63 }
 0x1b1   :  { %307 = vperm.xlu1 %13052, %v13889_v48  }
 0x1b2   :  { %v1258_v1 = vrot.slane %v1213_v0, %v13940_v5  ;;  %v1262_v34 = vrot.slane %v1213_v0, %v13943_v6  ;;  %v13978_v0 = vrot.slane %v1363_v38, %v13940_v5  ;;  %v13999_v38 = vrot.slane %v426_v8, %v13940_v5 }
 0x1b3   :  { %v13892_v49 = vpop.permute.xlu0 %404 }
 0x1b4   :  { %18353 = vst [vmem:[#allocation34_spill] sm:$0xff] %v13892_v49  ;;  %516 = vperm.xlu0 %13057, %v13894_v50   ;;  %v13897_v51 = vpop.permute.xlu1 %491  ;;  %18367 = vst [vmem:[#allocation47_spill] sm:$0xff] %v13978_v0 }
 0x1b5   :  { %608 = vperm.xlu1 %13052, %v13889_v48   ;;  %18373 = vst [vmem:[#allocation53_spill] sm:$0xff] %v13999_v38 }
 0x1b7   :  { %v13900_v52 = vpop.permute.xlu0 %603 }
 0x1b8   :  { %18354 = vst [vmem:[#allocation35_spill] sm:$0xff] %v13900_v52  ;;  %817 = vperm.xlu0 %13057, %v13894_v50   ;;  %v13903_v53 = vpop.permute.xlu1 %588  ;;  %v13990_v52 = vrot.slane %v1262_v34, %v13940_v5  ;;  %v1460_v34 = vrot.slane %v1415_v18, %v13940_v5 }
 0x1b9   :  { %910 = vperm.xlu1 %13052, %v13889_v48  }
 0x1ba   :  { %18371 = vst [vmem:[#allocation51_spill] sm:$0xff] %v13990_v52  ;;  %v14038_v31 = vrot.slane %v1460_v34, %v13940_v5 }
 0x1bb   :  { %v13906_v54 = vpop.permute.xlu0 %705 }
 0x1bc   :  { %18355 = vst [vmem:[#allocation36_spill] sm:$0xff] %v13906_v54  ;;  %1119 = vperm.xlu0 %13057, %v13894_v50   ;;  %v13909_v55 = vpop.permute.xlu1 %690  ;;  %v13975_v54 = vrot.slane %v1359_v35, %v13940_v5  ;;  %v10847_v35 = vld [vmem:[%s18167_s3 + $0x6] sm:$0x3]  ;;  %18376 = vst [vmem:[#allocation56_spill] sm:$0xff] %v14038_v31 }
 0x1bd   :  { %1012 = vperm.xlu1 %13052, %v13816_v22   ;;  %v585_v23 = vunpack.c.l.bf16 %v10847_v35 }
 0x1be   :  { %18366 = vst [vmem:[#allocation46_spill] sm:$0xff] %v13975_v54  ;;  %v1374_v49 = vmul.f32 %v13975_v54, %v13741_v29 }
 0x1bf   :  { %v13912_v57 = vpop.permute.xlu0 %905 }
 0x1c0   :  { %18356 = vst [vmem:[#allocation37_spill] sm:$0xff] %v13912_v57  ;;  %13058 = vset.pattern.permute.xlu0 %v18184_v16 }
 0x1c1   :  { %1246 = vperm.xlu0 %13058, %v13883_v46   ;;  %13054 = vset.pattern.permute.xlu1 %v18184_v16  ;;  %v13917_v58 = vpop.permute.xlu1 %1221  ;;  %v279_v16 = vunpack.c.l.bf16 %v278_v62 }
 0x1c2   :  { %18357 = vst [vmem:[#allocation38_spill] sm:$0xff] %v13917_v58  ;;  %1241 = vperm.xlu1 %13054, %v13889_v48  }
 0x1c3   :  { %v13921_v60 = vpop.permute.xlu0 %1007  ;;  %v324_v62 = vrot.slane %v279_v16, %v13940_v5  ;;  %v328_v63 = vrot.slane %v279_v16, %v13943_v6 }
 0x1c4   :  { %18358 = vst [vmem:[#allocation39_spill] sm:$0xff] %v13921_v60 }
 0x1c5   :  { %1448 = vperm.xlu0 %13058, %v13894_v50   ;;  %v13937_v2 = vpop.permute.xlu1 %1423  ;;  %v13984_v41 = vrot.slane %v328_v63, %v13940_v5 }
 0x1c6   :  { %18359 = vst [vmem:[#allocation40_spill] sm:$0xff] %v13937_v2  ;;  %1539 = vperm.xlu1 %13054, %v13889_v48  }
 0x1c7   :  { %v13945_v56 = vpop.permute.xlu0 %1109  ;;  %18369 = vst [vmem:[#allocation49_spill] sm:$0xff] %v13984_v41  ;;  %v340_v8 = vmul.f32 %v13984_v41, %v13781_v9 }
 0x1c8   :  { %18361 = vst [vmem:[#allocation42_spill] sm:$0xff] %v13945_v56 }
 0x1c9   :  { %1640 = vperm.xlu0 %13058, %v13816_v22   ;;  %v13949_v37 = vpop.permute.xlu1 %1519 }
 0x1ca   :  { %18362 = vst [vmem:[#allocation43_spill] sm:$0xff] %v13949_v37  ;;  %13056 = vset.pattern.permute.xlu1 %v18363_v61  ;;  %v10846_v61 = vld [vmem:[%s18167_s3 + $0x4] sm:$0x3] }
 0x1cb   :  { %623 = vperm.xlu1 %13056, %v13957_v33   ;;  %v483_v63 = vunpack.c.l.bf16 %v10846_v61  ;;  %v10848_v61 = vld [vmem:[%s18167_s3 + $0x8] sm:$0x3] }
 0x1cc   :  { %v13963_v19 = vpop.permute.xlu0 %1337  ;;  %v687_v45 = vunpack.c.l.bf16 %v10848_v61 }
 0x1cd   :  { %18364 = vst [vmem:[#allocation44_spill] sm:$0xff] %v13963_v19  ;;  %1832 = vperm.xlu0 %13058, %v13760_v4   ;;  %v13972_v16 = vpop.permute.xlu1 %1721  ;;  %v13981_v19 = vrot.slane %v324_v62, %v13940_v5  ;;  %v13987_v4 = vrot.slane %v1258_v1, %v13940_v5  ;;  %v14002_v62 = vrot.slane %v430_v15, %v13940_v5 }
 0x1ce   :  { %18365 = vst [vmem:[#allocation45_spill] sm:$0xff] %v13972_v16  ;;  %v1464_v1 = vrot.slane %v1415_v18, %v13943_v6  ;;  %v1274_v18 = vmul.f32 %v13990_v52, %v13784_v10  ;;  %v634_v16 = vrot.slane %v585_v23, %v13943_v6 }
 0x1cf   :  { %18368 = vst [vmem:[#allocation48_spill] sm:$0xff] %v13981_v19  ;;  %18370 = vst [vmem:[#allocation50_spill] sm:$0xff] %v13987_v4  ;;  %725 = vperm.xlu1 %13056, %v13874_v43   ;;  %v339_v15 = vmul.f32 %v13981_v19, %v13781_v9  ;;  %v442_v35 = vmul.f32 %v14002_v62, %v13786_v11  ;;  %v528_v9 = vrot.slane %v483_v63, %v13940_v5 }
 0x1d0   :  { %v13995_v36 = vpop.permute.xlu0 %1635  ;;  %18374 = vst [vmem:[#allocation54_spill] sm:$0xff] %v14002_v62  ;;  %v14041_v48 = vrot.slane %v1464_v1, %v13940_v5 }
 0x1d1   :  { %18372 = vst [vmem:[#allocation52_spill] sm:$0xff] %v13995_v36  ;;  %2024 = vperm.xlu0 %13058, %v13773_v7   ;;  %v1375_v36 = vmul.f32 %v13978_v0, %v13741_v29  ;;  %v1273_v7 = vmul.f32 %v13987_v4, %v13784_v10  ;;  %v441_v29 = vmul.f32 %v13999_v38, %v13786_v11  ;;  %v10851_v10 = vld [vmem:[%s18167_s3 + $0xe] sm:$0x3] }
 0x1d2   :  { %v14011_v21 = vpop.permute.xlu1 %302  ;;  %18377 = vst [vmem:[#allocation57_spill] sm:$0xff] %v14041_v48  ;;  %v630_v11 = vrot.slane %v585_v23, %v13940_v5  ;;  %v994_v0 = vunpack.c.l.bf16 %v10851_v10  ;;  %v458_v37 = vadd.f32 %v442_v35, %v340_v8  ;;  %v14049_v34 = vrot.slane %v528_v9, %v13940_v5 }
 0x1d3   :  { %18375 = vst [vmem:[#allocation55_spill] sm:$0xff] %v14011_v21  ;;  %925 = vperm.xlu1 %13056, %v13957_v33   ;;  %v532_v21 = vrot.slane %v483_v63, %v13943_v6  ;;  %v1390_v2 = vadd.f32 %v1374_v49, %v1273_v7  ;;  %v1391_v17 = vadd.f32 %v1375_v36, %v1274_v18 }
 0x1d4   :  { %v457_v52 = vadd.f32 %v441_v29, %v339_v15  ;;  %v1475_v23 = vmul.f32 %v14038_v31, %v13792_v13  ;;  %v1476_v49 = vmul.f32 %v14041_v48, %v13792_v13  ;;  %v443_v36 = vmul.f32 %v13999_v38, %v13887_v47  ;;  %v14075_v29 = vld [vmem:[#allocation2 + $0x61] sm:$0xff]  ;;  %v10850_v13 = vld [vmem:[%s18167_s3 + $0xc] sm:$0x3] }
 0x1d5   :  { %1549 = vperm.xlu0 %13058, %v13789_v12   ;;  %v14035_v20 = vpop.permute.xlu0 %292  ;;  %v14052_v1 = vrot.slane %v532_v21, %v13940_v5  ;;  %v444_v15 = vmul.f32 %v14002_v62, %v13887_v47  ;;  %v14066_v8 = vrot.slane %v630_v11, %v13940_v5  ;;  %v14069_v21 = vrot.slane %v634_v16, %v13940_v5  ;;  %v10852_v47 = vld [vmem:[%s18167_s3 + $0x10] sm:$0x3]  ;;  %v10858_v48 = vld [vmem:[%s18167_s3 + $0xc] sm:$0x3] }
 0x1d6   :  { %v14045_v63 = vpop.permute.xlu1 %506  ;;  %v732_v7 = vrot.slane %v687_v45, %v13940_v5  ;;  %v736_v18 = vrot.slane %v687_v45, %v13943_v6  ;;  %v341_v16 = vmul.f32 %v13981_v19, %v13879_v44  ;;  %v342_v35 = vmul.f32 %v13984_v41, %v13879_v44  ;;  %v10849_v44 = vld [vmem:[%s18167_s3 + $0xa] sm:$0x3] }
 0x1d7   :  { %18378 = vst [vmem:[#allocation58_spill] sm:$0xff] %v14045_v63  ;;  %1129 = vperm.xlu1 %13056, %v13866_v40   ;;  %18379 = vst [vmem:[#allocation59_spill] sm:$0xff] %v14066_v8  ;;  %v545_v45 = vmul.f32 %v14049_v34, %v13897_v51  ;;  %v546_v9 = vmul.f32 %v14052_v1, %v13897_v51  ;;  %v543_v10 = vmul.f32 %v14049_v34, %v13796_v14  ;;  %v10856_v51 = vld [vmem:[%s18167_s3 + $0x8] sm:$0x3] }
 0x1d8   :  { %18380 = vst [vmem:[#allocation60_spill] sm:$0xff] %v14069_v21  ;;  %v544_v11 = vmul.f32 %v14052_v1, %v13796_v14  ;;  %v1043_v63 = vrot.slane %v994_v0, %v13943_v6  ;;  %v10855_v14 = vld [vmem:[%s18167_s3 + $0x6] sm:$0x3]  ;;  %v460_v31 = vadd.f32 %v444_v15, %v342_v35  ;;  %v14115_v42 = vadd.f32 %v1476_v49, %v1391_v17 }
 0x1d9   :  { %1741 = vperm.xlu0 %13058, %v13824_v25   ;;  %v14055_v4 = vpop.permute.xlu0 %496  ;;  %v892_v56 = vunpack.c.l.bf16 %v10850_v13  ;;  %v1096_v60 = vunpack.c.l.bf16 %v10852_v47  ;;  %v14118_v57 = vrot.slane %v732_v7, %v13940_v5  ;;  %v14121_v25 = vrot.slane %v736_v18, %v13940_v5 }
 0x1da   :  { %v14073_v61 = vpop.permute.xlu1 %807  ;;  %v562_v39 = vadd.f32 %v546_v9, %v460_v31  ;;  %v789_v15 = vunpack.c.l.bf16 %v10849_v44  ;;  %v14129_v47 = vadd.f32 %v543_v10, %v457_v52  ;;  %v14131_v31 = vadd.f32 %v544_v11, %v458_v37 }
 0x1db   :  { %18381 = vst [vmem:[#allocation61_spill] sm:$0xff] %v14073_v61  ;;  %414 = vperm.xlu1 %13056, %v14075_v29   ;;  %v1039_v61 = vrot.slane %v994_v0, %v13940_v5  ;;  %v459_v0 = vadd.f32 %v443_v36, %v341_v16  ;;  %18382 = vst [vmem:[#allocation62_spill] sm:$0xff] %v14118_v57  ;;  %v937_v16 = vrot.slane %v892_v56, %v13940_v5 }
 0x1dc   :  { %18383 = vst [vmem:[#allocation63_spill] sm:$0xff] %v14121_v25  ;;  %v941_v35 = vrot.slane %v892_v56, %v13943_v6  ;;  %v834_v52 = vrot.slane %v789_v15, %v13940_v5 }
 0x1dd   :  { %1933 = vperm.xlu0 %13058, %v13757_v3   ;;  %v594_v40 = vpop.permute.xlu0 %593  ;;  %v14113_v3 = vadd.f32 %v1475_v23, %v1390_v2  ;;  %v561_v30 = vadd.f32 %v545_v45, %v459_v0  ;;  %v1819_v2 = vunpack.c.l.bf16 %v10858_v48  ;;  %v1516_v23 = vunpack.c.l.bf16 %v10855_v14 }
 0x1de   :  { %v647_v58 = vmul.f32 %v14066_v8, %v594_v40  ;;  %v648_v54 = vmul.f32 %v14069_v21, %v594_v40  ;;  %v1617_v40 = vunpack.c.l.bf16 %v10856_v51  ;;  %v1141_v48 = vrot.slane %v1096_v60, %v13940_v5 }
 0x1df   :  { %613 = vperm.xlu1 %13056, %v13883_v46   ;;  %v14124_v36 = vpop.permute.xlu1 %1236  ;;  %v1145_v45 = vrot.slane %v1096_v60, %v13943_v6  ;;  %v1864_v10 = vrot.slane %v1819_v2, %v13940_v5  ;;  %v1868_v11 = vrot.slane %v1819_v2, %v13943_v6  ;;  %v1561_v44 = vrot.slane %v1516_v23, %v13940_v5 }
 0x1e0   :  { %18384 = vst [vmem:[#allocation64_spill] sm:$0xff] %v14124_v36  ;;  %v663_v49 = vadd.f32 %v647_v58, %v561_v30  ;;  %v664_v13 = vadd.f32 %v648_v54, %v562_v39  ;;  %v10857_v30 = vld [vmem:[%s18167_s3 + $0xa] sm:$0x3]  ;;  %v838_v58 = vrot.slane %v789_v15, %v13943_v6  ;;  %v1662_v56 = vrot.slane %v1617_v40, %v13940_v5 }
 0x1e1   :  { %1554 = vperm.xlu0 %13058, %v13957_v33   ;;  %v696_v17 = vpop.permute.xlu0 %695  ;;  %v1666_v60 = vrot.slane %v1617_v40, %v13943_v6  ;;  %v1565_v51 = vrot.slane %v1516_v23, %v13943_v6  ;;  %v14159_v14 = vrot.slane %v1039_v61, %v13940_v5  ;;  %v14162_v0 = vrot.slane %v1043_v63, %v13940_v5 }
 0x1e2   :  { %v749_v7 = vmul.f32 %v14118_v57, %v696_v17  ;;  %v750_v18 = vmul.f32 %v14121_v25, %v696_v17  ;;  %v14165_v15 = vrot.slane %v937_v16, %v13940_v5  ;;  %v1718_v40 = vunpack.c.l.bf16 %v10857_v30  ;;  %v14198_v16 = vld [vmem:[%s18168_s4] sm:$0x3] }
 0x1e3   :  { %715 = vperm.xlu1 %13056, %v14075_v29   ;;  %v14145_v37 = vpop.permute.xlu1 %1438  ;;  %v14168_v17 = vrot.slane %v941_v35, %v13940_v5  ;;  %v14174_v2 = vrot.slane %v1145_v45, %v13940_v5  ;;  %v14180_v63 = vsub.s32 1, %v13919_v59  ;;  %v14183_v23 = vrot.slane %v834_v52, %v13940_v5  ;;  %18390 = vst [vmem:[#allocation70_spill] sm:$0xff] %v14198_v16 }
 0x1e4   :  { %v14140_v39 = vadd.f32 %v749_v7, %v663_v49  ;;  %v14142_v54 = vadd.f32 %v750_v18, %v664_v13  ;;  %18385 = vst [vmem:[#allocation65_spill] sm:$0xff] %v14145_v37  ;;  %v14171_v49 = vrot.slane %v1141_v48, %v13940_v5  ;;  %v14186_v13 = vrot.slane %v838_v58, %v13940_v5 }
 0x1e5   :  { %1746 = vperm.xlu0 %13058, %v13894_v50   ;;  %v14152_v9 = vpop.permute.xlu0 %895  ;;  %18387 = vst [vmem:[#allocation67_spill] sm:$0xff] %v14180_v63  ;;  %v14189_v7 = vrot.slane %v1662_v56, %v13940_v5  ;;  %v14192_v18 = vrot.slane %v1666_v60, %v13940_v5  ;;  %v14201_v59 = vrot.slane %v1864_v10, %v13940_v5 }
 0x1e6   :  { %v14204_v35 = vrot.slane %v1868_v11, %v13940_v5  ;;  %v14207_v48 = vrot.slane %v1561_v44, %v13940_v5  ;;  %v14210_v45 = vrot.slane %v1565_v51, %v13940_v5  ;;  %v14218_v52 = vrot.slane %v1718_v40, %v13943_v6 }
 0x1e7   :  { %915 = vperm.xlu1 %13056, %v13883_v46   ;;  %v14177_v61 = vpop.permute.xlu1 %1534  ;;  %18388 = vst [vmem:[#allocation68_spill] sm:$0xff] %v14189_v7  ;;  %18389 = vst [vmem:[#allocation69_spill] sm:$0xff] %v14192_v18  ;;  %v645_v58 = vmul.f32 %v14066_v8, %v13903_v53  ;;  %v646_v56 = vmul.f32 %v14069_v21, %v13903_v53  ;;  %v649_v60 = vmul.f32 %v14066_v8, %v13821_v24 }
 0x1e8   :  { %18386 = vst [vmem:[#allocation66_spill] sm:$0xff] %v14177_v61  ;;  %18391 = vst [vmem:[#allocation71_spill] sm:$0xff] %v14201_v59  ;;  %v650_v10 = vmul.f32 %v14069_v21, %v13821_v24  ;;  %v751_v11 = vmul.f32 %v14118_v57, %v13827_v26  ;;  %v14233_v44 = vrot.slane %v14198_v16, %v14180_v63 }
 0x1e9   :  { %1938 = vperm.xlu0 %13058, %v13816_v22   ;;  %18392 = vst [vmem:[#allocation72_spill] sm:$0xff] %v14204_v35  ;;  %18393 = vst [vmem:[#allocation73_spill] sm:$0xff] %v14207_v48  ;;  %v14215_v22 = vrot.slane %v1718_v40, %v13940_v5  ;;  %v752_v51 = vmul.f32 %v14121_v25, %v13827_v26  ;;  %v1057_v53 = vmul.f32 %v14162_v0, %v13829_v27 }
 0x1ea   :  { %18394 = vst [vmem:[#allocation74_spill] sm:$0xff] %v14210_v45  ;;  %v14212_v30 = vpop.permute.xlu0 %1327  ;;  %18395 = vst [vmem:[#allocation75_spill] sm:$0xff] %v14233_v44  ;;  %v747_v40 = vmul.f32 %v14118_v57, %v13909_v55  ;;  %v748_v24 = vmul.f32 %v14121_v25, %v13909_v55  ;;  %v343_v37 = vmul.f32 %v13981_v19, %v14035_v20 }
 0x1eb   :  { %1017 = vperm.xlu1 %13056, %v14075_v29   ;;  %v344_v63 = vmul.f32 %v13984_v41, %v14035_v20  ;;  %v853_v36 = vmul.f32 %v14183_v23, %v13832_v28  ;;  %v854_v55 = vmul.f32 %v14186_v13, %v13832_v28  ;;  %v661_v25 = vadd.f32 %v645_v58, %v14129_v47 }
 0x1ec   :  { %v395_v61 = vpop.permute.xlu1 %394  ;;  %v662_v57 = vadd.f32 %v646_v56, %v14131_v31  ;;  %v547_v21 = vmul.f32 %v14049_v34, %v14055_v4  ;;  %v548_v20 = vmul.f32 %v14052_v1, %v14055_v4 }
 0x1ed   :  { %1655 = vperm.xlu0 %13058, %v13874_v43   ;;  %v445_v26 = vmul.f32 %v13999_v38, %v395_v61  ;;  %v446_v16 = vmul.f32 %v14002_v62, %v395_v61  ;;  %v18396_v62 = vmov 1   ;;  %v955_v38 = vmul.f32 %v14168_v17, %v13841_v32 }
 0x1ee   :  { %v14250_v27 = vpop.permute.xlu0 %1625  ;;  %v763_v41 = vadd.f32 %v747_v40, %v661_v25  ;;  %v764_v19 = vadd.f32 %v748_v24, %v662_v57  ;;  %v953_v57 = vmul.f32 %v14168_v17, %v14152_v9  ;;  %v18399_v40 = vld [vmem:[#allocation19_spill] sm:$0xff] }
 0x1ef   :  { %v461_v8 = vadd.f32 %v445_v26, %v343_v37  ;;  %v462_v61 = vadd.f32 %v446_v16, %v344_v63  ;;  %13059 = vset.pattern.permute.xlu1 %v18396_v62  ;;  %v18397_v63 = vld [vmem:[#allocation28_spill] sm:$0xff]  ;;  %v1159_v24 = vmul.f32 %v14174_v2, %v18399_v40 }
 0x1f0   :  { %1347 = vperm.xlu1 %13059, %v14075_v29   ;;  %v798_v28 = vpop.permute.xlu1 %797  ;;  %v849_v62 = vmul.f32 %v14183_v23, %v18397_v63  ;;  %v850_v25 = vmul.f32 %v14186_v13, %v18397_v63  ;;  %v18401_v63 = vld [vmem:[#allocation37_spill] sm:$0xff] }
 0x1f1   :  { %1847 = vperm.xlu0 %13058, %v13789_v12   ;;  %v563_v47 = vadd.f32 %v547_v21, %v461_v8  ;;  %v564_v31 = vadd.f32 %v548_v20, %v462_v61  ;;  %v851_v58 = vmul.f32 %v14183_v23, %v798_v28  ;;  %v852_v4 = vmul.f32 %v14186_v13, %v798_v28  ;;  %v18400_v61 = vld [vmem:[#allocation17_spill] sm:$0xff] }
 0x1f2   :  { %v14269_v37 = vpop.permute.xlu0 %1822  ;;  %v952_v12 = vmul.f32 %v14165_v15, %v14152_v9  ;;  %v865_v26 = vadd.f32 %v849_v62, %v763_v41  ;;  %v866_v20 = vadd.f32 %v850_v25, %v764_v19  ;;  %v956_v9 = vmul.f32 %v14165_v15, %v18401_v63 }
 0x1f3   :  { %v665_v8 = vadd.f32 %v649_v60, %v563_v47  ;;  %v666_v21 = vadd.f32 %v650_v10, %v564_v31  ;;  %v14280_v16 = vadd.f32 %v851_v58, %v14140_v39  ;;  %v868_v56 = vadd.f32 %v852_v4, %v14142_v54  ;;  %v14292_v39 = vld [vmem:[%s18167_s3 + $0xe] sm:$0x3] }
 0x1f4   :  { %1544 = vperm.xlu1 %13059, %v13883_v46   ;;  %v998_v28 = vpop.permute.xlu1 %997  ;;  %v968_v54 = vadd.f32 %v952_v12, %v865_v26  ;;  %v969_v31 = vadd.f32 %v953_v57, %v866_v20  ;;  %v957_v4 = vmul.f32 %v14168_v17, %v18401_v63  ;;  %v14303_v12 = vld [vmem:[#allocation2 + $0x42] sm:$0xff] }
 0x1f5   :  { %18398 = vst [vmem:[#allocation28_spill] sm:$0xff] %v14280_v16  ;;  %2039 = vperm.xlu0 %13058, %v18400_v61   ;;  %v767_v60 = vadd.f32 %v751_v11, %v665_v8  ;;  %v768_v10 = vadd.f32 %v752_v51, %v666_v21  ;;  %v971_v47 = vadd.f32 %v955_v38, %v868_v56  ;;  %v18402_v38 = vld [vmem:[#allocation39_spill] sm:$0xff]  ;;  %v1920_v56 = vunpack.c.l.bf16 %v14292_v39 }
 0x1f6   :  { %v1054_v19 = vmul.f32 %v14159_v14, %v998_v28  ;;  %v1055_v41 = vmul.f32 %v14162_v0, %v998_v28  ;;  %v1058_v25 = vmul.f32 %v14159_v14, %v18402_v38  ;;  %v1059_v26 = vmul.f32 %v14162_v0, %v18402_v38 }
 0x1f7   :  { %v14296_v58 = vpop.permute.xlu0 %317  ;;  %v869_v62 = vadd.f32 %v853_v36, %v767_v60  ;;  %v870_v11 = vadd.f32 %v854_v55, %v768_v10  ;;  %v1073_v51 = vadd.f32 %v1057_v53, %v971_v47  ;;  %v14311_v53 = vrot.slane %v14215_v22, %v13940_v5  ;;  %v18406_v60 = vld [vmem:[#allocation42_spill] sm:$0xff] }
 0x1f8   :  { %v1070_v8 = vadd.f32 %v1054_v19, %v968_v54  ;;  %v1071_v21 = vadd.f32 %v1055_v41, %v969_v31  ;;  %v1100_v57 = vpop.permute.xlu1 %1099  ;;  %1736 = vperm.xlu1 %13059, %v14303_v12   ;;  %v1912_v54 = vld [vmem:[#allocation2 + $0x31] sm:$0xff]  ;;  %v14332_v31 = vrot.slane %v1920_v56, %v13940_v5  ;;  %v18409_v19 = vld [vmem:[#allocation31_spill] sm:$0xff]  ;;  %v18410_v41 = vld [vmem:[#allocation46_spill] sm:$0xff] }
 0x1f9   :  { %1852 = vperm.xlu0 %13058, %v13957_v33   ;;  %v972_v20 = vadd.f32 %v956_v9, %v869_v62  ;;  %v973_v61 = vadd.f32 %v957_v4, %v870_v11  ;;  %v1175_v36 = vadd.f32 %v1159_v24, %v1073_v51  ;;  %18403 = vst [vmem:[#allocation17_spill] sm:$0xff] %v14311_v53  ;;  %v18411_v62 = vld [vmem:[#allocation38_spill] sm:$0xff] }
 0x1fa   :  { %v14315_v33 = vrot.slane %v14218_v52, %v13940_v5  ;;  %v1156_v55 = vmul.f32 %v14171_v49, %v1100_v57  ;;  %v1157_v28 = vmul.f32 %v14174_v2, %v1100_v57  ;;  %v1160_v9 = vmul.f32 %v14171_v49, %v18406_v60  ;;  %v18412_v11 = vld [vmem:[#allocation50_spill] sm:$0xff] }
 0x1fb   :  { %v14319_v63 = vpop.permute.xlu0 %618  ;;  %v1161_v24 = vmul.f32 %v14174_v2, %v18406_v60  ;;  %v1074_v10 = vadd.f32 %v1058_v25, %v972_v20  ;;  %v1075_v47 = vadd.f32 %v1059_v26, %v973_v61  ;;  %v14326_v22 = vadd.f32 %v14233_v44, %v1175_v36  ;;  %v18416_v20 = vld [vmem:[#allocation51_spill] sm:$0xff] }
 0x1fc   :  { %18404 = vst [vmem:[#allocation37_spill] sm:$0xff] %v14315_v33  ;;  %18405 = vst [vmem:[#allocation39_spill] sm:$0xff] %v14319_v63  ;;  %v14328_v39 = vadd.f32 %v1156_v55, %v1070_v8  ;;  %v1173_v52 = vadd.f32 %v1157_v28, %v1071_v21  ;;  %v1376_v4 = vmul.f32 %v18410_v41, %v18409_v19  ;;  %1928 = vperm.xlu1 %13059, %v1912_v54   ;;  %v18414_v8 = vld [vmem:[#allocation43_spill] sm:$0xff]  ;;  %v18421_v63 = vld [vmem:[#allocation40_spill] sm:$0xff] }
 0x1fd   :  { %18407 = vst [vmem:[#allocation42_spill] sm:$0xff] %v14326_v22  ;;  %2044 = vperm.xlu0 %13058, %v13894_v50   ;;  %v1275_v51 = vmul.f32 %v18412_v11, %v18411_v62  ;;  %v14338_v38 = vadd.f32 %v1160_v9, %v1074_v10  ;;  %v1177_v25 = vadd.f32 %v1161_v24, %v1075_v47  ;;  %v1227_v57 = vpop.permute.xlu1 %1226  ;;  %v18418_v60 = vld [vmem:[#allocation47_spill] sm:$0xff] }
 0x1fe   :  { %18408 = vst [vmem:[#allocation76_spill] sm:$0xff] %v14328_v39  ;;  %v1576_v21 = vmul.f32 %v14207_v48, %v18414_v8  ;;  %v14343_v50 = vadd.f32 %v14233_v44, %v1173_v52  ;;  %v1277_v26 = vmul.f32 %v18412_v11, %v1227_v57  ;;  %v1278_v61 = vmul.f32 %v18416_v20, %v1227_v57  ;;  %v18423_v39 = vld [vmem:[#allocation57_spill] sm:$0xff] }
 0x1ff   :  { %18413 = vst [vmem:[#allocation31_spill] sm:$0xff] %v14338_v38  ;;  %v14347_v36 = vpop.permute.xlu0 %822  ;;  %v1577_v55 = vmul.f32 %v14210_v45, %v18414_v8  ;;  %v1378_v28 = vmul.f32 %v18410_v41, %v14212_v30  ;;  %v1379_v9 = vmul.f32 %v18418_v60, %v14212_v30  ;;  %v14356_v24 = vadd.f32 %v14233_v44, %v1177_v25  ;;  %v18422_v38 = vld [vmem:[#allocation56_spill] sm:$0xff] }
 0x200   :  { %18415 = vst [vmem:[#allocation38_spill] sm:$0xff] %v14343_v50  ;;  %18417 = vst [vmem:[#allocation50_spill] sm:$0xff] %v14347_v36  ;;  %v1276_v10 = vmul.f32 %v18416_v20, %v18411_v62  ;;  %v2255_v47 = vmul.f32 %v14326_v22, %v14326_v22  ;;  %v2228_v52 = vadd.f32 %v14326_v22, %v14343_v50  ;;  %v18420_v62 = vld [vmem:[#allocation11_spill] sm:$0xff]  ;;  %v1918_v36 = vld [vmem:[#allocation2 + $0x91] sm:$0xff] }
 0x201   :  { %18419 = vst [vmem:[#allocation43_spill] sm:$0xff] %v14356_v24  ;;  %v2253_v54 = vmul.f32 %v14343_v50, %v14343_v50  ;;  %1953 = vperm.xlu0 %13058, %v13874_v43   ;;  %v1377_v30 = vmul.f32 %v18418_v60, %v18409_v19  ;;  %v2257_v25 = vmul.f32 %v14356_v24, %v14356_v24  ;;  %v1429_v44 = vpop.permute.xlu1 %1428 }
 0x202   :  { %v1394_v57 = vadd.f32 %v1378_v28, %v1277_v26  ;;  %v1395_v8 = vadd.f32 %v1379_v9, %v1278_v61  ;;  %1453 = vperm.xlu1 %13059, %v18420_v62   ;;  %v1477_v22 = vmul.f32 %v18422_v38, %v18421_v63  ;;  %v1478_v50 = vmul.f32 %v18423_v39, %v18421_v63 }
 0x203   :  { %v14377_v43 = vadd.f32 %v2228_v52, %v14356_v24  ;;  %v2305_v40 = vadd.f32 %v2255_v47, %v2253_v54  ;;  %v1592_v19 = vadd.f32 %v1576_v21, %v14113_v3  ;;  %v1593_v16 = vadd.f32 %v1577_v55, %v14115_v42  ;;  %v18426_v52 = vld [vmem:[#allocation32_spill] sm:$0xff]  ;;  %v18429_v54 = vld [vmem:[#allocation45_spill] sm:$0xff] }
 0x204   :  { %v1479_v26 = vmul.f32 %v18422_v38, %v1429_v44  ;;  %v1480_v61 = vmul.f32 %v18423_v39, %v1429_v44  ;;  %v14383_v28 = vpop.permute.xlu0 %1251  ;;  %v1392_v9 = vadd.f32 %v1376_v4, %v1275_v51  ;;  %v1393_v62 = vadd.f32 %v1377_v30, %v1276_v10  ;;  %v2019_v4 = vld [vmem:[#allocation2 + $0x92] sm:$0xff] }
 0x205   :  { %18424 = vst [vmem:[#allocation11_spill] sm:$0xff] %v14377_v43  ;;  %v14385_v32 = vadd.f32 %v2305_v40, %v2257_v25  ;;  %1958 = vperm.xlu0 %13058, %v1918_v36   ;;  %v1969_v63 = vrot.slane %v1920_v56, %v13943_v6  ;;  %v1677_v47 = vmul.f32 %v14189_v7, %v18426_v52  ;;  %v1525_v44 = vpop.permute.xlu1 %1524  ;;  %v18454_v43 = vld [vmem:[#allocation34_spill] sm:$0xff] }
 0x206   :  { %v1678_v3 = vmul.f32 %v14192_v18, %v18426_v52  ;;  %v14392_v42 = vadd.f32 %v1479_v26, %v1394_v57  ;;  %v14394_v21 = vadd.f32 %v1480_v61, %v1395_v8  ;;  %1645 = vperm.xlu1 %13059, %v14075_v29   ;;  %v1493_v51 = vadd.f32 %v1477_v22, %v1392_v9  ;;  %v18430_v61 = vld [vmem:[#allocation33_spill] sm:$0xff] }
 0x207   :  { %18425 = vst [vmem:[#allocation40_spill] sm:$0xff] %v14385_v32  ;;  %v1494_v40 = vadd.f32 %v1478_v50, %v1393_v62  ;;  %v1578_v36 = vmul.f32 %v14207_v48, %v1525_v44  ;;  %v1579_v56 = vmul.f32 %v14210_v45, %v1525_v44  ;;  %v1693_v55 = vadd.f32 %v1677_v47, %v1592_v19 }
 0x208   :  { %18427 = vst [vmem:[#allocation32_spill] sm:$0xff] %v14392_v42  ;;  %18428 = vst [vmem:[#allocation77_spill] sm:$0xff] %v14394_v21  ;;  %v1694_v10 = vadd.f32 %v1678_v3, %v1593_v16  ;;  %v1778_v30 = vmul.f32 %v14311_v53, %v18429_v54  ;;  %v1779_v25 = vmul.f32 %v14315_v33, %v18429_v54 }
 0x209   :  { %v1679_v57 = vmul.f32 %v14189_v7, %v14250_v27  ;;  %v1680_v8 = vmul.f32 %v14192_v18, %v14250_v27  ;;  %v1594_v22 = vadd.f32 %v1578_v36, %v1493_v51  ;;  %v1595_v50 = vadd.f32 %v1579_v56, %v1494_v40  ;;  %2059 = vperm.xlu0 %13058, %v2019_v4   ;;  %v14407_v26 = vpop.permute.xlu0 %409  ;;  %v1727_v9 = vpop.permute.xlu1 %1726  ;;  %v2013_v56 = vld [vmem:[#allocation2 + $0x32] sm:$0xff]  ;;  %v18451_v7 = vld [vmem:[#allocation55_spill] sm:$0xff] }
 0x20a   :  { %v1879_v16 = vmul.f32 %v14201_v59, %v14269_v37  ;;  %v1880_v19 = vmul.f32 %v14204_v35, %v14269_v37  ;;  %1837 = vperm.xlu1 %13059, %v18430_v61   ;;  %v14416_v62 = vrot.slane %v14332_v31, %v13940_v5  ;;  %v14419_v27 = vrot.slane %v1969_v63, %v13940_v5 }
 0x20b   :  { %v1695_v52 = vadd.f32 %v1679_v57, %v1594_v22  ;;  %v1696_v47 = vadd.f32 %v1680_v8, %v1595_v50  ;;  %v1780_v3 = vmul.f32 %v14311_v53, %v1727_v9  ;;  %v1781_v44 = vmul.f32 %v14315_v33, %v1727_v9  ;;  %v18439_v9 = vld [vmem:[#allocation49_spill] sm:$0xff] }
 0x20c   :  { %18431 = vst [vmem:[#allocation45_spill] sm:$0xff] %v14416_v62  ;;  %18432 = vst [vmem:[#allocation33_spill] sm:$0xff] %v14419_v27  ;;  %v1794_v4 = vadd.f32 %v1778_v30, %v1693_v55  ;;  %v1795_v51 = vadd.f32 %v1779_v25, %v1694_v10  ;;  %v18437_v10 = vld [vmem:[#allocation20_spill] sm:$0xff]  ;;  %v1288_v35 = vmul.f32 %v18416_v20, %v14383_v28 }
 0x20d   :  { %v14423_v40 = vadd.f32 %v1780_v3, %v1695_v52  ;;  %v14425_v37 = vadd.f32 %v1781_v44, %v1696_v47  ;;  %v14427_v36 = vpop.permute.xlu0 %511  ;;  %v1924_v31 = vpop.permute.xlu1 %1923  ;;  %v18438_v25 = vld [vmem:[#allocation48_spill] sm:$0xff]  ;;  %v18441_v47 = vld [vmem:[#allocation54_spill] sm:$0xff] }
 0x20e   :  { %2029 = vperm.xlu1 %13059, %v2013_v56   ;;  %v1895_v54 = vadd.f32 %v1879_v16, %v1794_v4  ;;  %v1896_v63 = vadd.f32 %v1880_v19, %v1795_v51  ;;  %v1980_v57 = vmul.f32 %v14416_v62, %v1924_v31  ;;  %v1981_v8 = vmul.f32 %v14419_v27, %v1924_v31  ;;  %v18440_v19 = vld [vmem:[#allocation53_spill] sm:$0xff]  ;;  %v18450_v27 = vld [vmem:[#allocation16_spill] sm:$0xff] }
 0x20f   :  { %18433 = vst [vmem:[#allocation78_spill] sm:$0xff] %v14423_v40  ;;  %18434 = vst [vmem:[#allocation79_spill] sm:$0xff] %v14425_v37  ;;  %v353_v61 = vmul.f32 %v18438_v25, %v14296_v58  ;;  %v354_v16 = vmul.f32 %v18439_v9, %v14296_v58  ;;  %v1817_v40 = vld [vmem:[#allocation2 + $0x90] sm:$0xff]  ;;  %v549_v33 = vmul.f32 %v14049_v34, %v18450_v27 }
 0x210   :  { %v14431_v22 = vadd.f32 %v1980_v57, %v1895_v54  ;;  %v14433_v50 = vadd.f32 %v1981_v8, %v1896_v63  ;;  %v550_v62 = vmul.f32 %v14052_v1, %v18450_v27  ;;  %v347_v21 = vmul.f32 %v18438_v25, %v18451_v7 }
 0x211   :  { %v14435_v55 = vpop.permute.xlu0 %710  ;;  %v348_v27 = vmul.f32 %v18439_v9, %v18451_v7 }
 0x212   :  { %18435 = vst [vmem:[#allocation80_spill] sm:$0xff] %v14431_v22  ;;  %18436 = vst [vmem:[#allocation81_spill] sm:$0xff] %v14433_v50  ;;  %1650 = vperm.xlu1 %13059, %v18437_v10   ;;  %v420_v30 = vpop.permute.xlu1 %419 }
 0x213   :  { %v455_v52 = vmul.f32 %v18440_v19, %v420_v30  ;;  %v456_v3 = vmul.f32 %v18441_v47, %v420_v30  ;;  %v1715_v30 = vld [vmem:[#allocation2 + $0x72] sm:$0xff] }
 0x215   :  { %v14444_v44 = vpop.permute.xlu0 %812  ;;  %v471_v4 = vadd.f32 %v455_v52, %v353_v61  ;;  %v472_v51 = vadd.f32 %v456_v3, %v354_v16  ;;  %v18445_v3 = vld [vmem:[#allocation29_spill] sm:$0xff] }
 0x216   :  { %1842 = vperm.xlu1 %13059, %v13883_v46   ;;  %v522_v56 = vpop.permute.xlu1 %521 }
 0x217   :  { %v557_v31 = vmul.f32 %v14049_v34, %v522_v56  ;;  %v558_v54 = vmul.f32 %v14052_v1, %v522_v56 }
 0x219   :  { %v14449_v63 = vpop.permute.xlu0 %1114  ;;  %v14451_v57 = vadd.f32 %v557_v31, %v471_v4  ;;  %v14453_v58 = vadd.f32 %v558_v54, %v472_v51  ;;  %v18448_v54 = vld [vmem:[#allocation15_spill] sm:$0xff] }
 0x21a   :  { %2034 = vperm.xlu1 %13059, %v14303_v12   ;;  %v14456_v8 = vpop.permute.xlu1 %720  ;;  %v18447_v12 = vld [vmem:[#allocation14_spill] sm:$0xff]  ;;  %v345_v24 = vmul.f32 %v18438_v25, %v18448_v54 }
 0x21b   :  { %18442 = vst [vmem:[#allocation20_spill] sm:$0xff] %v14456_v8  ;;  %v447_v56 = vmul.f32 %v18440_v19, %v18447_v12  ;;  %v448_v31 = vmul.f32 %v18441_v47, %v18447_v12  ;;  %v1287_v12 = vmul.f32 %v18412_v11, %v14383_v28 }
 0x21d   :  { %v463_v59 = vadd.f32 %v447_v56, %v345_v24  ;;  %v450_v24 = vmul.f32 %v18441_v47, %v18454_v43 }
 0x21e   :  { %1751 = vperm.xlu1 %13059, %v1715_v30   ;;  %v14458_v61 = vpop.permute.xlu0 %1342  ;;  %v14460_v46 = vpop.permute.xlu1 %920 }
 0x21f   :  { %18443 = vst [vmem:[#allocation48_spill] sm:$0xff] %v14460_v46  ;;  %v565_v28 = vadd.f32 %v549_v33, %v463_v59  ;;  %v452_v59 = vmul.f32 %v18441_v47, %v14407_v26  ;;  %v18461_v46 = vld [vmem:[#allocation63_spill] sm:$0xff] }
 0x222   :  { %1943 = vperm.xlu1 %13059, %v14075_v29   ;;  %v14463_v16 = vpop.permute.xlu0 %1443  ;;  %v14465_v52 = vpop.permute.xlu1 %1022  ;;  %v346_v29 = vmul.f32 %v18439_v9, %v18448_v54 }
 0x223   :  { %18444 = vst [vmem:[#allocation49_spill] sm:$0xff] %v14465_v52 }
 0x224   :  { %v464_v18 = vadd.f32 %v448_v31, %v346_v29 }
 0x226   :  { %1756 = vperm.xlu1 %13059, %v18445_v3   ;;  %v14470_v51 = vpop.permute.xlu1 %1124  ;;  %v566_v32 = vadd.f32 %v550_v62, %v464_v18  ;;  %v18456_v62 = vld [vmem:[#allocation35_spill] sm:$0xff] }
 0x227   :  { %v14468_v4 = vpop.permute.xlu0 %827  ;;  %18446 = vst [vmem:[#allocation53_spill] sm:$0xff] %v14470_v51  ;;  %v18459_v51 = vld [vmem:[#allocation36_spill] sm:$0xff] }
 0x228   :  { %v754_v8 = vmul.f32 %v18461_v46, %v18459_v51 }
 0x22a   :  { %1948 = vperm.xlu1 %13059, %v18437_v10  }
 0x22b   :  { %v14481_v37 = vpop.permute.xlu0 %1027  ;;  %v1353_v53 = vpop.permute.xlu1 %1352 }
 0x22c   :  { %18449 = vst [vmem:[#allocation29_spill] sm:$0xff] %v14481_v37  ;;  %v1388_v54 = vmul.f32 %v18410_v41, %v1353_v53  ;;  %v1389_v10 = vmul.f32 %v18418_v60, %v1353_v53  ;;  %v449_v53 = vmul.f32 %v18440_v19, %v18454_v43  ;;  %v18457_v43 = vld [vmem:[#allocation59_spill] sm:$0xff] }
 0x22d   :  { %v651_v29 = vmul.f32 %v18457_v43, %v18456_v62 }
 0x22e   :  { %1857 = vperm.xlu1 %13059, %v1817_v40   ;;  %v14497_v42 = vadd.f32 %v1388_v54, %v1287_v12  ;;  %v14499_v50 = vadd.f32 %v1389_v10, %v1288_v35  ;;  %v18455_v40 = vld [vmem:[#allocation58_spill] sm:$0xff]  ;;  %v451_v35 = vmul.f32 %v18440_v19, %v14407_v26  ;;  %v18458_v12 = vld [vmem:[#allocation60_spill] sm:$0xff]  ;;  %v465_v10 = vadd.f32 %v449_v53, %v347_v21 }
 0x22f   :  { %v14501_v22 = vpop.permute.xlu0 %312  ;;  %v551_v56 = vmul.f32 %v14049_v34, %v18455_v40  ;;  %v552_v7 = vmul.f32 %v14052_v1, %v18455_v40  ;;  %v652_v54 = vmul.f32 %v18458_v12, %v18456_v62  ;;  %v466_v40 = vadd.f32 %v450_v24, %v348_v27 }
 0x230   :  { %18452 = vst [vmem:[#allocation14_spill] sm:$0xff] %v14497_v42  ;;  %18453 = vst [vmem:[#allocation15_spill] sm:$0xff] %v14499_v50  ;;  %v308_v31 = vpop.permute.xlu1 %307  ;;  %v553_v42 = vmul.f32 %v14049_v34, %v14427_v36  ;;  %v554_v26 = vmul.f32 %v14052_v1, %v14427_v36 }
 0x231   :  { %v349_v18 = vmul.f32 %v18438_v25, %v308_v31  ;;  %v350_v33 = vmul.f32 %v18439_v9, %v308_v31  ;;  %v18460_v31 = vld [vmem:[#allocation62_spill] sm:$0xff]  ;;  %v567_v47 = vadd.f32 %v551_v56, %v465_v10  ;;  %v568_v62 = vadd.f32 %v552_v7, %v466_v40 }
 0x232   :  { %2049 = vperm.xlu1 %13059, %v1715_v30   ;;  %v753_v52 = vmul.f32 %v18460_v31, %v18459_v51  ;;  %v755_v56 = vmul.f32 %v18460_v31, %v14435_v55 }
 0x233   :  { %v14521_v50 = vpop.permute.xlu0 %516  ;;  %v467_v30 = vadd.f32 %v451_v35, %v349_v18  ;;  %v468_v37 = vadd.f32 %v452_v59, %v350_v33  ;;  %v667_v35 = vadd.f32 %v651_v29, %v565_v28  ;;  %v668_v59 = vadd.f32 %v652_v54, %v566_v32  ;;  %v18462_v18 = vld [vmem:[#allocation61_spill] sm:$0xff] }
 0x234   :  { %v609_v21 = vpop.permute.xlu1 %608  ;;  %v855_v33 = vmul.f32 %v14183_v23, %v18462_v18  ;;  %v856_v51 = vmul.f32 %v14186_v13, %v18462_v18  ;;  %v18463_v18 = vld [vmem:[#allocation64_spill] sm:$0xff] }
 0x235   :  { %v653_v27 = vmul.f32 %v18457_v43, %v609_v21  ;;  %v654_v53 = vmul.f32 %v18458_v12, %v609_v21  ;;  %v14534_v24 = vadd.f32 %v553_v42, %v467_v30  ;;  %v14536_v36 = vadd.f32 %v554_v26, %v468_v37 }
 0x236   :  { %2054 = vperm.xlu1 %13059, %v18445_v3   ;;  %v756_v3 = vmul.f32 %v18461_v46, %v14435_v55  ;;  %v769_v42 = vadd.f32 %v753_v52, %v667_v35  ;;  %v770_v40 = vadd.f32 %v754_v8, %v668_v59  ;;  %v857_v30 = vmul.f32 %v14183_v23, %v14444_v44 }
 0x237   :  { %v669_v7 = vadd.f32 %v653_v27, %v567_v47  ;;  %v670_v10 = vadd.f32 %v654_v53, %v568_v62  ;;  %v14546_v37 = vpop.permute.xlu0 %817  ;;  %v858_v21 = vmul.f32 %v14186_v13, %v14444_v44 }
 0x238   :  { %v911_v28 = vpop.permute.xlu1 %910  ;;  %v871_v55 = vadd.f32 %v855_v33, %v769_v42  ;;  %v872_v47 = vadd.f32 %v856_v51, %v770_v40  ;;  %v1162_v33 = vmul.f32 %v14171_v49, %v14449_v63  ;;  %v1163_v51 = vmul.f32 %v14174_v2, %v14449_v63  ;;  %v18464_v42 = vld [vmem:[#allocation44_spill] sm:$0xff] }
 0x239   :  { %v771_v32 = vadd.f32 %v755_v56, %v669_v7  ;;  %v772_v29 = vadd.f32 %v756_v3, %v670_v10  ;;  %v958_v54 = vmul.f32 %v14165_v15, %v911_v28  ;;  %v959_v26 = vmul.f32 %v14168_v17, %v911_v28 }
 0x23a   :  { %v1281_v56 = vmul.f32 %v18412_v11, %v18463_v18  ;;  %v1282_v3 = vmul.f32 %v18416_v20, %v18463_v18  ;;  %v1382_v40 = vmul.f32 %v18410_v41, %v18464_v42  ;;  %v1383_v28 = vmul.f32 %v18418_v60, %v18464_v42 }
 0x23b   :  { %v14554_v52 = vadd.f32 %v857_v30, %v771_v32  ;;  %v14556_v8 = vadd.f32 %v858_v21, %v772_v29  ;;  %v974_v27 = vadd.f32 %v958_v54, %v871_v55  ;;  %v975_v53 = vadd.f32 %v959_v26, %v872_v47  ;;  %v14564_v44 = vpop.permute.xlu0 %1119  ;;  %v18465_v32 = vld [vmem:[#allocation65_spill] sm:$0xff] }
 0x23c   :  { %v1013_v62 = vpop.permute.xlu1 %1012  ;;  %v1483_v29 = vmul.f32 %v18422_v38, %v18465_v32  ;;  %v1484_v54 = vmul.f32 %v18423_v39, %v18465_v32  ;;  %v1384_v63 = vmul.f32 %v18410_v41, %v14458_v61  ;;  %v1385_v55 = vmul.f32 %v18418_v60, %v14458_v61  ;;  %v18490_v60 = vld [vmem:[#allocation20_spill] sm:$0xff] }
 0x23d   :  { %v1060_v35 = vmul.f32 %v14159_v14, %v1013_v62  ;;  %v1061_v59 = vmul.f32 %v14162_v0, %v1013_v62 }
 0x23f   :  { %v1076_v7 = vadd.f32 %v1060_v35, %v974_v27  ;;  %v1077_v10 = vadd.f32 %v1061_v59, %v975_v53  ;;  %v1398_v27 = vadd.f32 %v1382_v40, %v1281_v56  ;;  %v1399_v53 = vadd.f32 %v1383_v28, %v1282_v3 }
 0x240   :  { %v1485_v35 = vmul.f32 %v18422_v38, %v14463_v16  ;;  %v1486_v59 = vmul.f32 %v18423_v39, %v14463_v16  ;;  %v14592_v18 = vpop.permute.xlu0 %1246  ;;  %v18471_v16 = vld [vmem:[#allocation21_spill] sm:$0xff] }
 0x241   :  { %v14578_v26 = vadd.f32 %v1162_v33, %v1076_v7  ;;  %v14580_v30 = vadd.f32 %v1163_v51, %v1077_v10  ;;  %v1242_v21 = vpop.permute.xlu1 %1241  ;;  %18466 = vst [vmem:[#allocation16_spill] sm:$0xff] %v14592_v18  ;;  %v1499_v7 = vadd.f32 %v1483_v29, %v1398_v27  ;;  %v1500_v10 = vadd.f32 %v1484_v54, %v1399_v53 }
 0x242   :  { %v1283_v47 = vmul.f32 %v18412_v11, %v1242_v21  ;;  %v1284_v62 = vmul.f32 %v18416_v20, %v1242_v21  ;;  %v954_v28 = vmul.f32 %v14165_v15, %v18471_v16 }
 0x244   :  { %v1400_v33 = vadd.f32 %v1384_v63, %v1283_v47  ;;  %v1401_v51 = vadd.f32 %v1385_v55, %v1284_v62  ;;  %v14606_v63 = vpop.permute.xlu0 %1448  ;;  %v18473_v47 = vld [vmem:[#allocation28_spill] sm:$0xff] }
 0x245   :  { %v1540_v42 = vpop.permute.xlu1 %1539  ;;  %18472 = vst [vmem:[#allocation59_spill] sm:$0xff] %v14606_v63  ;;  %v970_v62 = vadd.f32 %v954_v28, %v18473_v47 }
 0x246   :  { %v1584_v61 = vmul.f32 %v14207_v48, %v1540_v42  ;;  %v1585_v32 = vmul.f32 %v14210_v45, %v1540_v42  ;;  %v14596_v21 = vadd.f32 %v1485_v35, %v1400_v33  ;;  %v14598_v56 = vadd.f32 %v1486_v59, %v1401_v51  ;;  %v10860_v35 = vld [vmem:[%s18167_s3 + $0x10] sm:$0x3]  ;;  %v18474_v59 = vld [vmem:[#allocation18_spill] sm:$0xff] }
 0x247   :  { %v1056_v33 = vmul.f32 %v14159_v14, %v18474_v59  ;;  %v18489_v45 = vld [vmem:[#allocation50_spill] sm:$0xff] }
 0x248   :  { %18467 = vst [vmem:[#allocation55_spill] sm:$0xff] %v14596_v21  ;;  %18468 = vst [vmem:[#allocation34_spill] sm:$0xff] %v14598_v56  ;;  %v14600_v3 = vadd.f32 %v1584_v61, %v1499_v7  ;;  %v14602_v40 = vadd.f32 %v1585_v32, %v1500_v10  ;;  %v14620_v61 = vpop.permute.xlu0 %1640  ;;  %v2021_v32 = vunpack.c.l.bf16 %v10860_v35  ;;  %v18487_v56 = vld [vmem:[#allocation39_spill] sm:$0xff] }
 0x249   :  { %v1072_v42 = vadd.f32 %v1056_v33, %v970_v62  ;;  %18475 = vst [vmem:[#allocation60_spill] sm:$0xff] %v14620_v61  ;;  %v18477_v62 = vld [vmem:[#allocation70_spill] sm:$0xff]  ;;  %v657_v21 = vmul.f32 %v18457_v43, %v18487_v56  ;;  %v658_v63 = vmul.f32 %v18458_v12, %v18487_v56 }
 0x24a   :  { %18469 = vst [vmem:[#allocation58_spill] sm:$0xff] %v14600_v3  ;;  %18470 = vst [vmem:[#allocation35_spill] sm:$0xff] %v14602_v40  ;;  %v624_v29 = vpop.permute.xlu1 %623  ;;  %v14636_v35 = vrot.slane %v18477_v62, %v13940_v5  ;;  %v13064_v62 = vld [vmem:[#allocation7 + $0xc0] sm:$0xff]  }
 0x24b   :  { %v659_v54 = vmul.f32 %v18457_v43, %v624_v29  ;;  %v660_v55 = vmul.f32 %v18458_v12, %v624_v29  ;;  %v18476_v29 = vld [vmem:[#allocation19_spill] sm:$0xff]  ;;  %11406 = vmatprep.subr.bf16.mxu0 %v13064_v62  ;;  %12750 = vmatprep.subr.bf16.mxu1 %v13064_v62  ;;  %v861_v62 = vmul.f32 %v14183_v23, %v18489_v45 }
 0x24d   :  { %v675_v27 = vadd.f32 %v659_v54, %v14451_v57  ;;  %v676_v53 = vadd.f32 %v660_v55, %v14453_v58  ;;  %v863_v57 = vmul.f32 %v14183_v23, %v14468_v4  ;;  %v864_v58 = vmul.f32 %v14186_v13, %v14468_v4 }
 0x24e   :  { %v726_v51 = vpop.permute.xlu1 %725  ;;  %v1158_v54 = vmul.f32 %v14171_v49, %v18476_v29  ;;  %v2070_v4 = vrot.slane %v2021_v32, %v13943_v6  ;;  %v18484_v29 = vld [vmem:[#allocation31_spill] sm:$0xff] }
 0x24f   :  { %v761_v7 = vmul.f32 %v18460_v31, %v726_v51  ;;  %v762_v10 = vmul.f32 %v18461_v46, %v726_v51  ;;  %v2066_v51 = vrot.slane %v2021_v32, %v13940_v5 }
 0x250   :  { %v1174_v33 = vadd.f32 %v1158_v54, %v1072_v42  ;;  %v18482_v42 = vld [vmem:[#allocation10_spill] sm:$0xff]  ;;  %v14669_v54 = vadd.f32 %v14636_v35, %v18484_v29 }
 0x251   :  { %v777_v16 = vadd.f32 %v761_v7, %v675_v27  ;;  %v778_v28 = vadd.f32 %v762_v10, %v676_v53  ;;  %v18478_v27 = vld [vmem:[#allocation76_spill] sm:$0xff]  ;;  %v14644_v7 = vpop.permute.xlu0 %1832  ;;  %v14662_v6 = vmul.f32 %v14168_v17, %v18482_v42  ;;  %v14678_v40 = vrot.slane %v2066_v51, %v13940_v5 }
 0x252   :  { %v14628_v55 = vpop.permute.xlu1 %925  ;;  %v14642_v53 = vadd.f32 %v14636_v35, %v18478_v27  ;;  %18480 = vst [vmem:[#allocation62_spill] sm:$0xff] %v14644_v7  ;;  %v14665_v32 = vadd.f32 %v14636_v35, %v1174_v33  ;;  %18485 = vst [vmem:[#allocation61_spill] sm:$0xff] %v14669_v54  ;;  %v18486_v27 = vld [vmem:[#allocation13_spill] sm:$0xff]  ;;  %v13065_v33 = vld [vmem:[#allocation7 + $0x80] sm:$0xff]   ;;  %v351_v51 = vmul.f32 %v18438_v25, %v14501_v22 }
 0x253   :  { %v14630_v47 = vadd.f32 %v863_v57, %v777_v16  ;;  %v14632_v59 = vadd.f32 %v864_v58, %v778_v28  ;;  %v18481_v57 = vld [vmem:[#allocation12_spill] sm:$0xff]  ;;  %v14658_v28 = vmul.f32 %v14165_v15, %v18482_v42  ;;  %v14681_v42 = vrot.slane %v2070_v4, %v13940_v5  ;;  %v18488_v7 = vld [vmem:[#allocation54_spill] sm:$0xff]  ;;  %11407 = vmatpush3.bf16.msra.mxu0 %v13065_v33 }
 0x254   :  { %18479 = vst [vmem:[#allocation36_spill] sm:$0xff] %v14642_v53  ;;  %v14650_v58 = vmul.f32 %v14159_v14, %v18481_v57  ;;  %v14654_v16 = vmul.f32 %v14162_v0, %v18481_v57  ;;  %18483 = vst [vmem:[#allocation63_spill] sm:$0xff] %v14665_v32  ;;  %v14673_v57 = vmul.f32 %v14171_v49, %v18486_v27  ;;  %12758 = vmatpush3.bf16.msra.mxu1 %v13065_v33 }
 0x255   :  { %v2207_v3 = vadd.f32 %v14665_v32, %v14642_v53  ;;  %v2252_v29 = vmul.f32 %v14642_v53, %v14642_v53  ;;  %v352_v4 = vmul.f32 %v18439_v9, %v14501_v22  ;;  %v2254_v53 = vmul.f32 %v14665_v32, %v14665_v32  ;;  %v14705_v48 = vpop.permute.xlu0 %2024  ;;  %v13066_v22 = vld [vmem:[#allocation7 + $0xc8] sm:$0xff]  }
 0x256   :  { %v14646_v10 = vpop.permute.xlu1 %1129  ;;  %v14699_v56 = vmul.f32 %v14669_v54, %v14669_v54  ;;  %v862_v25 = vmul.f32 %v14186_v13, %v18489_v45  ;;  %v555_v9 = vmul.f32 %v14049_v34, %v14521_v50  ;;  %v13067_v32 = vld [vmem:[#allocation7 + $0x88] sm:$0xff]   ;;  %v759_v45 = vmul.f32 %v18460_v31, %v18490_v60  ;;  %11408 = vmatprep.subr.bf16.mxu0 %v13066_v22 }
 0x257   :  { %v14712_v39 = vadd.f32 %v2207_v3, %v14669_v54  ;;  %v14714_v38 = vadd.f32 %v2254_v53, %v2252_v29  ;;  %12751 = vmatprep.subr.bf16.mxu1 %v13066_v22  ;;  %11409 = vmatpush3.bf16.msra.mxu0 %v13067_v32  ;;  %v18492_v53 = vld [vmem:[#allocation49_spill] sm:$0xff]  ;;  %v13069_v22 = vld [vmem:[#allocation7 + $0x90] sm:$0xff]  }
 0x258   :  { %v14728_v29 = vmul.f32 %v14159_v14, %v18492_v53  ;;  %12759 = vmatpush3.bf16.msra.mxu1 %v13067_v32 }
 0x25a   :  { %v415_v18 = vpop.permute.xlu1 %414 }
 0x25b   :  { %v453_v5 = vmul.f32 %v18440_v19, %v415_v18  ;;  %v454_v61 = vmul.f32 %v18488_v7, %v415_v18  ;;  %v556_v19 = vmul.f32 %v14052_v1, %v14521_v50  ;;  %v18491_v50 = vld [vmem:[#allocation48_spill] sm:$0xff] }
 0x25c   :  { %v962_v3 = vmul.f32 %v14165_v15, %v18491_v50 }
 0x25d   :  { %v469_v18 = vadd.f32 %v453_v5, %v351_v51  ;;  %v470_v7 = vadd.f32 %v454_v61, %v352_v4  ;;  %v760_v5 = vmul.f32 %v18461_v46, %v18490_v60  ;;  %v963_v61 = vmul.f32 %v14168_v17, %v18491_v50  ;;  %v13068_v51 = vld [vmem:[#allocation7 + $0xd0] sm:$0xff]  }
 0x25e   :  { %v614_v41 = vpop.permute.xlu1 %613  ;;  %11410 = vmatprep.subr.bf16.mxu0 %v13068_v51  ;;  %12752 = vmatprep.subr.bf16.mxu1 %v13068_v51 }
 0x25f   :  { %v571_v33 = vadd.f32 %v555_v9, %v469_v18  ;;  %v572_v20 = vadd.f32 %v556_v19, %v470_v7  ;;  %v655_v34 = vmul.f32 %v18457_v43, %v614_v41  ;;  %v656_v1 = vmul.f32 %v18458_v12, %v614_v41  ;;  %v18493_v41 = vld [vmem:[#allocation53_spill] sm:$0xff]  ;;  %v14740_v19 = vpop.permute.xlu0 %1549  ;;  %11411 = vmatpush3.bf16.msra.mxu0 %v13069_v22 }
 0x260   :  { %v1065_v43 = vmul.f32 %v14162_v0, %v18492_v53  ;;  %v14734_v12 = vmul.f32 %v14171_v49, %v18493_v41  ;;  %v14738_v9 = vmul.f32 %v14174_v2, %v18493_v41  ;;  %12760 = vmatpush3.bf16.msra.mxu1 %v13069_v22 }
 0x261   :  { %v673_v60 = vadd.f32 %v657_v21, %v571_v33  ;;  %v674_v4 = vadd.f32 %v658_v63, %v572_v20  ;;  %v671_v18 = vadd.f32 %v655_v34, %v14534_v24  ;;  %v672_v32 = vadd.f32 %v656_v1, %v14536_v36 }
 0x262   :  { %v716_v7 = vpop.permute.xlu1 %715  ;;  %v859_v21 = vmul.f32 %v14183_v23, %v14546_v37  ;;  %v860_v63 = vmul.f32 %v14186_v13, %v14546_v37  ;;  %v964_v24 = vmul.f32 %v14165_v15, %v14628_v55  ;;  %v965_v36 = vmul.f32 %v14168_v17, %v14628_v55 }
 0x263   :  { %v775_v50 = vadd.f32 %v759_v45, %v673_v60  ;;  %v776_v53 = vadd.f32 %v760_v5, %v674_v4  ;;  %v757_v54 = vmul.f32 %v18460_v31, %v716_v7  ;;  %v758_v20 = vmul.f32 %v18461_v46, %v716_v7  ;;  %v13070_v45 = vld [vmem:[#allocation7 + $0xd8] sm:$0xff]   ;;  %v14766_v4 = vpop.permute.xlu0 %1741 }
 0x264   :  { %v13071_v46 = vld [vmem:[#allocation7 + $0x98] sm:$0xff]   ;;  %v14760_v13 = vadd.f32 %v14636_v35, %v14578_v26  ;;  %11412 = vmatprep.subr.bf16.mxu0 %v13070_v45  ;;  %12753 = vmatprep.subr.bf16.mxu1 %v13070_v45  ;;  %v1169_v60 = vmul.f32 %v14174_v2, %v14646_v10 }
 0x265   :  { %v877_v33 = vadd.f32 %v861_v62, %v775_v50  ;;  %v878_v34 = vadd.f32 %v862_v25, %v776_v53  ;;  %v773_v31 = vadd.f32 %v757_v54, %v671_v18  ;;  %v774_v1 = vadd.f32 %v758_v20, %v672_v32  ;;  %v18494_v5 = vld [vmem:[#allocation29_spill] sm:$0xff]  ;;  %11413 = vmatpush3.bf16.msra.mxu0 %v13071_v46  ;;  %v13072_v18 = vld [vmem:[#allocation7 + $0xe0] sm:$0xff]  }
 0x266   :  { %v1066_v51 = vmul.f32 %v14159_v14, %v18494_v5  ;;  %v1067_v23 = vmul.f32 %v14162_v0, %v18494_v5  ;;  %18495 = vst [vmem:[#allocation64_spill] sm:$0xff] %v14760_v13  ;;  %v916_v37 = vpop.permute.xlu1 %915  ;;  %v1168_v54 = vmul.f32 %v14171_v49, %v14646_v10  ;;  %12761 = vmatpush3.bf16.msra.mxu1 %v13071_v46  ;;  %v13073_v20 = vld [vmem:[#allocation7 + $0xa0] sm:$0xff]   ;;  %v13077_v5 = vld [vmem:[#allocation7 + $0xb0] sm:$0xff]  }
 0x267   :  { %v980_v55 = vadd.f32 %v964_v24, %v877_v33  ;;  %v981_v41 = vadd.f32 %v965_v36, %v878_v34  ;;  %v875_v62 = vadd.f32 %v859_v21, %v773_v31  ;;  %v876_v25 = vadd.f32 %v860_v63, %v774_v1  ;;  %v18496_v21 = vld [vmem:[#allocation75_spill] sm:$0xff]  ;;  %11414 = vmatprep.subr.bf16.mxu0 %v13072_v18  ;;  %v13076_v31 = vld [vmem:[#allocation7 + $0xf0] sm:$0xff]  }
 0x268   :  { %v960_v22 = vmul.f32 %v14165_v15, %v916_v37  ;;  %v961_v26 = vmul.f32 %v14168_v17, %v916_v37  ;;  %v14772_v63 = vadd.f32 %v18496_v21, %v14580_v30  ;;  %v982_v10 = vadd.f32 %v14658_v28, %v14630_v47  ;;  %12754 = vmatprep.subr.bf16.mxu1 %v13072_v18  ;;  %v13074_v17 = vld [vmem:[#allocation7 + $0xe8] sm:$0xff]  }
 0x269   :  { %v1082_v32 = vadd.f32 %v1066_v51, %v980_v55  ;;  %v1083_v7 = vadd.f32 %v1067_v23, %v981_v41  ;;  %v978_v50 = vadd.f32 %v962_v3, %v875_v62  ;;  %v979_v53 = vadd.f32 %v963_v61, %v876_v25  ;;  %11415 = vmatpush3.bf16.msra.mxu0 %v13073_v20  ;;  %v13075_v33 = vld [vmem:[#allocation7 + $0xa8] sm:$0xff]  }
 0x26a   :  { %18497 = vst [vmem:[#allocation44_spill] sm:$0xff] %v14772_v63  ;;  %v983_v24 = vadd.f32 %v14662_v6, %v14632_v59  ;;  %v1018_v15 = vpop.permute.xlu1 %1017  ;;  %v976_v30 = vadd.f32 %v960_v22, %v14554_v52  ;;  %v977_v34 = vadd.f32 %v961_v26, %v14556_v8  ;;  %12762 = vmatpush3.bf16.msra.mxu1 %v13073_v20  ;;  %v18498_v23 = vld [vmem:[#allocation11_spill] sm:$0xff] }
 0x26b   :  { %v1184_v36 = vadd.f32 %v1168_v54, %v1082_v32  ;;  %v1185_v45 = vadd.f32 %v1169_v60, %v1083_v7  ;;  %v1080_v3 = vadd.f32 %v14728_v29, %v978_v50  ;;  %v1081_v61 = vadd.f32 %v1065_v43, %v979_v53  ;;  %11416 = vmatprep.subr.bf16.mxu0 %v13074_v17  ;;  %v13079_v32 = vld [vmem:[#allocation7 + $0xb8] sm:$0xff]  }
 0x26c   :  { %v1062_v47 = vmul.f32 %v14159_v14, %v1018_v15  ;;  %v1063_v28 = vmul.f32 %v14162_v0, %v1018_v15  ;;  %v1164_v59 = vmul.f32 %v14171_v49, %v14564_v44  ;;  %v1165_v6 = vmul.f32 %v14174_v2, %v14564_v44  ;;  %v14793_v0 = vpop.permute.xlu0 %1933  ;;  %12755 = vmatprep.subr.bf16.mxu1 %v13074_v17  ;;  %v18507_v15 = vld [vmem:[#allocation81_spill] sm:$0xff] }
 0x26d   :  { %v1182_v29 = vadd.f32 %v14734_v12, %v1080_v3  ;;  %v1183_v43 = vadd.f32 %v14738_v9, %v1081_v61  ;;  %v2258_v52 = vmul.f32 %v14760_v13, %v14760_v13  ;;  %v2259_v14 = vmul.f32 %v14772_v63, %v14772_v63  ;;  %11417 = vmatpush3.bf16.msra.mxu0 %v13075_v33 }
 0x26e   :  { %v1078_v8 = vadd.f32 %v1062_v47, %v976_v30  ;;  %v1079_v1 = vadd.f32 %v1063_v28, %v977_v34  ;;  %v1171_v49 = vmul.f32 %v14174_v2, %v18486_v27  ;;  %v2285_v44 = vadd.f32 %v14714_v38, %v14699_v56  ;;  %12763 = vmatpush3.bf16.msra.mxu1 %v13075_v33  ;;  %v18501_v56 = vld [vmem:[#allocation40_spill] sm:$0xff] }
 0x26f   :  { %v1084_v12 = vadd.f32 %v14650_v58, %v982_v10  ;;  %v1085_v9 = vadd.f32 %v14654_v16, %v983_v24  ;;  %v14801_v46 = vpop.permute.xlu1 %1347  ;;  %v2209_v51 = vadd.f32 %v14712_v39, %v14760_v13  ;;  %v2230_v37 = vadd.f32 %v18498_v23, %v14772_v63  ;;  %11418 = vmatprep.subr.bf16.mxu0 %v13076_v31  ;;  %v13078_v39 = vld [vmem:[#allocation7 + $0xf8] sm:$0xff]   ;;  %v18506_v10 = vld [vmem:[#allocation80_spill] sm:$0xff]  ;;  %v18512_v23 = vld [vmem:[#allocation23_spill] sm:$0xff] }
 0x270   :  { %v1180_v55 = vadd.f32 %v1164_v59, %v1078_v8  ;;  %v1181_v41 = vadd.f32 %v1165_v6, %v1079_v1  ;;  %v2081_v2 = vmul.f32 %v14678_v40, %v14705_v48  ;;  %v2082_v38 = vmul.f32 %v14681_v42, %v14705_v48  ;;  %12756 = vmatprep.subr.bf16.mxu1 %v13076_v31  ;;  %v14833_v7 = vpop.permute.xlu0 %1554  ;;  %v13080_v31 = vld [vmem:[#allocation7 + $0x40] sm:$0xff]  }
 0x271   :  { %v14812_v58 = vadd.f32 %v14636_v35, %v1182_v29  ;;  %v14815_v16 = vadd.f32 %v18496_v21, %v1183_v43  ;;  %v2286_v27 = vadd.f32 %v2285_v44, %v2258_v52  ;;  %v2307_v62 = vadd.f32 %v18501_v56, %v2259_v14  ;;  %11419 = vmatpush3.bf16.msra.mxu0 %v13077_v5  ;;  %v13082_v52 = vld [vmem:[#allocation7 + $0x140] sm:$0xff]  }
 0x272   :  { %v14819_v25 = vadd.f32 %v14636_v35, %v1180_v55  ;;  %v14822_v54 = vadd.f32 %v18496_v21, %v1181_v41  ;;  %v1186_v48 = vadd.f32 %v14673_v57, %v1084_v12  ;;  %v1187_v60 = vadd.f32 %v1171_v49, %v1085_v9  ;;  %12764 = vmatpush3.bf16.msra.mxu1 %v13077_v5  ;;  %v18513_v55 = vld [vmem:[#allocation51_spill] sm:$0xff] }
 0x273   :  { %18499 = vst [vmem:[#allocation65_spill] sm:$0xff] %v14812_v58  ;;  %18500 = vst [vmem:[#allocation21_spill] sm:$0xff] %v14815_v16  ;;  %v14826_v22 = vadd.f32 %v14636_v35, %v1184_v36  ;;  %v14829_v26 = vadd.f32 %v18496_v21, %v1185_v45  ;;  %v14831_v18 = vpop.permute.xlu1 %1544  ;;  %v2097_v24 = vadd.f32 %v2081_v2, %v18506_v10  ;;  %11420 = vmatprep.subr.bf16.mxu0 %v13078_v39 }
 0x274   :  { %18502 = vst [vmem:[#allocation28_spill] sm:$0xff] %v14819_v25  ;;  %18503 = vst [vmem:[#allocation18_spill] sm:$0xff] %v14822_v54  ;;  %v2210_v50 = vadd.f32 %v2209_v51, %v14819_v25  ;;  %v2231_v53 = vadd.f32 %v2230_v37, %v14822_v54  ;;  %v2260_v57 = vmul.f32 %v14819_v25, %v14819_v25  ;;  %12757 = vmatprep.subr.bf16.mxu1 %v13078_v39  ;;  %v14867_v1 = vpop.permute.xlu0 %1746 }
 0x275   :  { %18504 = vst [vmem:[#allocation19_spill] sm:$0xff] %v14826_v22  ;;  %18505 = vst [vmem:[#allocation70_spill] sm:$0xff] %v14829_v26  ;;  %v2261_v20 = vmul.f32 %v14822_v54, %v14822_v54  ;;  %v2098_v17 = vadd.f32 %v2082_v38, %v18507_v15  ;;  %v2262_v36 = vmul.f32 %v14812_v58, %v14812_v58  ;;  %11421 = vmatpush3.bf16.msra.mxu0 %v13079_v32  ;;  %v18518_v15 = vld [vmem:[#allocation56_spill] sm:$0xff]  ;;  %v18541_v54 = vld [vmem:[#allocation62_spill] sm:$0xff] }
 0x276   :  { %v2263_v45 = vmul.f32 %v14815_v16, %v14815_v16  ;;  %v2211_v3 = vadd.f32 %v2210_v50, %v14812_v58  ;;  %v2232_v61 = vadd.f32 %v2231_v53, %v14815_v16  ;;  %v2287_v33 = vadd.f32 %v2286_v27, %v2260_v57  ;;  %12765 = vmatpush3.bf16.msra.mxu1 %v13079_v32  ;;  %v18515_v32 = vld [vmem:[#allocation46_spill] sm:$0xff]  ;;  %v18516_v53 = vld [vmem:[#allocation47_spill] sm:$0xff]  ;;  %v18538_v58 = vld [vmem:[#allocation33_spill] sm:$0xff] }
 0x277   :  { %v2308_v30 = vadd.f32 %v2307_v62, %v2261_v20  ;;  %v14850_v34 = vadd.f32 %v14636_v35, %v1186_v48  ;;  %v14853_v47 = vadd.f32 %v18496_v21, %v1187_v60  ;;  %v14855_v6 = vpop.permute.xlu1 %1736  ;;  %v2264_v29 = vmul.f32 %v14826_v22, %v14826_v22  ;;  %11470 = vmatprep.subr.bf16.mxu0 %v13080_v31  ;;  %v18514_v60 = vld [vmem:[#allocation22_spill] sm:$0xff] }
 0x278   :  { %v2288_v28 = vadd.f32 %v2287_v33, %v2262_v36  ;;  %v2265_v43 = vmul.f32 %v14829_v26, %v14829_v26  ;;  %v14862_v14 = vadd.f32 %v14636_v35, %v2097_v24  ;;  %v14865_v8 = vadd.f32 %v18496_v21, %v2098_v17  ;;  %11534 = vmatprep.subr.bf16.mxu1 %v13082_v52  ;;  %v18517_v24 = vld [vmem:[#allocation25_spill] sm:$0xff]  ;;  %v18522_v52 = vld [vmem:[#allocation74_spill] sm:$0xff] }
 0x279   :  { %18508 = vst [vmem:[#allocation76_spill] sm:$0xff] %v14850_v34  ;;  %18509 = vst [vmem:[#allocation12_spill] sm:$0xff] %v14853_v47  ;;  %v2309_v59 = vadd.f32 %v2308_v30, %v2263_v45  ;;  %v2212_v49 = vadd.f32 %v2211_v3, %v14826_v22  ;;  %v2233_v44 = vadd.f32 %v2232_v61, %v14829_v26  ;;  %v18519_v36 = vld [vmem:[#allocation57_spill] sm:$0xff]  ;;  %v18520_v30 = vld [vmem:[#allocation27_spill] sm:$0xff] }
 0x27a   :  { %18510 = vst [vmem:[#allocation10_spill] sm:$0xff] %v14862_v14  ;;  %18511 = vst [vmem:[#allocation31_spill] sm:$0xff] %v14865_v8  ;;  %v2289_v12 = vadd.f32 %v2288_v28, %v2264_v29  ;;  %v2266_v5 = vmul.f32 %v14850_v34, %v14850_v34  ;;  %v2267_v51 = vmul.f32 %v14853_v47, %v14853_v47  ;;  %v18521_v28 = vld [vmem:[#allocation73_spill] sm:$0xff]  ;;  %v14905_v29 = vpop.permute.xlu0 %1938  ;;  %v18540_v16 = vld [vmem:[#allocation78_spill] sm:$0xff] }
 0x27b   :  { %v2310_v9 = vadd.f32 %v2309_v59, %v2265_v43  ;;  %v1279_v37 = vmul.f32 %v18412_v11, %v18512_v23  ;;  %v1280_v41 = vmul.f32 %v18513_v55, %v18512_v23  ;;  %v1929_v2 = vpop.permute.xlu1 %1928  ;;  %v2213_v38 = vadd.f32 %v2212_v49, %v14850_v34  ;;  %v18534_v34 = vld [vmem:[#allocation30_spill] sm:$0xff] }
 0x27c   :  { %v2234_v39 = vadd.f32 %v2233_v44, %v14853_v47  ;;  %v2268_v27 = vmul.f32 %v14862_v14, %v14862_v14  ;;  %v2269_v56 = vmul.f32 %v14865_v8, %v14865_v8  ;;  %v2290_v62 = vadd.f32 %v2289_v12, %v2266_v5  ;;  %v18523_v44 = vld [vmem:[#allocation66_spill] sm:$0xff]  ;;  %v18524_v5 = vld [vmem:[#allocation32_spill] sm:$0xff] }
 0x27d   :  { %v2311_v48 = vadd.f32 %v2310_v9, %v2267_v51  ;;  %v1380_v50 = vmul.f32 %v18515_v32, %v18514_v60  ;;  %v1381_v57 = vmul.f32 %v18516_v53, %v18514_v60  ;;  %v14890_v20 = vadd.f32 %v2213_v38, %v14862_v14  ;;  %v18525_v38 = vld [vmem:[#allocation77_spill] sm:$0xff] }
 0x27e   :  { %v14893_v10 = vadd.f32 %v2234_v39, %v14865_v8  ;;  %v1481_v17 = vmul.f32 %v18518_v15, %v18517_v24  ;;  %v1482_v45 = vmul.f32 %v18519_v36, %v18517_v24  ;;  %v14899_v3 = vadd.f32 %v2290_v62, %v2268_v27  ;;  %v18526_v27 = vld [vmem:[#allocation24_spill] sm:$0xff] }
 0x27f   :  { %v14901_v61 = vadd.f32 %v2311_v48, %v2269_v56  ;;  %v1396_v33 = vadd.f32 %v1380_v50, %v1279_v37  ;;  %v1580_v59 = vmul.f32 %v18521_v28, %v18520_v30  ;;  %v1397_v31 = vadd.f32 %v1381_v57, %v1280_v41  ;;  %v18527_v56 = vld [vmem:[#allocation68_spill] sm:$0xff]  ;;  %v18529_v41 = vld [vmem:[#allocation69_spill] sm:$0xff] }
 0x280   :  { %v1581_v49 = vmul.f32 %v18522_v52, %v18520_v30  ;;  %v1582_v12 = vmul.f32 %v18521_v28, %v18523_v44  ;;  %v1583_v9 = vmul.f32 %v18522_v52, %v18523_v44  ;;  %v1681_v62 = vmul.f32 %v18527_v56, %v18526_v27  ;;  %v14923_v30 = vpop.permute.xlu0 %1655  ;;  %v18530_v44 = vld [vmem:[#allocation52_spill] sm:$0xff] }
 0x281   :  { %v14907_v43 = vpop.permute.xlu1 %1453  ;;  %v1596_v51 = vadd.f32 %v1580_v59, %v18524_v5  ;;  %v1497_v23 = vadd.f32 %v1481_v17, %v1396_v33  ;;  %v1498_v37 = vadd.f32 %v1482_v45, %v1397_v31  ;;  %v1682_v60 = vmul.f32 %v18529_v41, %v18526_v27  ;;  %v18531_v33 = vld [vmem:[#allocation26_spill] sm:$0xff]  ;;  %v18532_v31 = vld [vmem:[#allocation71_spill] sm:$0xff]  ;;  %v18533_v5 = vld [vmem:[#allocation72_spill] sm:$0xff] }
 0x282   :  { %v1597_v39 = vadd.f32 %v1581_v49, %v18525_v38  ;;  %v1683_v59 = vmul.f32 %v18527_v56, %v18530_v44  ;;  %v1684_v17 = vmul.f32 %v18529_v41, %v18530_v44  ;;  %v1881_v49 = vmul.f32 %v18532_v31, %v18531_v33  ;;  %v18535_v27 = vld [vmem:[#allocation17_spill] sm:$0xff] }
 0x283   :  { %v1598_v50 = vadd.f32 %v1582_v12, %v1497_v23  ;;  %v1599_v57 = vadd.f32 %v1583_v9, %v1498_v37  ;;  %v1697_v24 = vadd.f32 %v1681_v62, %v1596_v51  ;;  %v1882_v38 = vmul.f32 %v18533_v5, %v18531_v33  ;;  %v18536_v9 = vld [vmem:[#allocation45_spill] sm:$0xff] }
 0x284   :  { %v1698_v45 = vadd.f32 %v1682_v60, %v1597_v39  ;;  %v1782_v12 = vmul.f32 %v18535_v27, %v18534_v34  ;;  %v1982_v51 = vmul.f32 %v18536_v9, %v1929_v2  ;;  %v18537_v37 = vld [vmem:[#allocation37_spill] sm:$0xff]  ;;  %v1983_v44 = vmul.f32 %v18538_v58, %v1929_v2  ;;  %v18539_v39 = vld [vmem:[#allocation60_spill] sm:$0xff] }
 0x285   :  { %v14919_v48 = vpop.permute.xlu1 %1645  ;;  %v1783_v62 = vmul.f32 %v18537_v37, %v18534_v34  ;;  %v1699_v47 = vadd.f32 %v1683_v59, %v1598_v50  ;;  %v1700_v22 = vadd.f32 %v1684_v17, %v1599_v57  ;;  %v1685_v60 = vmul.f32 %v18527_v56, %v18539_v39  ;;  %v18542_v50 = vld [vmem:[#allocation79_spill] sm:$0xff]  ;;  %v18543_v59 = vld [vmem:[#allocation16_spill] sm:$0xff] }
 0x286   :  { %18528 = vst [vmem:[#allocation13_spill] sm:$0xff] %v14919_v48  ;;  %v1686_v26 = vmul.f32 %v18529_v41, %v18539_v39  ;;  %v1798_v33 = vadd.f32 %v1782_v12, %v1697_v24  ;;  %v1897_v25 = vadd.f32 %v1881_v49, %v18540_v16  ;;  %v1883_v63 = vmul.f32 %v18532_v31, %v18541_v54  ;;  %v14955_v12 = vpop.permute.xlu0 %1847 }
 0x287   :  { %v1799_v13 = vadd.f32 %v1783_v62, %v1698_v45  ;;  %v1785_v34 = vmul.f32 %v18537_v37, %v14855_v6  ;;  %v1898_v57 = vadd.f32 %v1882_v38, %v18542_v50  ;;  %v1285_v2 = vmul.f32 %v18412_v11, %v18543_v59  ;;  %18544 = vst [vmem:[#allocation39_spill] sm:$0xff] %v14955_v12  ;;  %v18545_v50 = vld [vmem:[#allocation59_spill] sm:$0xff] }
 0x288   :  { %v1286_v17 = vmul.f32 %v18513_v55, %v18543_v59  ;;  %v1884_v24 = vmul.f32 %v18533_v5, %v18541_v54  ;;  %v1998_v16 = vadd.f32 %v1982_v51, %v1897_v25  ;;  %v1487_v11 = vmul.f32 %v18518_v15, %v18545_v50  ;;  %v18546_v59 = vld [vmem:[#allocation58_spill] sm:$0xff]  ;;  %v18547_v54 = vld [vmem:[#allocation35_spill] sm:$0xff] }
 0x289   :  { %v1838_v23 = vpop.permute.xlu1 %1837  ;;  %v1999_v49 = vadd.f32 %v1983_v44, %v1898_v57  ;;  %v1488_v55 = vmul.f32 %v18519_v36, %v18545_v50  ;;  %v1701_v14 = vadd.f32 %v1685_v60, %v18546_v59  ;;  %v1702_v8 = vadd.f32 %v1686_v26, %v18547_v54 }
 0x28a   :  { %v1886_v62 = vmul.f32 %v18533_v5, %v1838_v23  ;;  %v1899_v12 = vadd.f32 %v1883_v63, %v1798_v33  ;;  %v1801_v25 = vadd.f32 %v1785_v34, %v1700_v22  ;;  %v1900_v57 = vadd.f32 %v1884_v24, %v1799_v13  ;;  %v2040_v33 = vpop.permute.xlu0 %2039 }
 0x28b   :  { %v1786_v5 = vmul.f32 %v18535_v27, %v14766_v4  ;;  %v1784_v48 = vmul.f32 %v18535_v27, %v14855_v6  ;;  %v1984_v60 = vmul.f32 %v18536_v9, %v14793_v0  ;;  %v14984_v22 = vmul.f32 %v18521_v28, %v14740_v19 }
 0x28c   :  { %v1902_v26 = vadd.f32 %v1886_v62, %v1801_v25  ;;  %v1386_v6 = vmul.f32 %v18515_v32, %v14801_v46  ;;  %v1885_v34 = vmul.f32 %v18532_v31, %v1838_v23  ;;  %v1987_v24 = vmul.f32 %v18538_v58, %v14905_v29 }
 0x28d   :  { %v2030_v45 = vpop.permute.xlu1 %2029  ;;  %v1800_v32 = vadd.f32 %v1784_v48, %v1699_v47  ;;  %v1802_v50 = vadd.f32 %v1786_v5, %v1701_v14  ;;  %v15011_v47 = vmul.f32 %v18521_v28, %v14833_v7  ;;  %v15016_v14 = vmul.f32 %v18522_v52, %v14833_v7 }
 0x28e   :  { %v2083_v39 = vmul.f32 %v14678_v40, %v2030_v45  ;;  %v2084_v38 = vmul.f32 %v14681_v42, %v2030_v45  ;;  %v1787_v45 = vmul.f32 %v18537_v37, %v14766_v4  ;;  %v1985_v4 = vmul.f32 %v18538_v58, %v14793_v0  ;;  %v15028_v5 = vpop.permute.xlu0 %1852 }
 0x28f   :  { %v15001_v0 = vmul.f32 %v18522_v52, %v14740_v19  ;;  %v2003_v59 = vadd.f32 %v1987_v24, %v1902_v26  ;;  %v1901_v54 = vadd.f32 %v1885_v34, %v1800_v32  ;;  %v2087_v26 = vmul.f32 %v14678_v40, %v2040_v33  ;;  %v18548_v34 = vld [vmem:[#allocation56_spill] sm:$0xff]  ;;  %v18549_v32 = vld [vmem:[#allocation13_spill] sm:$0xff] }
 0x290   :  { %v2099_v51 = vadd.f32 %v2083_v39, %v1998_v16  ;;  %v2100_v44 = vadd.f32 %v2084_v38, %v1999_v49  ;;  %v1387_v16 = vmul.f32 %v18516_v53, %v14801_v46  ;;  %v1803_v46 = vadd.f32 %v1787_v45, %v1702_v8 }
 0x291   :  { %v14972_v15 = vpop.permute.xlu1 %1650  ;;  %v2000_v53 = vadd.f32 %v1984_v60, %v1899_v12  ;;  %v2001_v19 = vadd.f32 %v1985_v4, %v1900_v57  ;;  %v15020_v8 = vmul.f32 %v18535_v27, %v14867_v1  ;;  %v15036_v57 = vmul.f32 %v18527_v56, %v14923_v30 }
 0x292   :  { %v14977_v63 = vadd.f32 %v14636_v35, %v2099_v51  ;;  %v14980_v13 = vadd.f32 %v18496_v21, %v2100_v44  ;;  %v1403_v48 = vadd.f32 %v1387_v16, %v1286_v17  ;;  %v2088_v51 = vmul.f32 %v14681_v42, %v2040_v33 }
 0x293   :  { %v1586_v17 = vmul.f32 %v18521_v28, %v14831_v18  ;;  %v1489_v24 = vmul.f32 %v18548_v34, %v14907_v43  ;;  %v1490_v16 = vmul.f32 %v18519_v36, %v14907_v43 }
 0x294   :  { %v2215_v49 = vadd.f32 %v14890_v20, %v14977_v63  ;;  %v2236_v62 = vadd.f32 %v14893_v10, %v14980_v13  ;;  %v2270_v23 = vmul.f32 %v14977_v63, %v14977_v63  ;;  %v2271_v39 = vmul.f32 %v14980_v13, %v14980_v13 }
 0x295   :  { %v1843_v38 = vpop.permute.xlu1 %1842  ;;  %v1402_v20 = vadd.f32 %v1386_v6, %v1285_v2  ;;  %v2104_v12 = vadd.f32 %v2088_v51, %v2003_v59  ;;  %v1504_v60 = vadd.f32 %v1488_v55, %v1403_v48  ;;  %v1587_v6 = vmul.f32 %v18522_v52, %v14831_v18  ;;  %v2045_v52 = vpop.permute.xlu0 %2044  ;;  %v18551_v59 = vld [vmem:[#allocation72_spill] sm:$0xff] }
 0x296   :  { %v2292_v10 = vadd.f32 %v14899_v3, %v2270_v23  ;;  %v2313_v25 = vadd.f32 %v14901_v61, %v2271_v39  ;;  %v15024_v3 = vmul.f32 %v18537_v37, %v14867_v1  ;;  %v1986_v61 = vmul.f32 %v18536_v9, %v14905_v29 }
 0x297   :  { %v15040_v1 = vmul.f32 %v18529_v41, %v14923_v30  ;;  %v1503_v29 = vadd.f32 %v1487_v11, %v1402_v20  ;;  %v1687_v30 = vmul.f32 %v18527_v56, %v18549_v32  ;;  %v18550_v11 = vld [vmem:[#allocation55_spill] sm:$0xff]  ;;  %v15053_v55 = vadd.f32 %v18496_v21, %v2104_v12 }
 0x298   :  { %v2002_v45 = vadd.f32 %v1986_v61, %v1901_v54  ;;  %v1602_v39 = vadd.f32 %v1586_v17, %v18550_v11  ;;  %v1887_v43 = vmul.f32 %v18532_v31, %v1843_v38  ;;  %v1888_v20 = vmul.f32 %v18551_v59, %v1843_v38  ;;  %v18552_v61 = vld [vmem:[#allocation34_spill] sm:$0xff] }
 0x299   :  { %v2035_v2 = vpop.permute.xlu1 %2034  ;;  %v18553_v17 = vld [vmem:[#allocation14_spill] sm:$0xff]  ;;  %v2275_v38 = vmul.f32 %v15053_v55, %v15053_v55 }
 0x29a   :  { %v2085_v7 = vmul.f32 %v14678_v40, %v2035_v2  ;;  %v2086_v44 = vmul.f32 %v14681_v42, %v2035_v2  ;;  %v2103_v36 = vadd.f32 %v2087_v26, %v2002_v45  ;;  %v1603_v2 = vadd.f32 %v1587_v6, %v18552_v61  ;;  %v18555_v6 = vld [vmem:[#allocation39_spill] sm:$0xff] }
 0x29b   :  { %v1505_v12 = vadd.f32 %v1489_v24, %v18553_v17  ;;  %v1703_v45 = vadd.f32 %v1687_v30, %v1602_v39  ;;  %v1904_v34 = vadd.f32 %v1888_v20, %v1803_v46  ;;  %v1889_v24 = vmul.f32 %v18532_v31, %v18555_v6 }
 0x29c   :  { %v2101_v4 = vadd.f32 %v2085_v7, %v2000_v53  ;;  %v2102_v28 = vadd.f32 %v2086_v44, %v2001_v19  ;;  %v1688_v53 = vmul.f32 %v18529_v41, %v18549_v32  ;;  %v18554_v7 = vld [vmem:[#allocation15_spill] sm:$0xff]  ;;  %v2089_v39 = vmul.f32 %v14678_v40, %v2045_v52 }
 0x29d   :  { %v1752_v23 = vpop.permute.xlu1 %1751  ;;  %v1506_v44 = vadd.f32 %v1490_v16, %v18554_v7  ;;  %v15082_v16 = vadd.f32 %v14636_v35, %v2103_v36  ;;  %v1606_v20 = vadd.f32 %v15011_v47, %v1505_v12  ;;  %v1605_v36 = vadd.f32 %v15001_v0, %v1504_v60 }
 0x29e   :  { %v15056_v33 = vadd.f32 %v14636_v35, %v2101_v4  ;;  %v15059_v18 = vadd.f32 %v18496_v21, %v2102_v28  ;;  %v1903_v28 = vadd.f32 %v1887_v43, %v1802_v50  ;;  %v1704_v61 = vadd.f32 %v1688_v53, %v1603_v2 }
 0x29f   :  { %v1890_v43 = vmul.f32 %v18551_v59, %v18555_v6  ;;  %v1604_v53 = vadd.f32 %v14984_v22, %v1503_v29  ;;  %v2274_v7 = vmul.f32 %v15082_v16, %v15082_v16  ;;  %v1690_v47 = vmul.f32 %v18529_v41, %v14972_v15 }
 0x2a0   :  { %v2216_v54 = vadd.f32 %v2215_v49, %v15056_v33  ;;  %v2237_v19 = vadd.f32 %v2236_v62, %v15059_v18  ;;  %v2272_v48 = vmul.f32 %v15056_v33, %v15056_v33  ;;  %v2273_v51 = vmul.f32 %v15059_v18, %v15059_v18 }
 0x2a1   :  { %v1944_v26 = vpop.permute.xlu1 %1943  ;;  %v1805_v17 = vadd.f32 %v15024_v3, %v1704_v61  ;;  %v1790_v0 = vmul.f32 %v18535_v27, %v1752_v23  ;;  %v1791_v60 = vmul.f32 %v18537_v37, %v1752_v23 }
 0x2a2   :  { %v2238_v49 = vadd.f32 %v2237_v19, %v15053_v55  ;;  %v2293_v62 = vadd.f32 %v2292_v10, %v2272_v48  ;;  %v2314_v4 = vadd.f32 %v2313_v25, %v2273_v51  ;;  %v1988_v32 = vmul.f32 %v18536_v9, %v1944_v26  ;;  %v15086_v10 = vpop.permute.xlu0 %1953 }
 0x2a3   :  { %v1989_v11 = vmul.f32 %v18538_v58, %v1944_v26  ;;  %v2090_v19 = vmul.f32 %v14681_v42, %v2045_v52  ;;  %v1607_v48 = vadd.f32 %v15016_v14, %v1506_v44  ;;  %v1804_v51 = vadd.f32 %v15020_v8, %v1703_v45 }
 0x2a4   :  { %v2315_v30 = vadd.f32 %v2314_v4, %v2275_v38  ;;  %v2004_v50 = vadd.f32 %v1988_v32, %v1903_v28  ;;  %v1689_v26 = vmul.f32 %v18527_v56, %v14972_v15  ;;  %v2217_v22 = vadd.f32 %v2216_v54, %v15082_v16 }
 0x2a5   :  { %v2005_v46 = vadd.f32 %v1989_v11, %v1904_v34  ;;  %v1757_v25 = vpop.permute.xlu1 %1756  ;;  %v2294_v29 = vadd.f32 %v2293_v62, %v2274_v7  ;;  %v1706_v4 = vadd.f32 %v1690_v47, %v1605_v36  ;;  %v1707_v62 = vadd.f32 %v15036_v57, %v1606_v20 }
 0x2a6   :  { %v2105_v2 = vadd.f32 %v2089_v39, %v2004_v50  ;;  %v1792_v12 = vmul.f32 %v18535_v27, %v1757_v25  ;;  %v1793_v56 = vmul.f32 %v18537_v37, %v1757_v25  ;;  %v1959_v44 = vpop.permute.xlu0 %1958  ;;  %v1705_v38 = vadd.f32 %v1689_v26, %v1604_v53 }
 0x2a7   :  { %v2106_v52 = vadd.f32 %v2090_v19, %v2005_v46  ;;  %v1708_v23 = vadd.f32 %v15040_v1, %v1607_v48  ;;  %v1807_v19 = vadd.f32 %v1791_v60, %v1706_v4  ;;  %v1905_v50 = vadd.f32 %v1889_v24, %v1804_v51 }
 0x2a8   :  { %v15105_v14 = vadd.f32 %v14636_v35, %v2105_v2  ;;  %v1808_v11 = vadd.f32 %v1792_v12, %v1707_v62  ;;  %v1906_v46 = vadd.f32 %v1890_v43, %v1805_v17  ;;  %v1994_v57 = vmul.f32 %v18536_v9, %v1959_v44 }
 0x2a9   :  { %v15108_v8 = vadd.f32 %v18496_v21, %v2106_v52  ;;  %v1949_v3 = vpop.permute.xlu1 %1948  ;;  %v1809_v6 = vadd.f32 %v1793_v56, %v1708_v23  ;;  %v1995_v1 = vmul.f32 %v18538_v58, %v1959_v44  ;;  %v1891_v53 = vmul.f32 %v18532_v31, %v15028_v5 }
 0x2aa   :  { %v2276_v15 = vmul.f32 %v15105_v14, %v15105_v14  ;;  %v2218_v54 = vadd.f32 %v2217_v22, %v15105_v14  ;;  %v1990_v27 = vmul.f32 %v18536_v9, %v1949_v3  ;;  %v1991_v37 = vmul.f32 %v18538_v58, %v1949_v3  ;;  %v2060_v36 = vpop.permute.xlu0 %2059 }
 0x2ab   :  { %v2277_v41 = vmul.f32 %v15108_v8, %v15108_v8  ;;  %v2239_v45 = vadd.f32 %v2238_v49, %v15108_v8  ;;  %v1806_v49 = vadd.f32 %v1790_v0, %v1705_v38  ;;  %v2095_v47 = vmul.f32 %v14678_v40, %v2060_v36 }
 0x2ac   :  { %v2295_v34 = vadd.f32 %v2294_v29, %v2276_v15  ;;  %v2006_v48 = vadd.f32 %v1990_v27, %v1905_v50  ;;  %v2007_v2 = vadd.f32 %v1991_v37, %v1906_v46  ;;  %v2096_v22 = vmul.f32 %v14681_v42, %v2060_v36 }
 0x2ad   :  { %v1858_v28 = vpop.permute.xlu1 %1857  ;;  %v2316_v32 = vadd.f32 %v2315_v30, %v2277_v41  ;;  %v1892_v30 = vmul.f32 %v18551_v59, %v15028_v5  ;;  %v1907_v51 = vadd.f32 %v1891_v53, %v1806_v49  ;;  %v1992_v5 = vmul.f32 %v18536_v9, %v15086_v10 }
 0x2ae   :  { %v1893_v61 = vmul.f32 %v18532_v31, %v1858_v28  ;;  %v1894_v39 = vmul.f32 %v18551_v59, %v1858_v28  ;;  %v1993_v59 = vmul.f32 %v18538_v58, %v15086_v10 }
 0x2af   :  { %v1908_v17 = vadd.f32 %v1892_v30, %v1807_v19  ;;  %v2008_v44 = vadd.f32 %v1992_v5, %v1907_v51  ;;  %v2844_v5 = vld [vmem:[#allocation4 + $0x18] sm:$0x1] }
 0x2b0   :  { %v1909_v25 = vadd.f32 %v1893_v61, %v1808_v11  ;;  %v1910_v20 = vadd.f32 %v1894_v39, %v1809_v6 }
 0x2b1   :  { %v2050_v52 = vpop.permute.xlu1 %2049  ;;  %v2009_v15 = vadd.f32 %v1993_v59, %v1908_v17  ;;  %v2842_v17 = vld [vmem:[#allocation4 + $0x8] sm:$0xfe] }
 0x2b2   :  { %v2010_v7 = vadd.f32 %v1994_v57, %v1909_v25  ;;  %v2011_v26 = vadd.f32 %v1995_v1, %v1910_v20  ;;  %v2091_v24 = vmul.f32 %v14678_v40, %v2050_v52  ;;  %v2092_v43 = vmul.f32 %v14681_v42, %v2050_v52  ;;  %v2206_v52 = vld [vmem:[%s18170_s6] sm:$0x3]  ;;  %v2874_v59 = vld [vmem:[#allocation4 + $0x148] sm:$0xfe] }
 0x2b4   :  { %v2107_v31 = vadd.f32 %v2091_v24, %v2006_v48  ;;  %v2108_v0 = vadd.f32 %v2092_v43, %v2007_v2  ;;  %v2111_v29 = vadd.f32 %v2095_v47, %v2010_v7  ;;  %v2112_v60 = vadd.f32 %v2096_v22, %v2011_v26  ;;  %v2205_v7 = vld [vmem:[%s18169_s5] sm:$0x3] }
 0x2b5   :  { %v2055_v3 = vpop.permute.xlu1 %2054 }
 0x2b6   :  { %v15140_v12 = vadd.f32 %v14636_v35, %v2107_v31  ;;  %v15143_v56 = vadd.f32 %v18496_v21, %v2108_v0  ;;  %v2093_v41 = vmul.f32 %v14678_v40, %v2055_v3  ;;  %v2094_v38 = vmul.f32 %v14681_v42, %v2055_v3  ;;  %v18556_v3 = vld [vmem:[#allocation67_spill] sm:$0xff] }
 0x2b7   :  { %v15154_v27 = vadd.f32 %v14636_v35, %v2111_v29  ;;  %v15157_v37 = vadd.f32 %v18496_v21, %v2112_v60  ;;  %v15184_v29 = vrot.slane %v2206_v52, %v18556_v3  ;;  %v18557_v60 = vld [vmem:[#allocation41_spill] sm:$0xff] }
 0x2b8   :  { %v2219_v9 = vadd.f32 %v2218_v54, %v15140_v12  ;;  %v2240_v4 = vadd.f32 %v2239_v45, %v15143_v56  ;;  %v2278_v58 = vmul.f32 %v15140_v12, %v15140_v12  ;;  %v2279_v10 = vmul.f32 %v15143_v56, %v15143_v56 }
 0x2b9   :  { %v2109_v62 = vadd.f32 %v2093_v41, %v2008_v44  ;;  %v2110_v23 = vadd.f32 %v2094_v38, %v2009_v15  ;;  %v15187_v44 = vrot.slane %v2205_v7, %v18557_v60  ;;  %v2876_v15 = vld [vmem:[#allocation4 + $0x158] sm:$0x1]  ;;  %v2841_v41 = vld [vmem:[#allocation4] sm:$0xfe] }
 0x2ba   :  { %v2296_v40 = vadd.f32 %v2295_v34, %v2278_v58  ;;  %v2317_v42 = vadd.f32 %v2316_v32, %v2279_v10  ;;  %v2282_v34 = vmul.f32 %v15154_v27, %v15154_v27  ;;  %v2843_v10 = vld [vmem:[#allocation4 + $0x10] sm:$0x1] }
 0x2bb   :  { %v15160_v54 = vadd.f32 %v14636_v35, %v2109_v62  ;;  %v15163_v45 = vadd.f32 %v18496_v21, %v2110_v23  ;;  %v2283_v35 = vmul.f32 %v15157_v37, %v15157_v37  ;;  %v2873_v62 = vld [vmem:[#allocation4 + $0x140] sm:$0xfe]  ;;  %v2973_v23 = vrot.slane %v2842_v17, 1 }
 0x2bd   :  { %v2220_v28 = vadd.f32 %v2219_v9, %v15160_v54  ;;  %v2241_v11 = vadd.f32 %v2240_v4, %v15163_v45  ;;  %v2280_v6 = vmul.f32 %v15160_v54, %v15160_v54  ;;  %v2281_v61 = vmul.f32 %v15163_v45, %v15163_v45 }
 0x2bf   :  { %v2221_v32 = vadd.f32 %v2220_v28, %v15154_v27  ;;  %v2242_v21 = vadd.f32 %v2241_v11, %v15157_v37  ;;  %v2297_v39 = vadd.f32 %v2296_v40, %v2280_v6  ;;  %v2318_v49 = vadd.f32 %v2317_v42, %v2281_v61 }
 0x2c0   :  { %v2974_v40 = vrot.slane %v2844_v5, 1  ;;  %v3021_v42 = vrot.slane %v2874_v59, 1 }
 0x2c1   :  { %v2222_v19 = vrot.slane %v2221_v32, 4  ;;  %v2243_v50 = vrot.slane %v2242_v21, 4  ;;  %v2298_v46 = vadd.f32 %v2297_v39, %v2282_v34  ;;  %v2319_v57 = vadd.f32 %v2318_v49, %v2283_v35  ;;  %v2875_v34 = vld [vmem:[#allocation4 + $0x150] sm:$0x1] }
 0x2c2   :  { %v3022_v35 = vrot.slane %v2876_v15, 1  ;;  %v3018_v39 = vrot.slane %v2873_v62, 1  ;;  %v18564_v62 = vld [vmem:[#allocation63_spill] sm:$0xff] }
 0x2c3   :  { %v2223_v1 = vadd.f32 %v2222_v19, %v2221_v32  ;;  %v2244_v25 = vadd.f32 %v2243_v50, %v2242_v21  ;;  %v2299_v20 = vrot.slane %v2298_v46, 4  ;;  %v2320_v53 = vrot.slane %v2319_v57, 4 }
 0x2c4   :  { %v2970_v32 = vrot.slane %v2841_v41, 1  ;;  %v2971_v21 = vrot.slane %v2843_v10, 1 }
 0x2c5   :  { %v2224_v30 = vrot.slane %v2223_v1, 2  ;;  %v2245_v36 = vrot.slane %v2244_v25, 2  ;;  %v2300_v48 = vadd.f32 %v2299_v20, %v2298_v46  ;;  %v2321_v2 = vadd.f32 %v2320_v53, %v2319_v57  ;;  %v18559_v20 = vld [vmem:[#allocation31_spill] sm:$0xff] }
 0x2c6   :  { %v15222_v5 = vsel %vm2969_vm3, %v2970_v32, %v2971_v21 }
 0x2c7   :  { %v2225_v26 = vadd.f32 %v2224_v30, %v2223_v1  ;;  %v2246_v24 = vadd.f32 %v2245_v36, %v2244_v25  ;;  %v2301_v43 = vrot.slane %v2300_v48, 2  ;;  %v2322_v51 = vrot.slane %v2321_v2, 2  ;;  %v18558_v1 = vld [vmem:[#allocation38_spill] sm:$0xff] }
 0x2c8   :  { %v3019_v30 = vrot.slane %v2875_v34, 1 }
 0x2c9   :  { %v2226_v47 = vrot.slane %v2225_v26, 1  ;;  %v2247_v22 = vrot.slane %v2246_v24, 1  ;;  %v2302_v31 = vadd.f32 %v2301_v43, %v2300_v48  ;;  %v2323_v0 = vadd.f32 %v2322_v51, %v2321_v2  ;;  %v18560_v2 = vld [vmem:[#allocation36_spill] sm:$0xff] }
 0x2ca   :  { %v15208_v51 = vrot.slane %v2205_v7, %v18556_v3  ;;  %v18562_v7 = vld [vmem:[#allocation42_spill] sm:$0xff] }
 0x2cb   :  { %v2227_v38 = vadd.f32 %v2226_v47, %v2225_v26  ;;  %v2248_v9 = vadd.f32 %v2247_v22, %v2246_v24  ;;  %v2303_v4 = vrot.slane %v2302_v31, 1  ;;  %v2324_v58 = vrot.slane %v2323_v0, 1  ;;  %v18561_v24 = vld [vmem:[#allocation10_spill] sm:$0xff] }
 0x2cc   :  { %v15216_v47 = vsel %vm2969_vm3, %v2973_v23, %v2974_v40 }
 0x2cd   :  { %v15189_v28 = vmul.f32 0.0078125, %v2227_v38  ;;  %v15191_v11 = vmul.f32 0.0078125, %v2248_v9  ;;  %v2304_v6 = vadd.f32 %v2303_v4, %v2302_v31  ;;  %v2325_v61 = vadd.f32 %v2324_v58, %v2323_v0 }
 0x2ce   :  { %v15219_v0 = vsel %vm2969_vm3, %v3021_v42, %v3022_v35  ;;  %v15234_v9 = vsel %vm2969_vm3, %v3018_v39, %v3019_v30 }
 0x2cf   :  { %v2326_v49 = vmul.f32 0.0078125, %v2304_v6  ;;  %v2327_v19 = vmul.f32 0.0078125, %v2325_v61  ;;  %v2328_v50 = vmul.f32 %v15189_v28, %v15189_v28  ;;  %v2329_v46 = vmul.f32 %v15191_v11, %v15191_v11 }
 0x2d0   :  { %v2362_v57 = vsub.f32 %v15160_v54, %v15189_v28  ;;  %v2335_v25 = vsub.f32 %v18558_v1, %v15191_v11  ;;  %v2351_v53 = vsub.f32 %v18559_v20, %v15191_v11  ;;  %v2334_v26 = vsub.f32 %v18560_v2, %v15189_v28  ;;  %v18568_v1 = vld [vmem:[#allocation64_spill] sm:$0xff] }
 0x2d1   :  { %v2330_v36 = vsub.f32 %v2326_v49, %v2328_v50  ;;  %v2331_v48 = vsub.f32 %v2327_v19, %v2329_v46  ;;  %v2350_v43 = vsub.f32 %v18561_v24, %v15189_v28  ;;  %v15211_v54 = vrot.slane %v2206_v52, %v18557_v60  ;;  %v18563_v52 = vld [vmem:[#allocation43_spill] sm:$0xff]  ;;  %v18566_v19 = vld [vmem:[#allocation44_spill] sm:$0xff] }
 0x2d2   :  { %v2363_v17 = vsub.f32 %v15163_v45, %v15191_v11  ;;  %v2337_v59 = vsub.f32 %v18562_v7, %v15191_v11  ;;  %v2339_v3 = vsub.f32 %v18563_v52, %v15191_v11  ;;  %v2353_v45 = vsub.f32 %v14980_v13, %v15191_v11 }
 0x2d3   :  { %v2332_v22 = vmax.f32 %v2330_v36, 0.0  ;;  %v2333_v31 = vmax.f32 %v2331_v48, 0.0  ;;  %v2355_v60 = vsub.f32 %v15059_v18, %v15191_v11  ;;  %v2405_v15 = vmul.f32 %v15187_v44, %v2362_v57  ;;  %v18565_v18 = vld [vmem:[#allocation61_spill] sm:$0xff] }
 0x2d4   :  { %v2406_v4 = vmul.f32 %v15208_v51, %v2363_v17  ;;  %v2378_v58 = vmul.f32 %v15208_v51, %v2335_v25  ;;  %v2394_v10 = vmul.f32 %v15208_v51, %v2351_v53  ;;  %v2336_v23 = vsub.f32 %v18564_v62, %v15189_v28  ;;  %v18569_v25 = vld [vmem:[#allocation28_spill] sm:$0xff]  ;;  %v18570_v48 = vld [vmem:[#allocation21_spill] sm:$0xff] }
 0x2d5   :  { %v2409_v41 = vadd.f32 1e-05, %v2332_v22  ;;  %v2410_v38 = vadd.f32 1e-05, %v2333_v31  ;;  %v2377_v13 = vmul.f32 %v15187_v44, %v2334_v26  ;;  %v2338_v40 = vsub.f32 %v18565_v18, %v15189_v28  ;;  %v18571_v26 = vld [vmem:[#allocation70_spill] sm:$0xff]  ;;  %v18573_v22 = vld [vmem:[#allocation19_spill] sm:$0xff] }
 0x2d6   :  { %v2352_v42 = vsub.f32 %v14977_v63, %v15189_v28  ;;  %v2393_v6 = vmul.f32 %v15187_v44, %v2350_v43  ;;  %v2380_v61 = vmul.f32 %v15208_v51, %v2337_v59  ;;  %v2354_v34 = vsub.f32 %v15056_v33, %v15189_v28  ;;  %v18567_v33 = vld [vmem:[#allocation18_spill] sm:$0xff] }
 0x2d7   :  { %13316 = vrsqrt.f32 %v2409_v41  ;;  %v2382_v35 = vmul.f32 %v15208_v51, %v2339_v3  ;;  %v15252_v32 = vmul.f32 %v15208_v51, %v2353_v45  ;;  %v2357_v21 = vsub.f32 %v15053_v55, %v15191_v11 }
 0x2d8   :  { %13318 = vrsqrt.f32 %v2410_v38  ;;  %v2359_v39 = vsub.f32 %v15108_v8, %v15191_v11  ;;  %v15259_v63 = vmul.f32 %v15208_v51, %v2355_v60  ;;  %v2379_v49 = vmul.f32 %v15187_v44, %v2336_v23 }
 0x2d9   :  { %v2341_v50 = vsub.f32 %v18566_v19, %v15191_v11  ;;  %v2343_v46 = vsub.f32 %v18567_v33, %v15191_v11  ;;  %v15267_v57 = vmul.f32 %v15187_v44, %v2338_v40  ;;  %v2340_v55 = vsub.f32 %v18568_v1, %v15189_v28 }
 0x2da   :  { %v2342_v8 = vsub.f32 %v18569_v25, %v15189_v28  ;;  %v2356_v20 = vsub.f32 %v15082_v16, %v15189_v28  ;;  %v15276_v53 = vmul.f32 %v15187_v44, %v2352_v42  ;;  %v15279_v30 = vmul.f32 %v15187_v44, %v2354_v34  ;;  %v18572_v16 = vld [vmem:[#allocation65_spill] sm:$0xff] }
 0x2db   :  { %v2358_v36 = vsub.f32 %v15105_v14, %v15189_v28  ;;  %v2345_v2 = vsub.f32 %v18570_v48, %v15191_v11  ;;  %v2347_v24 = vsub.f32 %v18571_v26, %v15191_v11  ;;  %v2361_v43 = vsub.f32 %v15143_v56, %v15191_v11 }
 0x2dc   :  { %v2344_v17 = vsub.f32 %v18572_v16, %v15189_v28  ;;  %v2346_v31 = vsub.f32 %v18573_v22, %v15189_v28  ;;  %v15294_v7 = vmul.f32 %v15208_v51, %v2341_v50  ;;  %v15297_v14 = vmul.f32 %v15208_v51, %v2343_v46 }
 0x2dd   :  { %v15300_v59 = vmul.f32 %v15208_v51, %v2357_v21  ;;  %v2360_v52 = vsub.f32 %v15140_v12, %v15189_v28  ;;  %v15305_v56 = vmul.f32 %v15208_v51, %v2359_v39  ;;  %v15308_v3 = vmul.f32 %v15187_v44, %v2340_v55  ;;  %v13107_v12 = vld [vmem:[#allocation7 + $0x130] sm:$0xff]  }
 0x2de   :  { %v15311_v45 = vmul.f32 %v15187_v44, %v2342_v8  ;;  %v15314_v60 = vmul.f32 %v15187_v44, %v2356_v20  ;;  %v15317_v41 = vmul.f32 %v15187_v44, %v2358_v36  ;;  %v15320_v38 = vmul.f32 %v15208_v51, %v2345_v2 }
 0x2df   :  { %v2365_v62 = vsub.f32 %v15157_v37, %v15191_v11  ;;  %v2364_v23 = vsub.f32 %v15154_v27, %v15189_v28  ;;  %v15329_v40 = vmul.f32 %v15208_v51, %v2347_v24  ;;  %v15332_v42 = vmul.f32 %v15208_v51, %v2361_v43 }
 0x2e0   :  { %v15335_v34 = vmul.f32 %v15187_v44, %v2344_v17  ;;  %v15338_v21 = vmul.f32 %v15187_v44, %v2346_v31 }
 0x2e1   :  { %v15326_v18 = vpop.eup %13316 }
 0x2e2   :  { %v15340_v39 = vpop.eup %13318  ;;  %v2441_v19 = vmul.f32 %v15326_v18, %v2405_v15  ;;  %v2413_v50 = vmul.f32 %v15326_v18, %v2377_v13  ;;  %v2429_v33 = vmul.f32 %v15326_v18, %v2393_v6  ;;  %v2415_v46 = vmul.f32 %v15326_v18, %v2379_v49 }
 0x2e3   :  { %v2442_v1 = vmul.f32 %v15340_v39, %v2406_v4  ;;  %v2414_v55 = vmul.f32 %v15340_v39, %v2378_v58  ;;  %v2430_v25 = vmul.f32 %v15340_v39, %v2394_v10  ;;  %v2416_v8 = vmul.f32 %v15340_v39, %v2380_v61 }
 0x2e4   :  { %v2484_v20 = vadd.f32 %v15211_v54, %v2441_v19  ;;  %v2456_v36 = vadd.f32 %v15211_v54, %v2413_v50  ;;  %v2472_v15 = vadd.f32 %v15211_v54, %v2429_v33  ;;  %v2418_v13 = vmul.f32 %v15340_v39, %v2382_v35 }
 0x2e5   :  { %v2485_v6 = vadd.f32 %v15184_v29, %v2442_v1  ;;  %v2457_v49 = vadd.f32 %v15184_v29, %v2414_v55  ;;  %v2473_v4 = vadd.f32 %v15184_v29, %v2430_v25  ;;  %v2459_v58 = vadd.f32 %v15184_v29, %v2416_v8 }
 0x2e6   :  { %v2516_v48 = vmax.f32 %v2484_v20, 0.0  ;;  %v2488_v10 = vmax.f32 %v2456_v36, 0.0  ;;  %v2504_v2 = vmax.f32 %v2472_v15, 0.0  ;;  %v2461_v61 = vadd.f32 %v15184_v29, %v2418_v13 }
 0x2e7   :  { %v2517_v26 = vmax.f32 %v2485_v6, 0.0  ;;  %v2489_v24 = vmax.f32 %v2457_v49, 0.0  ;;  %v2505_v43 = vmax.f32 %v2473_v4, 0.0  ;;  %v2491_v16 = vmax.f32 %v2459_v58, 0.0 }
 0x2e8   :  { %v2660_v17 = vrot.slane %v2516_v48, 7  ;;  %v2632_v22 = vrot.slane %v2488_v10, 7  ;;  %v2648_v35 = vrot.slane %v2504_v2, 7  ;;  %v2493_v31 = vmax.f32 %v2461_v61, 0.0 }
 0x2e9   :  { %v2661_v19 = vrot.slane %v2517_v26, 7  ;;  %v2633_v50 = vrot.slane %v2489_v24, 7  ;;  %v2649_v33 = vrot.slane %v2505_v43, 7  ;;  %v2635_v1 = vrot.slane %v2491_v16, 7 }
 0x2ea   :  { %2753 = vst [vmem:[#allocation4 + $0x220] sm:$0xfe] %v2660_v17  ;;  %2755 = vst [vmem:[#allocation4 + $0x230] sm:$0x1] %v2660_v17  ;;  %v2637_v55 = vrot.slane %v2493_v31, 7  ;;  %v2432_v25 = vmul.f32 %v15340_v39, %v15252_v32  ;;  %v2434_v8 = vmul.f32 %v15340_v39, %v15259_v63  ;;  %v2417_v20 = vmul.f32 %v15326_v18, %v15267_v57 }
 0x2eb   :  { %2697 = vst [vmem:[#allocation4 + $0x20] sm:$0xfe] %v2632_v22  ;;  %2699 = vst [vmem:[#allocation4 + $0x30] sm:$0x1] %v2632_v22  ;;  %v2458_v36 = vadd.f32 %v15211_v54, %v2415_v46  ;;  %v2431_v15 = vmul.f32 %v15326_v18, %v15276_v53  ;;  %v2433_v32 = vmul.f32 %v15326_v18, %v15279_v30 }
 0x2ec   :  { %2729 = vst [vmem:[#allocation4 + $0x160] sm:$0xfe] %v2648_v35  ;;  %2731 = vst [vmem:[#allocation4 + $0x170] sm:$0x1] %v2648_v35  ;;  %v2420_v63 = vmul.f32 %v15340_v39, %v15294_v7  ;;  %v2475_v57 = vadd.f32 %v15184_v29, %v2432_v25  ;;  %v2477_v13 = vadd.f32 %v15184_v29, %v2434_v8 }
 0x2ed   :  { %2754 = vst [vmem:[#allocation4 + $0x228] sm:$0xfe] %v2661_v19  ;;  %2756 = vst [vmem:[#allocation4 + $0x238] sm:$0x1] %v2661_v19  ;;  %v2460_v6 = vadd.f32 %v15211_v54, %v2417_v20  ;;  %v2422_v46 = vmul.f32 %v15340_v39, %v15297_v14  ;;  %v2490_v49 = vmax.f32 %v2458_v36, 0.0  ;;  %v2474_v53 = vadd.f32 %v15211_v54, %v2431_v15 }
 0x2ee   :  { %2698 = vst [vmem:[#allocation4 + $0x28] sm:$0xfe] %v2633_v50  ;;  %2700 = vst [vmem:[#allocation4 + $0x38] sm:$0x1] %v2633_v50  ;;  %v2476_v4 = vadd.f32 %v15211_v54, %v2433_v32  ;;  %v15380_v30 = vadd.f32 %v15184_v29, %v2420_v63  ;;  %v2507_v7 = vmax.f32 %v2475_v57, 0.0  ;;  %v2509_v58 = vmax.f32 %v2477_v13, 0.0 }
 0x2ef   :  { %2730 = vst [vmem:[#allocation4 + $0x168] sm:$0xfe] %v2649_v33  ;;  %2732 = vst [vmem:[#allocation4 + $0x178] sm:$0x1] %v2649_v33  ;;  %v2492_v48 = vmax.f32 %v2460_v6, 0.0  ;;  %v15383_v10 = vadd.f32 %v15184_v29, %v2422_v46  ;;  %v2634_v2 = vrot.slane %v2490_v49, 7  ;;  %v2436_v19 = vmul.f32 %v15340_v39, %v15300_v59 }
 0x2f0   :  { %2702 = vst [vmem:[#allocation4 + $0x48] sm:$0xfe] %v2635_v1  ;;  %2704 = vst [vmem:[#allocation4 + $0x58] sm:$0x1] %v2635_v1  ;;  %v2506_v61 = vmax.f32 %v2474_v53, 0.0  ;;  %v2508_v26 = vmax.f32 %v2476_v4, 0.0  ;;  %v2438_v50 = vmul.f32 %v15340_v39, %v15305_v56  ;;  %v15393_v33 = vmul.f32 %v15326_v18, %v15308_v3 }
 0x2f1   :  { %2706 = vst [vmem:[#allocation4 + $0x68] sm:$0xfe] %v2637_v55  ;;  %2708 = vst [vmem:[#allocation4 + $0x78] sm:$0x1] %v2637_v55  ;;  %v2495_v24 = vmax.f32 %v15380_v30, 0.0  ;;  %v2651_v14 = vrot.slane %v2507_v7, 7  ;;  %v15397_v1 = vmul.f32 %v15326_v18, %v15311_v45  ;;  %v15401_v59 = vmul.f32 %v15326_v18, %v15314_v60 }
 0x2f2   :  { %v2653_v43 = vrot.slane %v2509_v58, 7  ;;  %v2636_v16 = vrot.slane %v2492_v48, 7  ;;  %v2497_v17 = vmax.f32 %v15383_v10, 0.0  ;;  %v2845_v22 = vld [vmem:[#allocation4 + $0x20] sm:$0xfe]  ;;  %v15405_v56 = vmul.f32 %v15326_v18, %v15317_v41 }
 0x2f3   :  { %v2847_v35 = vld [vmem:[#allocation4 + $0x30] sm:$0x1]  ;;  %v2877_v31 = vld [vmem:[#allocation4 + $0x160] sm:$0xfe]  ;;  %2701 = vst [vmem:[#allocation4 + $0x40] sm:$0xfe] %v2634_v2  ;;  %v15409_v3 = vmul.f32 %v15340_v39, %v15320_v38  ;;  %v15413_v45 = vmul.f32 %v15340_v39, %v15329_v40  ;;  %v15417_v7 = vadd.f32 %v15184_v29, %v2436_v19 }
 0x2f4   :  { %2703 = vst [vmem:[#allocation4 + $0x50] sm:$0x1] %v2634_v2  ;;  %2734 = vst [vmem:[#allocation4 + $0x188] sm:$0xfe] %v2651_v14  ;;  %v2976_v63 = vrot.slane %v2845_v22, 1  ;;  %v2977_v60 = vrot.slane %v2847_v35, 1 }
 0x2f5   :  { %v2846_v55 = vld [vmem:[#allocation4 + $0x28] sm:$0xfe]  ;;  %v2848_v25 = vld [vmem:[#allocation4 + $0x38] sm:$0x1]  ;;  %2736 = vst [vmem:[#allocation4 + $0x198] sm:$0x1] %v2651_v14 }
 0x2f6   :  { %v2878_v8 = vld [vmem:[#allocation4 + $0x168] sm:$0xfe]  ;;  %2738 = vst [vmem:[#allocation4 + $0x1a8] sm:$0xfe] %v2653_v43  ;;  %2740 = vst [vmem:[#allocation4 + $0x1b8] sm:$0x1] %v2653_v43  ;;  %v2978_v48 = vsel %vm2969_vm3, %v2976_v63, %v2977_v60 }
 0x2f7   :  { %2705 = vst [vmem:[#allocation4 + $0x60] sm:$0xfe] %v2636_v16  ;;  %2707 = vst [vmem:[#allocation4 + $0x70] sm:$0x1] %v2636_v16  ;;  %v2979_v20 = vrot.slane %v2846_v55, 1  ;;  %v2980_v36 = vrot.slane %v2848_v25, 1  ;;  %v3098_v22 = vpack.c.bf16 %v2978_v48, %v15222_v5 }
 0x2f8   :  { %v2880_v15 = vld [vmem:[#allocation4 + $0x178] sm:$0x1]  ;;  %v3027_v32 = vrot.slane %v2878_v8, 1  ;;  %v2879_v13 = vld [vmem:[#allocation4 + $0x170] sm:$0x1]  ;;  %v3024_v6 = vrot.slane %v2877_v31, 1 }
 0x2f9   :  { %v3028_v57 = vrot.slane %v2880_v15, 1  ;;  %v2650_v46 = vrot.slane %v2506_v61, 7  ;;  %v2981_v41 = vsel %vm2969_vm3, %v2979_v20, %v2980_v36  ;;  %v3025_v49 = vrot.slane %v2879_v13, 1  ;;  %v2850_v53 = vld [vmem:[#allocation4 + $0x48] sm:$0xfe]  ;;  %v13081_v2 = vld [vmem:[#allocation7] sm:$0xff]  }
 0x2fa   :  { %v2852_v38 = vld [vmem:[#allocation4 + $0x58] sm:$0x1]  ;;  %v2652_v4 = vrot.slane %v2508_v26, 7  ;;  %v3099_v40 = vpack.c.bf16 %v2981_v41, %v15216_v47  ;;  %v2854_v14 = vld [vmem:[#allocation4 + $0x68] sm:$0xfe]  ;;  %v2985_v16 = vrot.slane %v2850_v53, 1  ;;  %v15432_v13 = vadd.f32 %v15211_v54, %v15393_v33 }
 0x2fb   :  { %v3029_v58 = vsel %vm2969_vm3, %v3027_v32, %v3028_v57  ;;  %v2856_v43 = vld [vmem:[#allocation4 + $0x78] sm:$0x1]  ;;  %2733 = vst [vmem:[#allocation4 + $0x180] sm:$0xfe] %v2650_v46  ;;  %2735 = vst [vmem:[#allocation4 + $0x190] sm:$0x1] %v2650_v46  ;;  %v3026_v26 = vsel %vm2969_vm3, %v3024_v6, %v3025_v49 }
 0x2fc   :  { %v3107_v61 = vpack.c.bf16 %v3029_v58, %v15219_v0  ;;  %v2986_v35 = vrot.slane %v2852_v38, 1  ;;  %v13083_v31 = vld [vmem:[#allocation7 + $0x100] sm:$0xff]   ;;  %v13084_v19 = vld [vmem:[#allocation7 + $0x48] sm:$0xff]   ;;  %2737 = vst [vmem:[#allocation4 + $0x1a0] sm:$0xfe] %v2652_v4  ;;  %3275 = vmatprep.mubr.bf16.mxu0 %v3099_v40  ;;  %v3106_v55 = vpack.c.bf16 %v3026_v26, %v15234_v9  ;;  %v2991_v25 = vrot.slane %v2854_v14, 1 }
 0x2fd   :  { %v13086_v47 = vld [vmem:[#allocation7 + $0x148] sm:$0xff]   ;;  %2739 = vst [vmem:[#allocation4 + $0x1b0] sm:$0x1] %v2652_v4  ;;  %v2992_v8 = vrot.slane %v2856_v43, 1  ;;  %v2849_v36 = vld [vmem:[#allocation4 + $0x40] sm:$0xfe]  ;;  %v15427_v0 = vadd.f32 %v15184_v29, %v2438_v50  ;;  %3276 = vmatmul.mubr.bf16.vlgmr.msra.gmra.mrb[8].mxu0 %v3098_v22  ;;  %v15436_v9 = vadd.f32 %v15211_v54, %v15397_v1  ;;  %v2478_v1 = vadd.f32 %v15211_v54, %v15401_v59 }
 0x2fe   :  { %v13085_v20 = vld [vmem:[#allocation7 + $0x8] sm:$0xff]   ;;  %v2851_v15 = vld [vmem:[#allocation4 + $0x50] sm:$0x1]  ;;  %3307 = vmatprep.mubr.bf16.mxu1 %v3107_v61  ;;  %v2987_v5 = vsel %vm2969_vm3, %v2985_v16, %v2986_v35  ;;  %v2884_v63 = vld [vmem:[#allocation4 + $0x198] sm:$0x1]  ;;  %11471 = vmatpush3.bf16.msra.mxu0 %v13081_v2  ;;  %v2982_v58 = vrot.slane %v2849_v36, 1  ;;  %v2480_v59 = vadd.f32 %v15211_v54, %v15405_v56 }
 0x2ff   :  { %v2882_v32 = vld [vmem:[#allocation4 + $0x188] sm:$0xfe]  ;;  %3308 = vmatmul.mubr.bf16.vlgmr.msra.gmra.mrb[0].mxu1 %v3106_v55  ;;  %v2993_v50 = vsel %vm2969_vm3, %v2991_v25, %v2992_v8  ;;  %v2888_v6 = vld [vmem:[#allocation4 + $0x1b8] sm:$0x1]  ;;  %v3034_v41 = vrot.slane %v2884_v63, 1  ;;  %v13088_v53 = vld [vmem:[#allocation7 + $0x50] sm:$0xff]   ;;  %11472 = vmatprep.subr.bf16.mxu0 %v13084_v19 }
 0x300   :  { %v2886_v57 = vld [vmem:[#allocation4 + $0x1a8] sm:$0xfe]  ;;  %v3033_v46 = vrot.slane %v2882_v32, 1  ;;  %v3101_v38 = vpack.c.bf16 %v2993_v50, %v2987_v5  ;;  %v3040_v4 = vrot.slane %v2888_v6, 1  ;;  %11535 = vmatpush3.bf16.msra.mxu1 %v13083_v31  ;;  %v2853_v40 = vld [vmem:[#allocation4 + $0x60] sm:$0xfe] }
 0x301   :  { %v13087_v60 = vld [vmem:[#allocation7 + $0x108] sm:$0xff]   ;;  %v3039_v49 = vrot.slane %v2886_v57, 1  ;;  %v2855_v33 = vld [vmem:[#allocation4 + $0x70] sm:$0x1]  ;;  %11536 = vmatprep.subr.bf16.mxu1 %v13086_v47  ;;  %v2983_v2 = vrot.slane %v2851_v15, 1  ;;  %v2988_v14 = vrot.slane %v2853_v40, 1 }
 0x302   :  { %v3035_v48 = vsel %vm2969_vm3, %v3033_v46, %v3034_v41  ;;  %v2989_v43 = vrot.slane %v2855_v33, 1  ;;  %v13090_v16 = vld [vmem:[#allocation7 + $0x150] sm:$0xff]   ;;  %3283 = vmatprep.mubr.bf16.mxu0 %v3101_v38  ;;  %v2881_v22 = vld [vmem:[#allocation4 + $0x180] sm:$0xfe]  ;;  %v2639_v35 = vrot.slane %v2495_v24, 7  ;;  %v2641_v31 = vrot.slane %v2497_v17, 7  ;;  %11473 = vmatpush3.bf16.msra.mxu0 %v13085_v20 }
 0x303   :  { %v3041_v61 = vsel %vm2969_vm3, %v3039_v49, %v3040_v4  ;;  %v2883_v26 = vld [vmem:[#allocation4 + $0x190] sm:$0x1]  ;;  %v2984_v47 = vsel %vm2969_vm3, %v2982_v58, %v2983_v2  ;;  %v2885_v25 = vld [vmem:[#allocation4 + $0x1a0] sm:$0xfe]  ;;  %v3030_v36 = vrot.slane %v2881_v22, 1  ;;  %11474 = vmatprep.subr.bf16.mxu0 %v13088_v53  ;;  %v13092_v56 = vld [vmem:[#allocation7 + $0x58] sm:$0xff]   ;;  %v2467_v58 = vadd.f32 %v15184_v29, %v15409_v3 }
 0x304   :  { %v3109_v19 = vpack.c.bf16 %v3041_v61, %v3035_v48  ;;  %v2990_v55 = vsel %vm2969_vm3, %v2988_v14, %v2989_v43  ;;  %v2887_v8 = vld [vmem:[#allocation4 + $0x1b0] sm:$0x1]  ;;  %11537 = vmatpush3.bf16.msra.mxu1 %v13087_v60  ;;  %v3031_v24 = vrot.slane %v2883_v26, 1  ;;  %v3036_v5 = vrot.slane %v2885_v25, 1  ;;  %2710 = vst [vmem:[#allocation4 + $0x88] sm:$0xfe] %v2639_v35 }
 0x305   :  { %v13089_v15 = vld [vmem:[#allocation7 + $0x10] sm:$0xff]   ;;  %v3100_v30 = vpack.c.bf16 %v2990_v55, %v2984_v47  ;;  %v3037_v10 = vrot.slane %v2887_v8, 1  ;;  %2712 = vst [vmem:[#allocation4 + $0x98] sm:$0x1] %v2639_v35  ;;  %2714 = vst [vmem:[#allocation4 + $0xa8] sm:$0xfe] %v2641_v31  ;;  %11538 = vmatprep.subr.bf16.mxu1 %v13090_v16  ;;  %v2469_v2 = vadd.f32 %v15184_v29, %v15413_v45 }
 0x306   :  { %2716 = vst [vmem:[#allocation4 + $0xb8] sm:$0x1] %v2641_v31  ;;  %v13091_v17 = vld [vmem:[#allocation7 + $0x110] sm:$0xff]   ;;  %3315 = vmatprep.mubr.bf16.mxu1 %v3109_v19  ;;  %v2511_v20 = vmax.f32 %v15417_v7, 0.0  ;;  %v2513_v32 = vmax.f32 %v15427_v0, 0.0  ;;  %v13094_v63 = vld [vmem:[#allocation7 + $0x158] sm:$0xff]   ;;  %v3032_v50 = vsel %vm2969_vm3, %v3030_v36, %v3031_v24  ;;  %11475 = vmatpush3.bf16.msra.mxu0 %v13089_v15  ;;  %v2440_v14 = vmul.f32 %v15340_v39, %v15332_v42 }
 0x307   :  { %v2494_v57 = vmax.f32 %v15432_v13, 0.0  ;;  %v2496_v60 = vmax.f32 %v15436_v9, 0.0  ;;  %3284 = vmatmul.mubr.bf16.gmra.mrb[12].mxu0 %v3100_v30  ;;  %v3038_v6 = vsel %vm2969_vm3, %v3036_v5, %v3037_v10  ;;  %v2510_v46 = vmax.f32 %v2478_v1, 0.0  ;;  %v13093_v4 = vld [vmem:[#allocation7 + $0x18] sm:$0xff]   ;;  %11476 = vmatprep.subr.bf16.mxu0 %v13092_v56  ;;  %v13096_v40 = vld [vmem:[#allocation7 + $0x60] sm:$0xff]   ;;  %v13100_v22 = vld [vmem:[#allocation7 + $0x68] sm:$0xff]  }
 0x308   :  { %v2512_v41 = vmax.f32 %v2480_v59, 0.0  ;;  %v3108_v49 = vpack.c.bf16 %v3038_v6, %v3032_v50  ;;  %v2655_v53 = vrot.slane %v2511_v20, 7  ;;  %v2657_v38 = vrot.slane %v2513_v32, 7  ;;  %11539 = vmatpush3.bf16.msra.mxu1 %v13091_v17  ;;  %v13095_v0 = vld [vmem:[#allocation7 + $0x118] sm:$0xff]   ;;  %v13097_v1 = vld [vmem:[#allocation7 + $0x20] sm:$0xff]   ;;  %v13102_v30 = vld [vmem:[#allocation7 + $0x168] sm:$0xff]  }
 0x309   :  { %v2638_v7 = vrot.slane %v2494_v57, 7  ;;  %v2640_v13 = vrot.slane %v2496_v60, 7  ;;  %v2654_v33 = vrot.slane %v2510_v46, 7  ;;  %11540 = vmatprep.subr.bf16.mxu1 %v13094_v63  ;;  %v13098_v48 = vld [vmem:[#allocation7 + $0x160] sm:$0xff]   ;;  %v2499_v3 = vmax.f32 %v2467_v58, 0.0  ;;  %v13101_v17 = vld [vmem:[#allocation7 + $0x28] sm:$0xff]  }
 0x30a   :  { %v2656_v9 = vrot.slane %v2512_v41, 7  ;;  %3316 = vmatmul.mubr.bf16.gmra.mrb[4].mxu1 %v3108_v49  ;;  %2742 = vst [vmem:[#allocation4 + $0x1c8] sm:$0xfe] %v2655_v53  ;;  %2744 = vst [vmem:[#allocation4 + $0x1d8] sm:$0x1] %v2655_v53  ;;  %v13099_v61 = vld [vmem:[#allocation7 + $0x120] sm:$0xff]   ;;  %v2423_v26 = vmul.f32 %v15326_v18, %v15335_v34  ;;  %v2425_v45 = vmul.f32 %v15326_v18, %v15338_v21  ;;  %11477 = vmatpush3.bf16.msra.mxu0 %v13093_v4 }
 0x30b   :  { %2746 = vst [vmem:[#allocation4 + $0x1e8] sm:$0xfe] %v2657_v38  ;;  %2748 = vst [vmem:[#allocation4 + $0x1f8] sm:$0x1] %v2657_v38  ;;  %v15463_v43 = vld [vmem:[#allocation4 + $0x228] sm:$0xfe]  ;;  %v2483_v59 = vadd.f32 %v15184_v29, %v2440_v14  ;;  %11478 = vmatprep.subr.bf16.mxu0 %v13096_v40  ;;  %v2403_v38 = vmul.f32 %v15187_v44, %v2360_v52 }
 0x30c   :  { %2709 = vst [vmem:[#allocation4 + $0x80] sm:$0xfe] %v2638_v7  ;;  %2711 = vst [vmem:[#allocation4 + $0x90] sm:$0x1] %v2638_v7  ;;  %v15465_v16 = vld [vmem:[#allocation4 + $0x238] sm:$0x1]  ;;  %11541 = vmatpush3.bf16.msra.mxu1 %v13095_v0  ;;  %v2466_v21 = vadd.f32 %v15211_v54, %v2423_v26  ;;  %v15476_v56 = vadd.f32 %v15211_v54, %v2425_v45 }
 0x30d   :  { %2713 = vst [vmem:[#allocation4 + $0xa0] sm:$0xfe] %v2640_v13  ;;  %2715 = vst [vmem:[#allocation4 + $0xb0] sm:$0x1] %v2640_v13  ;;  %v2858_v42 = vld [vmem:[#allocation4 + $0x88] sm:$0xfe]  ;;  %11542 = vmatprep.subr.bf16.mxu1 %v13098_v48 }
 0x30e   :  { %2741 = vst [vmem:[#allocation4 + $0x1c0] sm:$0xfe] %v2654_v33  ;;  %2743 = vst [vmem:[#allocation4 + $0x1d0] sm:$0x1] %v2654_v33  ;;  %v2860_v35 = vld [vmem:[#allocation4 + $0x98] sm:$0x1]  ;;  %11479 = vmatpush3.bf16.msra.mxu0 %v13097_v1 }
 0x30f   :  { %2745 = vst [vmem:[#allocation4 + $0x1e0] sm:$0xfe] %v2656_v9  ;;  %2747 = vst [vmem:[#allocation4 + $0x1f0] sm:$0x1] %v2656_v9  ;;  %v2862_v31 = vld [vmem:[#allocation4 + $0xa8] sm:$0xfe]  ;;  %11480 = vmatprep.subr.bf16.mxu0 %v13100_v22 }
 0x310   :  { %v2864_v19 = vld [vmem:[#allocation4 + $0xb8] sm:$0x1]  ;;  %v2997_v47 = vrot.slane %v2858_v42, 1  ;;  %v2998_v55 = vrot.slane %v2860_v35, 1  ;;  %v3003_v25 = vrot.slane %v2862_v31, 1  ;;  %v2501_v8 = vmax.f32 %v2469_v2, 0.0  ;;  %11543 = vmatpush3.bf16.msra.mxu1 %v13099_v61 }
 0x311   :  { %v3004_v36 = vrot.slane %v2864_v19, 1  ;;  %v2643_v15 = vrot.slane %v2499_v3, 7  ;;  %v2515_v34 = vmax.f32 %v2483_v59, 0.0  ;;  %v3063_v10 = vrot.slane %v15463_v43, 1  ;;  %v13103_v57 = vld [vmem:[#allocation7 + $0x128] sm:$0xff]   ;;  %v13104_v60 = vld [vmem:[#allocation7 + $0x70] sm:$0xff]   ;;  %11544 = vmatprep.subr.bf16.mxu1 %v13102_v30 }
 0x312   :  { %v2999_v24 = vsel %vm2969_vm3, %v2997_v47, %v2998_v55  ;;  %v2645_v5 = vrot.slane %v2501_v8, 7  ;;  %v3064_v63 = vrot.slane %v15465_v16, 1  ;;  %v2498_v50 = vmax.f32 %v2466_v21, 0.0  ;;  %v13106_v6 = vld [vmem:[#allocation7 + $0x170] sm:$0xff]   ;;  %v2890_v41 = vld [vmem:[#allocation4 + $0x1c8] sm:$0xfe]  ;;  %11481 = vmatpush3.bf16.msra.mxu0 %v13101_v17 }
 0x313   :  { %v3005_v20 = vsel %vm2969_vm3, %v3003_v25, %v3004_v36  ;;  %2718 = vst [vmem:[#allocation4 + $0xc8] sm:$0xfe] %v2643_v15  ;;  %2720 = vst [vmem:[#allocation4 + $0xd8] sm:$0x1] %v2643_v15  ;;  %v2659_v32 = vrot.slane %v2515_v34, 7  ;;  %v3045_v7 = vrot.slane %v2890_v41, 1  ;;  %v2439_v2 = vmul.f32 %v15326_v18, %v2403_v38  ;;  %11482 = vmatprep.subr.bf16.mxu0 %v13104_v60 }
 0x314   :  { %v3103_v46 = vpack.c.bf16 %v3005_v20, %v2999_v24  ;;  %v2892_v49 = vld [vmem:[#allocation4 + $0x1d8] sm:$0x1]  ;;  %v2894_v53 = vld [vmem:[#allocation4 + $0x1e8] sm:$0xfe]  ;;  %2722 = vst [vmem:[#allocation4 + $0xe8] sm:$0xfe] %v2645_v5  ;;  %11545 = vmatpush3.bf16.msra.mxu1 %v13103_v57 }
 0x315   :  { %2724 = vst [vmem:[#allocation4 + $0xf8] sm:$0x1] %v2645_v5  ;;  %v2896_v4 = vld [vmem:[#allocation4 + $0x1f8] sm:$0x1]  ;;  %v3046_v0 = vrot.slane %v2892_v49, 1  ;;  %v3051_v40 = vrot.slane %v2894_v53, 1  ;;  %11546 = vmatprep.subr.bf16.mxu1 %v13106_v6  ;;  %v2482_v20 = vadd.f32 %v15211_v54, %v2439_v2 }
 0x316   :  { %2750 = vst [vmem:[#allocation4 + $0x208] sm:$0xfe] %v2659_v32  ;;  %2752 = vst [vmem:[#allocation4 + $0x218] sm:$0x1] %v2659_v32  ;;  %v2500_v13 = vmax.f32 %v15476_v56, 0.0  ;;  %v13105_v33 = vld [vmem:[#allocation7 + $0x30] sm:$0xff]   ;;  %3291 = vmatprep.mubr.bf16.mxu0 %v3103_v46 }
 0x317   :  { %v3052_v9 = vrot.slane %v2896_v4, 1  ;;  %v2857_v58 = vld [vmem:[#allocation4 + $0x80] sm:$0xfe]  ;;  %v2859_v1 = vld [vmem:[#allocation4 + $0x90] sm:$0x1]  ;;  %v2642_v48 = vrot.slane %v2498_v50, 7  ;;  %v3047_v52 = vsel %vm2969_vm3, %v3045_v7, %v3046_v0  ;;  %11483 = vmatpush3.bf16.msra.mxu0 %v13105_v33 }
 0x318   :  { %v13108_v14 = vld [vmem:[#allocation7 + $0x78] sm:$0xff]   ;;  %v2861_v3 = vld [vmem:[#allocation4 + $0xa0] sm:$0xfe]  ;;  %v2863_v61 = vld [vmem:[#allocation4 + $0xb0] sm:$0x1]  ;;  %v2994_v22 = vrot.slane %v2857_v58, 1  ;;  %11547 = vmatpush3.bf16.msra.mxu1 %v13107_v12 }
 0x319   :  { %v2995_v26 = vrot.slane %v2859_v1, 1  ;;  %v13110_v45 = vld [vmem:[#allocation7 + $0x178] sm:$0xff]   ;;  %v3053_v42 = vsel %vm2969_vm3, %v3051_v40, %v3052_v9  ;;  %v3000_v35 = vrot.slane %v2861_v3, 1  ;;  %v3001_v31 = vrot.slane %v2863_v61, 1  ;;  %v2889_v59 = vld [vmem:[#allocation4 + $0x1c0] sm:$0xfe]  ;;  %11484 = vmatprep.subr.bf16.mxu0 %v13108_v14 }
 0x31a   :  { %v2891_v19 = vld [vmem:[#allocation4 + $0x1d0] sm:$0x1]  ;;  %2717 = vst [vmem:[#allocation4 + $0xc0] sm:$0xfe] %v2642_v48  ;;  %2719 = vst [vmem:[#allocation4 + $0xd0] sm:$0x1] %v2642_v48  ;;  %v3111_v47 = vpack.c.bf16 %v3053_v42, %v3047_v52  ;;  %v3065_v40 = vsel %vm2969_vm3, %v3063_v10, %v3064_v63  ;;  %11548 = vmatprep.subr.bf16.mxu1 %v13110_v45 }
 0x31b   :  { %v2996_v55 = vsel %vm2969_vm3, %v2994_v22, %v2995_v26  ;;  %v2893_v25 = vld [vmem:[#allocation4 + $0x1e0] sm:$0xfe]  ;;  %v2895_v8 = vld [vmem:[#allocation4 + $0x1f0] sm:$0x1]  ;;  %v3042_v36 = vrot.slane %v2889_v59, 1  ;;  %v3043_v15 = vrot.slane %v2891_v19, 1  ;;  %v3002_v30 = vsel %vm2969_vm3, %v3000_v35, %v3001_v31 }
 0x31c   :  { %v13109_v34 = vld [vmem:[#allocation7 + $0x38] sm:$0xff]   ;;  %v3048_v21 = vrot.slane %v2893_v25, 1  ;;  %v3049_v24 = vrot.slane %v2895_v8, 1  ;;  %v2866_v5 = vld [vmem:[#allocation4 + $0xc8] sm:$0xfe]  ;;  %v13112_v57 = vld [vmem:[#allocation7 + $0x1c0] sm:$0xff]   ;;  %3323 = vmatprep.mubr.bf16.mxu1 %v3111_v47  ;;  %v3102_v60 = vpack.c.bf16 %v3002_v30, %v2996_v55 }
 0x31d   :  { %v2868_v17 = vld [vmem:[#allocation4 + $0xd8] sm:$0x1]  ;;  %v3044_v50 = vsel %vm2969_vm3, %v3042_v36, %v3043_v15  ;;  %v2870_v46 = vld [vmem:[#allocation4 + $0xe8] sm:$0xfe]  ;;  %v3009_v49 = vrot.slane %v2866_v5, 1  ;;  %v13114_v48 = vld [vmem:[#allocation7 + $0x240] sm:$0xff]   ;;  %11485 = vmatpush3.bf16.msra.mxu0 %v13109_v34 }
 0x31e   :  { %v13111_v32 = vld [vmem:[#allocation7 + $0x138] sm:$0xff]   ;;  %v3010_v53 = vrot.slane %v2868_v17, 1  ;;  %v3050_v6 = vsel %vm2969_vm3, %v3048_v21, %v3049_v24  ;;  %v3015_v38 = vrot.slane %v2870_v46, 1  ;;  %v2898_v7 = vld [vmem:[#allocation4 + $0x208] sm:$0xfe]  ;;  %3292 = vmatmul.mubr.bf16.gmra.mrb[16].mxu0 %v3102_v60  ;;  %v2644_v52 = vrot.slane %v2500_v13, 7  ;;  %11598 = vmatprep.subr.bf16.mxu0 %v13112_v57 }
 0x31f   :  { %v2872_v41 = vld [vmem:[#allocation4 + $0xf8] sm:$0x1]  ;;  %v3110_v9 = vpack.c.bf16 %v3050_v6, %v3044_v50  ;;  %v3057_v1 = vrot.slane %v2898_v7, 1  ;;  %v2514_v16 = vmax.f32 %v2482_v20, 0.0  ;;  %11549 = vmatpush3.bf16.msra.mxu1 %v13111_v32  ;;  %v3534_v56 = vld [vmem:[#allocation4 + $0x8] sm:$0xfc] }
 0x320   :  { %v3016_v4 = vrot.slane %v2872_v41, 1  ;;  %v2900_v0 = vld [vmem:[#allocation4 + $0x218] sm:$0x1]  ;;  %v3011_v58 = vsel %vm2969_vm3, %v3009_v49, %v3010_v53  ;;  %2721 = vst [vmem:[#allocation4 + $0xe0] sm:$0xfe] %v2644_v52  ;;  %11662 = vmatprep.subr.bf16.mxu1 %v13114_v48  ;;  %v3665_v19 = vrot.slane %v3534_v56, 2 }
 0x321   :  { %v3058_v33 = vrot.slane %v2900_v0, 1  ;;  %3324 = vmatmul.mubr.bf16.gmra.mrb[8].mxu1 %v3110_v9  ;;  %2723 = vst [vmem:[#allocation4 + $0xf0] sm:$0x1] %v2644_v52  ;;  %v2658_v12 = vrot.slane %v2514_v16, 7  ;;  %v2865_v14 = vld [vmem:[#allocation4 + $0xc0] sm:$0xfe] }
 0x322   :  { %v3017_v2 = vsel %vm2969_vm3, %v3015_v38, %v3016_v4  ;;  %v2867_v3 = vld [vmem:[#allocation4 + $0xd0] sm:$0x1]  ;;  %v2901_v13 = vld [vmem:[#allocation4 + $0x220] sm:$0xfe]  ;;  %v3536_v22 = vld [vmem:[#allocation4 + $0x18] sm:$0x3] }
 0x323   :  { %v3105_v43 = vpack.c.bf16 %v3017_v2, %v3011_v58  ;;  %v3059_v10 = vsel %vm2969_vm3, %v3057_v1, %v3058_v33  ;;  %2749 = vst [vmem:[#allocation4 + $0x200] sm:$0xfe] %v2658_v12  ;;  %2751 = vst [vmem:[#allocation4 + $0x210] sm:$0x1] %v2658_v12  ;;  %v2903_v61 = vld [vmem:[#allocation4 + $0x230] sm:$0x1] }
 0x324   :  { %v3113_v63 = vpack.c.bf16 %v3065_v40, %v3059_v10  ;;  %v3006_v26 = vrot.slane %v2865_v14, 1  ;;  %v3007_v45 = vrot.slane %v2867_v3, 1  ;;  %v3538_v42 = vld [vmem:[#allocation4 + $0x28] sm:$0xfc]  ;;  %v3540_v35 = vld [vmem:[#allocation4 + $0x38] sm:$0x3] }
 0x325   :  { %3299 = vmatprep.mubr.bf16.mxu0 %v3105_v43  ;;  %v3060_v31 = vrot.slane %v2901_v13, 1  ;;  %v3061_v59 = vrot.slane %v2903_v61, 1  ;;  %v3666_v47 = vrot.slane %v3536_v22, 2  ;;  %v3671_v8 = vrot.slane %v3538_v42, 2  ;;  %v15504_v5 = vld [vmem:[#allocation4 + $0x28] sm:$0xff]  ;;  %v15511_v7 = vld [vmem:[#allocation4] sm:$0xff] }
 0x326   :  { %3331 = vmatprep.mubr.bf16.mxu1 %v3113_v63  ;;  %v3672_v36 = vrot.slane %v3540_v35, 2  ;;  %v3008_v15 = vsel %vm2969_vm3, %v3006_v26, %v3007_v45  ;;  %v3533_v60 = vld [vmem:[#allocation4] sm:$0xfc]  ;;  %v3535_v50 = vld [vmem:[#allocation4 + $0x10] sm:$0x3]  ;;  %v2794_v0 = vpack.c.bf16 %v15504_v5, %v15511_v7  ;;  %v15517_v56 = vld [vmem:[#allocation4 + $0x48] sm:$0xff] }
 0x327   :  { %v2869_v55 = vld [vmem:[#allocation4 + $0xe0] sm:$0xfe]  ;;  %v3062_v57 = vsel %vm2969_vm3, %v3060_v31, %v3061_v59  ;;  %v3667_v41 = vsel %vm3661_vm4, %v3665_v19, %v3666_v47  ;;  %v3539_v6 = vld [vmem:[#allocation4 + $0x30] sm:$0x3]  ;;  %v3542_v38 = vld [vmem:[#allocation4 + $0x48] sm:$0xfc] }
 0x328   :  { %v2871_v25 = vld [vmem:[#allocation4 + $0xf0] sm:$0x1]  ;;  %v3012_v34 = vrot.slane %v2869_v55, 1  ;;  %v3673_v49 = vsel %vm3661_vm4, %v3671_v8, %v3672_v36  ;;  %v3537_v53 = vld [vmem:[#allocation4 + $0x20] sm:$0xfc]  ;;  %v3662_v33 = vrot.slane %v3533_v60, 2 }
 0x329   :  { %v3013_v30 = vrot.slane %v2871_v25, 1  ;;  %v3544_v40 = vld [vmem:[#allocation4 + $0x58] sm:$0x3]  ;;  %v3546_v9 = vld [vmem:[#allocation4 + $0x68] sm:$0xfc]  ;;  %v3791_v48 = vpack.c.bf16 %v3673_v49, %v3667_v41  ;;  %v3663_v2 = vrot.slane %v3535_v50, 2 }
 0x32a   :  { %v2897_v21 = vld [vmem:[#allocation4 + $0x200] sm:$0xfe]  ;;  %v2899_v24 = vld [vmem:[#allocation4 + $0x210] sm:$0x1]  ;;  %v3548_v58 = vld [vmem:[#allocation4 + $0x78] sm:$0x3] }
 0x32b   :  { %v3014_v17 = vsel %vm2969_vm3, %v3012_v34, %v3013_v30  ;;  %v3054_v20 = vrot.slane %v2897_v21, 1  ;;  %v3055_v32 = vrot.slane %v2899_v24, 1  ;;  %v3668_v52 = vrot.slane %v3537_v53, 2  ;;  %v15515_v14 = vld [vmem:[#allocation4 + $0x20] sm:$0xff]  ;;  %v15519_v13 = vld [vmem:[#allocation4 + $0x68] sm:$0xff] }
 0x32c   :  { %v3104_v46 = vpack.c.bf16 %v3014_v17, %v3008_v15  ;;  %v3669_v16 = vrot.slane %v3539_v6, 2  ;;  %v3677_v43 = vrot.slane %v3542_v38, 2  ;;  %v3678_v10 = vrot.slane %v3544_v40, 2  ;;  %v13113_v3 = vld [vmem:[#allocation7 + $0x180] sm:$0xff]   ;;  %v13116_v45 = vld [vmem:[#allocation7 + $0x1c8] sm:$0xff]   ;;  %v13120_v6 = vld [vmem:[#allocation7 + $0x1d0] sm:$0xff]  }
 0x32d   :  { %v3056_v4 = vsel %vm2969_vm3, %v3054_v20, %v3055_v32  ;;  %v3683_v63 = vrot.slane %v3546_v9, 2  ;;  %v3684_v12 = vrot.slane %v3548_v58, 2  ;;  %v3664_v61 = vsel %vm3661_vm4, %v3662_v33, %v3663_v2  ;;  %v13115_v26 = vld [vmem:[#allocation7 + $0x200] sm:$0xff]   ;;  %v3543_v35 = vld [vmem:[#allocation4 + $0x50] sm:$0x3]  ;;  %v13118_v24 = vld [vmem:[#allocation7 + $0x248] sm:$0xff]  }
 0x32e   :  { %3300 = vmatmul.mubr.bf16.gmra.mrb[20].mxu0 %v3104_v46  ;;  %v3112_v1 = vpack.c.bf16 %v3062_v57, %v3056_v4  ;;  %v3670_v22 = vsel %vm3661_vm4, %v3668_v52, %v3669_v16  ;;  %v3541_v42 = vld [vmem:[#allocation4 + $0x40] sm:$0xfc]  ;;  %v2793_v31 = vpack.c.bf16 %v15515_v14, %v15511_v7  ;;  %v3679_v59 = vsel %vm3661_vm4, %v3677_v43, %v3678_v10  ;;  %v3547_v55 = vld [vmem:[#allocation4 + $0x70] sm:$0x3]  ;;  %v3550_v25 = vld [vmem:[#allocation4 + $0x88] sm:$0xfc] }
 0x32f   :  { %3468 = vmatprep.mubr.bf16.mxu0 %v2794_v0  ;;  %v3685_v19 = vsel %vm3661_vm4, %v3683_v63, %v3684_v12  ;;  %v3545_v47 = vld [vmem:[#allocation4 + $0x60] sm:$0xfc]  ;;  %v2796_v8 = vpack.c.bf16 %v15519_v13, %v15517_v56  ;;  %v3552_v36 = vld [vmem:[#allocation4 + $0x98] sm:$0x3]  ;;  %v3554_v15 = vld [vmem:[#allocation4 + $0xa8] sm:$0xfc]  ;;  %v3790_v30 = vpack.c.bf16 %v3670_v22, %v3664_v61 }
 0x330   :  { %3332 = vmatmul.mubr.bf16.gmra.mrb[12].mxu1 %v3112_v1  ;;  %v3556_v34 = vld [vmem:[#allocation4 + $0xb8] sm:$0x3]  ;;  %v3674_v21 = vrot.slane %v3541_v42, 2  ;;  %v3793_v17 = vpack.c.bf16 %v3685_v19, %v3679_v59  ;;  %v3675_v20 = vrot.slane %v3543_v35, 2  ;;  %v3680_v32 = vrot.slane %v3545_v47, 2  ;;  %v13117_v60 = vld [vmem:[#allocation7 + $0x188] sm:$0xff]  }
 0x331   :  { %3967 = vmatprep.mubr.bf16.mxu1 %v3791_v48  ;;  %v3681_v57 = vrot.slane %v3547_v55, 2  ;;  %v3689_v50 = vrot.slane %v3550_v25, 2  ;;  %v3690_v46 = vrot.slane %v3552_v36, 2  ;;  %v3695_v41 = vrot.slane %v3554_v15, 2  ;;  %v13119_v53 = vld [vmem:[#allocation7 + $0x208] sm:$0xff]   ;;  %v15529_v38 = vld [vmem:[#allocation4 + $0x40] sm:$0xff] }
 0x332   :  { %v3696_v49 = vrot.slane %v3556_v34, 2  ;;  %v15531_v4 = vld [vmem:[#allocation4 + $0x60] sm:$0xff]  ;;  %v13121_v0 = vld [vmem:[#allocation7 + $0x190] sm:$0xff]   ;;  %v15533_v40 = vld [vmem:[#allocation4 + $0x88] sm:$0xff]  ;;  %v3676_v1 = vsel %vm3661_vm4, %v3674_v21, %v3675_v20 }
 0x333   :  { %v15535_v9 = vld [vmem:[#allocation4 + $0xa8] sm:$0xff]  ;;  %v13122_v58 = vld [vmem:[#allocation7 + $0x250] sm:$0xff]   ;;  %v3682_v33 = vsel %vm3661_vm4, %v3680_v32, %v3681_v57  ;;  %v3549_v48 = vld [vmem:[#allocation4 + $0x80] sm:$0xfc]  ;;  %v2795_v43 = vpack.c.bf16 %v15531_v4, %v15529_v38  ;;  %v3691_v10 = vsel %vm3661_vm4, %v3689_v50, %v3690_v46 }
 0x334   :  { %v3551_v2 = vld [vmem:[#allocation4 + $0x90] sm:$0x3]  ;;  %v13124_v16 = vld [vmem:[#allocation7 + $0x1d8] sm:$0xff]   ;;  %v3697_v63 = vsel %vm3661_vm4, %v3695_v41, %v3696_v49  ;;  %v3553_v12 = vld [vmem:[#allocation4 + $0xa0] sm:$0xfc]  ;;  %v2798_v22 = vpack.c.bf16 %v15535_v9, %v15533_v40  ;;  %v3792_v35 = vpack.c.bf16 %v3682_v33, %v3676_v1 }
 0x335   :  { %v13123_v52 = vld [vmem:[#allocation7 + $0x210] sm:$0xff]   ;;  %v3558_v61 = vld [vmem:[#allocation4 + $0xc8] sm:$0xfc]  ;;  %v3564_v42 = vld [vmem:[#allocation4 + $0xf8] sm:$0x3]  ;;  %v3795_v19 = vpack.c.bf16 %v3697_v63, %v3691_v10  ;;  %v3687_v47 = vrot.slane %v3551_v2, 2 }
 0x336   :  { %3469 = vmatmul.mubr.bf16.vlgmr.msra.gmra.mrb[24].mxu0 %v2793_v31  ;;  %v3686_v31 = vrot.slane %v3549_v48, 2  ;;  %v13126_v59 = vld [vmem:[#allocation7 + $0x258] sm:$0xff]   ;;  %v3692_v55 = vrot.slane %v3553_v12, 2  ;;  %v3701_v36 = vrot.slane %v3558_v61, 2  ;;  %v13128_v21 = vld [vmem:[#allocation7 + $0x1e0] sm:$0xff]   ;;  %v18574_v32 = vld [vmem:[#allocation12_spill] sm:$0xff] }
 0x337   :  { %11599 = vmatpush3.bf16.msra.mxu0 %v13113_v3  ;;  %3476 = vmatprep.mubr.bf16.mxu0 %v2796_v8  ;;  %v3555_v3 = vld [vmem:[#allocation4 + $0xb0] sm:$0x3]  ;;  %v13125_v8 = vld [vmem:[#allocation7 + $0x198] sm:$0xff]   ;;  %v2349_v57 = vsub.f32 %v18574_v32, %v15191_v11  ;;  %v15553_v50 = vld [vmem:[#allocation4 + $0xe8] sm:$0xff] }
 0x338   :  { %3968 = vmatmul.mubr.bf16.vlgmr.msra.gmra.mrb[16].mxu1 %v3790_v30  ;;  %11600 = vmatprep.subr.bf16.mxu0 %v13116_v45  ;;  %v3562_v45 = vld [vmem:[#allocation4 + $0xe8] sm:$0xfc]  ;;  %v3693_v25 = vrot.slane %v3555_v3, 2  ;;  %v3708_v30 = vrot.slane %v3564_v42, 2  ;;  %v13127_v20 = vld [vmem:[#allocation7 + $0x218] sm:$0xff]   ;;  %v13130_v46 = vld [vmem:[#allocation7 + $0x260] sm:$0xff]   ;;  %v3688_v41 = vsel %vm3661_vm4, %v3686_v31, %v3687_v47 }
 0x339   :  { %3975 = vmatprep.mubr.bf16.mxu1 %v3793_v17  ;;  %11663 = vmatpush3.bf16.msra.mxu1 %v13115_v26  ;;  %v3560_v26 = vld [vmem:[#allocation4 + $0xd8] sm:$0x3]  ;;  %v3707_v34 = vrot.slane %v3562_v45, 2  ;;  %v15547_v17 = vld [vmem:[#allocation4 + $0xa0] sm:$0xff]  ;;  %v3570_v63 = vld [vmem:[#allocation4 + $0x168] sm:$0xfc]  ;;  %v2392_v61 = vmul.f32 %v15208_v51, %v2349_v57 }
 0x33a   :  { %11664 = vmatprep.subr.bf16.mxu1 %v13118_v24  ;;  %v3702_v15 = vrot.slane %v3560_v26, 2  ;;  %v15545_v24 = vld [vmem:[#allocation4 + $0x80] sm:$0xff]  ;;  %v3694_v49 = vsel %vm3661_vm4, %v3692_v55, %v3693_v25  ;;  %v3572_v12 = vld [vmem:[#allocation4 + $0x178] sm:$0x3]  ;;  %v13134_v42 = vld [vmem:[#allocation7 + $0x268] sm:$0xff]  }
 0x33b   :  { %11601 = vmatpush3.bf16.msra.mxu0 %v13117_v60  ;;  %v15551_v60 = vld [vmem:[#allocation4 + $0xc8] sm:$0xff]  ;;  %v13129_v1 = vld [vmem:[#allocation7 + $0x1a0] sm:$0xff]   ;;  %v2797_v33 = vpack.c.bf16 %v15547_v17, %v15545_v24  ;;  %v3709_v2 = vsel %vm3661_vm4, %v3707_v34, %v3708_v30  ;;  %v3719_v34 = vrot.slane %v3570_v63, 2  ;;  %v3720_v30 = vrot.slane %v3572_v12, 2  ;;  %v3576_v12 = vld [vmem:[#allocation4 + $0x198] sm:$0x3] }
 0x33c   :  { %11602 = vmatprep.subr.bf16.mxu0 %v13120_v6  ;;  %v3559_v6 = vld [vmem:[#allocation4 + $0xd0] sm:$0x3]  ;;  %v3703_v48 = vsel %vm3661_vm4, %v3701_v36, %v3702_v15  ;;  %v2800_v10 = vpack.c.bf16 %v15553_v50, %v15551_v60  ;;  %v13131_v3 = vld [vmem:[#allocation7 + $0x220] sm:$0xff]   ;;  %v13133_v25 = vld [vmem:[#allocation7 + $0x1a8] sm:$0xff]  }
 0x33d   :  { %11665 = vmatpush3.bf16.msra.mxu1 %v13119_v53  ;;  %v3557_v53 = vld [vmem:[#allocation4 + $0xc0] sm:$0xfc]  ;;  %v3699_v45 = vrot.slane %v3559_v6, 2  ;;  %v13135_v57 = vld [vmem:[#allocation7 + $0x228] sm:$0xff]  }
 0x33e   :  { %3477 = vmatmul.mubr.bf16.gmra.mrb[28].mxu0 %v2795_v43  ;;  %11666 = vmatprep.subr.bf16.mxu1 %v13122_v58  ;;  %v3568_v58 = vld [vmem:[#allocation4 + $0x158] sm:$0x3]  ;;  %v13132_v43 = vld [vmem:[#allocation7 + $0x1e8] sm:$0xff]   ;;  %v3698_v26 = vrot.slane %v3557_v53, 2  ;;  %v15566_v55 = vld [vmem:[#allocation4 + $0x140] sm:$0xfc] }
 0x33f   :  { %3484 = vmatprep.mubr.bf16.mxu0 %v2798_v22  ;;  %11603 = vmatpush3.bf16.msra.mxu0 %v13121_v0  ;;  %v3566_v0 = vld [vmem:[#allocation4 + $0x148] sm:$0xfc]  ;;  %v3794_v22 = vpack.c.bf16 %v3694_v49, %v3688_v41  ;;  %v3714_v15 = vrot.slane %v3568_v58, 2  ;;  %v15571_v32 = vld [vmem:[#allocation4 + $0xe0] sm:$0xff]  ;;  %v3567_v49 = vld [vmem:[#allocation4 + $0x150] sm:$0x3] }
 0x340   :  { %3976 = vmatmul.mubr.bf16.gmra.mrb[20].mxu1 %v3792_v35  ;;  %11604 = vmatprep.subr.bf16.mxu0 %v13124_v16  ;;  %v3563_v16 = vld [vmem:[#allocation4 + $0xf0] sm:$0x3]  ;;  %v3713_v36 = vrot.slane %v3566_v0, 2  ;;  %v15574_v41 = vld [vmem:[#allocation4 + $0x168] sm:$0xff]  ;;  %v3700_v6 = vsel %vm3661_vm4, %v3698_v26, %v3699_v45  ;;  %v3569_v58 = vld [vmem:[#allocation4 + $0x160] sm:$0xfc] }
 0x341   :  { %3983 = vmatprep.mubr.bf16.mxu1 %v3795_v19  ;;  %11667 = vmatpush3.bf16.msra.mxu1 %v13123_v52  ;;  %v3561_v52 = vld [vmem:[#allocation4 + $0xe0] sm:$0xfc]  ;;  %v18575_v35 = vld [vmem:[#allocation76_spill] sm:$0xff]  ;;  %v3705_v47 = vrot.slane %v3563_v16, 2  ;;  %v3574_v63 = vld [vmem:[#allocation4 + $0x188] sm:$0xfc] }
 0x342   :  { %11668 = vmatprep.subr.bf16.mxu1 %v13126_v59  ;;  %v2348_v31 = vsub.f32 %v18575_v35, %v15189_v28  ;;  %v3797_v59 = vpack.c.bf16 %v3709_v2, %v3703_v48  ;;  %v3704_v19 = vrot.slane %v3561_v52, 2  ;;  %v13138_v53 = vld [vmem:[#allocation7 + $0x270] sm:$0xff]   ;;  %v3715_v16 = vsel %vm3661_vm4, %v3713_v36, %v3714_v15  ;;  %v3580_v26 = vld [vmem:[#allocation4 + $0x1b8] sm:$0x3]  ;;  %v3581_v27 = vld [vmem:[#allocation4 + $0x1c0] sm:$0xfc] }
 0x343   :  { %11605 = vmatpush3.bf16.msra.mxu0 %v13125_v8  ;;  %v2428_v8 = vmul.f32 %v15340_v39, %v2392_v61  ;;  %v2802_v61 = vpack.c.bf16 %v15574_v41, %v15511_v7  ;;  %v13139_v45 = vld [vmem:[#allocation7 + $0x230] sm:$0xff]   ;;  %v3725_v15 = vrot.slane %v3574_v63, 2 }
 0x344   :  { %11606 = vmatprep.subr.bf16.mxu0 %v13128_v21  ;;  %v13136_v21 = vld [vmem:[#allocation7 + $0x1f0] sm:$0xff]   ;;  %v3706_v0 = vsel %vm3661_vm4, %v3704_v19, %v3705_v47  ;;  %v2391_v2 = vmul.f32 %v15187_v44, %v2348_v31  ;;  %v3716_v19 = vrot.slane %v3569_v58, 2 }
 0x345   :  { %11669 = vmatpush3.bf16.msra.mxu1 %v13127_v20  ;;  %v15569_v20 = vld [vmem:[#allocation4 + $0xc0] sm:$0xff]  ;;  %v3796_v31 = vpack.c.bf16 %v3706_v0, %v3700_v6  ;;  %v3583_v28 = vld [vmem:[#allocation4 + $0x1d0] sm:$0x3] }
 0x346   :  { %3485 = vmatmul.mubr.bf16.gmra.mrb[32].mxu0 %v2797_v33  ;;  %11670 = vmatprep.subr.bf16.mxu1 %v13130_v46  ;;  %v2471_v46 = vadd.f32 %v15184_v29, %v2428_v8  ;;  %v13137_v33 = vld [vmem:[#allocation7 + $0x1b0] sm:$0xff]   ;;  %v2799_v52 = vpack.c.bf16 %v15571_v32, %v15569_v20  ;;  %v2427_v35 = vmul.f32 %v15326_v18, %v2391_v2  ;;  %v13141_v8 = vld [vmem:[#allocation7 + $0x1b8] sm:$0xff]   ;;  %v13146_v6 = vld [vmem:[#allocation7 + $0x340] sm:$0xff]  }
 0x347   :  { %3492 = vmatprep.mubr.bf16.mxu0 %v2800_v10  ;;  %11607 = vmatpush3.bf16.msra.mxu0 %v13129_v1  ;;  %v3571_v1 = vld [vmem:[#allocation4 + $0x170] sm:$0x3]  ;;  %v3710_v10 = vrot.slane %v15566_v55, 2  ;;  %v13142_v55 = vld [vmem:[#allocation7 + $0x278] sm:$0xff]  }
 0x348   :  { %3984 = vmatmul.mubr.bf16.gmra.mrb[24].mxu1 %v3794_v22  ;;  %11608 = vmatprep.subr.bf16.mxu0 %v13132_v43  ;;  %v2503_v48 = vmax.f32 %v2471_v46, 0.0  ;;  %v3721_v43 = vsel %vm3661_vm4, %v3719_v34, %v3720_v30  ;;  %v3578_v22 = vld [vmem:[#allocation4 + $0x1a8] sm:$0xfc]  ;;  %v3717_v47 = vrot.slane %v3571_v1, 2  ;;  %v2470_v36 = vadd.f32 %v15211_v54, %v2427_v35  ;;  %v13144_v46 = vld [vmem:[#allocation7 + $0x2c0] sm:$0xff]  }
 0x349   :  { %3991 = vmatprep.mubr.bf16.mxu1 %v3797_v59  ;;  %11671 = vmatpush3.bf16.msra.mxu1 %v13131_v3  ;;  %v13140_v3 = vld [vmem:[#allocation7 + $0x1f8] sm:$0xff]   ;;  %v3711_v59 = vrot.slane %v3567_v49, 2  ;;  %v3726_v34 = vrot.slane %v3576_v12, 2  ;;  %v3731_v30 = vrot.slane %v3578_v22, 2  ;;  %v15588_v49 = vld [vmem:[#allocation4 + $0x160] sm:$0xff]  ;;  %v2408_v22 = vmul.f32 %v15208_v51, %v2365_v62 }
 0x34a   :  { %11672 = vmatprep.subr.bf16.mxu1 %v13134_v42  ;;  %v2647_v42 = vrot.slane %v2503_v48, 7  ;;  %v2502_v0 = vmax.f32 %v2470_v36, 0.0  ;;  %v3718_v1 = vsel %vm3661_vm4, %v3716_v19, %v3717_v47  ;;  %v3573_v48 = vld [vmem:[#allocation4 + $0x180] sm:$0xfc]  ;;  %v3575_v2 = vld [vmem:[#allocation4 + $0x190] sm:$0x3]  ;;  %v2801_v63 = vpack.c.bf16 %v15588_v49, %v15511_v7 }
 0x34b   :  { %11609 = vmatpush3.bf16.msra.mxu0 %v13133_v25  ;;  %v3799_v25 = vpack.c.bf16 %v3721_v43, %v3715_v16  ;;  %v3712_v58 = vsel %vm3661_vm4, %v3710_v10, %v3711_v59  ;;  %v3579_v16 = vld [vmem:[#allocation4 + $0x1b0] sm:$0x3]  ;;  %v3727_v12 = vsel %vm3661_vm4, %v3725_v15, %v3726_v34  ;;  %v3584_v10 = vld [vmem:[#allocation4 + $0x1d8] sm:$0x3]  ;;  %v3586_v35 = vld [vmem:[#allocation4 + $0x1e8] sm:$0xfc]  ;;  %v2444_v47 = vmul.f32 %v15340_v39, %v2408_v22 }
 0x34c   :  { %11610 = vmatprep.subr.bf16.mxu0 %v13136_v21  ;;  %2726 = vst [vmem:[#allocation4 + $0x108] sm:$0xfe] %v2647_v42  ;;  %2728 = vst [vmem:[#allocation4 + $0x118] sm:$0x1] %v2647_v42  ;;  %v3732_v21 = vrot.slane %v3580_v26, 2  ;;  %v2646_v43 = vrot.slane %v2502_v0, 7  ;;  %v3798_v26 = vpack.c.bf16 %v3718_v1, %v3712_v58 }
 0x34d   :  { %11673 = vmatpush3.bf16.msra.mxu1 %v13135_v57  ;;  %v13143_v57 = vld [vmem:[#allocation7 + $0x238] sm:$0xff]   ;;  %v3722_v42 = vrot.slane %v3573_v48, 2  ;;  %v3723_v7 = vrot.slane %v3575_v2, 2  ;;  %v3729_v19 = vrot.slane %v3579_v16, 2  ;;  %v3738_v51 = vrot.slane %v3584_v10, 2  ;;  %v15613_v36 = vld [vmem:[#allocation4 + $0x1a0] sm:$0xff] }
 0x34e   :  { %3493 = vmatmul.mubr.bf16.gmra.mrb[36].mxu0 %v2799_v52  ;;  %11674 = vmatprep.subr.bf16.mxu1 %v13138_v53  ;;  %v15590_v53 = vld [vmem:[#allocation4 + $0x188] sm:$0xff]  ;;  %v3577_v52 = vld [vmem:[#allocation4 + $0x1a0] sm:$0xfc]  ;;  %2725 = vst [vmem:[#allocation4 + $0x100] sm:$0xfe] %v2646_v43  ;;  %v3743_v62 = vrot.slane %v3586_v35, 2 }
 0x34f   :  { %3500 = vmatprep.mubr.bf16.mxu0 %v2802_v61  ;;  %11611 = vmatpush3.bf16.msra.mxu0 %v13137_v33  ;;  %v15594_v33 = vld [vmem:[#allocation4 + $0x1a8] sm:$0xff]  ;;  %2727 = vst [vmem:[#allocation4 + $0x110] sm:$0x1] %v2646_v43  ;;  %v3728_v59 = vrot.slane %v3577_v52, 2  ;;  %v3724_v15 = vsel %vm3661_vm4, %v3722_v42, %v3723_v7  ;;  %v3587_v0 = vld [vmem:[#allocation4 + $0x1f0] sm:$0x3] }
 0x350   :  { %3992 = vmatmul.mubr.bf16.gmra.mrb[28].mxu1 %v3796_v31  ;;  %11612 = vmatprep.subr.bf16.mxu0 %v13140_v3  ;;  %v3733_v3 = vsel %vm3661_vm4, %v3731_v30, %v3732_v21  ;;  %v3582_v61 = vld [vmem:[#allocation4 + $0x1c8] sm:$0xfc]  ;;  %v3588_v31 = vld [vmem:[#allocation4 + $0x1f8] sm:$0x3]  ;;  %v2487_v21 = vadd.f32 %v15184_v29, %v2444_v47  ;;  %v3734_v16 = vrot.slane %v3581_v27, 2  ;;  %v3735_v43 = vrot.slane %v3583_v28, 2 }
 0x351   :  { %3999 = vmatprep.mubr.bf16.mxu1 %v3799_v25  ;;  %11675 = vmatpush3.bf16.msra.mxu1 %v13139_v45  ;;  %v2804_v45 = vpack.c.bf16 %v15594_v33, %v15590_v53  ;;  %v3801_v37 = vpack.c.bf16 %v3733_v3, %v3727_v12  ;;  %v3737_v11 = vrot.slane %v3582_v61, 2  ;;  %v2407_v25 = vmul.f32 %v15187_v44, %v2364_v23  ;;  %v15617_v34 = vld [vmem:[#allocation4 + $0x1c8] sm:$0xff]  ;;  %v3585_v44 = vld [vmem:[#allocation4 + $0x1e0] sm:$0xfc]  ;;  %v3592_v2 = vld [vmem:[#allocation4 + $0x218] sm:$0x3] }
 0x352   :  { %11676 = vmatprep.subr.bf16.mxu1 %v13142_v55  ;;  %v3744_v55 = vrot.slane %v3588_v31, 2  ;;  %v3730_v39 = vsel %vm3661_vm4, %v3728_v59, %v3729_v19  ;;  %v15619_v30 = vld [vmem:[#allocation4 + $0x1e8] sm:$0xff]  ;;  %v3596_v52 = vld [vmem:[#allocation4 + $0x238] sm:$0x3]  ;;  %v2519_v12 = vmax.f32 %v2487_v21, 0.0  ;;  %v3741_v61 = vrot.slane %v3587_v0, 2 }
 0x353   :  { %11613 = vmatpush3.bf16.msra.mxu0 %v13141_v8  ;;  %v15611_v8 = vld [vmem:[#allocation4 + $0x180] sm:$0xff]  ;;  %v3590_v58 = vld [vmem:[#allocation4 + $0x208] sm:$0xfc]  ;;  %v3800_v48 = vpack.c.bf16 %v3730_v39, %v3724_v15  ;;  %v2806_v29 = vpack.c.bf16 %v15619_v30, %v15617_v34  ;;  %v3736_v47 = vsel %vm3661_vm4, %v3734_v16, %v3735_v43  ;;  %v3595_v39 = vld [vmem:[#allocation4 + $0x230] sm:$0x3] }
 0x354   :  { %11726 = vmatprep.subr.bf16.mxu0 %v13144_v46  ;;  %v2803_v23 = vpack.c.bf16 %v15613_v36, %v15611_v8  ;;  %v3739_v46 = vsel %vm3661_vm4, %v3737_v11, %v3738_v51  ;;  %v3749_v10 = vrot.slane %v3590_v58, 2  ;;  %v2663_v42 = vrot.slane %v2519_v12, 7  ;;  %v15630_v35 = vld [vmem:[#allocation4 + $0x1c0] sm:$0xff]  ;;  %v15634_v59 = vld [vmem:[#allocation4 + $0x208] sm:$0xff]  ;;  %v3591_v51 = vld [vmem:[#allocation4 + $0x210] sm:$0x3] }
 0x355   :  { %11677 = vmatpush3.bf16.msra.mxu1 %v13143_v57  ;;  %v2443_v57 = vmul.f32 %v15326_v18, %v2407_v25  ;;  %v3594_v18 = vld [vmem:[#allocation4 + $0x228] sm:$0xfc]  ;;  %v15632_v31 = vld [vmem:[#allocation4 + $0x1e0] sm:$0xff]  ;;  %v4341_v27 = vld [vmem:[#allocation4 + $0x38] sm:$0x1]  ;;  %v3747_v0 = vrot.slane %v3591_v51, 2 }
 0x356   :  { %3501 = vmatmul.mubr.bf16.gmra.mrb[40].mxu0 %v2801_v63  ;;  %11790 = vmatprep.subr.bf16.mxu1 %v13146_v6  ;;  %v3745_v6 = vsel %vm3661_vm4, %v3743_v62, %v3744_v55  ;;  %v3740_v63 = vrot.slane %v3585_v44, 2  ;;  %v15636_v19 = vld [vmem:[#allocation4 + $0x228] sm:$0xff]  ;;  %2758 = vst [vmem:[#allocation4 + $0x248] sm:$0xfe] %v2663_v42  ;;  %2760 = vst [vmem:[#allocation4 + $0x258] sm:$0x1] %v2663_v42  ;;  %v2805_v62 = vpack.c.bf16 %v15632_v31, %v15630_v35 }
 0x357   :  { %3508 = vmatprep.mubr.bf16.mxu0 %v2804_v45  ;;  %v2486_v1 = vadd.f32 %v15211_v54, %v2443_v57  ;;  %v3803_v3 = vpack.c.bf16 %v3745_v6, %v3739_v46  ;;  %v3755_v54 = vrot.slane %v3594_v18, 2  ;;  %v3756_v45 = vrot.slane %v3596_v52, 2  ;;  %v3589_v11 = vld [vmem:[#allocation4 + $0x200] sm:$0xfc]  ;;  %v4339_v21 = vld [vmem:[#allocation4 + $0x28] sm:$0xfe] }
 0x358   :  { %4000 = vmatmul.mubr.bf16.gmra.mrb[32].mxu1 %v3798_v26  ;;  %v3750_v26 = vrot.slane %v3592_v2, 2  ;;  %v3593_v15 = vld [vmem:[#allocation4 + $0x220] sm:$0xfc]  ;;  %v2808_v57 = vpack.c.bf16 %v15636_v19, %v15634_v59  ;;  %v4343_v28 = vld [vmem:[#allocation4 + $0x48] sm:$0xfe]  ;;  %v3746_v46 = vrot.slane %v3589_v11, 2  ;;  %v4081_v42 = vpack.c.bf16 %v15517_v56, %v15504_v5 }
 0x359   :  { %4007 = vmatprep.mubr.bf16.mxu1 %v3801_v37  ;;  %v2518_v22 = vmax.f32 %v2486_v1, 0.0  ;;  %v3742_v37 = vsel %vm3661_vm4, %v3740_v63, %v3741_v61  ;;  %v3757_v25 = vsel %vm3661_vm4, %v3755_v54, %v3756_v45  ;;  %v4345_v44 = vld [vmem:[#allocation4 + $0x58] sm:$0x1]  ;;  %v3752_v58 = vrot.slane %v3593_v15, 2  ;;  %v15646_v52 = vld [vmem:[#allocation4 + $0x200] sm:$0xff] }
 0x35a   :  { %v3751_v55 = vsel %vm3661_vm4, %v3749_v10, %v3750_v26  ;;  %v3753_v1 = vrot.slane %v3595_v39, 2  ;;  %v4475_v2 = vrot.slane %v4343_v28, 1  ;;  %v4476_v18 = vrot.slane %v4345_v44, 1  ;;  %v15648_v16 = vld [vmem:[#allocation4 + $0x220] sm:$0xff]  ;;  %v4344_v54 = vld [vmem:[#allocation4 + $0x50] sm:$0x1] }
 0x35b   :  { %v2662_v7 = vrot.slane %v2518_v22, 7  ;;  %v3805_v6 = vpack.c.bf16 %v3757_v25, %v3751_v55  ;;  %v3748_v43 = vsel %vm3661_vm4, %v3746_v46, %v3747_v0  ;;  %v4338_v12 = vld [vmem:[#allocation4 + $0x20] sm:$0xfe]  ;;  %v2807_v61 = vpack.c.bf16 %v15648_v16, %v15646_v52  ;;  %v4347_v45 = vld [vmem:[#allocation4 + $0x68] sm:$0xfe] }
 0x35c   :  { %v3754_v63 = vsel %vm3661_vm4, %v3752_v58, %v3753_v1  ;;  %v4477_v22 = vsel %vm2969_vm3, %v4475_v2, %v4476_v18  ;;  %v4342_v26 = vld [vmem:[#allocation4 + $0x40] sm:$0xfe]  ;;  %v4466_v51 = vrot.slane %v4338_v12, 1  ;;  %v4473_v15 = vrot.slane %v4344_v54, 1  ;;  %v4355_v2 = vld [vmem:[#allocation4 + $0xa8] sm:$0xfe] }
 0x35d   :  { %2757 = vst [vmem:[#allocation4 + $0x240] sm:$0xfe] %v2662_v7  ;;  %2759 = vst [vmem:[#allocation4 + $0x250] sm:$0x1] %v2662_v7  ;;  %v4349_v7 = vld [vmem:[#allocation4 + $0x78] sm:$0x1]  ;;  %v3804_v11 = vpack.c.bf16 %v3754_v63, %v3748_v43  ;;  %v4080_v0 = vpack.c.bf16 %v15529_v38, %v15515_v14  ;;  %v4083_v18 = vpack.c.bf16 %v15533_v40, %v15519_v13 }
 0x35e   :  { %3509 = vmatmul.mubr.bf16.gmra.mrb[44].mxu0 %v2803_v23  ;;  %v3802_v23 = vpack.c.bf16 %v3742_v37, %v3736_v47  ;;  %v4351_v47 = vld [vmem:[#allocation4 + $0x88] sm:$0xfe]  ;;  %v4353_v37 = vld [vmem:[#allocation4 + $0x98] sm:$0x1]  ;;  %v4472_v25 = vrot.slane %v4342_v26, 1  ;;  %v4481_v39 = vrot.slane %v4347_v45, 1 }
 0x35f   :  { %3516 = vmatprep.mubr.bf16.mxu0 %v2806_v29  ;;  %v4470_v29 = vrot.slane %v4341_v27, 1  ;;  %v4488_v27 = vrot.slane %v4353_v37, 1  ;;  %v13145_v28 = vld [vmem:[#allocation7 + $0x280] sm:$0xff]   ;;  %v4357_v43 = vld [vmem:[#allocation4 + $0xb8] sm:$0x1]  ;;  %v13149_v54 = vld [vmem:[#allocation7 + $0x288] sm:$0xff]  }
 0x360   :  { %4008 = vmatmul.mubr.bf16.gmra.mrb[36].mxu1 %v3800_v48  ;;  %v4469_v48 = vrot.slane %v4339_v21, 1  ;;  %v4482_v21 = vrot.slane %v4349_v7, 1  ;;  %v4474_v56 = vsel %vm2969_vm3, %v4472_v25, %v4473_v15  ;;  %v13147_v44 = vld [vmem:[#allocation7 + $0x300] sm:$0xff]   ;;  %v4359_v63 = vld [vmem:[#allocation4 + $0xc8] sm:$0xfe]  ;;  %v4493_v45 = vrot.slane %v4355_v2, 1 }
 0x361   :  { %4015 = vmatprep.mubr.bf16.mxu1 %v3803_v3  ;;  %v4340_v3 = vld [vmem:[#allocation4 + $0x30] sm:$0x1]  ;;  %v4346_v46 = vld [vmem:[#allocation4 + $0x60] sm:$0xfe]  ;;  %v4361_v12 = vld [vmem:[#allocation4 + $0xd8] sm:$0x1] }
 0x362   :  { %v4471_v10 = vsel %vm2969_vm3, %v4469_v48, %v4470_v29  ;;  %v4467_v55 = vrot.slane %v4340_v3, 1  ;;  %v4483_v58 = vsel %vm2969_vm3, %v4481_v39, %v4482_v21  ;;  %v4350_v48 = vld [vmem:[#allocation4 + $0x80] sm:$0xfe]  ;;  %v4352_v29 = vld [vmem:[#allocation4 + $0x90] sm:$0x1]  ;;  %v4499_v7 = vrot.slane %v4359_v63, 1 }
 0x363   :  { %v4485_v26 = vrot.slane %v4352_v29, 1  ;;  %v4500_v13 = vrot.slane %v4361_v12, 1  ;;  %v13152_v40 = vld [vmem:[#allocation7 + $0x2d0] sm:$0xff]   ;;  %v4354_v37 = vld [vmem:[#allocation4 + $0xa0] sm:$0xfe]  ;;  %v4082_v21 = vpack.c.bf16 %v15545_v24, %v15531_v4  ;;  %v13158_v4 = vld [vmem:[#allocation7 + $0x358] sm:$0xff]  }
 0x364   :  { %v4468_v5 = vsel %vm2969_vm3, %v4466_v51, %v4467_v55  ;;  %v13154_v51 = vld [vmem:[#allocation7 + $0x350] sm:$0xff]   ;;  %v4358_v15 = vld [vmem:[#allocation4 + $0xc0] sm:$0xfe]  ;;  %v13157_v2 = vld [vmem:[#allocation7 + $0x298] sm:$0xff]  }
 0x365   :  { %v4594_v3 = vpack.c.bf16 %v4474_v56, %v4468_v5  ;;  %v4356_v25 = vld [vmem:[#allocation4 + $0xb0] sm:$0x1]  ;;  %v4365_v5 = vld [vmem:[#allocation4 + $0xf8] sm:$0x1]  ;;  %v13160_v63 = vld [vmem:[#allocation7 + $0x2e0] sm:$0xff]  }
 0x366   :  { %3517 = vmatmul.mubr.bf16.gmra.mrb[48].mxu0 %v2805_v62  ;;  %v4595_v62 = vpack.c.bf16 %v4477_v22, %v4471_v10  ;;  %v13150_v10 = vld [vmem:[#allocation7 + $0x348] sm:$0xff]   ;;  %v4484_v22 = vrot.slane %v4350_v48, 1  ;;  %v4360_v39 = vld [vmem:[#allocation4 + $0xd0] sm:$0x1]  ;;  %v13156_v56 = vld [vmem:[#allocation7 + $0x2d8] sm:$0xff]   ;;  %v4496_v48 = vrot.slane %v4358_v15, 1 }
 0x367   :  { %3524 = vmatprep.mubr.bf16.mxu0 %v2808_v57  ;;  %v4487_v57 = vrot.slane %v4351_v47, 1  ;;  %v13151_v47 = vld [vmem:[#allocation7 + $0x308] sm:$0xff]   ;;  %v4497_v29 = vrot.slane %v4360_v39, 1  ;;  %v4362_v12 = vld [vmem:[#allocation4 + $0xe0] sm:$0xfe] }
 0x368   :  { %4016 = vmatmul.mubr.bf16.gmra.mrb[40].mxu1 %v3802_v23  ;;  %v13148_v23 = vld [vmem:[#allocation7 + $0x2c8] sm:$0xff]   ;;  %v4486_v55 = vsel %vm2969_vm3, %v4484_v22, %v4485_v26  ;;  %v4502_v15 = vrot.slane %v4362_v12, 1  ;;  %v4089_v12 = vpack.c.bf16 %v15590_v53, %v15574_v41 }
 0x369   :  { %4023 = vmatprep.mubr.bf16.mxu1 %v3805_v6  ;;  %v4348_v6 = vld [vmem:[#allocation4 + $0x70] sm:$0x1]  ;;  %v4489_v1 = vsel %vm2969_vm3, %v4487_v57, %v4488_v27  ;;  %v4501_v27 = vsel %vm2969_vm3, %v4499_v7, %v4500_v13  ;;  %v4498_v22 = vsel %vm2969_vm3, %v4496_v48, %v4497_v29  ;;  %v4371_v26 = vld [vmem:[#allocation4 + $0x168] sm:$0xfe] }
 0x36a   :  { %v4597_v14 = vpack.c.bf16 %v4489_v1, %v4483_v58  ;;  %v4479_v38 = vrot.slane %v4348_v6, 1  ;;  %v13155_v6 = vld [vmem:[#allocation7 + $0x310] sm:$0xff]   ;;  %v4490_v58 = vrot.slane %v4354_v37, 1  ;;  %v4491_v1 = vrot.slane %v4356_v25, 1  ;;  %v13164_v37 = vld [vmem:[#allocation7 + $0x2e8] sm:$0xff]  }
 0x36b   :  { %v4376_v48 = vld [vmem:[#allocation4 + $0x190] sm:$0x1] }
 0x36c   :  { %v13169_v29 = vld [vmem:[#allocation7 + $0x2b0] sm:$0xff]  }
 0x36e   :  { %3525 = vmatmul.mubr.bf16.gmra.mrb[52].mxu0 %v2807_v61  ;;  %v4478_v61 = vrot.slane %v4346_v46, 1  ;;  %v4369_v46 = vld [vmem:[#allocation4 + $0x118] sm:$0x1] }
 0x36f   :  { %4257 = vmatprep.mubr.bf16.mxu0 %v4081_v42  ;;  %v4494_v42 = vrot.slane %v4357_v43, 1  ;;  %v4506_v43 = vrot.slane %v4365_v5, 1 }
 0x370   :  { %4024 = vmatmul.mubr.bf16.gmra.mrb[44].mxu1 %v3804_v11  ;;  %v13153_v11 = vld [vmem:[#allocation7 + $0x290] sm:$0xff]  }
 0x371   :  { %4771 = vmatprep.mubr.bf16.mxu1 %v4595_v62  ;;  %v4480_v62 = vsel %vm2969_vm3, %v4478_v61, %v4479_v38  ;;  %v4495_v57 = vsel %vm2969_vm3, %v4493_v45, %v4494_v42  ;;  %v15674_v61 = vld [vmem:[#allocation4 + $0x108] sm:$0xff]  ;;  %v4492_v38 = vsel %vm2969_vm3, %v4490_v58, %v4491_v1  ;;  %v13161_v45 = vld [vmem:[#allocation7 + $0x2a0] sm:$0xff]   ;;  %v4084_v42 = vpack.c.bf16 %v15569_v20, %v15547_v17  ;;  %v13170_v58 = vld [vmem:[#allocation7 + $0x370] sm:$0xff]  }
 0x372   :  { %v4599_v24 = vpack.c.bf16 %v4501_v27, %v4495_v57  ;;  %v4598_v25 = vpack.c.bf16 %v4498_v22, %v4492_v38  ;;  %v13166_v17 = vld [vmem:[#allocation7 + $0x368] sm:$0xff]   ;;  %v4374_v1 = vld [vmem:[#allocation4 + $0x180] sm:$0xfe] }
 0x373   :  { %v13165_v27 = vld [vmem:[#allocation7 + $0x2a8] sm:$0xff]  }
 0x376   :  { %4258 = vmatmul.mubr.bf16.vlgmr.msra.gmra.mrb[56].mxu0 %v4080_v0  ;;  %v4596_v0 = vpack.c.bf16 %v4486_v55, %v4480_v62  ;;  %v4377_v62 = vld [vmem:[#allocation4 + $0x198] sm:$0x1]  ;;  %v13163_v55 = vld [vmem:[#allocation7 + $0x320] sm:$0xff]  }
 0x377   :  { %11727 = vmatpush3.bf16.msra.mxu0 %v13145_v28  ;;  %4265 = vmatprep.mubr.bf16.mxu0 %v4083_v18  ;;  %v4363_v28 = vld [vmem:[#allocation4 + $0xe8] sm:$0xfe] }
 0x378   :  { %4772 = vmatmul.mubr.bf16.vlgmr.msra.gmra.mrb[48].mxu1 %v4594_v3  ;;  %11728 = vmatprep.subr.bf16.mxu0 %v13148_v23  ;;  %v4367_v23 = vld [vmem:[#allocation4 + $0x108] sm:$0xfe]  ;;  %v4505_v18 = vrot.slane %v4363_v28, 1  ;;  %v13159_v3 = vld [vmem:[#allocation7 + $0x318] sm:$0xff]   ;;  %v4517_v28 = vrot.slane %v4371_v26, 1 }
 0x379   :  { %4779 = vmatprep.mubr.bf16.mxu1 %v4597_v14  ;;  %11791 = vmatpush3.bf16.msra.mxu1 %v13147_v44  ;;  %v4085_v44 = vpack.c.bf16 %v15551_v60, %v15535_v9  ;;  %v4511_v9 = vrot.slane %v4367_v23, 1  ;;  %v4512_v60 = vrot.slane %v4369_v46, 1  ;;  %v13162_v14 = vld [vmem:[#allocation7 + $0x360] sm:$0xff]   ;;  %v13167_v46 = vld [vmem:[#allocation7 + $0x328] sm:$0xff]  }
 0x37a   :  { %11792 = vmatprep.subr.bf16.mxu1 %v13150_v10  ;;  %v4364_v10 = vld [vmem:[#allocation4 + $0xf0] sm:$0x1]  ;;  %v4507_v7 = vsel %vm2969_vm3, %v4505_v18, %v4506_v43  ;;  %v15684_v23 = vld [vmem:[#allocation4 + $0x100] sm:$0xff] }
 0x37b   :  { %11729 = vmatpush3.bf16.msra.mxu0 %v13149_v54  ;;  %v4373_v54 = vld [vmem:[#allocation4 + $0x178] sm:$0x1]  ;;  %v4513_v13 = vsel %vm2969_vm3, %v4511_v9, %v4512_v60  ;;  %v4503_v39 = vrot.slane %v4364_v10, 1  ;;  %v4379_v9 = vld [vmem:[#allocation4 + $0x1a8] sm:$0xfe] }
 0x37c   :  { %11730 = vmatprep.subr.bf16.mxu0 %v13152_v40  ;;  %v4366_v40 = vld [vmem:[#allocation4 + $0x100] sm:$0xfe]  ;;  %v4601_v20 = vpack.c.bf16 %v4513_v13, %v4507_v7  ;;  %v4518_v5 = vrot.slane %v4373_v54, 1  ;;  %v4381_v60 = vld [vmem:[#allocation4 + $0x1b8] sm:$0x1]  ;;  %v4529_v13 = vrot.slane %v4379_v9, 1 }
 0x37d   :  { %11793 = vmatpush3.bf16.msra.mxu1 %v13151_v47  ;;  %v4368_v47 = vld [vmem:[#allocation4 + $0x110] sm:$0x1]  ;;  %v4385_v10 = vld [vmem:[#allocation4 + $0x1d8] sm:$0x1] }
 0x37e   :  { %4266 = vmatmul.mubr.bf16.gmra.mrb[60].mxu0 %v4082_v21  ;;  %11794 = vmatprep.subr.bf16.mxu1 %v13154_v51  ;;  %v4375_v51 = vld [vmem:[#allocation4 + $0x188] sm:$0xfe]  ;;  %v4508_v21 = vrot.slane %v4366_v40, 1  ;;  %v4509_v57 = vrot.slane %v4368_v47, 1  ;;  %v4519_v18 = vsel %vm2969_vm3, %v4517_v28, %v4518_v5  ;;  %v13173_v7 = vld [vmem:[#allocation7 + $0x2b8] sm:$0xff]   ;;  %v4530_v40 = vrot.slane %v4381_v60, 1 }
 0x37f   :  { %4273 = vmatprep.mubr.bf16.mxu0 %v4085_v44  ;;  %11731 = vmatpush3.bf16.msra.mxu0 %v13153_v11  ;;  %v4087_v11 = vpack.c.bf16 %v15674_v61, %v15553_v50  ;;  %v4523_v50 = vrot.slane %v4375_v51, 1  ;;  %v13168_v44 = vld [vmem:[#allocation7 + $0x2f0] sm:$0xff]   ;;  %v4536_v53 = vrot.slane %v4385_v10, 1  ;;  %v13176_v47 = vld [vmem:[#allocation7 + $0x3c0] sm:$0xff]   ;;  %v4389_v28 = vld [vmem:[#allocation4 + $0x1f8] sm:$0x1] }
 0x380   :  { %4780 = vmatmul.mubr.bf16.gmra.mrb[52].mxu1 %v4596_v0  ;;  %11732 = vmatprep.subr.bf16.mxu0 %v13156_v56  ;;  %v4524_v56 = vrot.slane %v4377_v62, 1  ;;  %v4372_v0 = vld [vmem:[#allocation4 + $0x170] sm:$0x1]  ;;  %v4391_v5 = vld [vmem:[#allocation4 + $0x208] sm:$0xfe] }
 0x381   :  { %4787 = vmatprep.mubr.bf16.mxu1 %v4599_v24  ;;  %11795 = vmatpush3.bf16.msra.mxu1 %v13155_v6  ;;  %v4370_v6 = vld [vmem:[#allocation4 + $0x160] sm:$0xfe]  ;;  %v4510_v24 = vsel %vm2969_vm3, %v4508_v21, %v4509_v57  ;;  %v4515_v54 = vrot.slane %v4372_v0, 1  ;;  %v4384_v21 = vld [vmem:[#allocation4 + $0x1d0] sm:$0x1] }
 0x382   :  { %11796 = vmatprep.subr.bf16.mxu1 %v13158_v4  ;;  %v4504_v4 = vsel %vm2969_vm3, %v4502_v15, %v4503_v39  ;;  %v4525_v43 = vsel %vm2969_vm3, %v4523_v50, %v4524_v56  ;;  %v4514_v22 = vrot.slane %v4370_v6, 1  ;;  %v4088_v15 = vpack.c.bf16 %v15611_v8, %v15588_v49  ;;  %v4382_v39 = vld [vmem:[#allocation4 + $0x1c0] sm:$0xfe]  ;;  %v4387_v57 = vld [vmem:[#allocation4 + $0x1e8] sm:$0xfe] }
 0x383   :  { %11733 = vmatpush3.bf16.msra.mxu0 %v13157_v2  ;;  %v4086_v2 = vpack.c.bf16 %v15684_v23, %v15571_v32  ;;  %v4600_v38 = vpack.c.bf16 %v4510_v24, %v4504_v4  ;;  %v13174_v32 = vld [vmem:[#allocation7 + $0x378] sm:$0xff]   ;;  %v4603_v26 = vpack.c.bf16 %v4525_v43, %v4519_v18  ;;  %v4533_v6 = vrot.slane %v4384_v21, 1  ;;  %v4390_v43 = vld [vmem:[#allocation4 + $0x200] sm:$0xfe]  ;;  %v4392_v9 = vld [vmem:[#allocation4 + $0x210] sm:$0x1] }
 0x384   :  { %11734 = vmatprep.subr.bf16.mxu0 %v13160_v63  ;;  %v13172_v63 = vld [vmem:[#allocation7 + $0x2f8] sm:$0xff]   ;;  %v4516_v51 = vsel %vm2969_vm3, %v4514_v22, %v4515_v54  ;;  %v4541_v0 = vrot.slane %v4387_v57, 1  ;;  %v4547_v4 = vrot.slane %v4391_v5, 1  ;;  %v4395_v60 = vld [vmem:[#allocation4 + $0x228] sm:$0xfe] }
 0x385   :  { %11797 = vmatpush3.bf16.msra.mxu1 %v13159_v3  ;;  %v4383_v3 = vld [vmem:[#allocation4 + $0x1c8] sm:$0xfe]  ;;  %v4393_v50 = vld [vmem:[#allocation4 + $0x218] sm:$0x1] }
 0x386   :  { %4274 = vmatmul.mubr.bf16.gmra.mrb[64].mxu0 %v4084_v42  ;;  %11798 = vmatprep.subr.bf16.mxu1 %v13162_v14  ;;  %v13171_v14 = vld [vmem:[#allocation7 + $0x330] sm:$0xff]   ;;  %v4521_v42 = vrot.slane %v4376_v48, 1  ;;  %v4535_v41 = vrot.slane %v4383_v3, 1  ;;  %v4548_v24 = vrot.slane %v4393_v50, 1  ;;  %v4399_v3 = vld [vmem:[#allocation4 + $0x248] sm:$0xfe] }
 0x387   :  { %4281 = vmatprep.mubr.bf16.mxu0 %v4087_v11  ;;  %11735 = vmatpush3.bf16.msra.mxu0 %v13161_v45  ;;  %v4520_v45 = vrot.slane %v4374_v1, 1  ;;  %v13178_v11 = vld [vmem:[#allocation7 + $0x440] sm:$0xff]   ;;  %v4388_v48 = vld [vmem:[#allocation4 + $0x1f0] sm:$0x1]  ;;  %v4401_v10 = vld [vmem:[#allocation4 + $0x258] sm:$0x1] }
 0x388   :  { %4788 = vmatmul.mubr.bf16.gmra.mrb[56].mxu1 %v4598_v25  ;;  %11736 = vmatprep.subr.bf16.mxu0 %v13164_v37  ;;  %v13175_v37 = vld [vmem:[#allocation7 + $0x338] sm:$0xff]   ;;  %v4380_v25 = vld [vmem:[#allocation4 + $0x1b0] sm:$0x1]  ;;  %v4386_v1 = vld [vmem:[#allocation4 + $0x1e0] sm:$0xfe]  ;;  %v4549_v18 = vsel %vm2969_vm3, %v4547_v4, %v4548_v24 }
 0x389   :  { %4795 = vmatprep.mubr.bf16.mxu1 %v4601_v20  ;;  %11799 = vmatpush3.bf16.msra.mxu1 %v13163_v55  ;;  %v4522_v62 = vsel %vm2969_vm3, %v4520_v45, %v4521_v42  ;;  %v4378_v55 = vld [vmem:[#allocation4 + $0x1a0] sm:$0xfe]  ;;  %v4537_v20 = vsel %vm2969_vm3, %v4535_v41, %v4536_v53  ;;  %v4527_v8 = vrot.slane %v4380_v25, 1  ;;  %v4559_v45 = vrot.slane %v4399_v3, 1  ;;  %v4400_v25 = vld [vmem:[#allocation4 + $0x250] sm:$0x1] }
 0x38a   :  { %11800 = vmatprep.subr.bf16.mxu1 %v13166_v17  ;;  %v4531_v17 = vsel %vm2969_vm3, %v4529_v13, %v4530_v40  ;;  %v4602_v56 = vpack.c.bf16 %v4522_v62, %v4516_v51  ;;  %v4560_v42 = vrot.slane %v4401_v10, 1  ;;  %v4855_v13 = vld [vmem:[#allocation4 + $0x38] sm:$0x3]  ;;  %v4852_v50 = vld [vmem:[#allocation4 + $0x20] sm:$0xfc] }
 0x38b   :  { %11737 = vmatpush3.bf16.msra.mxu0 %v13165_v27  ;;  %v4091_v27 = vpack.c.bf16 %v15617_v34, %v15594_v33  ;;  %v4605_v49 = vpack.c.bf16 %v4537_v20, %v4531_v17  ;;  %v4859_v40 = vld [vmem:[#allocation4 + $0x58] sm:$0x3]  ;;  %v4984_v20 = vrot.slane %v4855_v13, 2  ;;  %v4869_v13 = vld [vmem:[#allocation4 + $0xa8] sm:$0xfc] }
 0x38c   :  { %11738 = vmatprep.subr.bf16.mxu0 %v13168_v44  ;;  %v4526_v44 = vrot.slane %v4378_v55, 1  ;;  %v4561_v62 = vsel %vm2969_vm3, %v4559_v45, %v4560_v42  ;;  %v4398_v55 = vld [vmem:[#allocation4 + $0x240] sm:$0xfe]  ;;  %v4990_v21 = vrot.slane %v4859_v40, 2  ;;  %v4867_v4 = vld [vmem:[#allocation4 + $0x98] sm:$0x3] }
 0x38d   :  { %11801 = vmatpush3.bf16.msra.mxu1 %v13167_v46  ;;  %v4532_v46 = vrot.slane %v4382_v39, 1  ;;  %v5002_v3 = vrot.slane %v4867_v4, 2  ;;  %v4862_v45 = vld [vmem:[#allocation4 + $0x70] sm:$0x3]  ;;  %v4864_v42 = vld [vmem:[#allocation4 + $0x80] sm:$0xfc] }
 0x38e   :  { %4282 = vmatmul.mubr.bf16.gmra.mrb[68].mxu0 %v4086_v2  ;;  %11802 = vmatprep.subr.bf16.mxu1 %v13170_v58  ;;  %v4542_v58 = vrot.slane %v4389_v28, 1  ;;  %v4528_v33 = vsel %vm2969_vm3, %v4526_v44, %v4527_v8  ;;  %v4856_v44 = vld [vmem:[#allocation4 + $0x40] sm:$0xfc]  ;;  %v4873_v40 = vld [vmem:[#allocation4 + $0xc8] sm:$0xfc] }
 0x38f   :  { %4289 = vmatprep.mubr.bf16.mxu0 %v4089_v12  ;;  %11739 = vmatpush3.bf16.msra.mxu0 %v13169_v29  ;;  %v4534_v34 = vsel %vm2969_vm3, %v4532_v46, %v4533_v6  ;;  %v4090_v29 = vpack.c.bf16 %v15630_v35, %v15613_v36  ;;  %v4397_v12 = vld [vmem:[#allocation4 + $0x238] sm:$0x1]  ;;  %v4544_v36 = vrot.slane %v4390_v43, 1  ;;  %v4545_v35 = vrot.slane %v4392_v9, 1  ;;  %v4858_v46 = vld [vmem:[#allocation4 + $0x50] sm:$0x3] }
 0x390   :  { %4796 = vmatmul.mubr.bf16.gmra.mrb[60].mxu1 %v4600_v38  ;;  %11740 = vmatprep.subr.bf16.mxu0 %v13172_v63  ;;  %v4543_v2 = vsel %vm2969_vm3, %v4541_v0, %v4542_v58  ;;  %v4093_v63 = vpack.c.bf16 %v15634_v59, %v15619_v30  ;;  %v4538_v38 = vrot.slane %v4386_v1, 1  ;;  %v4554_v54 = vrot.slane %v4397_v12, 1  ;;  %v15710_v30 = vld [vmem:[#allocation4 + $0x248] sm:$0xff]  ;;  %v4863_v0 = vld [vmem:[#allocation4 + $0x78] sm:$0x3] }
 0x391   :  { %4803 = vmatprep.mubr.bf16.mxu1 %v4603_v26  ;;  %11803 = vmatpush3.bf16.msra.mxu1 %v13171_v14  ;;  %v4604_v14 = vpack.c.bf16 %v4534_v34, %v4528_v33  ;;  %v4607_v22 = vpack.c.bf16 %v4549_v18, %v4543_v2  ;;  %v4553_v26 = vrot.slane %v4395_v60, 1  ;;  %v4857_v59 = vld [vmem:[#allocation4 + $0x48] sm:$0xfc]  ;;  %v4546_v53 = vsel %vm2969_vm3, %v4544_v36, %v4545_v35  ;;  %v13177_v36 = vld [vmem:[#allocation7 + $0x380] sm:$0xff]  }
 0x392   :  { %11804 = vmatprep.subr.bf16.mxu1 %v13174_v32  ;;  %v4539_v32 = vrot.slane %v4388_v48, 1  ;;  %v4095_v17 = vpack.c.bf16 %v15710_v30, %v15636_v19  ;;  %v4989_v39 = vrot.slane %v4857_v59, 2  ;;  %v4861_v6 = vld [vmem:[#allocation4 + $0x68] sm:$0xfc]  ;;  %v4980_v34 = vrot.slane %v4852_v50, 2 }
 0x393   :  { %11741 = vmatpush3.bf16.msra.mxu0 %v13173_v7  ;;  %v4853_v7 = vld [vmem:[#allocation4 + $0x28] sm:$0xfc]  ;;  %v4555_v51 = vsel %vm2969_vm3, %v4553_v26, %v4554_v54  ;;  %v4986_v43 = vrot.slane %v4856_v44, 2  ;;  %v4987_v9 = vrot.slane %v4858_v46, 2  ;;  %v4995_v60 = vrot.slane %v4861_v6, 2  ;;  %v13184_v44 = vld [vmem:[#allocation7 + $0x3d0] sm:$0xff]  }
 0x394   :  { %11854 = vmatprep.subr.bf16.mxu0 %v13176_v47  ;;  %v4540_v41 = vsel %vm2969_vm3, %v4538_v38, %v4539_v32  ;;  %v4394_v47 = vld [vmem:[#allocation4 + $0x220] sm:$0xfe]  ;;  %v4609_v28 = vpack.c.bf16 %v4561_v62, %v4555_v51  ;;  %v4991_v8 = vsel %vm3661_vm4, %v4989_v39, %v4990_v21  ;;  %v4865_v58 = vld [vmem:[#allocation4 + $0x88] sm:$0xfc]  ;;  %v4871_v59 = vld [vmem:[#allocation4 + $0xb8] sm:$0x3] }
 0x395   :  { %11805 = vmatpush3.bf16.msra.mxu1 %v13175_v37  ;;  %v4396_v37 = vld [vmem:[#allocation4 + $0x230] sm:$0x1]  ;;  %v4606_v57 = vpack.c.bf16 %v4546_v53, %v4540_v41  ;;  %v5368_v2 = vld [vmem:[#allocation4 + $0x48] sm:$0xff]  ;;  %v5001_v12 = vrot.slane %v4865_v58, 2  ;;  %v5367_v38 = vld [vmem:[#allocation4 + $0x40] sm:$0xff]  ;;  %v5007_v39 = vrot.slane %v4869_v13, 2 }
 0x396   :  { %4290 = vmatmul.mubr.bf16.gmra.mrb[72].mxu0 %v4088_v15  ;;  %11918 = vmatprep.subr.bf16.mxu1 %v13178_v11  ;;  %v4092_v11 = vpack.c.bf16 %v15646_v52, %v15632_v31  ;;  %v4983_v15 = vrot.slane %v4853_v7, 2  ;;  %v4551_v5 = vrot.slane %v4396_v37, 1  ;;  %v4556_v31 = vrot.slane %v4398_v55, 1  ;;  %v5370_v18 = vld [vmem:[#allocation4 + $0x68] sm:$0xff]  ;;  %v4860_v54 = vld [vmem:[#allocation4 + $0x60] sm:$0xfc] }
 0x397   :  { %4297 = vmatprep.mubr.bf16.mxu0 %v4091_v27  ;;  %v4550_v27 = vrot.slane %v4394_v47, 1  ;;  %v4557_v52 = vrot.slane %v4400_v25, 1  ;;  %v5003_v26 = vsel %vm3661_vm4, %v5001_v12, %v5002_v3  ;;  %v4866_v7 = vld [vmem:[#allocation4 + $0x90] sm:$0x3]  ;;  %v4875_v41 = vld [vmem:[#allocation4 + $0xd8] sm:$0x3] }
 0x398   :  { %4804 = vmatmul.mubr.bf16.gmra.mrb[64].mxu1 %v4602_v56  ;;  %v4854_v56 = vld [vmem:[#allocation4 + $0x30] sm:$0x3]  ;;  %v4985_v19 = vsel %vm3661_vm4, %v4983_v15, %v4984_v20  ;;  %v5374_v51 = vld [vmem:[#allocation4 + $0xa8] sm:$0xff]  ;;  %v13179_v55 = vld [vmem:[#allocation7 + $0x400] sm:$0xff]   ;;  %v4992_v25 = vrot.slane %v4860_v54, 2  ;;  %v4993_v15 = vrot.slane %v4862_v45, 2 }
 0x399   :  { %4811 = vmatprep.mubr.bf16.mxu1 %v4605_v49  ;;  %v15720_v49 = vld [vmem:[#allocation4 + $0x240] sm:$0xff]  ;;  %v4552_v24 = vsel %vm2969_vm3, %v4550_v27, %v4551_v5  ;;  %v4558_v33 = vsel %vm2969_vm3, %v4556_v31, %v4557_v52  ;;  %v4981_v1 = vrot.slane %v4854_v56, 2  ;;  %v13180_v62 = vld [vmem:[#allocation7 + $0x3c8] sm:$0xff]   ;;  %v4999_v20 = vrot.slane %v4866_v7, 2  ;;  %v4870_v6 = vld [vmem:[#allocation4 + $0xb0] sm:$0x3] }
 0x39a   :  { %v4094_v48 = vpack.c.bf16 %v15720_v49, %v15648_v16  ;;  %v4608_v10 = vpack.c.bf16 %v4558_v33, %v4552_v24  ;;  %v4988_v16 = vsel %vm3661_vm4, %v4986_v43, %v4987_v9  ;;  %v5008_v21 = vrot.slane %v4871_v59, 2  ;;  %v5371_v31 = vld [vmem:[#allocation4 + $0x80] sm:$0xff]  ;;  %v13181_v50 = vld [vmem:[#allocation7 + $0x388] sm:$0xff]   ;;  %v4874_v58 = vld [vmem:[#allocation4 + $0xd0] sm:$0x3] }
 0x39b   :  { %v4982_v32 = vsel %vm3661_vm4, %v4980_v34, %v4981_v1  ;;  %v5014_v27 = vrot.slane %v4875_v41, 2  ;;  %v5373_v52 = vld [vmem:[#allocation4 + $0xa0] sm:$0xff]  ;;  %v13183_v56 = vld [vmem:[#allocation7 + $0x408] sm:$0xff]   ;;  %v13185_v33 = vld [vmem:[#allocation7 + $0x390] sm:$0xff]  }
 0x39c   :  { %v5108_v53 = vpack.c.bf16 %v4988_v16, %v4982_v32  ;;  %v5009_v4 = vsel %vm3661_vm4, %v5007_v39, %v5008_v21  ;;  %v4877_v34 = vld [vmem:[#allocation4 + $0xe8] sm:$0xfc]  ;;  %v13186_v1 = vld [vmem:[#allocation7 + $0x450] sm:$0xff]   ;;  %v5401_v43 = vpack.c.bf16 %v5373_v52, %v5371_v31  ;;  %v13188_v12 = vld [vmem:[#allocation7 + $0x3d8] sm:$0xff]  }
 0x39d   :  { %v5376_v9 = vld [vmem:[#allocation4 + $0xc8] sm:$0xff]  ;;  %v5019_v32 = vrot.slane %v4877_v34, 2  ;;  %v13189_v45 = vld [vmem:[#allocation7 + $0x398] sm:$0xff]   ;;  %v4878_v7 = vld [vmem:[#allocation4 + $0xf0] sm:$0x3] }
 0x39e   :  { %4298 = vmatmul.mubr.bf16.gmra.mrb[76].mxu0 %v4090_v29  ;;  %v5109_v29 = vpack.c.bf16 %v4991_v8, %v4985_v19  ;;  %v4868_v19 = vld [vmem:[#allocation4 + $0xa0] sm:$0xfc]  ;;  %v4994_v8 = vsel %vm3661_vm4, %v4992_v25, %v4993_v15  ;;  %v4887_v25 = vld [vmem:[#allocation4 + $0x178] sm:$0x3]  ;;  %v15750_v34 = vld [vmem:[#allocation4 + $0x190] sm:$0x3] }
 0x39f   :  { %4305 = vmatprep.mubr.bf16.mxu0 %v4093_v63  ;;  %v4996_v63 = vrot.slane %v4863_v0, 2  ;;  %v4872_v0 = vld [vmem:[#allocation4 + $0xc0] sm:$0xfc] }
 0x3a0   :  { %4812 = vmatmul.mubr.bf16.gmra.mrb[68].mxu1 %v4604_v14  ;;  %v5400_v14 = vpack.c.bf16 %v5370_v18, %v5368_v2  ;;  %v4883_v2 = vld [vmem:[#allocation4 + $0x118] sm:$0x3]  ;;  %v13192_v13 = vld [vmem:[#allocation7 + $0x3e0] sm:$0xff]  }
 0x3a1   :  { %4819 = vmatprep.mubr.bf16.mxu1 %v4607_v22  ;;  %v5369_v22 = vld [vmem:[#allocation4 + $0x60] sm:$0xff]  ;;  %v4997_v35 = vsel %vm3661_vm4, %v4995_v60, %v4996_v63  ;;  %v5378_v60 = vld [vmem:[#allocation4 + $0xe8] sm:$0xff]  ;;  %v5004_v63 = vrot.slane %v4868_v19, 2 }
 0x3a2   :  { %v5399_v47 = vpack.c.bf16 %v5369_v22, %v5367_v38  ;;  %v5111_v37 = vpack.c.bf16 %v5003_v26, %v4997_v35  ;;  %v5011_v38 = vrot.slane %v4874_v58, 2  ;;  %v13187_v22 = vld [vmem:[#allocation7 + $0x410] sm:$0xff]   ;;  %v5026_v35 = vrot.slane %v4883_v2, 2  ;;  %v13190_v26 = vld [vmem:[#allocation7 + $0x458] sm:$0xff]   ;;  %v5375_v41 = vld [vmem:[#allocation4 + $0xc0] sm:$0xff] }
 0x3a3   :  { %v5404_v54 = vpack.c.bf16 %v5378_v60, %v5376_v9  ;;  %v13194_v15 = vld [vmem:[#allocation7 + $0x460] sm:$0xff]   ;;  %v15754_v2 = vld [vmem:[#allocation4 + $0x1a8] sm:$0xfc] }
 0x3a4   :  { %v13193_v39 = vld [vmem:[#allocation7 + $0x3a0] sm:$0xff]   ;;  %v5384_v60 = vld [vmem:[#allocation4 + $0x188] sm:$0xff] }
 0x3a5   :  { %v13195_v19 = vld [vmem:[#allocation7 + $0x420] sm:$0xff]  }
 0x3a6   :  { %4306 = vmatmul.mubr.bf16.gmra.mrb[80].mxu0 %v4092_v11  ;;  %v5372_v11 = vld [vmem:[#allocation4 + $0x88] sm:$0xff]  ;;  %v15744_v58 = vld [vmem:[#allocation4 + $0x180] sm:$0xfc] }
 0x3a7   :  { %4313 = vmatprep.mubr.bf16.mxu0 %v4095_v17  ;;  %v4998_v17 = vrot.slane %v4864_v42, 2  ;;  %v5402_v5 = vpack.c.bf16 %v5374_v51, %v5372_v11  ;;  %v4876_v42 = vld [vmem:[#allocation4 + $0xe0] sm:$0xfc]  ;;  %v13191_v11 = vld [vmem:[#allocation7 + $0x418] sm:$0xff]  }
 0x3a8   :  { %4820 = vmatmul.mubr.bf16.gmra.mrb[72].mxu1 %v4606_v57  ;;  %v5013_v57 = vrot.slane %v4873_v40, 2 }
 0x3a9   :  { %4827 = vmatprep.mubr.bf16.mxu1 %v4609_v28  ;;  %v13182_v28 = vld [vmem:[#allocation7 + $0x448] sm:$0xff]   ;;  %v5000_v46 = vsel %vm3661_vm4, %v4998_v17, %v4999_v20  ;;  %v4891_v20 = vld [vmem:[#allocation4 + $0x198] sm:$0x3] }
 0x3aa   :  { %v5015_v24 = vsel %vm3661_vm4, %v5013_v57, %v5014_v27  ;;  %v5110_v18 = vpack.c.bf16 %v5000_v46, %v4994_v8  ;;  %v4889_v17 = vld [vmem:[#allocation4 + $0x188] sm:$0xfc]  ;;  %v5016_v57 = vrot.slane %v4876_v42, 2  ;;  %v5017_v27 = vrot.slane %v4878_v7, 2  ;;  %v13201_v7 = vld [vmem:[#allocation7 + $0x3b0] sm:$0xff]  }
 0x3ab   :  { %v5113_v3 = vpack.c.bf16 %v5015_v24, %v5009_v4  ;;  %v5032_v46 = vrot.slane %v4887_v25, 2  ;;  %v13198_v4 = vld [vmem:[#allocation7 + $0x468] sm:$0xff]   ;;  %v15746_v24 = vld [vmem:[#allocation4] sm:$0xff] }
 0x3ac   :  { %v5018_v9 = vsel %vm3661_vm4, %v5016_v57, %v5017_v27  ;;  %v15777_v42 = vld [vmem:[#allocation4 + $0x1e8] sm:$0xfc] }
 0x3ae   :  { %4314 = vmatmul.mubr.bf16.gmra.mrb[84].mxu0 %v4094_v48  ;;  %v4879_v48 = vld [vmem:[#allocation4 + $0xf8] sm:$0x3] }
 0x3af   :  { %5285 = vmatprep.mubr.bf16.mxu0 %v5109_v29  ;;  %v4881_v29 = vld [vmem:[#allocation4 + $0x108] sm:$0xfc]  ;;  %v5020_v16 = vrot.slane %v4879_v48, 2 }
 0x3b0   :  { %4828 = vmatmul.mubr.bf16.gmra.mrb[76].mxu1 %v4608_v10  ;;  %v5005_v10 = vrot.slane %v4870_v6, 2  ;;  %v5037_v6 = vrot.slane %v4889_v17, 2  ;;  %v13197_v48 = vld [vmem:[#allocation7 + $0x3a8] sm:$0xff]  }
 0x3b1   :  { %5576 = vmatprep.mubr.bf16.mxu1 %v5400_v14  ;;  %v5010_v14 = vrot.slane %v4872_v0, 2  ;;  %v5021_v51 = vsel %vm3661_vm4, %v5019_v32, %v5020_v16  ;;  %v5038_v0 = vrot.slane %v4891_v20, 2  ;;  %v5035_v32 = vrot.slane %v15750_v34, 2  ;;  %v15768_v16 = vld [vmem:[#allocation4 + $0x1a0] sm:$0xfc] }
 0x3b2   :  { %v5006_v59 = vsel %vm3661_vm4, %v5004_v63, %v5005_v10  ;;  %v5386_v63 = vld [vmem:[#allocation4 + $0x1a8] sm:$0xff]  ;;  %v15763_v10 = vld [vmem:[#allocation4 + $0x1d8] sm:$0x3]  ;;  %v15793_v20 = vld [vmem:[#allocation4 + $0x1f0] sm:$0x3]  ;;  %v5040_v57 = vrot.slane %v15768_v16, 2 }
 0x3b3   :  { %v5012_v40 = vsel %vm3661_vm4, %v5010_v14, %v5011_v38  ;;  %v13199_v14 = vld [vmem:[#allocation7 + $0x428] sm:$0xff]   ;;  %v5408_v25 = vpack.c.bf16 %v5386_v63, %v5384_v60  ;;  %v5050_v17 = vrot.slane %v15763_v10, 2  ;;  %v15825_v60 = vld [vmem:[#allocation4 + $0x240] sm:$0xfc]  ;;  %v15829_v10 = vld [vmem:[#allocation4 + $0x250] sm:$0x3] }
 0x3b4   :  { %v5112_v21 = vpack.c.bf16 %v5012_v40, %v5006_v59  ;;  %v15780_v40 = vld [vmem:[#allocation4 + $0x1f8] sm:$0x3] }
 0x3b6   :  { %5286 = vmatmul.mubr.bf16.vlgmr.msra.gmra.mrb[88].mxu0 %v5108_v53  ;;  %v5377_v53 = vld [vmem:[#allocation4 + $0xe0] sm:$0xff] }
 0x3b7   :  { %11855 = vmatpush3.bf16.msra.mxu0 %v13177_v36  ;;  %5293 = vmatprep.mubr.bf16.mxu0 %v5111_v37  ;;  %v5025_v36 = vrot.slane %v4881_v29, 2  ;;  %v4882_v37 = vld [vmem:[#allocation4 + $0x110] sm:$0x3]  ;;  %v5403_v8 = vpack.c.bf16 %v5377_v53, %v5375_v41  ;;  %v15782_v41 = vld [vmem:[#allocation4 + $0x208] sm:$0xfc]  ;;  %v13204_v53 = vld [vmem:[#allocation7 + $0x3f8] sm:$0xff]  }
 0x3b8   :  { %5577 = vmatmul.mubr.bf16.vlgmr.msra.gmra.mrb[80].mxu1 %v5399_v47  ;;  %11856 = vmatprep.subr.bf16.mxu0 %v13180_v62  ;;  %v4880_v47 = vld [vmem:[#allocation4 + $0x100] sm:$0xfc] }
 0x3b9   :  { %5584 = vmatprep.mubr.bf16.mxu1 %v5402_v5  ;;  %11919 = vmatpush3.bf16.msra.mxu1 %v13179_v55  ;;  %v5027_v62 = vsel %vm3661_vm4, %v5025_v36, %v5026_v35  ;;  %v4885_v55 = vld [vmem:[#allocation4 + $0x168] sm:$0xfc]  ;;  %v5022_v52 = vrot.slane %v4880_v47, 2  ;;  %v15770_v36 = vld [vmem:[#allocation4 + $0x1b0] sm:$0x3] }
 0x3ba   :  { %11920 = vmatprep.subr.bf16.mxu1 %v13182_v28  ;;  %v15740_v28 = vld [vmem:[#allocation4 + $0x160] sm:$0xfc]  ;;  %v13196_v5 = vld [vmem:[#allocation7 + $0x3e8] sm:$0xff]   ;;  %v5115_v31 = vpack.c.bf16 %v5027_v62, %v5021_v51  ;;  %v13203_v62 = vld [vmem:[#allocation7 + $0x430] sm:$0xff]   ;;  %v5041_v27 = vrot.slane %v15770_v36, 2 }
 0x3bb   :  { %11857 = vmatpush3.bf16.msra.mxu0 %v13181_v50  ;;  %v5023_v50 = vrot.slane %v4882_v37, 2  ;;  %v15772_v35 = vld [vmem:[#allocation4 + $0x1c0] sm:$0xfc] }
 0x3bc   :  { %11858 = vmatprep.subr.bf16.mxu0 %v13184_v44  ;;  %v15742_v44 = vld [vmem:[#allocation4 + $0x170] sm:$0x3]  ;;  %v15787_v51 = vld [vmem:[#allocation4 + $0x1e0] sm:$0xfc] }
 0x3bd   :  { %11921 = vmatpush3.bf16.msra.mxu1 %v13183_v56  ;;  %v5031_v56 = vrot.slane %v4885_v55, 2  ;;  %v5029_v29 = vrot.slane %v15742_v44, 2  ;;  %v5405_v55 = vpack.c.bf16 %v15746_v24, %v15684_v23  ;;  %v5061_v44 = vrot.slane %v15782_v41, 2  ;;  %v15882_v41 = vld [vmem:[#allocation4 + $0x40] sm:$0xfe] }
 0x3be   :  { %5294 = vmatmul.mubr.bf16.gmra.mrb[92].mxu0 %v5110_v18  ;;  %11922 = vmatprep.subr.bf16.mxu1 %v13186_v1  ;;  %v5028_v1 = vrot.slane %v15740_v28, 2  ;;  %v15756_v18 = vld [vmem:[#allocation4 + $0x1b8] sm:$0x3]  ;;  %v5046_v28 = vrot.slane %v15772_v35, 2  ;;  %v5392_v35 = vld [vmem:[#allocation4 + $0x208] sm:$0xff] }
 0x3bf   :  { %5301 = vmatprep.mubr.bf16.mxu0 %v5113_v3  ;;  %11859 = vmatpush3.bf16.msra.mxu0 %v13185_v33  ;;  %v5406_v33 = vpack.c.bf16 %v15746_v24, %v15674_v61  ;;  %v5024_v61 = vsel %vm3661_vm4, %v5022_v52, %v5023_v50  ;;  %v15761_v3 = vld [vmem:[#allocation4 + $0x1c8] sm:$0xfc]  ;;  %v5033_v38 = vsel %vm3661_vm4, %v5031_v56, %v5032_v46  ;;  %v5044_v59 = vrot.slane %v15756_v18, 2  ;;  %v5385_v52 = vld [vmem:[#allocation4 + $0x1a0] sm:$0xff] }
 0x3c0   :  { %5585 = vmatmul.mubr.bf16.gmra.mrb[84].mxu1 %v5401_v43  ;;  %11860 = vmatprep.subr.bf16.mxu0 %v13188_v12  ;;  %v13200_v43 = vld [vmem:[#allocation7 + $0x3f0] sm:$0xff]   ;;  %v5034_v12 = vrot.slane %v15744_v58, 2  ;;  %v5049_v37 = vrot.slane %v15761_v3, 2  ;;  %v5055_v50 = vrot.slane %v15777_v42, 2  ;;  %v5056_v56 = vrot.slane %v15780_v40, 2 }
 0x3c1   :  { %5592 = vmatprep.mubr.bf16.mxu1 %v5404_v54  ;;  %11923 = vmatpush3.bf16.msra.mxu1 %v13187_v22  ;;  %v5039_v22 = vsel %vm3661_vm4, %v5037_v6, %v5038_v0  ;;  %v5043_v54 = vrot.slane %v15754_v2, 2  ;;  %v5052_v6 = vrot.slane %v15787_v51, 2  ;;  %v5053_v0 = vrot.slane %v15793_v20, 2  ;;  %v15815_v2 = vld [vmem:[#allocation4 + $0x238] sm:$0x3] }
 0x3c2   :  { %11924 = vmatprep.subr.bf16.mxu1 %v13190_v26  ;;  %v13202_v26 = vld [vmem:[#allocation7 + $0x470] sm:$0xff]   ;;  %v5117_v47 = vpack.c.bf16 %v5039_v22, %v5033_v38  ;;  %v5036_v46 = vsel %vm3661_vm4, %v5034_v12, %v5035_v32  ;;  %v15817_v18 = vld [vmem:[#allocation4 + $0x248] sm:$0xfc]  ;;  %v5068_v32 = vrot.slane %v15815_v2, 2  ;;  %v5057_v16 = vsel %vm3661_vm4, %v5055_v50, %v5056_v56  ;;  %v15880_v50 = vld [vmem:[#allocation4 + $0x78] sm:$0x3] }
 0x3c3   :  { %11861 = vmatpush3.bf16.msra.mxu0 %v13189_v45  ;;  %v15775_v45 = vld [vmem:[#allocation4 + $0x1d0] sm:$0x3]  ;;  %v5045_v34 = vsel %vm3661_vm4, %v5043_v54, %v5044_v59  ;;  %v15835_v54 = vld [vmem:[#allocation4 + $0x58] sm:$0x1] }
 0x3c4   :  { %11862 = vmatprep.subr.bf16.mxu0 %v13192_v13  ;;  %v5114_v13 = vpack.c.bf16 %v5024_v61, %v5018_v9  ;;  %v5047_v23 = vrot.slane %v15775_v45, 2  ;;  %v15821_v9 = vld [vmem:[#allocation4 + $0x220] sm:$0xfc]  ;;  %v15823_v61 = vld [vmem:[#allocation4 + $0x230] sm:$0x3] }
 0x3c5   :  { %11925 = vmatpush3.bf16.msra.mxu1 %v13191_v11  ;;  %v15785_v11 = vld [vmem:[#allocation4 + $0x218] sm:$0x3]  ;;  %v15875_v45 = vld [vmem:[#allocation4 + $0x68] sm:$0xfc]  ;;  %v15902_v42 = vld [vmem:[#allocation4 + $0x70] sm:$0x3] }
 0x3c6   :  { %5302 = vmatmul.mubr.bf16.gmra.mrb[96].mxu0 %v5112_v21  ;;  %11926 = vmatprep.subr.bf16.mxu1 %v13194_v15  ;;  %v5030_v15 = vsel %vm3661_vm4, %v5028_v1, %v5029_v29  ;;  %v13206_v21 = vld [vmem:[#allocation7 + $0x478] sm:$0xff]   ;;  %v5051_v1 = vsel %vm3661_vm4, %v5049_v37, %v5050_v17  ;;  %v5390_v29 = vld [vmem:[#allocation4 + $0x1e8] sm:$0xff]  ;;  %v5070_v37 = vrot.slane %v15825_v60, 2  ;;  %v5071_v17 = vrot.slane %v15829_v10, 2 }
 0x3c7   :  { %5309 = vmatprep.mubr.bf16.mxu0 %v5115_v31  ;;  %11863 = vmatpush3.bf16.msra.mxu0 %v13193_v39  ;;  %v15795_v39 = vld [vmem:[#allocation4 + $0x200] sm:$0xfc]  ;;  %v5116_v63 = vpack.c.bf16 %v5036_v46, %v5030_v15  ;;  %v5119_v22 = vpack.c.bf16 %v5051_v1, %v5045_v34  ;;  %v5048_v36 = vsel %vm3661_vm4, %v5046_v28, %v5047_v23  ;;  %v5394_v28 = vld [vmem:[#allocation4 + $0x228] sm:$0xff]  ;;  %v16001_v10 = vld [vmem:[#allocation4 + $0xd8] sm:$0x1] }
 0x3c8   :  { %5593 = vmatmul.mubr.bf16.gmra.mrb[88].mxu1 %v5403_v8  ;;  %11864 = vmatprep.subr.bf16.mxu0 %v13196_v5  ;;  %v13205_v5 = vld [vmem:[#allocation7 + $0x3b8] sm:$0xff]   ;;  %v5383_v31 = vld [vmem:[#allocation4 + $0x180] sm:$0xff]  ;;  %v15805_v8 = vld [vmem:[#allocation4 + $0x210] sm:$0x3]  ;;  %v5058_v58 = vrot.slane %v15795_v39, 2 }
 0x3c9   :  { %5600 = vmatprep.mubr.bf16.mxu1 %v5406_v33  ;;  %11927 = vmatpush3.bf16.msra.mxu1 %v13195_v19  ;;  %v5062_v19 = vrot.slane %v15785_v11, 2  ;;  %v13207_v33 = vld [vmem:[#allocation7 + $0x438] sm:$0xff]   ;;  %v5059_v12 = vrot.slane %v15805_v8, 2  ;;  %v5407_v38 = vpack.c.bf16 %v5385_v52, %v5383_v31  ;;  %v5042_v31 = vsel %vm3661_vm4, %v5040_v57, %v5041_v27  ;;  %v15911_v34 = vld [vmem:[#allocation4 + $0x88] sm:$0xfe] }
 0x3ca   :  { %11928 = vmatprep.subr.bf16.mxu1 %v13198_v4  ;;  %v15811_v4 = vld [vmem:[#allocation4 + $0x228] sm:$0xfc]  ;;  %v16019_v60 = vld [vmem:[#allocation4 + $0xd8] sm:$0x3] }
 0x3cb   :  { %11865 = vmatpush3.bf16.msra.mxu0 %v13197_v48  ;;  %v5388_v48 = vld [vmem:[#allocation4 + $0x1c8] sm:$0xff]  ;;  %v5067_v3 = vrot.slane %v15811_v4, 2  ;;  %v5063_v57 = vsel %vm3661_vm4, %v5061_v44, %v5062_v19  ;;  %v15886_v44 = vld [vmem:[#allocation4 + $0x50] sm:$0x1]  ;;  %v15888_v19 = vld [vmem:[#allocation4 + $0x60] sm:$0xfe] }
 0x3cc   :  { %11866 = vmatprep.subr.bf16.mxu0 %v13200_v43  ;;  %v15819_v43 = vld [vmem:[#allocation4 + $0x258] sm:$0x3]  ;;  %v5410_v11 = vpack.c.bf16 %v5390_v29, %v5388_v48  ;;  %v15856_v48 = vld [vmem:[#allocation4 + $0x48] sm:$0xfc] }
 0x3cd   :  { %11929 = vmatpush3.bf16.msra.mxu1 %v13199_v14  ;;  %v15831_v14 = vld [vmem:[#allocation4 + $0x48] sm:$0xfe]  ;;  %v5069_v51 = vsel %vm3661_vm4, %v5067_v3, %v5068_v32  ;;  %v15956_v3 = vld [vmem:[#allocation4 + $0x80] sm:$0xfe] }
 0x3ce   :  { %5310 = vmatmul.mubr.bf16.gmra.mrb[100].mxu0 %v5114_v13  ;;  %11930 = vmatprep.subr.bf16.mxu1 %v13202_v26  ;;  %v5073_v26 = vrot.slane %v15817_v18, 2  ;;  %v5074_v13 = vrot.slane %v15819_v43, 2  ;;  %v15958_v43 = vld [vmem:[#allocation4 + $0x90] sm:$0x1] }
 0x3cf   :  { %5317 = vmatprep.mubr.bf16.mxu0 %v5117_v47  ;;  %11867 = vmatpush3.bf16.msra.mxu0 %v13201_v7  ;;  %v15837_v7 = vld [vmem:[#allocation4 + $0x68] sm:$0xfe]  ;;  %v5065_v47 = vrot.slane %v15823_v61, 2 }
 0x3d0   :  { %5601 = vmatmul.mubr.bf16.gmra.mrb[92].mxu1 %v5405_v55  ;;  %11868 = vmatprep.subr.bf16.mxu0 %v13204_v53  ;;  %v11422_v59 = vpop.f32.mrb[8].mxu0  ;;  %v5064_v53 = vrot.slane %v15821_v9, 2  ;;  %v5389_v55 = vld [vmem:[#allocation4 + $0x1e0] sm:$0xff]  ;;  %v5075_v20 = vsel %vm3661_vm4, %v5073_v26, %v5074_v13  ;;  %v5414_v26 = vpack.c.bf16 %v15746_v24, %v15710_v30  ;;  %v5072_v30 = vsel %vm3661_vm4, %v5070_v37, %v5071_v17 }
 0x3d1   :  { %5608 = vmatprep.mubr.bf16.mxu1 %v5408_v25  ;;  %11931 = vmatpush3.bf16.msra.mxu1 %v13203_v62  ;;  %v5387_v62 = vld [vmem:[#allocation4 + $0x1c0] sm:$0xff]  ;;  %v11423_v15 = vpop.f32.mrb[9].mxu0  ;;  %v18576_v17 = vrot.slane %v15835_v54, 1  ;;  %v18581_v54 = vrot.slane %v15856_v48, 2  ;;  %v18587_v48 = vrot.slane %v15888_v19, 1 }
 0x3d2   :  { %11932 = vmatprep.subr.bf16.mxu1 %v13206_v21  ;;  %v11446_v25 = vpop.f32.mrb[0].mxu1  ;;  %v15844_v21 = vld [vmem:[#allocation4 + $0x78] sm:$0x1]  ;;  %v15852_v52 = vadd.f32 %v11423_v15, %v11422_v59  ;;  %v5118_v59 = vpack.c.bf16 %v5048_v36, %v5042_v31  ;;  %v15892_v15 = vld [vmem:[#allocation4 + $0x40] sm:$0xfc] }
 0x3d3   :  { %11869 = vmatpush3.bf16.msra.mxu0 %v13205_v5  ;;  %v11447_v46 = vpop.f32.mrb[1].mxu1  ;;  %v15934_v36 = vld [vmem:[#allocation4 + $0x98] sm:$0x3]  ;;  %v18578_v37 = vrot.slane %v15844_v21, 1  ;;  %v18583_v21 = vrot.slane %v15875_v45, 2 }
 0x3d4   :  { %v15871_v27 = vadd.f32 %v11447_v46, %v11446_v25  ;;  %v11449_v29 = vpop.f32.mrb[2].mxu1  ;;  %v5121_v25 = vpack.c.bf16 %v5063_v57, %v5057_v16  ;;  %v15894_v46 = vld [vmem:[#allocation4 + $0x50] sm:$0x3]  ;;  %v5412_v57 = vpack.c.bf16 %v5394_v28, %v5392_v35  ;;  %v15916_v16 = vld [vmem:[#allocation4 + $0x98] sm:$0x1]  ;;  %v5054_v28 = vsel %vm3661_vm4, %v5052_v6, %v5053_v0 }
 0x3d5   :  { %11933 = vmatpush3.bf16.msra.mxu1 %v13207_v33  ;;  %v11425_v33 = vpop.f32.mrb[10].mxu0  ;;  %v11450_v40 = vpop.f32.mrb[3].mxu1  ;;  %v6300_v1 = vrot.slane %v15894_v46, 2  ;;  %v15918_v35 = vld [vmem:[#allocation4 + $0xa8] sm:$0xfe]  ;;  %v5800_v6 = vrot.slane %v15911_v34, 1 }
 0x3d6   :  { %5318 = vmatmul.mubr.bf16.gmra.mrb[104].mxu0 %v5116_v63  ;;  %v11426_v63 = vpop.f32.mrb[11].mxu0  ;;  %v15884_v56 = vadd.f32 %v11450_v40, %v11449_v29  ;;  %v5393_v29 = vld [vmem:[#allocation4 + $0x220] sm:$0xff]  ;;  %v6299_v40 = vrot.slane %v15892_v15, 2  ;;  %v15949_v0 = vld [vmem:[#allocation4 + $0xa8] sm:$0xfc] }
 0x3d7   :  { %5325 = vmatprep.mubr.bf16.mxu0 %v5119_v22  ;;  %v15877_v23 = vadd.f32 %v11426_v63, %v11425_v33  ;;  %v15890_v22 = vld [vmem:[#allocation4 + $0x70] sm:$0x1]  ;;  %v15896_v33 = vld [vmem:[#allocation4 + $0x60] sm:$0xfc] }
 0x3d8   :  { %5609 = vmatmul.mubr.bf16.gmra.mrb[96].mxu1 %v5407_v38  ;;  %v15873_v38 = vld [vmem:[#allocation4 + $0x58] sm:$0x3]  ;;  %v5391_v63 = vld [vmem:[#allocation4 + $0x200] sm:$0xff]  ;;  %v18589_v19 = vrot.slane %v15896_v33, 2  ;;  %v16100_v33 = vld [vmem:[#allocation4 + $0x128] sm:$0xfe] }
 0x3d9   :  { %5616 = vmatprep.mubr.bf16.mxu1 %v5410_v11  ;;  %v5409_v11 = vpack.c.bf16 %v5389_v55, %v5387_v62  ;;  %v5411_v32 = vpack.c.bf16 %v5393_v29, %v5391_v63  ;;  %v15979_v29 = vld [vmem:[#allocation4 + $0x80] sm:$0xfc] }
 0x3da   :  { %v11428_v31 = vpop.f32.mrb[12].mxu0 }
 0x3db   :  { %v11429_v5 = vpop.f32.mrb[13].mxu0 }
 0x3dc   :  { %v15913_v62 = vadd.f32 %v11429_v5, %v11428_v31  ;;  %v11431_v55 = vpop.f32.mrb[14].mxu0  ;;  %v5060_v5 = vsel %vm3661_vm4, %v5058_v58, %v5059_v12  ;;  %v15930_v31 = vld [vmem:[#allocation4 + $0xb8] sm:$0x1]  ;;  %v5801_v12 = vrot.slane %v15916_v16, 1 }
 0x3dd   :  { %v15951_v58 = vld [vmem:[#allocation4 + $0xb8] sm:$0x3]  ;;  %v5120_v18 = vpack.c.bf16 %v5060_v5, %v5054_v28  ;;  %v15981_v28 = vld [vmem:[#allocation4 + $0x90] sm:$0x3]  ;;  %v15983_v5 = vld [vmem:[#allocation4 + $0xa0] sm:$0xfc] }
 0x3de   :  { %5326 = vmatmul.mubr.bf16.gmra.mrb[108].mxu0 %v5118_v59  ;;  %v15932_v59 = vld [vmem:[#allocation4 + $0x88] sm:$0xfc]  ;;  %v5807_v61 = vrot.slane %v15930_v31, 1 }
 0x3df   :  { %5333 = vmatprep.mubr.bf16.mxu0 %v5121_v25  ;;  %v11432_v25 = vpop.f32.mrb[15].mxu0  ;;  %v18591_v16 = vrot.slane %v15932_v59, 2 }
 0x3e0   :  { %5617 = vmatmul.mubr.bf16.gmra.mrb[100].mxu1 %v5409_v11  ;;  %v11452_v11 = vpop.f32.mrb[4].mxu1  ;;  %v15946_v8 = vadd.f32 %v11432_v25, %v11431_v55  ;;  %v5806_v55 = vrot.slane %v15918_v35, 1  ;;  %v15965_v25 = vld [vmem:[#allocation4 + $0xb0] sm:$0x1] }
 0x3e1   :  { %5624 = vmatprep.mubr.bf16.mxu1 %v5412_v57  ;;  %v11453_v39 = vpop.f32.mrb[5].mxu1  ;;  %v15963_v57 = vld [vmem:[#allocation4 + $0xa0] sm:$0xfe] }
 0x3e2   :  { %v15953_v2 = vadd.f32 %v11453_v39, %v11452_v11  ;;  %v11455_v4 = vpop.f32.mrb[6].mxu1  ;;  %v5123_v11 = vpack.c.bf16 %v5075_v20, %v5069_v51  ;;  %v5066_v39 = vsel %vm3661_vm4, %v5064_v53, %v5065_v47  ;;  %v15994_v20 = vld [vmem:[#allocation4 + $0xb0] sm:$0x3]  ;;  %v16003_v47 = vld [vmem:[#allocation4 + $0xe8] sm:$0xfe]  ;;  %v18580_v53 = vrot.slane %v15873_v38, 2 }
 0x3e3   :  { %v11456_v13 = vpop.f32.mrb[7].mxu1  ;;  %v5122_v9 = vpack.c.bf16 %v5072_v30, %v5066_v39  ;;  %v16052_v30 = vld [vmem:[#allocation4 + $0xf0] sm:$0x1]  ;;  %v16064_v39 = vld [vmem:[#allocation4 + $0xe0] sm:$0xfc]  ;;  %v18586_v38 = vrot.slane %v15890_v22, 1  ;;  %v5808_v15 = vsel %vm2969_vm3, %v5806_v55, %v5807_v61 }
 0x3e4   :  { %v15977_v63 = vadd.f32 %v11456_v13, %v11455_v4  ;;  %v18579_v4 = vrot.slane %v15837_v7, 1  ;;  %v16015_v13 = vld [vmem:[#allocation4 + $0xf8] sm:$0x1]  ;;  %v18588_v22 = vrot.slane %v15902_v42, 2  ;;  %v18592_v61 = vrot.slane %v15951_v58, 2 }
 0x3e5   :  { %v16098_v42 = vld [vmem:[#allocation4 + $0x118] sm:$0x1]  ;;  %v18594_v58 = vrot.slane %v15958_v43, 1  ;;  %v18598_v43 = vrot.slane %v15981_v28, 2 }
 0x3e6   :  { %5334 = vmatmul.mubr.bf16.gmra.mrb[112].mxu0 %v5120_v18  ;;  %v5796_v18 = vsel %vm2969_vm3, %v18579_v4, %v18578_v37  ;;  %v16031_v37 = vld [vmem:[#allocation4 + $0xe8] sm:$0xfc]  ;;  %v16033_v4 = vld [vmem:[#allocation4 + $0xf8] sm:$0x3] }
 0x3e7   :  { %5341 = vmatprep.mubr.bf16.mxu0 %v5123_v11  ;;  %v15999_v11 = vld [vmem:[#allocation4 + $0xc8] sm:$0xfe]  ;;  %v16110_v55 = vld [vmem:[#allocation4 + $0x138] sm:$0x1] }
 0x3e8   :  { %5625 = vmatmul.mubr.bf16.gmra.mrb[104].mxu1 %v5411_v32  ;;  %v18577_v32 = vrot.slane %v15831_v14, 1  ;;  %v6304_v14 = vsel %vm3661_vm4, %v18581_v54, %v18580_v53  ;;  %v16060_v53 = vld [vmem:[#allocation4 + $0xc0] sm:$0xfc]  ;;  %v18603_v28 = vrot.slane %v15999_v11, 1 }
 0x3e9   :  { %5632 = vmatprep.mubr.bf16.mxu1 %v5414_v26  ;;  %v16017_v26 = vld [vmem:[#allocation4 + $0xc8] sm:$0xfc] }
 0x3ea   :  { %v5790_v51 = vsel %vm2969_vm3, %v18577_v32, %v18576_v17  ;;  %v18582_v17 = vrot.slane %v15880_v50, 2  ;;  %v16035_v32 = vld [vmem:[#allocation4 + $0xc0] sm:$0xfe]  ;;  %v5413_v50 = vpack.c.bf16 %v15746_v24, %v15720_v49  ;;  %v18607_v11 = vrot.slane %v16017_v26, 2 }
 0x3eb   :  { %v5914_v45 = vpack.c.bf16 %v5796_v18, %v5790_v51  ;;  %v5809_v49 = vrot.slane %v16035_v32, 1  ;;  %v18584_v51 = vrot.slane %v15886_v44, 1  ;;  %v18585_v18 = vrot.slane %v15882_v41, 1 }
 0x3ec   :  { %v6310_v7 = vsel %vm3661_vm4, %v18583_v21, %v18582_v17  ;;  %v16045_v17 = vld [vmem:[#allocation4 + $0xd0] sm:$0x1]  ;;  %v16047_v21 = vld [vmem:[#allocation4 + $0xe0] sm:$0xfe]  ;;  %v6301_v41 = vsel %vm3661_vm4, %v6299_v40, %v6300_v1  ;;  %v5802_v1 = vsel %vm2969_vm3, %v5800_v6, %v5801_v12  ;;  %v18595_v40 = vrot.slane %v15956_v3, 1 }
 0x3ed   :  { %v6428_v24 = vpack.c.bf16 %v6310_v7, %v6304_v14  ;;  %v5787_v54 = vsel %vm2969_vm3, %v18585_v18, %v18584_v51  ;;  %v5810_v44 = vrot.slane %v16045_v17, 1  ;;  %v16078_v7 = vld [vmem:[#allocation4 + $0xf0] sm:$0x3]  ;;  %v16080_v51 = vld [vmem:[#allocation4 + $0x108] sm:$0xfe]  ;;  %v18599_v3 = vrot.slane %v15979_v29, 2 }
 0x3ee   :  { %5342 = vmatmul.mubr.bf16.gmra.mrb[116].mxu0 %v5122_v9  ;;  %v16062_v9 = vld [vmem:[#allocation4 + $0xd0] sm:$0x3]  ;;  %v16134_v14 = vld [vmem:[#allocation4 + $0x138] sm:$0x3]  ;;  %v18613_v17 = vrot.slane %v16060_v53, 2 }
 0x3ef   :  { %6090 = vmatprep.mubr.bf16.mxu0 %v5914_v45  ;;  %v5793_v45 = vsel %vm2969_vm3, %v18587_v48, %v18586_v38  ;;  %v6307_v38 = vsel %vm3661_vm4, %v18589_v19, %v18588_v22  ;;  %v18590_v48 = vrot.slane %v15934_v36, 2  ;;  %v5831_v22 = vrot.slane %v16110_v55, 1  ;;  %v16132_v19 = vld [vmem:[#allocation4 + $0x128] sm:$0xfc] }
 0x3f0   :  { %5633 = vmatmul.mubr.bf16.gmra.mrb[108].mxu1 %v5413_v50  ;;  %v18593_v50 = vrot.slane %v15949_v0, 2  ;;  %v16125_v0 = vld [vmem:[#allocation4 + $0x118] sm:$0x3] }
 0x3f1   :  { %6604 = vmatprep.mubr.bf16.mxu1 %v6428_v24  ;;  %v11434_v46 = vpop.f32.mrb[16].mxu0  ;;  %v6316_v34 = vsel %vm3661_vm4, %v18591_v16, %v18590_v48  ;;  %v16121_v48 = vld [vmem:[#allocation4 + $0x108] sm:$0xfc]  ;;  %v5913_v16 = vpack.c.bf16 %v5793_v45, %v5787_v54  ;;  %v6427_v54 = vpack.c.bf16 %v6307_v38, %v6301_v41  ;;  %v18597_v41 = vrot.slane %v15963_v57, 1 }
 0x3f2   :  { %v11435_v6 = vpop.f32.mrb[17].mxu0  ;;  %v6322_v24 = vsel %vm3661_vm4, %v18593_v50, %v18592_v61  ;;  %v5916_v61 = vpack.c.bf16 %v5808_v15, %v5802_v1  ;;  %v5799_v1 = vsel %vm2969_vm3, %v18595_v40, %v18594_v58  ;;  %v6338_v15 = vrot.slane %v16121_v48, 2  ;;  %v16165_v48 = vld [vmem:[#allocation4 + $0x130] sm:$0x1] }
 0x3f3   :  { %v16117_v18 = vadd.f32 %v11435_v6, %v11434_v46  ;;  %v11437_v59 = vpop.f32.mrb[18].mxu0  ;;  %v6430_v45 = vpack.c.bf16 %v6322_v24, %v6316_v34  ;;  %v6313_v40 = vsel %vm3661_vm4, %v18599_v3, %v18598_v43  ;;  %v18600_v34 = vrot.slane %v15994_v20, 2  ;;  %v16197_v43 = vld [vmem:[#allocation4 + $0x130] sm:$0x3]  ;;  %v16199_v3 = vld [vmem:[#allocation4 + $0x188] sm:$0xfe] }
 0x3f4   :  { %v11458_v36 = vpop.f32.mrb[8].mxu1  ;;  %v11438_v31 = vpop.f32.mrb[19].mxu0  ;;  %v18601_v24 = vrot.slane %v15983_v5, 2  ;;  %v18602_v57 = vrot.slane %v16001_v10, 1  ;;  %v18605_v20 = vrot.slane %v16003_v47, 1  ;;  %v6339_v58 = vrot.slane %v16125_v0, 2 }
 0x3f5   :  { %v11459_v12 = vpop.f32.mrb[9].mxu1  ;;  %v16129_v6 = vadd.f32 %v11438_v31, %v11437_v59  ;;  %v16142_v31 = vld [vmem:[#allocation4 + $0x100] sm:$0xfe]  ;;  %v18606_v10 = vrot.slane %v16019_v60, 2  ;;  %v18609_v47 = vrot.slane %v16031_v37, 2  ;;  %v6345_v0 = vrot.slane %v16134_v14, 2 }
 0x3f6   :  { %v16127_v50 = vadd.f32 %v11459_v12, %v11458_v36  ;;  %v11461_v46 = vpop.f32.mrb[10].mxu1  ;;  %6091 = vmatmul.mubr.bf16.vlgmr.msra.gmra.mrb[120].mxu0 %v5913_v16  ;;  %v16144_v12 = vld [vmem:[#allocation4 + $0x110] sm:$0x1]  ;;  %v18596_v36 = vrot.slane %v15965_v25, 1  ;;  %v6319_v59 = vsel %vm3661_vm4, %v18601_v24, %v18600_v34  ;;  %v16167_v25 = vld [vmem:[#allocation4 + $0x100] sm:$0xfc]  ;;  %v5814_v29 = vsel %vm2969_vm3, %v18603_v28, %v18602_v57 }
 0x3f7   :  { %v11462_v35 = vpop.f32.mrb[11].mxu1  ;;  %6098 = vmatprep.mubr.bf16.mxu0 %v5916_v61  ;;  %v18604_v16 = vrot.slane %v16015_v13, 1  ;;  %v6344_v61 = vrot.slane %v16132_v19, 2  ;;  %v18608_v13 = vrot.slane %v16033_v4, 2  ;;  %v5821_v19 = vrot.slane %v16142_v31, 1 }
 0x3f8   :  { %v16146_v55 = vadd.f32 %v11462_v35, %v11461_v46  ;;  %v5805_v38 = vsel %vm2969_vm3, %v18597_v41, %v18596_v36  ;;  %v16163_v35 = vld [vmem:[#allocation4 + $0x120] sm:$0xfe]  ;;  %6605 = vmatmul.mubr.bf16.vlgmr.msra.gmra.mrb[112].mxu1 %v6427_v54  ;;  %v16181_v46 = vld [vmem:[#allocation4 + $0x110] sm:$0x3]  ;;  %v6328_v54 = vsel %vm3661_vm4, %v18607_v11, %v18606_v10  ;;  %v5822_v60 = vrot.slane %v16144_v12, 1 }
 0x3f9   :  { %v5820_v5 = vsel %vm2969_vm3, %v18605_v20, %v18604_v16  ;;  %v16183_v36 = vld [vmem:[#allocation4 + $0x120] sm:$0xfc]  ;;  %6612 = vmatprep.mubr.bf16.mxu1 %v6430_v45  ;;  %v6334_v41 = vsel %vm3661_vm4, %v18609_v47, %v18608_v13  ;;  %v5827_v26 = vrot.slane %v16163_v35, 1  ;;  %v5828_v45 = vrot.slane %v16165_v48, 1  ;;  %v16207_v24 = vld [vmem:[#allocation4 + $0x198] sm:$0x1] }
 0x3fa   :  { %v6336_v37 = vrot.slane %v16181_v46, 2  ;;  %v16209_v14 = vld [vmem:[#allocation4 + $0x1a8] sm:$0xfe]  ;;  %v5915_v57 = vpack.c.bf16 %v5805_v38, %v5799_v1  ;;  %v6429_v28 = vpack.c.bf16 %v6319_v59, %v6313_v40  ;;  %v6342_v16 = vrot.slane %v16197_v43, 2  ;;  %v16212_v20 = vld [vmem:[#allocation4 + $0x1b8] sm:$0x1] }
 0x3fb   :  { %v16215_v11 = vld [vmem:[#allocation4 + $0x188] sm:$0xfc]  ;;  %v5918_v13 = vpack.c.bf16 %v5820_v5, %v5814_v29  ;;  %v6432_v47 = vpack.c.bf16 %v6334_v41, %v6328_v54  ;;  %v5811_v34 = vsel %vm2969_vm3, %v5809_v49, %v5810_v44  ;;  %v18610_v4 = vrot.slane %v16052_v30, 1  ;;  %v16227_v40 = vld [vmem:[#allocation4 + $0x198] sm:$0x3] }
 0x3fc   :  { %v18611_v1 = vrot.slane %v16047_v21, 1  ;;  %v16229_v59 = vld [vmem:[#allocation4 + $0x1a8] sm:$0xfc]  ;;  %v16231_v10 = vld [vmem:[#allocation4 + $0x1b8] sm:$0x3]  ;;  %v18612_v29 = vrot.slane %v16062_v9, 2  ;;  %v5829_v12 = vsel %vm2969_vm3, %v5827_v26, %v5828_v45 }
 0x3fd   :  { %v18614_v30 = vrot.slane %v16078_v7, 2  ;;  %v18615_v21 = vrot.slane %v16064_v39, 2  ;;  %v18616_v44 = vrot.slane %v16098_v42, 1  ;;  %v18617_v5 = vrot.slane %v16080_v51, 1  ;;  %v16255_v41 = vld [vmem:[#allocation4 + $0x180] sm:$0xfe] }
 0x3fe   :  { %v5817_v38 = vsel %vm2969_vm3, %v18611_v1, %v18610_v4  ;;  %6099 = vmatmul.mubr.bf16.gmra.mrb[124].mxu0 %v5915_v57  ;;  %v16238_v32 = vsel %vm3661_vm4, %v18613_v17, %v18612_v29  ;;  %v18618_v9 = vrot.slane %v16100_v33, 1  ;;  %v16257_v4 = vld [vmem:[#allocation4 + $0x190] sm:$0x1]  ;;  %v16259_v7 = vld [vmem:[#allocation4 + $0x1a0] sm:$0xfe]  ;;  %v5837_v39 = vrot.slane %v16207_v24, 1 }
 0x3ff   :  { %v16245_v49 = vsel %vm3661_vm4, %v18615_v21, %v18614_v30  ;;  %v5826_v54 = vsel %vm2969_vm3, %v18617_v5, %v18616_v44  ;;  %6106 = vmatprep.mubr.bf16.mxu0 %v5918_v13  ;;  %v5842_v57 = vrot.slane %v16209_v14, 1  ;;  %v5843_v42 = vrot.slane %v16212_v20, 1  ;;  %v16265_v1 = vld [vmem:[#allocation4 + $0x1b0] sm:$0x1]  ;;  %v16271_v13 = vld [vmem:[#allocation4 + $0x180] sm:$0xfc] }
 0x400   :  { %v5832_v53 = vsel %vm2969_vm3, %v18618_v9, %v5831_v22  ;;  %v6350_v51 = vrot.slane %v16215_v11, 2  ;;  %6613 = vmatmul.mubr.bf16.gmra.mrb[116].mxu1 %v6429_v28  ;;  %v6340_v33 = vsel %vm3661_vm4, %v6338_v15, %v6339_v58  ;;  %v6346_v22 = vsel %vm3661_vm4, %v6344_v61, %v6345_v0  ;;  %v16273_v24 = vld [vmem:[#allocation4 + $0x190] sm:$0x3]  ;;  %v16280_v0 = vld [vmem:[#allocation4 + $0x1a0] sm:$0xfc] }
 0x401   :  { %v6351_v29 = vrot.slane %v16227_v40, 2  ;;  %v6356_v17 = vrot.slane %v16229_v59, 2  ;;  %6620 = vmatprep.mubr.bf16.mxu1 %v6432_v47  ;;  %v11440_v14 = vpop.f32.mrb[20].mxu0  ;;  %v6357_v20 = vrot.slane %v16231_v10, 2  ;;  %v16282_v40 = vld [vmem:[#allocation4 + $0x1b0] sm:$0x3]  ;;  %v5917_v21 = vpack.c.bf16 %v5817_v38, %v5811_v34 }
 0x402   :  { %v11441_v58 = vpop.f32.mrb[21].mxu0  ;;  %v16288_v5 = vld [vmem:[#allocation4 + $0x1c8] sm:$0xfe]  ;;  %v6431_v61 = vpack.c.bf16 %v16245_v49, %v16238_v32  ;;  %v5920_v11 = vpack.c.bf16 %v5832_v53, %v5826_v54  ;;  %v6434_v28 = vpack.c.bf16 %v6346_v22, %v6340_v33  ;;  %v16299_v34 = vld [vmem:[#allocation4 + $0x1d8] sm:$0x1]  ;;  %v6353_v31 = vrot.slane %v16280_v0, 2 }
 0x403   :  { %v11464_v59 = vpop.f32.mrb[12].mxu1  ;;  %v16284_v30 = vadd.f32 %v11441_v58, %v11440_v14  ;;  %v11443_v47 = vpop.f32.mrb[22].mxu0  ;;  %v16297_v14 = vsel %vm2969_vm3, %v5821_v19, %v5822_v60  ;;  %v16301_v38 = vld [vmem:[#allocation4 + $0x1e8] sm:$0xfe]  ;;  %v16313_v32 = vld [vmem:[#allocation4 + $0x1f8] sm:$0x1]  ;;  %v5844_v43 = vsel %vm2969_vm3, %v5842_v57, %v5843_v42 }
 0x404   :  { %v11465_v9 = vpop.f32.mrb[13].mxu1  ;;  %v11444_v15 = vpop.f32.mrb[23].mxu0  ;;  %v16315_v19 = vld [vmem:[#allocation4 + $0x1c8] sm:$0xfc]  ;;  %v18619_v49 = vrot.slane %v16167_v25, 2  ;;  %v18620_v35 = vrot.slane %v16183_v36, 2  ;;  %v16343_v36 = vsel %vm3661_vm4, %v6350_v51, %v6351_v29 }
 0x405   :  { %v16303_v58 = vadd.f32 %v11465_v9, %v11464_v59  ;;  %v11467_v10 = vpop.f32.mrb[14].mxu1  ;;  %v16305_v44 = vadd.f32 %v11444_v15, %v11443_v47  ;;  %v18621_v26 = vrot.slane %v16199_v3, 1  ;;  %v6354_v53 = vrot.slane %v16282_v40, 2  ;;  %v16335_v33 = vld [vmem:[#allocation4 + $0x1d8] sm:$0x3] }
 0x406   :  { %v11468_v60 = vpop.f32.mrb[15].mxu1  ;;  %6107 = vmatmul.mubr.bf16.gmra.mrb[128].mxu0 %v5917_v21  ;;  %v16322_v54 = vsel %vm3661_vm4, %v18619_v49, %v6336_v37  ;;  %v16329_v48 = vsel %vm3661_vm4, %v18620_v35, %v6342_v16  ;;  %v16337_v46 = vld [vmem:[#allocation4 + $0x1e8] sm:$0xfc]  ;;  %v16346_v37 = vsel %vm3661_vm4, %v6356_v17, %v6357_v20  ;;  %v16348_v3 = vld [vmem:[#allocation4 + $0x1f8] sm:$0x3]  ;;  %v5848_v22 = vrot.slane %v16288_v5, 1 }
 0x407   :  { %v5838_v45 = vsel %vm2969_vm3, %v18621_v26, %v5837_v39  ;;  %v16339_v25 = vadd.f32 %v11468_v60, %v11467_v10  ;;  %6114 = vmatprep.mubr.bf16.mxu0 %v5920_v11  ;;  %v16350_v16 = vld [vmem:[#allocation4 + $0x1c0] sm:$0xfe]  ;;  %v16352_v39 = vld [vmem:[#allocation4 + $0x1d0] sm:$0x1]  ;;  %v5849_v15 = vrot.slane %v16299_v34, 1  ;;  %v5854_v11 = vrot.slane %v16301_v38, 1 }
 0x408   :  { %6621 = vmatmul.mubr.bf16.gmra.mrb[120].mxu1 %v6431_v61  ;;  %v5855_v57 = vrot.slane %v16313_v32, 1  ;;  %v6362_v51 = vrot.slane %v16315_v19, 2  ;;  %v6363_v29 = vrot.slane %v16335_v33, 2  ;;  %v6368_v17 = vrot.slane %v16337_v46, 2  ;;  %v16361_v20 = vld [vmem:[#allocation4 + $0x1e0] sm:$0xfe] }
 0x409   :  { %6628 = vmatprep.mubr.bf16.mxu1 %v6434_v28  ;;  %v11486_v42 = vpop.f32.mrb[24].mxu0  ;;  %v5919_v61 = vpack.c.bf16 %v5829_v12, %v16297_v14  ;;  %v6369_v40 = vrot.slane %v16348_v3, 2  ;;  %v16365_v59 = vld [vmem:[#allocation4 + $0x1f0] sm:$0x1]  ;;  %v5845_v47 = vrot.slane %v16350_v16, 1  ;;  %v5846_v28 = vrot.slane %v16352_v39, 1 }
 0x40a   :  { %v11487_v0 = vpop.f32.mrb[25].mxu0  ;;  %v6433_v9 = vpack.c.bf16 %v16329_v48, %v16322_v54  ;;  %v5922_v34 = vpack.c.bf16 %v5844_v43, %v5838_v45  ;;  %v6436_v38 = vpack.c.bf16 %v16346_v37, %v16343_v36  ;;  %v16373_v32 = vld [vmem:[#allocation4 + $0x1c0] sm:$0xfc]  ;;  %v16375_v14 = vld [vmem:[#allocation4 + $0x1d0] sm:$0x3]  ;;  %v18622_v60 = vrot.slane %v16257_v4, 1 }
 0x40b   :  { %v11550_v21 = vpop.f32.mrb[16].mxu1  ;;  %v11488_v10 = vadd.f32 %v11487_v0, %v11486_v42  ;;  %v11489_v5 = vpop.f32.mrb[26].mxu0  ;;  %v18623_v49 = vrot.slane %v16255_v41, 1  ;;  %v18624_v26 = vrot.slane %v16265_v1, 1  ;;  %v18625_v54 = vrot.slane %v16259_v7, 1 }
 0x40c   :  { %v11551_v12 = vpop.f32.mrb[17].mxu1  ;;  %v11490_v19 = vpop.f32.mrb[27].mxu0  ;;  %v18626_v45 = vrot.slane %v16273_v24, 2  ;;  %v18627_v33 = vrot.slane %v16271_v13, 2  ;;  %v16399_v4 = vsel %vm3661_vm4, %v6353_v31, %v6354_v53  ;;  %v16401_v41 = vld [vmem:[#allocation4 + $0x1e0] sm:$0xfc]  ;;  %v16412_v31 = vsel %vm2969_vm3, %v5848_v22, %v5849_v15 }
 0x40d   :  { %v16382_v35 = vsel %vm2969_vm3, %v18623_v49, %v18622_v60  ;;  %v16389_v48 = vsel %vm2969_vm3, %v18625_v54, %v18624_v26  ;;  %v16403_v43 = vld [vmem:[#allocation4 + $0x1f0] sm:$0x3]  ;;  %v3471_v1 = vadd.f32 %v11488_v10, %v15852_v52  ;;  %v11552_v7 = vadd.f32 %v11551_v12, %v11550_v21  ;;  %v11553_v36 = vpop.f32.mrb[18].mxu1  ;;  %v16407_v24 = vld [vmem:[#allocation4 + $0x208] sm:$0xfe] }
 0x40e   :  { %v16396_v46 = vsel %vm3661_vm4, %v18627_v33, %v18626_v45  ;;  %v11491_v37 = vadd.f32 %v11490_v19, %v11489_v5  ;;  %v5851_v3 = vrot.slane %v16361_v20, 1  ;;  %v16409_v13 = vld [vmem:[#allocation4 + $0x218] sm:$0x1]  ;;  %v11554_v42 = vpop.f32.mrb[19].mxu1  ;;  %6115 = vmatmul.mubr.bf16.gmra.mrb[132].mxu0 %v5919_v61  ;;  %v5852_v53 = vrot.slane %v16365_v59, 1 }
 0x40f   :  { %v6359_v0 = vrot.slane %v16373_v32, 2  ;;  %v6360_v52 = vrot.slane %v16375_v14, 2  ;;  %v16417_v21 = vld [vmem:[#allocation4 + $0x228] sm:$0xfe]  ;;  %v16419_v10 = vadd.f32 %v11552_v7, %v3471_v1  ;;  %v11555_v5 = vadd.f32 %v11554_v42, %v11553_v36  ;;  %6122 = vmatprep.mubr.bf16.mxu0 %v5922_v34  ;;  %v16423_v61 = vld [vmem:[#allocation4 + $0x238] sm:$0x1] }
 0x410   :  { %v3474_v20 = vadd.f32 %v11491_v37, %v15877_v23  ;;  %v5856_v12 = vsel %vm2969_vm3, %v5854_v11, %v5855_v57  ;;  %v16425_v22 = vld [vmem:[#allocation4 + $0x208] sm:$0xfc]  ;;  %v16427_v15 = vld [vmem:[#allocation4 + $0x218] sm:$0x3]  ;;  %6629 = vmatmul.mubr.bf16.gmra.mrb[124].mxu1 %v6433_v9  ;;  %v6365_v59 = vrot.slane %v16401_v41, 2  ;;  %v6366_v32 = vrot.slane %v16403_v43, 2 }
 0x411   :  { %v5860_v14 = vrot.slane %v16407_v24, 1  ;;  %v5861_v19 = vrot.slane %v16409_v13, 1  ;;  %6636 = vmatprep.mubr.bf16.mxu1 %v6436_v38  ;;  %v11492_v34 = vpop.f32.mrb[28].mxu0  ;;  %v6364_v11 = vsel %vm3661_vm4, %v6362_v51, %v6363_v29  ;;  %v6370_v57 = vsel %vm3661_vm4, %v6368_v17, %v6369_v40  ;;  %v16438_v49 = vld [vmem:[#allocation4 + $0x228] sm:$0xfc] }
 0x412   :  { %v16433_v23 = vadd.f32 %v11555_v5, %v3474_v20  ;;  %v5866_v60 = vrot.slane %v16417_v21, 1  ;;  %v16440_v9 = vld [vmem:[#allocation4 + $0x238] sm:$0x3]  ;;  %v11493_v26 = vpop.f32.mrb[29].mxu0  ;;  %v5867_v54 = vrot.slane %v16423_v61, 1  ;;  %v6374_v45 = vrot.slane %v16425_v22, 2 }
 0x413   :  { %v6375_v33 = vrot.slane %v16427_v15, 2  ;;  %v16445_v41 = vld [vmem:[#allocation4 + $0x200] sm:$0xfe]  ;;  %v11556_v38 = vpop.f32.mrb[20].mxu1  ;;  %v11494_v43 = vadd.f32 %v11493_v26, %v11492_v34  ;;  %v11495_v51 = vpop.f32.mrb[30].mxu0  ;;  %v5921_v29 = vpack.c.bf16 %v16389_v48, %v16382_v35  ;;  %v6435_v17 = vpack.c.bf16 %v16399_v4, %v16396_v46 }
 0x414   :  { %v5924_v40 = vpack.c.bf16 %v5856_v12, %v16412_v31  ;;  %v16452_v1 = vld [vmem:[#allocation4 + $0x210] sm:$0x1]  ;;  %v16454_v7 = vld [vmem:[#allocation4 + $0x220] sm:$0xfe]  ;;  %v11557_v36 = vpop.f32.mrb[21].mxu1  ;;  %v11496_v37 = vpop.f32.mrb[31].mxu0  ;;  %v6438_v24 = vpack.c.bf16 %v6370_v57, %v6364_v11  ;;  %v16461_v13 = vsel %vm2969_vm3, %v5845_v47, %v5846_v28  ;;  %v5853_v35 = vsel %vm2969_vm3, %v5851_v3, %v5852_v53 }
 0x415   :  { %v16465_v48 = vsel %vm3661_vm4, %v6359_v0, %v6360_v52  ;;  %v16467_v46 = vld [vmem:[#allocation4 + $0x230] sm:$0x1]  ;;  %v16469_v4 = vld [vmem:[#allocation4 + $0x200] sm:$0xfc]  ;;  %v3479_v42 = vadd.f32 %v11494_v43, %v15913_v62  ;;  %v11558_v31 = vadd.f32 %v11557_v36, %v11556_v38  ;;  %v11559_v21 = vpop.f32.mrb[22].mxu1  ;;  %v11497_v20 = vadd.f32 %v11496_v37, %v11495_v51 }
 0x416   :  { %v6380_v39 = vrot.slane %v16438_v49, 2  ;;  %v16473_v16 = vld [vmem:[#allocation4 + $0x210] sm:$0x3]  ;;  %v16475_v47 = vld [vmem:[#allocation4 + $0x220] sm:$0xfc]  ;;  %v11560_v28 = vpop.f32.mrb[23].mxu1  ;;  %6123 = vmatmul.mubr.bf16.gmra.mrb[136].mxu0 %v5921_v29  ;;  %v6367_v3 = vsel %vm3661_vm4, %v6365_v59, %v6366_v32  ;;  %v5923_v36 = vpack.c.bf16 %v5853_v35, %v16461_v13  ;;  %v6376_v37 = vsel %vm3661_vm4, %v6374_v45, %v6375_v33 }
 0x417   :  { %v6381_v53 = vrot.slane %v16440_v9, 2  ;;  %v5857_v0 = vrot.slane %v16445_v41, 1  ;;  %v5858_v52 = vrot.slane %v16452_v1, 1  ;;  %v16481_v62 = vld [vmem:[#allocation4 + $0x230] sm:$0x3]  ;;  %v16483_v5 = vadd.f32 %v11558_v31, %v3479_v42  ;;  %6130 = vmatprep.mubr.bf16.mxu0 %v5924_v40 }
 0x418   :  { %v3482_v12 = vadd.f32 %v11497_v20, %v15946_v8  ;;  %v11561_v61 = vadd.f32 %v11560_v28, %v11559_v21  ;;  %v5863_v22 = vrot.slane %v16454_v7, 1  ;;  %v5714_v15 = vld [vmem:[#allocation4 + $0x248] sm:$0xfe]  ;;  %6637 = vmatmul.mubr.bf16.gmra.mrb[128].mxu1 %v6435_v17  ;;  %v5864_v59 = vrot.slane %v16467_v46, 1  ;;  %v5716_v41 = vld [vmem:[#allocation4 + $0x258] sm:$0x1] }
 0x419   :  { %v6371_v32 = vrot.slane %v16469_v4, 2  ;;  %v6372_v34 = vrot.slane %v16473_v16, 2  ;;  %v6377_v11 = vrot.slane %v16475_v47, 2  ;;  %6644 = vmatprep.mubr.bf16.mxu1 %v6438_v24  ;;  %v11498_v49 = vpop.f32.mrb[32].mxu0  ;;  %v5862_v8 = vsel %vm2969_vm3, %v5860_v14, %v5861_v19  ;;  %v5718_v38 = vld [vmem:[#allocation4 + $0x268] sm:$0xfe] }
 0x41a   :  { %v16491_v57 = vadd.f32 %v11561_v61, %v3482_v12  ;;  %v5868_v9 = vsel %vm2969_vm3, %v5866_v60, %v5867_v54  ;;  %v6378_v26 = vrot.slane %v16481_v62, 2  ;;  %v11499_v43 = vpop.f32.mrb[33].mxu0  ;;  %v5720_v51 = vld [vmem:[#allocation4 + $0x278] sm:$0x1]  ;;  %v5872_v29 = vrot.slane %v5714_v15, 1 }
 0x41b   :  { %v6228_v17 = vld [vmem:[#allocation4 + $0x248] sm:$0xfc]  ;;  %v11562_v40 = vpop.f32.mrb[24].mxu1  ;;  %v11500_v1 = vadd.f32 %v11499_v43, %v11498_v49  ;;  %v11501_v7 = vpop.f32.mrb[34].mxu0  ;;  %v6382_v24 = vsel %vm3661_vm4, %v6380_v39, %v6381_v53  ;;  %v6230_v14 = vld [vmem:[#allocation4 + $0x258] sm:$0x3]  ;;  %v6437_v46 = vpack.c.bf16 %v6367_v3, %v16465_v48  ;;  %v5926_v4 = vpack.c.bf16 %v5868_v9, %v5862_v8 }
 0x41c   :  { %v6232_v19 = vld [vmem:[#allocation4 + $0x268] sm:$0xfc]  ;;  %v11563_v60 = vpop.f32.mrb[25].mxu1  ;;  %v11502_v54 = vpop.f32.mrb[35].mxu0  ;;  %v5873_v42 = vrot.slane %v5716_v41, 1  ;;  %v5878_v31 = vrot.slane %v5718_v38, 1  ;;  %v6440_v45 = vpack.c.bf16 %v6382_v24, %v6376_v37  ;;  %v5865_v15 = vsel %vm2969_vm3, %v5863_v22, %v5864_v59 }
 0x41d   :  { %v6234_v21 = vld [vmem:[#allocation4 + $0x278] sm:$0x3]  ;;  %v3487_v20 = vadd.f32 %v11500_v1, %v16117_v18  ;;  %v11564_v16 = vadd.f32 %v11563_v60, %v11562_v40  ;;  %v11565_v47 = vpop.f32.mrb[26].mxu1  ;;  %v11503_v28 = vadd.f32 %v11502_v54, %v11501_v7  ;;  %v5879_v13 = vrot.slane %v5720_v51, 1  ;;  %v5713_v61 = vld [vmem:[#allocation4 + $0x240] sm:$0xfe] }
 0x41e   :  { %v11566_v35 = vpop.f32.mrb[27].mxu1  ;;  %6131 = vmatmul.mubr.bf16.gmra.mrb[140].mxu0 %v5923_v36  ;;  %v6386_v33 = vrot.slane %v6228_v17, 2  ;;  %v6387_v39 = vrot.slane %v6230_v14, 2  ;;  %v6392_v53 = vrot.slane %v6232_v19, 2  ;;  %v6393_v12 = vrot.slane %v6234_v21, 2 }
 0x41f   :  { %v16501_v62 = vadd.f32 %v11564_v16, %v3487_v20  ;;  %v3490_v48 = vadd.f32 %v11503_v28, %v16129_v6  ;;  %v11567_v3 = vadd.f32 %v11566_v35, %v11565_v47  ;;  %6138 = vmatprep.mubr.bf16.mxu0 %v5926_v4  ;;  %v5859_v18 = vsel %vm2969_vm3, %v5857_v0, %v5858_v52  ;;  %v5715_v43 = vld [vmem:[#allocation4 + $0x250] sm:$0x1]  ;;  %v5717_v51 = vld [vmem:[#allocation4 + $0x260] sm:$0xfe] }
 0x420   :  { %6645 = vmatmul.mubr.bf16.gmra.mrb[132].mxu1 %v6437_v46  ;;  %v6373_v49 = vsel %vm3661_vm4, %v6371_v32, %v6372_v34  ;;  %v6379_v41 = vsel %vm3661_vm4, %v6377_v11, %v6378_v26  ;;  %v5874_v38 = vsel %vm2969_vm3, %v5872_v29, %v5873_v42  ;;  %v5880_v6 = vsel %vm2969_vm3, %v5878_v31, %v5879_v13  ;;  %v5719_v40 = vld [vmem:[#allocation4 + $0x270] sm:$0x1]  ;;  %v6227_v0 = vld [vmem:[#allocation4 + $0x240] sm:$0xfc] }
 0x421   :  { %v16507_v8 = vadd.f32 %v11567_v3, %v3490_v48  ;;  %6652 = vmatprep.mubr.bf16.mxu1 %v6440_v45  ;;  %v11504_v9 = vpop.f32.mrb[36].mxu0  ;;  %v5869_v1 = vrot.slane %v5713_v61, 1  ;;  %v5925_v32 = vpack.c.bf16 %v5865_v15, %v5859_v18  ;;  %v6388_v34 = vsel %vm3661_vm4, %v6386_v33, %v6387_v39  ;;  %v6229_v36 = vld [vmem:[#allocation4 + $0x250] sm:$0x3]  ;;  %v6231_v11 = vld [vmem:[#allocation4 + $0x260] sm:$0xfc] }
 0x422   :  { %v11505_v17 = vpop.f32.mrb[37].mxu0  ;;  %v6394_v7 = vsel %vm3661_vm4, %v6392_v53, %v6393_v12  ;;  %v6439_v37 = vpack.c.bf16 %v6379_v41, %v6373_v49  ;;  %v5928_v24 = vpack.c.bf16 %v5880_v6, %v5874_v38  ;;  %v5870_v14 = vrot.slane %v5715_v43, 1  ;;  %v6233_v60 = vld [vmem:[#allocation4 + $0x270] sm:$0x3] }
 0x423   :  { %v11568_v52 = vpop.f32.mrb[28].mxu1  ;;  %v11506_v22 = vadd.f32 %v11505_v17, %v11504_v9  ;;  %v11507_v59 = vpop.f32.mrb[38].mxu0  ;;  %v5875_v19 = vrot.slane %v5717_v51, 1  ;;  %v5876_v31 = vrot.slane %v5719_v40, 1  ;;  %v6442_v20 = vpack.c.bf16 %v6394_v7, %v6388_v34 }
 0x424   :  { %v11569_v26 = vpop.f32.mrb[29].mxu1  ;;  %v11508_v29 = vpop.f32.mrb[39].mxu0  ;;  %v6383_v16 = vrot.slane %v6227_v0, 2  ;;  %v6384_v47 = vrot.slane %v6229_v36, 2  ;;  %v6389_v28 = vrot.slane %v6231_v11, 2  ;;  %v6390_v33 = vrot.slane %v6233_v60, 2 }
 0x425   :  { %v3495_v54 = vadd.f32 %v11506_v22, %v16284_v30  ;;  %v11570_v46 = vadd.f32 %v11569_v26, %v11568_v52  ;;  %v11571_v4 = vpop.f32.mrb[30].mxu1  ;;  %v11509_v42 = vadd.f32 %v11508_v29, %v11507_v59  ;;  %v5871_v53 = vsel %vm2969_vm3, %v5869_v1, %v5870_v14 }
 0x426   :  { %v11572_v21 = vpop.f32.mrb[31].mxu1  ;;  %6139 = vmatmul.mubr.bf16.gmra.mrb[144].mxu0 %v5925_v32  ;;  %v5877_v48 = vsel %vm2969_vm3, %v5875_v19, %v5876_v31  ;;  %v6385_v15 = vsel %vm3661_vm4, %v6383_v16, %v6384_v47 }
 0x427   :  { %v16515_v13 = vadd.f32 %v11570_v46, %v3495_v54  ;;  %v3498_v35 = vadd.f32 %v11509_v42, %v16305_v44  ;;  %v11573_v45 = vadd.f32 %v11572_v21, %v11571_v4  ;;  %6146 = vmatprep.mubr.bf16.mxu0 %v5928_v24  ;;  %v6391_v44 = vsel %vm3661_vm4, %v6389_v28, %v6390_v33 }
 0x428   :  { %6653 = vmatmul.mubr.bf16.gmra.mrb[136].mxu1 %v6439_v37  ;;  %v5927_v41 = vpack.c.bf16 %v5877_v48, %v5871_v53  ;;  %v6441_v40 = vpack.c.bf16 %v6391_v44, %v6385_v15 }
 0x429   :  { %v16518_v39 = vadd.f32 %v11573_v45, %v3498_v35  ;;  %6660 = vmatprep.mubr.bf16.mxu1 %v6442_v20  ;;  %v11510_v30 = vpop.f32.mrb[40].mxu0 }
 0x42a   :  { %v11511_v3 = vpop.f32.mrb[41].mxu0 }
 0x42b   :  { %v11574_v12 = vpop.f32.mrb[32].mxu1  ;;  %v11512_v61 = vadd.f32 %v11511_v3, %v11510_v30  ;;  %v11513_v18 = vpop.f32.mrb[42].mxu0 }
 0x42c   :  { %v11575_v49 = vpop.f32.mrb[33].mxu1  ;;  %v11514_v9 = vpop.f32.mrb[43].mxu0 }
 0x42d   :  { %v3503_v38 = vadd.f32 %v11512_v61, %v15871_v27  ;;  %v11576_v6 = vadd.f32 %v11575_v49, %v11574_v12  ;;  %v11577_v43 = vpop.f32.mrb[34].mxu1  ;;  %v11515_v51 = vadd.f32 %v11514_v9, %v11513_v18 }
 0x42e   :  { %v11578_v17 = vpop.f32.mrb[35].mxu1  ;;  %6147 = vmatmul.mubr.bf16.gmra.mrb[148].mxu0 %v5927_v41 }
 0x42f   :  { %v16525_v1 = vadd.f32 %v11576_v6, %v3503_v38  ;;  %v3506_v0 = vadd.f32 %v11515_v51, %v15884_v56  ;;  %v11579_v52 = vadd.f32 %v11578_v17, %v11577_v43 }
 0x430   :  { %6661 = vmatmul.mubr.bf16.gmra.mrb[140].mxu1 %v6441_v40 }
 0x431   :  { %v16528_v22 = vadd.f32 %v11579_v52, %v3506_v0  ;;  %v11516_v59 = vpop.f32.mrb[44].mxu0 }
 0x432   :  { %v11517_v32 = vpop.f32.mrb[45].mxu0 }
 0x433   :  { %v11580_v34 = vpop.f32.mrb[36].mxu1  ;;  %v11518_v7 = vadd.f32 %v11517_v32, %v11516_v59  ;;  %v11519_v36 = vpop.f32.mrb[46].mxu0 }
 0x434   :  { %v11581_v27 = vpop.f32.mrb[37].mxu1  ;;  %v11520_v11 = vpop.f32.mrb[47].mxu0 }
 0x435   :  { %v3511_v26 = vadd.f32 %v11518_v7, %v15953_v2  ;;  %v11582_v29 = vadd.f32 %v11581_v27, %v11580_v34  ;;  %v11583_v37 = vpop.f32.mrb[38].mxu1  ;;  %v11521_v24 = vadd.f32 %v11520_v11, %v11519_v36 }
 0x436   :  { %v11584_v14 = vpop.f32.mrb[39].mxu1 }
 0x437   :  { %v16531_v19 = vadd.f32 %v11582_v29, %v3511_v26  ;;  %v3514_v56 = vadd.f32 %v11521_v24, %v15977_v63  ;;  %v11585_v60 = vadd.f32 %v11584_v14, %v11583_v37 }
 0x439   :  { %v16534_v54 = vadd.f32 %v11585_v60, %v3514_v56  ;;  %v11522_v46 = vpop.f32.mrb[48].mxu0 }
 0x43a   :  { %v11523_v4 = vpop.f32.mrb[49].mxu0 }
 0x43b   :  { %v11586_v42 = vpop.f32.mrb[40].mxu1  ;;  %v11524_v31 = vadd.f32 %v11523_v4, %v11522_v46  ;;  %v11525_v21 = vpop.f32.mrb[50].mxu0 }
 0x43c   :  { %v11587_v20 = vpop.f32.mrb[41].mxu1  ;;  %v11526_v16 = vpop.f32.mrb[51].mxu0 }
 0x43d   :  { %v3519_v2 = vadd.f32 %v11524_v31, %v16127_v50  ;;  %v11588_v47 = vadd.f32 %v11587_v20, %v11586_v42  ;;  %v11589_v28 = vpop.f32.mrb[42].mxu1  ;;  %v11527_v35 = vadd.f32 %v11526_v16, %v11525_v21 }
 0x43e   :  { %v11590_v45 = vpop.f32.mrb[43].mxu1 }
 0x43f   :  { %v16537_v33 = vadd.f32 %v11588_v47, %v3519_v2  ;;  %v3522_v63 = vadd.f32 %v11527_v35, %v16146_v55  ;;  %v11591_v30 = vadd.f32 %v11590_v45, %v11589_v28 }
 0x441   :  { %v16540_v53 = vadd.f32 %v11591_v30, %v3522_v63  ;;  %v11528_v48 = vpop.f32.mrb[52].mxu0 }
 0x442   :  { %v11529_v3 = vpop.f32.mrb[53].mxu0 }
 0x443   :  { %v11592_v12 = vpop.f32.mrb[44].mxu1  ;;  %v11530_v61 = vadd.f32 %v11529_v3, %v11528_v48  ;;  %v11531_v18 = vpop.f32.mrb[54].mxu0 }
 0x444   :  { %v11593_v15 = vpop.f32.mrb[45].mxu1  ;;  %v11532_v44 = vpop.f32.mrb[55].mxu0 }
 0x445   :  { %v3527_v50 = vadd.f32 %v11530_v61, %v16303_v58  ;;  %v11594_v49 = vadd.f32 %v11593_v15, %v11592_v12  ;;  %v11595_v9 = vpop.f32.mrb[46].mxu1  ;;  %v11533_v41 = vadd.f32 %v11532_v44, %v11531_v18 }
 0x446   :  { %v11596_v38 = vpop.f32.mrb[47].mxu1 }
 0x447   :  { %v16543_v6 = vadd.f32 %v11594_v49, %v3527_v50  ;;  %v3530_v55 = vadd.f32 %v11533_v41, %v16339_v25  ;;  %v11597_v43 = vadd.f32 %v11596_v38, %v11595_v9 }
 0x449   :  { %v16546_v51 = vadd.f32 %v11597_v43, %v3530_v55  ;;  %v11614_v17 = vpop.f32.mrb[56].mxu0 }
 0x44a   :  { %v11615_v40 = vpop.f32.mrb[57].mxu0 }
 0x44b   :  { %v11678_v0 = vpop.f32.mrb[48].mxu1  ;;  %v11616_v52 = vadd.f32 %v11615_v40, %v11614_v17  ;;  %v11617_v59 = vpop.f32.mrb[58].mxu0 }
 0x44c   :  { %v11679_v32 = vpop.f32.mrb[49].mxu1  ;;  %v11618_v34 = vpop.f32.mrb[59].mxu0 }
 0x44d   :  { %v4322_v58 = vadd.f32 %v11616_v52, %v16419_v10  ;;  %v11680_v7 = vadd.f32 %v11679_v32, %v11678_v0  ;;  %v11681_v36 = vpop.f32.mrb[50].mxu1  ;;  %v11619_v27 = vadd.f32 %v11618_v34, %v11617_v59 }
 0x44e   :  { %v11682_v11 = vpop.f32.mrb[51].mxu1 }
 0x44f   :  { %v16549_v26 = vadd.f32 %v11680_v7, %v4322_v58  ;;  %v4323_v25 = vadd.f32 %v11619_v27, %v16433_v23  ;;  %v11683_v29 = vadd.f32 %v11682_v11, %v11681_v36 }
 0x451   :  { %v16552_v37 = vadd.f32 %v11683_v29, %v4323_v25  ;;  %v11620_v24 = vpop.f32.mrb[60].mxu0 }
 0x452   :  { %v11621_v14 = vpop.f32.mrb[61].mxu0 }
 0x453   :  { %v11684_v56 = vpop.f32.mrb[52].mxu1  ;;  %v11622_v60 = vadd.f32 %v11621_v14, %v11620_v24  ;;  %v11623_v46 = vpop.f32.mrb[62].mxu0 }
 0x454   :  { %v11685_v4 = vpop.f32.mrb[53].mxu1  ;;  %v11624_v42 = vpop.f32.mrb[63].mxu0 }
 0x455   :  { %v4324_v10 = vadd.f32 %v11622_v60, %v16483_v5  ;;  %v11686_v31 = vadd.f32 %v11685_v4, %v11684_v56  ;;  %v11687_v21 = vpop.f32.mrb[54].mxu1  ;;  %v11625_v20 = vadd.f32 %v11624_v42, %v11623_v46 }
 0x456   :  { %v11688_v16 = vpop.f32.mrb[55].mxu1 }
 0x457   :  { %v16555_v2 = vadd.f32 %v11686_v31, %v4324_v10  ;;  %v4325_v23 = vadd.f32 %v11625_v20, %v16491_v57  ;;  %v11689_v47 = vadd.f32 %v11688_v16, %v11687_v21 }
 0x459   :  { %v16558_v28 = vadd.f32 %v11689_v47, %v4325_v23  ;;  %v11626_v35 = vpop.f32.mrb[64].mxu0 }
 0x45a   :  { %v11627_v45 = vpop.f32.mrb[65].mxu0 }
 0x45b   :  { %v11690_v63 = vpop.f32.mrb[56].mxu1  ;;  %v11628_v30 = vadd.f32 %v11627_v45, %v11626_v35  ;;  %v11629_v48 = vpop.f32.mrb[66].mxu0 }
 0x45c   :  { %v11691_v3 = vpop.f32.mrb[57].mxu1  ;;  %v11630_v12 = vpop.f32.mrb[67].mxu0 }
 0x45d   :  { %v4326_v5 = vadd.f32 %v11628_v30, %v16501_v62  ;;  %v11692_v61 = vadd.f32 %v11691_v3, %v11690_v63  ;;  %v11693_v18 = vpop.f32.mrb[58].mxu1  ;;  %v11631_v15 = vadd.f32 %v11630_v12, %v11629_v48 }
 0x45e   :  { %v11694_v44 = vpop.f32.mrb[59].mxu1 }
 0x45f   :  { %v16561_v50 = vadd.f32 %v11692_v61, %v4326_v5  ;;  %v4327_v57 = vadd.f32 %v11631_v15, %v16507_v8  ;;  %v11695_v49 = vadd.f32 %v11694_v44, %v11693_v18 }
 0x461   :  { %v16564_v9 = vadd.f32 %v11695_v49, %v4327_v57  ;;  %v11632_v41 = vpop.f32.mrb[68].mxu0 }
 0x462   :  { %v11633_v38 = vpop.f32.mrb[69].mxu0 }
 0x463   :  { %v11696_v55 = vpop.f32.mrb[60].mxu1  ;;  %v11634_v43 = vadd.f32 %v11633_v38, %v11632_v41  ;;  %v11635_v17 = vpop.f32.mrb[70].mxu0 }
 0x464   :  { %v11697_v40 = vpop.f32.mrb[61].mxu1  ;;  %v11636_v0 = vpop.f32.mrb[71].mxu0 }
 0x465   :  { %v4328_v62 = vadd.f32 %v11634_v43, %v16515_v13  ;;  %v11698_v52 = vadd.f32 %v11697_v40, %v11696_v55  ;;  %v11699_v59 = vpop.f32.mrb[62].mxu1  ;;  %v11637_v32 = vadd.f32 %v11636_v0, %v11635_v17 }
 0x466   :  { %v11700_v34 = vpop.f32.mrb[63].mxu1 }
 0x467   :  { %v16567_v58 = vadd.f32 %v11698_v52, %v4328_v62  ;;  %v4329_v8 = vadd.f32 %v11637_v32, %v16518_v39  ;;  %v11701_v7 = vadd.f32 %v11700_v34, %v11699_v59 }
 0x469   :  { %v16570_v36 = vadd.f32 %v11701_v7, %v4329_v8  ;;  %v11638_v27 = vpop.f32.mrb[72].mxu0 }
 0x46a   :  { %v11639_v11 = vpop.f32.mrb[73].mxu0 }
 0x46b   :  { %v11702_v25 = vpop.f32.mrb[64].mxu1  ;;  %v11640_v29 = vadd.f32 %v11639_v11, %v11638_v27  ;;  %v11641_v24 = vpop.f32.mrb[74].mxu0 }
 0x46c   :  { %v11703_v14 = vpop.f32.mrb[65].mxu1  ;;  %v11642_v56 = vpop.f32.mrb[75].mxu0 }
 0x46d   :  { %v4330_v13 = vadd.f32 %v11640_v29, %v16525_v1  ;;  %v11704_v60 = vadd.f32 %v11703_v14, %v11702_v25  ;;  %v11705_v46 = vpop.f32.mrb[66].mxu1  ;;  %v11643_v4 = vadd.f32 %v11642_v56, %v11641_v24 }
 0x46e   :  { %v11706_v42 = vpop.f32.mrb[67].mxu1 }
 0x46f   :  { %v16573_v10 = vadd.f32 %v11704_v60, %v4330_v13  ;;  %v4331_v39 = vadd.f32 %v11643_v4, %v16528_v22  ;;  %v11707_v31 = vadd.f32 %v11706_v42, %v11705_v46  ;;  %v13208_v46 = vld [vmem:[%s18175_s11 + $0x40] sm:$0xff]  }
 0x470   :  { %12246 = vmatprep.subr.bf16.mxu0 %v13208_v46 }
 0x471   :  { %v16576_v21 = vadd.f32 %v11707_v31, %v4331_v39  ;;  %v11644_v20 = vpop.f32.mrb[76].mxu0  ;;  %12247 = vmatpush3.bf16.msra.mxu0 %v13208_v46 }
 0x472   :  { %v11645_v16 = vpop.f32.mrb[77].mxu0 }
 0x473   :  { %v11708_v23 = vpop.f32.mrb[68].mxu1  ;;  %v11646_v47 = vadd.f32 %v11645_v16, %v11644_v20  ;;  %v11647_v35 = vpop.f32.mrb[78].mxu0 }
 0x474   :  { %v11709_v45 = vpop.f32.mrb[69].mxu1  ;;  %v11648_v63 = vpop.f32.mrb[79].mxu0 }
 0x475   :  { %v4332_v1 = vadd.f32 %v11646_v47, %v16531_v19  ;;  %v11710_v30 = vadd.f32 %v11709_v45, %v11708_v23  ;;  %v11711_v48 = vpop.f32.mrb[70].mxu1  ;;  %v11649_v3 = vadd.f32 %v11648_v63, %v11647_v35 }
 0x476   :  { %v11712_v12 = vpop.f32.mrb[71].mxu1 }
 0x477   :  { %v16579_v5 = vadd.f32 %v11710_v30, %v4332_v1  ;;  %v4333_v22 = vadd.f32 %v11649_v3, %v16534_v54  ;;  %v11713_v61 = vadd.f32 %v11712_v12, %v11711_v48 }
 0x479   :  { %v16582_v18 = vadd.f32 %v11713_v61, %v4333_v22  ;;  %v11650_v15 = vpop.f32.mrb[80].mxu0 }
 0x47a   :  { %v11651_v44 = vpop.f32.mrb[81].mxu0 }
 0x47b   :  { %v11714_v57 = vpop.f32.mrb[72].mxu1  ;;  %v11652_v49 = vadd.f32 %v11651_v44, %v11650_v15  ;;  %v11653_v41 = vpop.f32.mrb[82].mxu0 }
 0x47c   :  { %v11715_v38 = vpop.f32.mrb[73].mxu1  ;;  %v11654_v55 = vpop.f32.mrb[83].mxu0 }
 0x47d   :  { %v4334_v19 = vadd.f32 %v11652_v49, %v16537_v33  ;;  %v11716_v43 = vadd.f32 %v11715_v38, %v11714_v57  ;;  %v11717_v17 = vpop.f32.mrb[74].mxu1  ;;  %v11655_v40 = vadd.f32 %v11654_v55, %v11653_v41 }
 0x47e   :  { %v11718_v0 = vpop.f32.mrb[75].mxu1 }
 0x47f   :  { %v16585_v62 = vadd.f32 %v11716_v43, %v4334_v19  ;;  %v4335_v54 = vadd.f32 %v11655_v40, %v16540_v53  ;;  %v11719_v52 = vadd.f32 %v11718_v0, %v11717_v17 }
 0x481   :  { %v16588_v59 = vadd.f32 %v11719_v52, %v4335_v54  ;;  %v11656_v32 = vpop.f32.mrb[84].mxu0 }
 0x482   :  { %v11657_v34 = vpop.f32.mrb[85].mxu0 }
 0x483   :  { %v11720_v8 = vpop.f32.mrb[76].mxu1  ;;  %v11658_v7 = vadd.f32 %v11657_v34, %v11656_v32  ;;  %v11659_v27 = vpop.f32.mrb[86].mxu0 }
 0x484   :  { %v11721_v11 = vpop.f32.mrb[77].mxu1  ;;  %v11660_v25 = vpop.f32.mrb[87].mxu0 }
 0x485   :  { %v4336_v33 = vadd.f32 %v11658_v7, %v16543_v6  ;;  %v11722_v29 = vadd.f32 %v11721_v11, %v11720_v8  ;;  %v11723_v24 = vpop.f32.mrb[78].mxu1  ;;  %v11661_v14 = vadd.f32 %v11660_v25, %v11659_v27 }
 0x486   :  { %v11724_v56 = vpop.f32.mrb[79].mxu1 }
 0x487   :  { %v16591_v13 = vadd.f32 %v11722_v29, %v4336_v33  ;;  %v4337_v53 = vadd.f32 %v11661_v14, %v16546_v51  ;;  %v11725_v60 = vadd.f32 %v11724_v56, %v11723_v24 }
 0x489   :  { %v16597_v4 = vadd.f32 %v11725_v60, %v4337_v53  ;;  %v11742_v42 = vpop.f32.mrb[88].mxu0 }
 0x48a   :  { %v11743_v39 = vpop.f32.mrb[89].mxu0 }
 0x48b   :  { %v11806_v6 = vpop.f32.mrb[80].mxu1  ;;  %v11744_v31 = vadd.f32 %v11743_v39, %v11742_v42  ;;  %v11745_v20 = vpop.f32.mrb[90].mxu0 }
 0x48c   :  { %v11807_v16 = vpop.f32.mrb[81].mxu1  ;;  %v11746_v23 = vpop.f32.mrb[91].mxu0 }
 0x48d   :  { %v5350_v47 = vadd.f32 %v11744_v31, %v16549_v26  ;;  %v11808_v35 = vadd.f32 %v11807_v16, %v11806_v6  ;;  %v11809_v51 = vpop.f32.mrb[82].mxu1  ;;  %v11747_v45 = vadd.f32 %v11746_v23, %v11745_v20 }
 0x48e   :  { %v11810_v63 = vpop.f32.mrb[83].mxu1 }
 0x48f   :  { %v16600_v1 = vadd.f32 %v11808_v35, %v5350_v47  ;;  %v5351_v30 = vadd.f32 %v11747_v45, %v16552_v37  ;;  %v11811_v48 = vadd.f32 %v11810_v63, %v11809_v51 }
 0x491   :  { %v16603_v3 = vadd.f32 %v11811_v48, %v5351_v30  ;;  %v11748_v12 = vpop.f32.mrb[92].mxu0 }
 0x492   :  { %v11749_v22 = vpop.f32.mrb[93].mxu0 }
 0x493   :  { %v11812_v61 = vpop.f32.mrb[84].mxu1  ;;  %v11750_v15 = vadd.f32 %v11749_v22, %v11748_v12  ;;  %v11751_v44 = vpop.f32.mrb[94].mxu0 }
 0x494   :  { %v11813_v57 = vpop.f32.mrb[85].mxu1  ;;  %v11752_v49 = vpop.f32.mrb[95].mxu0 }
 0x495   :  { %v5352_v26 = vadd.f32 %v11750_v15, %v16555_v2  ;;  %v11814_v41 = vadd.f32 %v11813_v57, %v11812_v61  ;;  %v11815_v38 = vpop.f32.mrb[86].mxu1  ;;  %v11753_v55 = vadd.f32 %v11752_v49, %v11751_v44 }
 0x496   :  { %v11816_v19 = vpop.f32.mrb[87].mxu1 }
 0x497   :  { %v16606_v43 = vadd.f32 %v11814_v41, %v5352_v26  ;;  %v5353_v37 = vadd.f32 %v11753_v55, %v16558_v28  ;;  %v11817_v17 = vadd.f32 %v11816_v19, %v11815_v38 }
 0x499   :  { %v16609_v40 = vadd.f32 %v11817_v17, %v5353_v37  ;;  %v11754_v0 = vpop.f32.mrb[96].mxu0 }
 0x49a   :  { %v11755_v54 = vpop.f32.mrb[97].mxu0 }
 0x49b   :  { %v11818_v52 = vpop.f32.mrb[88].mxu1  ;;  %v11756_v32 = vadd.f32 %v11755_v54, %v11754_v0  ;;  %v11757_v34 = vpop.f32.mrb[98].mxu0 }
 0x49c   :  { %v11819_v8 = vpop.f32.mrb[89].mxu1  ;;  %v11758_v7 = vpop.f32.mrb[99].mxu0 }
 0x49d   :  { %v5354_v2 = vadd.f32 %v11756_v32, %v16561_v50  ;;  %v11820_v27 = vadd.f32 %v11819_v8, %v11818_v52  ;;  %v11821_v11 = vpop.f32.mrb[90].mxu1  ;;  %v11759_v25 = vadd.f32 %v11758_v7, %v11757_v34 }
 0x49e   :  { %v11822_v33 = vpop.f32.mrb[91].mxu1 }
 0x49f   :  { %v16612_v29 = vadd.f32 %v11820_v27, %v5354_v2  ;;  %v5355_v28 = vadd.f32 %v11759_v25, %v16564_v9  ;;  %v11823_v24 = vadd.f32 %v11822_v33, %v11821_v11  ;;  %v13209_v11 = vld [vmem:[%s18175_s11 + $0x48] sm:$0xff]   ;;  %v13210_v25 = vld [vmem:[%s18175_s11 + $0x50] sm:$0xff]  }
 0x4a0   :  { %12248 = vmatprep.subr.bf16.mxu0 %v13209_v11 }
 0x4a1   :  { %v16615_v14 = vadd.f32 %v11823_v24, %v5355_v28  ;;  %v11760_v56 = vpop.f32.mrb[100].mxu0  ;;  %12249 = vmatpush3.bf16.msra.mxu0 %v13209_v11 }
 0x4a2   :  { %v11761_v53 = vpop.f32.mrb[101].mxu0  ;;  %12250 = vmatprep.subr.bf16.mxu0 %v13210_v25 }
 0x4a3   :  { %v11824_v60 = vpop.f32.mrb[92].mxu1  ;;  %v11762_v46 = vadd.f32 %v11761_v53, %v11760_v56  ;;  %v11763_v42 = vpop.f32.mrb[102].mxu0 }
 0x4a4   :  { %v11825_v39 = vpop.f32.mrb[93].mxu1  ;;  %v11764_v6 = vpop.f32.mrb[103].mxu0 }
 0x4a5   :  { %v5356_v50 = vadd.f32 %v11762_v46, %v16567_v58  ;;  %v11826_v31 = vadd.f32 %v11825_v39, %v11824_v60  ;;  %v11827_v20 = vpop.f32.mrb[94].mxu1  ;;  %v11765_v16 = vadd.f32 %v11764_v6, %v11763_v42  ;;  %12251 = vmatpush3.bf16.msra.mxu0 %v13210_v25 }
 0x4a6   :  { %v11828_v23 = vpop.f32.mrb[95].mxu1 }
 0x4a7   :  { %v16618_v47 = vadd.f32 %v11826_v31, %v5356_v50  ;;  %v5357_v9 = vadd.f32 %v11765_v16, %v16570_v36  ;;  %v11829_v35 = vadd.f32 %v11828_v23, %v11827_v20 }
 0x4a9   :  { %v16621_v51 = vadd.f32 %v11829_v35, %v5357_v9  ;;  %v11766_v45 = vpop.f32.mrb[104].mxu0  ;;  %v13212_v9 = vld [vmem:[%s18175_s11 + $0x60] sm:$0xff]  }
 0x4aa   :  { %v11767_v63 = vpop.f32.mrb[105].mxu0 }
 0x4ab   :  { %v11830_v30 = vpop.f32.mrb[96].mxu1  ;;  %v11768_v48 = vadd.f32 %v11767_v63, %v11766_v45  ;;  %v11769_v12 = vpop.f32.mrb[106].mxu0 }
 0x4ac   :  { %v11831_v22 = vpop.f32.mrb[97].mxu1  ;;  %v11770_v61 = vpop.f32.mrb[107].mxu0 }
 0x4ad   :  { %v5358_v58 = vadd.f32 %v11768_v48, %v16573_v10  ;;  %v11832_v15 = vadd.f32 %v11831_v22, %v11830_v30  ;;  %v11833_v44 = vpop.f32.mrb[98].mxu1  ;;  %v11771_v57 = vadd.f32 %v11770_v61, %v11769_v12  ;;  %v13213_v12 = vld [vmem:[%s18175_s11 + $0x68] sm:$0xff]  }
 0x4ae   :  { %v11834_v49 = vpop.f32.mrb[99].mxu1 }
 0x4af   :  { %v16624_v26 = vadd.f32 %v11832_v15, %v5358_v58  ;;  %v5359_v36 = vadd.f32 %v11771_v57, %v16576_v21  ;;  %v11835_v41 = vadd.f32 %v11834_v49, %v11833_v44 }
 0x4b1   :  { %v16627_v38 = vadd.f32 %v11835_v41, %v5359_v36  ;;  %v11772_v55 = vpop.f32.mrb[108].mxu0 }
 0x4b2   :  { %v11773_v19 = vpop.f32.mrb[109].mxu0 }
 0x4b3   :  { %v11836_v37 = vpop.f32.mrb[100].mxu1  ;;  %v11774_v17 = vadd.f32 %v11773_v19, %v11772_v55  ;;  %v11775_v0 = vpop.f32.mrb[110].mxu0  ;;  %v13214_v55 = vld [vmem:[%s18175_s11 + $0x70] sm:$0xff]  }
 0x4b4   :  { %v11837_v54 = vpop.f32.mrb[101].mxu1  ;;  %v11776_v52 = vpop.f32.mrb[111].mxu0 }
 0x4b5   :  { %v5360_v10 = vadd.f32 %v11774_v17, %v16579_v5  ;;  %v11838_v32 = vadd.f32 %v11837_v54, %v11836_v37  ;;  %v11839_v34 = vpop.f32.mrb[102].mxu1  ;;  %v11777_v8 = vadd.f32 %v11776_v52, %v11775_v0  ;;  %v13215_v52 = vld [vmem:[%s18175_s11 + $0x78] sm:$0xff]  }
 0x4b6   :  { %v11840_v7 = vpop.f32.mrb[103].mxu1 }
 0x4b7   :  { %v16630_v2 = vadd.f32 %v11838_v32, %v5360_v10  ;;  %v5361_v21 = vadd.f32 %v11777_v8, %v16582_v18  ;;  %v11841_v27 = vadd.f32 %v11840_v7, %v11839_v34  ;;  %v13211_v18 = vld [vmem:[%s18175_s11 + $0x58] sm:$0xff]  }
 0x4b8   :  { %12252 = vmatprep.subr.bf16.mxu0 %v13211_v18 }
 0x4b9   :  { %v16639_v33 = vadd.f32 %v11841_v27, %v5361_v21  ;;  %v11778_v5 = vpop.f32.mrb[112].mxu0  ;;  %12253 = vmatpush3.bf16.msra.mxu0 %v13211_v18  ;;  %v16672_v21 = vld [vmem:[%s18172_s8] ss:$0 sm:$0xff] }
 0x4ba   :  { %v11779_v28 = vpop.f32.mrb[113].mxu0  ;;  %12254 = vmatprep.subr.bf16.mxu0 %v13212_v9 }
 0x4bb   :  { %v11842_v24 = vpop.f32.mrb[104].mxu1  ;;  %v11780_v56 = vadd.f32 %v11779_v28, %v11778_v5  ;;  %v11781_v53 = vpop.f32.mrb[114].mxu0  ;;  %v16678_v28 = vld [vmem:[%s18175_s11] sm:$0xff]  }
 0x4bc   :  { %v11843_v60 = vpop.f32.mrb[105].mxu1  ;;  %v11782_v46 = vpop.f32.mrb[115].mxu0 }
 0x4bd   :  { %v5362_v42 = vadd.f32 %v11780_v56, %v16585_v62  ;;  %v11844_v39 = vadd.f32 %v11843_v60, %v11842_v24  ;;  %v11845_v6 = vpop.f32.mrb[106].mxu1  ;;  %v11783_v50 = vadd.f32 %v11782_v46, %v11781_v53  ;;  %12255 = vmatpush3.bf16.msra.mxu0 %v13212_v9 }
 0x4be   :  { %v11846_v31 = vpop.f32.mrb[107].mxu1  ;;  %12256 = vmatprep.subr.bf16.mxu0 %v13213_v12 }
 0x4bf   :  { %v16645_v20 = vadd.f32 %v11844_v39, %v5362_v42  ;;  %v5363_v16 = vadd.f32 %v11783_v50, %v16588_v59  ;;  %v11847_v23 = vadd.f32 %v11846_v31, %v11845_v6 }
 0x4c1   :  { %v16651_v35 = vadd.f32 %v11847_v23, %v5363_v16  ;;  %v11784_v45 = vpop.f32.mrb[116].mxu0  ;;  %12257 = vmatpush3.bf16.msra.mxu0 %v13213_v12 }
 0x4c2   :  { %v11785_v63 = vpop.f32.mrb[117].mxu0  ;;  %12258 = vmatprep.subr.bf16.mxu0 %v13214_v55 }
 0x4c3   :  { %v11848_v62 = vpop.f32.mrb[108].mxu1  ;;  %v11786_v30 = vadd.f32 %v11785_v63, %v11784_v45  ;;  %v11787_v48 = vpop.f32.mrb[118].mxu0 }
 0x4c4   :  { %v11849_v59 = vpop.f32.mrb[109].mxu1  ;;  %v11788_v22 = vpop.f32.mrb[119].mxu0 }
 0x4c5   :  { %v5364_v61 = vadd.f32 %v11786_v30, %v16591_v13  ;;  %v11850_v58 = vadd.f32 %v11849_v59, %v11848_v62  ;;  %v11851_v15 = vpop.f32.mrb[110].mxu1  ;;  %v11789_v44 = vadd.f32 %v11788_v22, %v11787_v48  ;;  %12259 = vmatpush3.bf16.msra.mxu0 %v13214_v55 }
 0x4c6   :  { %v11852_v57 = vpop.f32.mrb[111].mxu1  ;;  %12260 = vmatprep.subr.bf16.mxu0 %v13215_v52 }
 0x4c7   :  { %v16657_v49 = vadd.f32 %v11850_v58, %v5364_v61  ;;  %v5365_v36 = vadd.f32 %v11789_v44, %v16597_v4  ;;  %v11853_v41 = vadd.f32 %v11852_v57, %v11851_v15 }
 0x4c9   :  { %v16663_v19 = vadd.f32 %v11853_v41, %v5365_v36  ;;  %v11870_v37 = vpop.f32.mrb[120].mxu0  ;;  %12261 = vmatpush3.bf16.msra.mxu0 %v13215_v52 }
 0x4ca   :  { %v11871_v17 = vpop.f32.mrb[121].mxu0  ;;  %12278 = vmatprep.subr.bf16.mxu0 %v16678_v28 }
 0x4cb   :  { %v11934_v13 = vpop.f32.mrb[112].mxu1  ;;  %v11872_v0 = vadd.f32 %v11871_v17, %v11870_v37  ;;  %v11873_v54 = vpop.f32.mrb[122].mxu0 }
 0x4cc   :  { %v11935_v4 = vpop.f32.mrb[113].mxu1  ;;  %v11874_v10 = vpop.f32.mrb[123].mxu0 }
 0x4cd   :  { %v6155_v32 = vadd.f32 %v11872_v0, %v16600_v1  ;;  %v11936_v34 = vadd.f32 %v11935_v4, %v11934_v13  ;;  %v11937_v8 = vpop.f32.mrb[114].mxu1  ;;  %v11875_v7 = vadd.f32 %v11874_v10, %v11873_v54 }
 0x4ce   :  { %v11938_v27 = vpop.f32.mrb[115].mxu1 }
 0x4cf   :  { %v6669_v11 = vadd.f32 %v11936_v34, %v6155_v32  ;;  %v6156_v25 = vadd.f32 %v11875_v7, %v16603_v3  ;;  %v11939_v5 = vadd.f32 %v11938_v27, %v11937_v8 }
 0x4d1   :  { %v16681_v1 = vadd.f32 %v16672_v21, %v6669_v11  ;;  %v6670_v24 = vadd.f32 %v11939_v5, %v6156_v25  ;;  %v11876_v56 = vpop.f32.mrb[124].mxu0 }
 0x4d2   :  { %v11877_v53 = vpop.f32.mrb[125].mxu0 }
 0x4d3   :  { %v16684_v18 = vadd.f32 %v16672_v21, %v6670_v24  ;;  %v11940_v60 = vpop.f32.mrb[116].mxu1  ;;  %v11878_v46 = vadd.f32 %v11877_v53, %v11876_v56  ;;  %v11879_v3 = vpop.f32.mrb[126].mxu0  ;;  %v6732_v42 = vmul.f32 %v16681_v1, %v16681_v1 }
 0x4d4   :  { %v11941_v39 = vpop.f32.mrb[117].mxu1  ;;  %v11880_v6 = vpop.f32.mrb[127].mxu0 }
 0x4d5   :  { %v6710_v50 = vadd.f32 %v16684_v18, %v16681_v1  ;;  %v6733_v31 = vmul.f32 %v16684_v18, %v16684_v18  ;;  %v6157_v16 = vadd.f32 %v11878_v46, %v16606_v43  ;;  %v11942_v23 = vadd.f32 %v11941_v39, %v11940_v60  ;;  %v11943_v9 = vpop.f32.mrb[118].mxu1 }
 0x4d6   :  { %v11881_v45 = vadd.f32 %v11880_v6, %v11879_v3  ;;  %v11944_v63 = vpop.f32.mrb[119].mxu1 }
 0x4d7   :  { %v6748_v62 = vadd.f32 %v6733_v31, %v6732_v42  ;;  %v6671_v30 = vadd.f32 %v11942_v23, %v6157_v16  ;;  %v11945_v48 = vadd.f32 %v11944_v63, %v11943_v9 }
 0x4d8   :  { %v6158_v12 = vadd.f32 %v11881_v45, %v16609_v40 }
 0x4d9   :  { %v16696_v59 = vadd.f32 %v16672_v21, %v6671_v30  ;;  %v11882_v22 = vpop.f32.mrb[128].mxu0 }
 0x4da   :  { %v6672_v61 = vadd.f32 %v11945_v48, %v6158_v12  ;;  %v11883_v58 = vpop.f32.mrb[129].mxu0 }
 0x4db   :  { %v6711_v15 = vadd.f32 %v6710_v50, %v16696_v59  ;;  %v6734_v43 = vmul.f32 %v16696_v59, %v16696_v59  ;;  %v11946_v44 = vpop.f32.mrb[120].mxu1  ;;  %v11884_v57 = vadd.f32 %v11883_v58, %v11882_v22  ;;  %v11885_v36 = vpop.f32.mrb[130].mxu0 }
 0x4dc   :  { %v16702_v41 = vadd.f32 %v16672_v21, %v6672_v61  ;;  %v11947_v55 = vpop.f32.mrb[121].mxu1  ;;  %v11886_v37 = vpop.f32.mrb[131].mxu0 }
 0x4dd   :  { %v6749_v40 = vadd.f32 %v6748_v62, %v6734_v43  ;;  %v6159_v17 = vadd.f32 %v11884_v57, %v16612_v29  ;;  %v11948_v13 = vadd.f32 %v11947_v55, %v11946_v44  ;;  %v11949_v0 = vpop.f32.mrb[122].mxu1  ;;  %v11887_v54 = vadd.f32 %v11886_v37, %v11885_v36 }
 0x4de   :  { %v6712_v52 = vadd.f32 %v6711_v15, %v16702_v41  ;;  %v6735_v4 = vmul.f32 %v16702_v41, %v16702_v41  ;;  %v11950_v10 = vpop.f32.mrb[123].mxu1 }
 0x4df   :  { %v6673_v32 = vadd.f32 %v11948_v13, %v6159_v17  ;;  %v6160_v34 = vadd.f32 %v11887_v54, %v16615_v14  ;;  %v11951_v8 = vadd.f32 %v11950_v10, %v11949_v0 }
 0x4e0   :  { %v6750_v7 = vadd.f32 %v6749_v40, %v6735_v4 }
 0x4e1   :  { %v16710_v27 = vadd.f32 %v16672_v21, %v6673_v32  ;;  %v6674_v11 = vadd.f32 %v11951_v8, %v6160_v34  ;;  %v11888_v25 = vpop.f32.mrb[132].mxu0 }
 0x4e2   :  { %v11889_v29 = vpop.f32.mrb[133].mxu0 }
 0x4e3   :  { %v6713_v5 = vadd.f32 %v6712_v52, %v16710_v27  ;;  %v6736_v24 = vmul.f32 %v16710_v27, %v16710_v27  ;;  %v16716_v56 = vadd.f32 %v16672_v21, %v6674_v11  ;;  %v11952_v53 = vpop.f32.mrb[124].mxu1  ;;  %v11890_v60 = vadd.f32 %v11889_v29, %v11888_v25  ;;  %v11891_v46 = vpop.f32.mrb[134].mxu0 }
 0x4e4   :  { %v11953_v14 = vpop.f32.mrb[125].mxu1  ;;  %v11892_v3 = vpop.f32.mrb[135].mxu0 }
 0x4e5   :  { %v6751_v42 = vadd.f32 %v6750_v7, %v6736_v24  ;;  %v6714_v39 = vadd.f32 %v6713_v5, %v16716_v56  ;;  %v6737_v6 = vmul.f32 %v16716_v56, %v16716_v56  ;;  %v6161_v50 = vadd.f32 %v11890_v60, %v16618_v47  ;;  %v11955_v31 = vpop.f32.mrb[126].mxu1 }
 0x4e6   :  { %v11954_v16 = vadd.f32 %v11953_v14, %v11952_v53  ;;  %v11893_v23 = vadd.f32 %v11892_v3, %v11891_v46  ;;  %v11956_v9 = vpop.f32.mrb[127].mxu1 }
 0x4e7   :  { %v6752_v45 = vadd.f32 %v6751_v42, %v6737_v6  ;;  %v11957_v63 = vadd.f32 %v11956_v9, %v11955_v31 }
 0x4e8   :  { %v6675_v62 = vadd.f32 %v11954_v16, %v6161_v50  ;;  %v6162_v30 = vadd.f32 %v11893_v23, %v16621_v51 }
 0x4e9   :  { %v11894_v48 = vpop.f32.mrb[136].mxu0 }
 0x4ea   :  { %v16724_v12 = vadd.f32 %v16672_v21, %v6675_v62  ;;  %v6676_v22 = vadd.f32 %v11957_v63, %v6162_v30  ;;  %v11895_v61 = vpop.f32.mrb[137].mxu0 }
 0x4eb   :  { %v11958_v58 = vpop.f32.mrb[128].mxu1  ;;  %v11896_v15 = vadd.f32 %v11895_v61, %v11894_v48  ;;  %v11897_v43 = vpop.f32.mrb[138].mxu0 }
 0x4ec   :  { %v6715_v47 = vadd.f32 %v6714_v39, %v16724_v12  ;;  %v6738_v44 = vmul.f32 %v16724_v12, %v16724_v12  ;;  %v16730_v57 = vadd.f32 %v16672_v21, %v6676_v22  ;;  %v11959_v36 = vpop.f32.mrb[129].mxu1  ;;  %v11898_v55 = vpop.f32.mrb[139].mxu0 }
 0x4ed   :  { %v6163_v51 = vadd.f32 %v11896_v15, %v16624_v26  ;;  %v11960_v37 = vadd.f32 %v11959_v36, %v11958_v58  ;;  %v11961_v40 = vpop.f32.mrb[130].mxu1  ;;  %v11899_v17 = vadd.f32 %v11898_v55, %v11897_v43 }
 0x4ee   :  { %v6753_v13 = vadd.f32 %v6752_v45, %v6738_v44  ;;  %v6716_v0 = vadd.f32 %v6715_v47, %v16730_v57  ;;  %v6739_v54 = vmul.f32 %v16730_v57, %v16730_v57  ;;  %v11962_v52 = vpop.f32.mrb[131].mxu1 }
 0x4ef   :  { %v6677_v4 = vadd.f32 %v11960_v37, %v6163_v51  ;;  %v6164_v10 = vadd.f32 %v11899_v17, %v16627_v38  ;;  %v11963_v32 = vadd.f32 %v11962_v52, %v11961_v40 }
 0x4f0   :  { %v6754_v34 = vadd.f32 %v6753_v13, %v6739_v54 }
 0x4f1   :  { %v16738_v8 = vadd.f32 %v16672_v21, %v6677_v4  ;;  %v6678_v7 = vadd.f32 %v11963_v32, %v6164_v10  ;;  %v11900_v26 = vpop.f32.mrb[140].mxu0 }
 0x4f2   :  { %v11901_v11 = vpop.f32.mrb[141].mxu0 }
 0x4f3   :  { %v6717_v25 = vadd.f32 %v6716_v0, %v16738_v8  ;;  %v6740_v29 = vmul.f32 %v16738_v8, %v16738_v8  ;;  %v16744_v5 = vadd.f32 %v16672_v21, %v6678_v7  ;;  %v11964_v24 = vpop.f32.mrb[132].mxu1  ;;  %v11902_v53 = vadd.f32 %v11901_v11, %v11900_v26  ;;  %v11903_v60 = vpop.f32.mrb[142].mxu0 }
 0x4f4   :  { %v11965_v38 = vpop.f32.mrb[133].mxu1  ;;  %v11904_v46 = vpop.f32.mrb[143].mxu0 }
 0x4f5   :  { %v6755_v14 = vadd.f32 %v6754_v34, %v6740_v29  ;;  %v6718_v3 = vadd.f32 %v6717_v25, %v16744_v5  ;;  %v6741_v42 = vmul.f32 %v16744_v5, %v16744_v5  ;;  %v6165_v39 = vadd.f32 %v11902_v53, %v16630_v2  ;;  %v11967_v6 = vpop.f32.mrb[134].mxu1 }
 0x4f6   :  { %v11966_v50 = vadd.f32 %v11965_v38, %v11964_v24  ;;  %v11905_v31 = vadd.f32 %v11904_v46, %v11903_v60  ;;  %v11968_v16 = vpop.f32.mrb[135].mxu1 }
 0x4f7   :  { %v6756_v23 = vadd.f32 %v6755_v14, %v6741_v42  ;;  %v11969_v9 = vadd.f32 %v11968_v16, %v11967_v6 }
 0x4f8   :  { %v6679_v45 = vadd.f32 %v11966_v50, %v6165_v39  ;;  %v6166_v63 = vadd.f32 %v11905_v31, %v16639_v33 }
 0x4f9   :  { %v11906_v62 = vpop.f32.mrb[144].mxu0 }
 0x4fa   :  { %v16752_v30 = vadd.f32 %v16672_v21, %v6679_v45  ;;  %v6680_v48 = vadd.f32 %v11969_v9, %v6166_v63  ;;  %v11907_v22 = vpop.f32.mrb[145].mxu0 }
 0x4fb   :  { %v11970_v61 = vpop.f32.mrb[136].mxu1  ;;  %v11908_v58 = vadd.f32 %v11907_v22, %v11906_v62  ;;  %v11909_v15 = vpop.f32.mrb[146].mxu0 }
 0x4fc   :  { %v6719_v2 = vadd.f32 %v6718_v3, %v16752_v30  ;;  %v6742_v43 = vmul.f32 %v16752_v30, %v16752_v30  ;;  %v16758_v47 = vadd.f32 %v16672_v21, %v6680_v48  ;;  %v11971_v44 = vpop.f32.mrb[137].mxu1  ;;  %v11910_v36 = vpop.f32.mrb[147].mxu0 }
 0x4fd   :  { %v6167_v33 = vadd.f32 %v11908_v58, %v16645_v20  ;;  %v11972_v55 = vadd.f32 %v11971_v44, %v11970_v61  ;;  %v11973_v51 = vpop.f32.mrb[138].mxu1  ;;  %v11911_v37 = vadd.f32 %v11910_v36, %v11909_v15 }
 0x4fe   :  { %v6757_v40 = vadd.f32 %v6756_v23, %v6742_v43  ;;  %v6720_v17 = vadd.f32 %v6719_v2, %v16758_v47  ;;  %v6743_v13 = vmul.f32 %v16758_v47, %v16758_v47  ;;  %v11974_v0 = vpop.f32.mrb[139].mxu1 }
 0x4ff   :  { %v6681_v54 = vadd.f32 %v11972_v55, %v6167_v33  ;;  %v6168_v52 = vadd.f32 %v11911_v37, %v16651_v35  ;;  %v11975_v4 = vadd.f32 %v11974_v0, %v11973_v51 }
 0x500   :  { %v6758_v10 = vadd.f32 %v6757_v40, %v6743_v13 }
 0x501   :  { %v16766_v32 = vadd.f32 %v16672_v21, %v6681_v54  ;;  %v6682_v34 = vadd.f32 %v11975_v4, %v6168_v52  ;;  %v11912_v20 = vpop.f32.mrb[148].mxu0 }
 0x502   :  { %v11913_v7 = vpop.f32.mrb[149].mxu0 }
 0x503   :  { %v6721_v26 = vadd.f32 %v6720_v17, %v16766_v32  ;;  %v6744_v11 = vmul.f32 %v16766_v32, %v16766_v32  ;;  %v16772_v25 = vadd.f32 %v16672_v21, %v6682_v34  ;;  %v11976_v29 = vpop.f32.mrb[140].mxu1  ;;  %v11914_v24 = vadd.f32 %v11913_v7, %v11912_v20  ;;  %v11915_v53 = vpop.f32.mrb[150].mxu0 }
 0x504   :  { %v11977_v35 = vpop.f32.mrb[141].mxu1  ;;  %v11916_v60 = vpop.f32.mrb[151].mxu0 }
 0x505   :  { %v6759_v38 = vadd.f32 %v6758_v10, %v6744_v11  ;;  %v6722_v46 = vadd.f32 %v6721_v26, %v16772_v25  ;;  %v6745_v14 = vmul.f32 %v16772_v25, %v16772_v25  ;;  %v6169_v3 = vadd.f32 %v11914_v24, %v16657_v49  ;;  %v11979_v42 = vpop.f32.mrb[142].mxu1 }
 0x506   :  { %v11978_v39 = vadd.f32 %v11977_v35, %v11976_v29  ;;  %v11917_v6 = vadd.f32 %v11916_v60, %v11915_v53  ;;  %v11980_v50 = vpop.f32.mrb[143].mxu1 }
 0x507   :  { %v6760_v31 = vadd.f32 %v6759_v38, %v6745_v14  ;;  %v11981_v16 = vadd.f32 %v11980_v50, %v11979_v42 }
 0x508   :  { %v6683_v23 = vadd.f32 %v11978_v39, %v6169_v3  ;;  %v6170_v9 = vadd.f32 %v11917_v6, %v16663_v19 }
 0x50a   :  { %v6706_v45 = vadd.f32 %v16672_v21, %v6683_v23  ;;  %v6684_v63 = vadd.f32 %v11981_v16, %v6170_v9 }
 0x50c   :  { %v6723_v62 = vadd.f32 %v6722_v46, %v6706_v45  ;;  %v6746_v48 = vmul.f32 %v6706_v45, %v6706_v45  ;;  %v6707_v22 = vadd.f32 %v16672_v21, %v6684_v63 }
 0x50e   :  { %v6761_v61 = vadd.f32 %v6760_v31, %v6746_v48  ;;  %v6724_v58 = vadd.f32 %v6723_v62, %v6707_v22  ;;  %v6747_v15 = vmul.f32 %v6707_v22, %v6707_v22 }
 0x510   :  { %v6725_v49 = vrot.slane %v6724_v58, 4  ;;  %v6762_v2 = vadd.f32 %v6761_v61, %v6747_v15 }
 0x512   :  { %v6726_v43 = vadd.f32 %v6725_v49, %v6724_v58  ;;  %v6763_v44 = vrot.slane %v6762_v2, 4 }
 0x514   :  { %v6727_v36 = vrot.slane %v6726_v43, 2  ;;  %v6764_v33 = vadd.f32 %v6763_v44, %v6762_v2  ;;  %v6964_v44 = vld [vmem:[#allocation5 + $0x1] sm:$0xff] }
 0x516   :  { %v6728_v55 = vadd.f32 %v6727_v36, %v6726_v43  ;;  %v6765_v51 = vrot.slane %v6764_v33, 2 }
 0x518   :  { %v6729_v37 = vrot.slane %v6728_v55, 1  ;;  %v6766_v19 = vadd.f32 %v6765_v51, %v6764_v33 }
 0x51a   :  { %v6730_v40 = vadd.f32 %v6729_v37, %v6728_v55  ;;  %v6767_v17 = vrot.slane %v6766_v19, 1 }
 0x51c   :  { %v6731_v13 = vmul.f32 0.0078125, %v6730_v40  ;;  %v6768_v0 = vadd.f32 %v6767_v17, %v6766_v19 }
 0x51e   :  { %v6769_v54 = vmul.f32 0.0078125, %v6768_v0  ;;  %v6770_v52 = vmul.f32 %v6731_v13, %v6731_v13  ;;  %v6788_v21 = vsub.f32 %v6707_v22, %v6731_v13  ;;  %v6773_v4 = vsub.f32 %v16681_v1, %v6731_v13 }
 0x51f   :  { %v6774_v10 = vsub.f32 %v16684_v18, %v6731_v13  ;;  %v6775_v34 = vsub.f32 %v16696_v59, %v6731_v13  ;;  %v6776_v20 = vsub.f32 %v16702_v41, %v6731_v13  ;;  %v6777_v7 = vsub.f32 %v16710_v27, %v6731_v13 }
 0x520   :  { %v6771_v26 = vsub.f32 %v6769_v54, %v6770_v52  ;;  %v6778_v11 = vsub.f32 %v16716_v56, %v6731_v13  ;;  %v6779_v24 = vsub.f32 %v16724_v12, %v6731_v13  ;;  %v6781_v53 = vsub.f32 %v16738_v8, %v6731_v13  ;;  %v11006_v12 = vld [vmem:[%s18173_s9] ss:$0 sm:$0xff] }
 0x521   :  { %v6782_v35 = vsub.f32 %v16744_v5, %v6731_v13  ;;  %v6783_v1 = vsub.f32 %v16752_v30, %v6731_v13  ;;  %v6784_v18 = vsub.f32 %v16758_v47, %v6731_v13  ;;  %v6785_v59 = vsub.f32 %v16766_v32, %v6731_v13 }
 0x522   :  { %v6772_v29 = vmax.f32 %v6771_v26, 0.0  ;;  %v6786_v41 = vsub.f32 %v16772_v25, %v6731_v13  ;;  %v6787_v27 = vsub.f32 %v6706_v45, %v6731_v13  ;;  %v6780_v56 = vsub.f32 %v16730_v57, %v6731_v13  ;;  %v16801_v57 = vld [vmem:[%s18174_s10] ss:$0 sm:$0xff] }
 0x523   :  { %v6810_v8 = vmul.f32 %v11006_v12, %v6788_v21  ;;  %v6795_v38 = vmul.f32 %v11006_v12, %v6773_v4  ;;  %v6796_v5 = vmul.f32 %v11006_v12, %v6774_v10  ;;  %v6797_v46 = vmul.f32 %v11006_v12, %v6775_v34 }
 0x524   :  { %v6811_v60 = vadd.f32 1e-05, %v6772_v29  ;;  %v6798_v30 = vmul.f32 %v11006_v12, %v6776_v20  ;;  %v6799_v14 = vmul.f32 %v11006_v12, %v6777_v7  ;;  %v6800_v47 = vmul.f32 %v11006_v12, %v6778_v11  ;;  %v13217_v7 = vld [vmem:[%s18175_s11 + $0x8] sm:$0xff]  }
 0x525   :  { %v6801_v3 = vmul.f32 %v11006_v12, %v6779_v24  ;;  %v6803_v32 = vmul.f32 %v11006_v12, %v6781_v53  ;;  %v6804_v42 = vmul.f32 %v11006_v12, %v6782_v35  ;;  %v6805_v39 = vmul.f32 %v11006_v12, %v6783_v1 }
 0x526   :  { %13320 = vrsqrt.f32 %v6811_v60  ;;  %v6806_v25 = vmul.f32 %v11006_v12, %v6784_v18  ;;  %v6807_v50 = vmul.f32 %v11006_v12, %v6785_v59  ;;  %v6808_v31 = vmul.f32 %v11006_v12, %v6786_v41 }
 0x527   :  { %v6809_v16 = vmul.f32 %v11006_v12, %v6787_v27  ;;  %v6802_v23 = vmul.f32 %v11006_v12, %v6780_v56 }
 0x530   :  { %v13321_v6 = vpop.eup %13320 }
 0x531   :  { %v6828_v9 = vmul.f32 %v13321_v6, %v6810_v8  ;;  %v6813_v45 = vmul.f32 %v13321_v6, %v6795_v38  ;;  %v6814_v63 = vmul.f32 %v13321_v6, %v6796_v5  ;;  %v6815_v62 = vmul.f32 %v13321_v6, %v6797_v46  ;;  %v13218_v38 = vld [vmem:[%s18175_s11 + $0x10] sm:$0xff]  }
 0x532   :  { %v6816_v48 = vmul.f32 %v13321_v6, %v6798_v30  ;;  %v6817_v22 = vmul.f32 %v13321_v6, %v6799_v14  ;;  %v6818_v61 = vmul.f32 %v13321_v6, %v6800_v47  ;;  %v6819_v58 = vmul.f32 %v13321_v6, %v6801_v3 }
 0x533   :  { %v16804_v15 = vadd.f32 %v16801_v57, %v6828_v9  ;;  %v6835_v49 = vadd.f32 %v16801_v57, %v6813_v45  ;;  %v6836_v2 = vadd.f32 %v16801_v57, %v6814_v63  ;;  %v6837_v43 = vadd.f32 %v16801_v57, %v6815_v62  ;;  %v13220_v63 = vld [vmem:[%s18175_s11 + $0x20] sm:$0xff]   ;;  %v13221_v62 = vld [vmem:[%s18175_s11 + $0x28] sm:$0xff]   ;;  %v13239_v9 = vld [vmem:[%s18175_s11 + $0xf8] sm:$0xff]  }
 0x534   :  { %v6838_v36 = vadd.f32 %v16801_v57, %v6816_v48  ;;  %v6839_v33 = vadd.f32 %v16801_v57, %v6817_v22  ;;  %v6840_v55 = vadd.f32 %v16801_v57, %v6818_v61  ;;  %v6841_v51 = vadd.f32 %v16801_v57, %v6819_v58  ;;  %v13222_v61 = vld [vmem:[%s18175_s11 + $0x30] sm:$0xff]   ;;  %v13237_v45 = vld [vmem:[%s18175_s11 + $0xe8] sm:$0xff]  }
 0x535   :  { %v6866_v37 = vmax.f32 %v16804_v15, 0.0  ;;  %v16814_v19 = vmax.f32 %v6835_v49, 0.0  ;;  %v16816_v40 = vmax.f32 %v6836_v2, 0.0  ;;  %v16818_v17 = vmax.f32 %v6837_v43, 0.0  ;;  %v13223_v49 = vld [vmem:[%s18175_s11 + $0x38] sm:$0xff]  }
 0x536   :  { %v16820_v13 = vmax.f32 %v6838_v36, 0.0  ;;  %v16822_v0 = vmax.f32 %v6839_v33, 0.0  ;;  %v16824_v54 = vmax.f32 %v6840_v55, 0.0  ;;  %v16826_v52 = vmax.f32 %v6841_v51, 0.0  ;;  %v16927_v36 = vld [vmem:[#allocation4] sm:$0xff] }
 0x537   :  { %6923 = vst [vmem:[#allocation5 + $0x121] sm:$0xff] %v6866_v37  ;;  %6908 = vst [vmem:[#allocation5 + $0x11] sm:$0xff] %v16814_v19  ;;  %v6980_v21 = vpack.c.bf16 %v16814_v19, %v6964_v44  ;;  %v6981_v4 = vpack.c.bf16 %v16818_v17, %v16816_v40  ;;  %v6821_v10 = vmul.f32 %v13321_v6, %v6803_v32  ;;  %v6972_v32 = vld [vmem:[#allocation5 + $0xa1] sm:$0xff] }
 0x538   :  { %6909 = vst [vmem:[#allocation5 + $0x21] sm:$0xff] %v16816_v40  ;;  %6910 = vst [vmem:[#allocation5 + $0x31] sm:$0xff] %v16818_v17  ;;  %v6822_v34 = vmul.f32 %v13321_v6, %v6804_v42  ;;  %v6982_v20 = vpack.c.bf16 %v16822_v0, %v16820_v13  ;;  %v6983_v26 = vpack.c.bf16 %v16826_v52, %v16824_v54  ;;  %v13224_v51 = vld [vmem:[%s18175_s11 + $0x80] sm:$0xff]  }
 0x539   :  { %6911 = vst [vmem:[#allocation5 + $0x41] sm:$0xff] %v16820_v13  ;;  %6912 = vst [vmem:[#allocation5 + $0x51] sm:$0xff] %v16822_v0  ;;  %v6823_v11 = vmul.f32 %v13321_v6, %v6805_v39  ;;  %v6824_v29 = vmul.f32 %v13321_v6, %v6806_v25  ;;  %12262 = vmatprep.mubr.bf16.mxu0 %v6980_v21  ;;  %v6843_v24 = vadd.f32 %v16801_v57, %v6821_v10 }
 0x53a   :  { %6913 = vst [vmem:[#allocation5 + $0x61] sm:$0xff] %v16824_v54  ;;  %6914 = vst [vmem:[#allocation5 + $0x71] sm:$0xff] %v16826_v52  ;;  %v6844_v53 = vadd.f32 %v16801_v57, %v6822_v34  ;;  %v6825_v35 = vmul.f32 %v13321_v6, %v6807_v50  ;;  %v6826_v1 = vmul.f32 %v13321_v6, %v6808_v31  ;;  %12263 = vmatmul.mubr.bf16.vlgmr.msra.gmra.mrb[152].mxu0 %v6981_v4  ;;  %v13219_v50 = vld [vmem:[%s18175_s11 + $0x18] sm:$0xff]  }
 0x53b   :  { %v6845_v18 = vadd.f32 %v16801_v57, %v6823_v11  ;;  %v6846_v59 = vadd.f32 %v16801_v57, %v6824_v29  ;;  %v6827_v60 = vmul.f32 %v13321_v6, %v6809_v16  ;;  %v6820_v41 = vmul.f32 %v13321_v6, %v6802_v23  ;;  %12279 = vmatpush3.bf16.msra.mxu0 %v16678_v28  ;;  %v13233_v29 = vld [vmem:[%s18175_s11 + $0xc8] sm:$0xff]  }
 0x53c   :  { %12266 = vmatprep.mubr.bf16.mxu0 %v6982_v20  ;;  %v16852_v27 = vmax.f32 %v6843_v24, 0.0  ;;  %v16854_v56 = vmax.f32 %v6844_v53, 0.0  ;;  %v6847_v12 = vadd.f32 %v16801_v57, %v6825_v35  ;;  %v6848_v8 = vadd.f32 %v16801_v57, %v6826_v1  ;;  %12280 = vmatprep.subr.bf16.mxu0 %v13217_v7  ;;  %v13226_v35 = vld [vmem:[%s18175_s11 + $0x90] sm:$0xff]   ;;  %v13241_v6 = vld [vmem:[%s18175_s11 + $0x108] sm:$0xff]   ;;  %8925 = vst.msk [vmem:[#allocation6] sm:$0xff] %vm8735_vm5, %v16927_v36 }
 0x53d   :  { %v16861_v5 = vmax.f32 %v6845_v18, 0.0  ;;  %v16863_v46 = vmax.f32 %v6846_v59, 0.0  ;;  %v6849_v28 = vadd.f32 %v16801_v57, %v6827_v60  ;;  %v6842_v30 = vadd.f32 %v16801_v57, %v6820_v41  ;;  %v13227_v41 = vld [vmem:[%s18175_s11 + $0x98] sm:$0xff]   ;;  %8928 = vst.msk [vmem:[#allocation6 + $0x10] sm:$0xff] %vm8735_vm5, %v16927_v36  ;;  %8930 = vst.msk [vmem:[#allocation6 + $0x20] sm:$0xff] %vm8735_vm5, %v16927_v36 }
 0x53e   :  { %6916 = vst [vmem:[#allocation5 + $0xb1] sm:$0xff] %v16852_v27  ;;  %6917 = vst [vmem:[#allocation5 + $0xc1] sm:$0xff] %v16854_v56  ;;  %v16869_v14 = vmax.f32 %v6847_v12, 0.0  ;;  %v16871_v47 = vmax.f32 %v6848_v8, 0.0  ;;  %v7715_v3 = vpack.c.bf16 %v16816_v40, %v16814_v19  ;;  %v6984_v16 = vpack.c.bf16 %v16852_v27, %v6972_v32  ;;  %v16914_v58 = vld [vmem:[#allocation5 + $0x10] sm:$0xff] }
 0x53f   :  { %6918 = vst [vmem:[#allocation5 + $0xd1] sm:$0xff] %v16861_v5  ;;  %v6985_v42 = vpack.c.bf16 %v16861_v5, %v16854_v56  ;;  %6919 = vst [vmem:[#allocation5 + $0xe1] sm:$0xff] %v16863_v46  ;;  %v6865_v39 = vmax.f32 %v6849_v28, 0.0  ;;  %v16879_v25 = vmax.f32 %v6842_v30, 0.0  ;;  %12281 = vmatpush3.bf16.msra.mxu0 %v13217_v7  ;;  %v16919_v2 = vld [vmem:[#allocation5 + $0x12] sm:$0xff]  ;;  %v16921_v43 = vld [vmem:[#allocation5 + $0x22] sm:$0xff]  ;;  %v6940_v33 = vpack.c.bf16 %v16914_v58, %v16927_v36 }
 0x540   :  { %6920 = vst [vmem:[#allocation5 + $0xf1] sm:$0xff] %v16869_v14  ;;  %v6986_v57 = vpack.c.bf16 %v16869_v14, %v16863_v46  ;;  %6921 = vst [vmem:[#allocation5 + $0x101] sm:$0xff] %v16871_v47  ;;  %12282 = vmatprep.subr.bf16.mxu0 %v13218_v38  ;;  %v16937_v15 = vld [vmem:[#allocation5 + $0x20] sm:$0xff]  ;;  %v16941_v21 = vld [vmem:[#allocation5 + $0x32] sm:$0xff]  ;;  %v18629_v19 = vpack.c.bf16 %v16824_v54, %v16822_v0 }
 0x541   :  { %6922 = vst [vmem:[#allocation5 + $0x111] sm:$0xff] %v6865_v39  ;;  %v16891_v31 = vpack.c.bf16 %v6865_v39, %v16871_v47  ;;  %6915 = vst [vmem:[#allocation5 + $0x81] sm:$0xff] %v16879_v25  ;;  %v16925_v44 = vpack.c.bf16 %v6866_v37, %v6865_v39  ;;  %v16939_v37 = vld [vmem:[#allocation5 + $0x30] sm:$0xff]  ;;  %v16943_v4 = vld [vmem:[#allocation5 + $0x42] sm:$0xff]  ;;  %v17052_v53 = vpack.c.bf16 %v16941_v21, %v16921_v43 }
 0x542   :  { %12267 = vmatmul.mubr.bf16.gmra.mrb[156].mxu0 %v6983_v26  ;;  %v16945_v10 = vld [vmem:[#allocation5 + $0x40] sm:$0xff]  ;;  %v16947_v34 = vld [vmem:[#allocation5 + $0x50] sm:$0xff]  ;;  %v16951_v20 = vpack.c.bf16 %v16939_v37, %v16937_v15  ;;  %v13225_v7 = vld [vmem:[%s18175_s11 + $0x88] sm:$0xff]   ;;  %8932 = vst.msk [vmem:[#allocation6 + $0x30] sm:$0xff] %vm8735_vm5, %v16927_v36 }
 0x543   :  { %12283 = vmatpush3.bf16.msra.mxu0 %v13218_v38  ;;  %12270 = vmatprep.mubr.bf16.mxu0 %v6984_v16  ;;  %v16956_v26 = vld [vmem:[#allocation5 + $0x52] sm:$0xff]  ;;  %v16958_v11 = vld [vmem:[#allocation5 + $0x62] sm:$0xff]  ;;  %v16964_v24 = vpack.c.bf16 %v16947_v34, %v16945_v10  ;;  %v7514_v23 = vpack.c.bf16 %v16945_v10, %v16939_v37  ;;  %8934 = vst.msk [vmem:[#allocation6 + $0x40] sm:$0xff] %vm8735_vm5, %v16927_v36  ;;  %8936 = vst.msk [vmem:[#allocation6 + $0x50] sm:$0xff] %vm8735_vm5, %v16927_v36 }
 0x544   :  { %12284 = vmatprep.subr.bf16.mxu0 %v13219_v50  ;;  %v16973_v1 = vld [vmem:[#allocation5 + $0x60] sm:$0xff]  ;;  %v16975_v18 = vld [vmem:[#allocation5 + $0x70] sm:$0xff]  ;;  %v13243_v10 = vld [vmem:[%s18175_s11 + $0x118] sm:$0xff]   ;;  %8938 = vst.msk [vmem:[#allocation6 + $0x60] sm:$0xff] %vm8735_vm5, %v16927_v36 }
 0x545   :  { %v16977_v59 = vld [vmem:[#allocation5 + $0xb0] sm:$0xff]  ;;  %v16981_v60 = vpack.c.bf16 %v16975_v18, %v16973_v1  ;;  %v16988_v8 = vld [vmem:[#allocation5 + $0xc2] sm:$0xff]  ;;  %8940 = vst.msk [vmem:[#allocation6 + $0x70] sm:$0xff] %vm8735_vm5, %v16927_v36  ;;  %8942 = vst.msk [vmem:[#allocation6 + $0x80] sm:$0xff] %vm8735_vm5, %v16927_v36 }
 0x546   :  { %v16986_v12 = vld [vmem:[#allocation5 + $0xb2] sm:$0xff]  ;;  %v6944_v38 = vpack.c.bf16 %v16977_v59, %v16927_v36  ;;  %v13228_v30 = vld [vmem:[%s18175_s11 + $0xa0] sm:$0xff]   ;;  %v13253_v54 = vld [vmem:[%s18175_s11 + $0x168] sm:$0xff]   ;;  %8944 = vst.msk [vmem:[#allocation6 + $0x90] sm:$0xff] %vm8735_vm5, %v16927_v36 }
 0x547   :  { %12285 = vmatpush3.bf16.msra.mxu0 %v13219_v50  ;;  %v16998_v32 = vld [vmem:[#allocation5 + $0xc0] sm:$0xff]  ;;  %v17002_v39 = vld [vmem:[#allocation5 + $0xd2] sm:$0xff]  ;;  %8946 = vst.msk [vmem:[#allocation6 + $0xa0] sm:$0xff] %vm8735_vm5, %v16927_v36  ;;  %8948 = vst.msk [vmem:[#allocation6 + $0xb0] sm:$0xff] %vm8735_vm5, %v16927_v36 }
 0x548   :  { %12286 = vmatprep.subr.bf16.mxu0 %v13220_v63  ;;  %v17006_v50 = vld [vmem:[#allocation5 + $0xe0] sm:$0xff]  ;;  %v17008_v16 = vld [vmem:[#allocation5 + $0xf0] sm:$0xff]  ;;  %v17082_v48 = vpack.c.bf16 %v17002_v39, %v16988_v8  ;;  %8950 = vst.msk [vmem:[#allocation6 + $0xc0] sm:$0xff] %vm8735_vm5, %v16927_v36  ;;  %8952 = vst.msk [vmem:[#allocation6 + $0xd0] sm:$0xff] %vm8735_vm5, %v16927_v36 }
 0x549   :  { %v13250_v40 = vld [vmem:[%s18175_s11 + $0x150] sm:$0xff]   ;;  %v13252_v0 = vld [vmem:[%s18175_s11 + $0x160] sm:$0xff]   ;;  %8954 = vst.msk [vmem:[#allocation6 + $0xe0] sm:$0xff] %vm8735_vm5, %v16927_v36  ;;  %8956 = vst.msk [vmem:[#allocation6 + $0xf0] sm:$0xff] %vm8735_vm5, %v16927_v36 }
 0x54a   :  { %12271 = vmatmul.mubr.bf16.gmra.mrb[160].mxu0 %v6985_v42  ;;  %v17000_v42 = vld [vmem:[#allocation5 + $0xd0] sm:$0xff]  ;;  %8958 = vst.msk [vmem:[#allocation6 + $0x100] sm:$0xff] %vm8735_vm5, %v16927_v36  ;;  %8960 = vst.msk [vmem:[#allocation6 + $0x110] sm:$0xff] %vm8735_vm5, %v16927_v36 }
 0x54b   :  { %12287 = vmatpush3.bf16.msra.mxu0 %v13220_v63  ;;  %12274 = vmatprep.mubr.bf16.mxu0 %v6986_v57  ;;  %v17004_v57 = vld [vmem:[#allocation5 + $0xe2] sm:$0xff]  ;;  %v17012_v63 = vpack.c.bf16 %v17000_v42, %v16998_v32  ;;  %8962 = vst.msk [vmem:[#allocation6 + $0x120] sm:$0xff] %vm8735_vm5, %v16927_v36  ;;  %8964 = vst.msk [vmem:[#allocation6 + $0x130] sm:$0xff] %vm8735_vm5, %v16927_v36 }
 0x54c   :  { %12288 = vmatprep.subr.bf16.mxu0 %v13221_v62  ;;  %8959 = vst.msk [vmem:[#allocation6 + $0x108] sm:$0x3] %vm8926_vm6, %v16927_v36  ;;  %8927 = vst.msk [vmem:[#allocation6 + $0x8] sm:$0x3] %vm8926_vm6, %v16927_v36 }
 0x54d   :  { %8929 = vst.msk [vmem:[#allocation6 + $0x18] sm:$0x3] %vm8926_vm6, %v16927_v36  ;;  %8931 = vst.msk [vmem:[#allocation6 + $0x28] sm:$0x3] %vm8926_vm6, %v16927_v36 }
 0x54e   :  { %8933 = vst.msk [vmem:[#allocation6 + $0x38] sm:$0x3] %vm8926_vm6, %v16927_v36  ;;  %8935 = vst.msk [vmem:[#allocation6 + $0x48] sm:$0x3] %vm8926_vm6, %v16927_v36 }
 0x54f   :  { %12289 = vmatpush3.bf16.msra.mxu0 %v13221_v62  ;;  %v13229_v62 = vld [vmem:[%s18175_s11 + $0xa8] sm:$0xff]   ;;  %8937 = vst.msk [vmem:[#allocation6 + $0x58] sm:$0x3] %vm8926_vm6, %v16927_v36  ;;  %8939 = vst.msk [vmem:[#allocation6 + $0x68] sm:$0x3] %vm8926_vm6, %v16927_v36 }
 0x550   :  { %12290 = vmatprep.subr.bf16.mxu0 %v13222_v61  ;;  %8941 = vst.msk [vmem:[#allocation6 + $0x78] sm:$0x3] %vm8926_vm6, %v16927_v36  ;;  %8943 = vst.msk [vmem:[#allocation6 + $0x88] sm:$0x3] %vm8926_vm6, %v16927_v36 }
 0x551   :  { %8945 = vst.msk [vmem:[#allocation6 + $0x98] sm:$0x3] %vm8926_vm6, %v16927_v36  ;;  %8947 = vst.msk [vmem:[#allocation6 + $0xa8] sm:$0x3] %vm8926_vm6, %v16927_v36 }
 0x552   :  { %12275 = vmatmul.mubr.bf16.gmra.mrb[164].mxu0 %v16891_v31  ;;  %8949 = vst.msk [vmem:[#allocation6 + $0xb8] sm:$0x3] %vm8926_vm6, %v16927_v36  ;;  %8951 = vst.msk [vmem:[#allocation6 + $0xc8] sm:$0x3] %vm8926_vm6, %v16927_v36 }
 0x553   :  { %12291 = vmatpush3.bf16.msra.mxu0 %v13222_v61  ;;  %12294 = vmatprep.mubr.bf16.mxu0 %v6940_v33  ;;  %v17017_v61 = vld [vmem:[#allocation5 + $0xf2] sm:$0xff]  ;;  %v7295_v33 = vld [vmem:[#allocation5 + $0x2] sm:$0xff]  ;;  %8953 = vst.msk [vmem:[#allocation6 + $0xd8] sm:$0x3] %vm8926_vm6, %v16927_v36  ;;  %8955 = vst.msk [vmem:[#allocation6 + $0xe8] sm:$0x3] %vm8926_vm6, %v16927_v36 }
 0x554   :  { %12292 = vmatprep.subr.bf16.mxu0 %v13223_v49  ;;  %v7311_v28 = vpack.c.bf16 %v16919_v2, %v7295_v33  ;;  %v17059_v33 = vpack.c.bf16 %v16956_v26, %v16943_v4  ;;  %8957 = vst.msk [vmem:[#allocation6 + $0xf8] sm:$0x3] %vm8926_vm6, %v16927_v36  ;;  %8961 = vst.msk [vmem:[#allocation6 + $0x118] sm:$0x3] %vm8926_vm6, %v16927_v36 }
 0x555   :  { %8963 = vst.msk [vmem:[#allocation6 + $0x128] sm:$0x3] %vm8926_vm6, %v16927_v36  ;;  %8965 = vst.msk [vmem:[#allocation6 + $0x138] sm:$0x3] %vm8926_vm6, %v16927_v36 }
 0x557   :  { %12293 = vmatpush3.bf16.msra.mxu0 %v13223_v49  ;;  %v17019_v49 = vld [vmem:[#allocation5 + $0x102] sm:$0xff] }
 0x558   :  { %12310 = vmatprep.subr.bf16.mxu0 %v13224_v51 }
 0x55a   :  { %12295 = vmatmul.mubr.bf16.vlgmr.msra.gmra.mrb[152].mxu0 %v16951_v20 }
 0x55b   :  { %12311 = vmatpush3.bf16.msra.mxu0 %v13224_v51  ;;  %12298 = vmatprep.mubr.bf16.mxu0 %v16964_v24  ;;  %v17025_v51 = vpack.c.bf16 %v17008_v16, %v17006_v50 }
 0x55c   :  { %12312 = vmatprep.subr.bf16.mxu0 %v13225_v7 }
 0x55f   :  { %12313 = vmatpush3.bf16.msra.mxu0 %v13225_v7  ;;  %v13231_v7 = vld [vmem:[%s18175_s11 + $0xb8] sm:$0xff]  }
 0x560   :  { %12314 = vmatprep.subr.bf16.mxu0 %v13226_v35 }
 0x562   :  { %12299 = vmatmul.mubr.bf16.gmra.mrb[156].mxu0 %v16981_v60 }
 0x563   :  { %12315 = vmatpush3.bf16.msra.mxu0 %v13226_v35  ;;  %12302 = vmatprep.mubr.bf16.mxu0 %v6944_v38  ;;  %v13230_v35 = vld [vmem:[%s18175_s11 + $0xb0] sm:$0xff]  }
 0x564   :  { %12316 = vmatprep.subr.bf16.mxu0 %v13227_v41  ;;  %v17036_v38 = vld [vmem:[#allocation5 + $0x110] sm:$0xff] }
 0x567   :  { %12317 = vmatpush3.bf16.msra.mxu0 %v13227_v41  ;;  %v17034_v41 = vld [vmem:[#allocation5 + $0x100] sm:$0xff] }
 0x568   :  { %12318 = vmatprep.subr.bf16.mxu0 %v13228_v30 }
 0x56a   :  { %12303 = vmatmul.mubr.bf16.gmra.mrb[160].mxu0 %v17012_v63 }
 0x56b   :  { %12319 = vmatpush3.bf16.msra.mxu0 %v13228_v30  ;;  %12306 = vmatprep.mubr.bf16.mxu0 %v17025_v51  ;;  %v17040_v30 = vpack.c.bf16 %v17036_v38, %v17034_v41 }
 0x56c   :  { %12320 = vmatprep.subr.bf16.mxu0 %v13229_v62 }
 0x56f   :  { %12321 = vmatpush3.bf16.msra.mxu0 %v13229_v62  ;;  %v13232_v62 = vld [vmem:[%s18175_s11 + $0xc0] sm:$0xff]  }
 0x570   :  { %12322 = vmatprep.subr.bf16.mxu0 %v13230_v35 }
 0x572   :  { %12307 = vmatmul.mubr.bf16.gmra.mrb[164].mxu0 %v17040_v30 }
 0x573   :  { %12323 = vmatpush3.bf16.msra.mxu0 %v13230_v35  ;;  %12326 = vmatprep.mubr.bf16.mxu0 %v7311_v28  ;;  %v13234_v28 = vld [vmem:[%s18175_s11 + $0xd0] sm:$0xff]   ;;  %v7303_v35 = vld [vmem:[#allocation5 + $0xa2] sm:$0xff] }
 0x574   :  { %12324 = vmatprep.subr.bf16.mxu0 %v13231_v7  ;;  %v7315_v22 = vpack.c.bf16 %v16986_v12, %v7303_v35  ;;  %v17089_v35 = vpack.c.bf16 %v17017_v61, %v17004_v57 }
 0x577   :  { %12325 = vmatpush3.bf16.msra.mxu0 %v13231_v7  ;;  %v17066_v7 = vld [vmem:[#allocation5 + $0x72] sm:$0xff] }
 0x578   :  { %12342 = vmatprep.subr.bf16.mxu0 %v13232_v62  ;;  %v17070_v55 = vpack.c.bf16 %v17066_v7, %v16958_v11 }
 0x57a   :  { %12327 = vmatmul.mubr.bf16.vlgmr.msra.gmra.mrb[152].mxu0 %v17052_v53 }
 0x57b   :  { %12343 = vmatpush3.bf16.msra.mxu0 %v13232_v62  ;;  %12330 = vmatprep.mubr.bf16.mxu0 %v17059_v33  ;;  %v13235_v62 = vld [vmem:[%s18175_s11 + $0xd8] sm:$0xff]  }
 0x57c   :  { %12344 = vmatprep.subr.bf16.mxu0 %v13233_v29 }
 0x57f   :  { %12345 = vmatpush3.bf16.msra.mxu0 %v13233_v29  ;;  %v13236_v29 = vld [vmem:[%s18175_s11 + $0xe0] sm:$0xff]  }
 0x580   :  { %12346 = vmatprep.subr.bf16.mxu0 %v13234_v28 }
 0x582   :  { %12331 = vmatmul.mubr.bf16.gmra.mrb[156].mxu0 %v17070_v55 }
 0x583   :  { %12347 = vmatpush3.bf16.msra.mxu0 %v13234_v28  ;;  %12334 = vmatprep.mubr.bf16.mxu0 %v7315_v22  ;;  %v13238_v22 = vld [vmem:[%s18175_s11 + $0xf0] sm:$0xff]  }
 0x584   :  { %12348 = vmatprep.subr.bf16.mxu0 %v13235_v62  ;;  %v17096_v28 = vld [vmem:[#allocation5 + $0x112] sm:$0xff] }
 0x587   :  { %12349 = vmatpush3.bf16.msra.mxu0 %v13235_v62  ;;  %v17100_v62 = vpack.c.bf16 %v17096_v28, %v17019_v49 }
 0x588   :  { %12350 = vmatprep.subr.bf16.mxu0 %v13236_v29 }
 0x58a   :  { %12335 = vmatmul.mubr.bf16.gmra.mrb[160].mxu0 %v17082_v48 }
 0x58b   :  { %12351 = vmatpush3.bf16.msra.mxu0 %v13236_v29  ;;  %12338 = vmatprep.mubr.bf16.mxu0 %v17089_v35  ;;  %v7513_v29 = vpack.c.bf16 %v16937_v15, %v16914_v58  ;;  %v7515_v58 = vpack.c.bf16 %v16973_v1, %v16947_v34  ;;  %v13242_v15 = vld [vmem:[%s18175_s11 + $0x110] sm:$0xff]   ;;  %v13244_v34 = vld [vmem:[%s18175_s11 + $0x120] sm:$0xff]   ;;  %v13245_v1 = vld [vmem:[%s18175_s11 + $0x128] sm:$0xff]  }
 0x58c   :  { %12352 = vmatprep.subr.bf16.mxu0 %v13237_v45 }
 0x58f   :  { %12353 = vmatpush3.bf16.msra.mxu0 %v13237_v45  ;;  %v13240_v45 = vld [vmem:[%s18175_s11 + $0x100] sm:$0xff]  }
 0x590   :  { %12354 = vmatprep.subr.bf16.mxu0 %v13238_v22 }
 0x592   :  { %12339 = vmatmul.mubr.bf16.gmra.mrb[164].mxu0 %v17100_v62 }
 0x593   :  { %12355 = vmatpush3.bf16.msra.mxu0 %v13238_v22  ;;  %12358 = vmatprep.mubr.bf16.mxu0 %v7513_v29  ;;  %v13255_v22 = vld [vmem:[%s18175_s11 + $0x178] sm:$0xff]  }
 0x594   :  { %12356 = vmatprep.subr.bf16.mxu0 %v13239_v9 }
 0x597   :  { %12357 = vmatpush3.bf16.msra.mxu0 %v13239_v9  ;;  %v17121_v9 = vld [vmem:[#allocation5 + $0x80] sm:$0xff] }
 0x598   :  { %12374 = vmatprep.subr.bf16.mxu0 %v13240_v45  ;;  %v7516_v37 = vpack.c.bf16 %v17121_v9, %v16975_v18  ;;  %v7519_v18 = vpack.c.bf16 %v17034_v41, %v17008_v16  ;;  %v13248_v16 = vld [vmem:[%s18175_s11 + $0x140] sm:$0xff]   ;;  %v13249_v41 = vld [vmem:[%s18175_s11 + $0x148] sm:$0xff]  }
 0x59a   :  { %12359 = vmatmul.mubr.bf16.vlgmr.msra.gmra.mrb[152].mxu0 %v7514_v23  ;;  %v7517_v23 = vpack.c.bf16 %v16998_v32, %v16977_v59  ;;  %v13246_v59 = vld [vmem:[%s18175_s11 + $0x130] sm:$0xff]   ;;  %v17143_v32 = vld [vmem:[#allocation5 + $0x120] sm:$0xff] }
 0x59b   :  { %12375 = vmatpush3.bf16.msra.mxu0 %v13240_v45  ;;  %12362 = vmatprep.mubr.bf16.mxu0 %v7515_v58  ;;  %v17239_v45 = vld [vmem:[#allocation5 + $0x122] sm:$0xff] }
 0x59c   :  { %12376 = vmatprep.subr.bf16.mxu0 %v13241_v6  ;;  %v7924_v58 = vpack.c.bf16 %v17239_v45, %v17096_v28  ;;  %v13267_v28 = vld [vmem:[%s18175_s11 + $0x1d8] sm:$0xff]  }
 0x59f   :  { %12377 = vmatpush3.bf16.msra.mxu0 %v13241_v6  ;;  %v7518_v6 = vpack.c.bf16 %v17006_v50, %v17000_v42  ;;  %v7520_v42 = vpack.c.bf16 %v17143_v32, %v17036_v38  ;;  %v13247_v50 = vld [vmem:[%s18175_s11 + $0x138] sm:$0xff]   ;;  %v18628_v38 = vpack.c.bf16 %v16820_v13, %v16818_v17  ;;  %v18630_v17 = vpack.c.bf16 %v16879_v25, %v16826_v52 }
 0x5a0   :  { %12378 = vmatprep.subr.bf16.mxu0 %v13242_v15  ;;  %v18631_v13 = vpack.c.bf16 %v16854_v56, %v16852_v27  ;;  %v18632_v52 = vpack.c.bf16 %v16863_v46, %v16861_v5  ;;  %v18633_v27 = vpack.c.bf16 %v16871_v47, %v16869_v14  ;;  %v13254_v56 = vld [vmem:[%s18175_s11 + $0x170] sm:$0xff]   ;;  %v18634_v5 = vpack.c.bf16 %v16921_v43, %v16919_v2  ;;  %v13256_v46 = vld [vmem:[%s18175_s11 + $0x180] sm:$0xff]   ;;  %v13257_v14 = vld [vmem:[%s18175_s11 + $0x188] sm:$0xff]  }
 0x5a1   :  { %v18635_v47 = vpack.c.bf16 %v16943_v4, %v16941_v21  ;;  %v18636_v2 = vpack.c.bf16 %v16958_v11, %v16956_v26  ;;  %v13258_v43 = vld [vmem:[%s18175_s11 + $0x190] sm:$0xff]   ;;  %v13259_v21 = vld [vmem:[%s18175_s11 + $0x198] sm:$0xff]   ;;  %v18637_v4 = vpack.c.bf16 %v16988_v8, %v16986_v12  ;;  %v13260_v26 = vld [vmem:[%s18175_s11 + $0x1a0] sm:$0xff]   ;;  %v18639_v12 = vpack.c.bf16 %v17019_v49, %v17017_v61 }
 0x5a2   :  { %12363 = vmatmul.mubr.bf16.gmra.mrb[156].mxu0 %v7516_v37  ;;  %v13261_v11 = vld [vmem:[%s18175_s11 + $0x1a8] sm:$0xff]   ;;  %v13262_v8 = vld [vmem:[%s18175_s11 + $0x1b0] sm:$0xff]   ;;  %v8123_v49 = vpack.c.bf16 %v16927_v36, %v17121_v9  ;;  %v8127_v37 = vpack.c.bf16 %v16927_v36, %v17143_v32  ;;  %v17409_v36 = vld [vmem:[%s18179_s15] sm:$0xff]  }
 0x5a3   :  { %12379 = vmatpush3.bf16.msra.mxu0 %v13242_v15  ;;  %12366 = vmatprep.mubr.bf16.mxu0 %v7517_v23  ;;  %v13265_v61 = vld [vmem:[%s18175_s11 + $0x1c8] sm:$0xff]   ;;  %v8307_v9 = vld [vmem:[#allocation5 + $0x31] sm:$0xff] }
 0x5a4   :  { %12380 = vmatprep.subr.bf16.mxu0 %v13243_v10  ;;  %v8306_v15 = vld [vmem:[#allocation5 + $0x21] sm:$0xff] }
 0x5a5   :  { %v8308_v23 = vld [vmem:[#allocation5 + $0x41] sm:$0xff] }
 0x5a7   :  { %12381 = vmatpush3.bf16.msra.mxu0 %v13243_v10  ;;  %v13271_v10 = vld [vmem:[%s18175_s11 + $0x1f8] sm:$0xff]  }
 0x5a8   :  { %12382 = vmatprep.subr.bf16.mxu0 %v13244_v34 }
 0x5aa   :  { %12367 = vmatmul.mubr.bf16.gmra.mrb[160].mxu0 %v7518_v6  ;;  %v8310_v6 = vld [vmem:[#allocation5 + $0x61] sm:$0xff] }
 0x5ab   :  { %12383 = vmatpush3.bf16.msra.mxu0 %v13244_v34  ;;  %12370 = vmatprep.mubr.bf16.mxu0 %v7519_v18  ;;  %v8309_v34 = vld [vmem:[#allocation5 + $0x51] sm:$0xff] }
 0x5ac   :  { %12384 = vmatprep.subr.bf16.mxu0 %v13245_v1  ;;  %v8323_v18 = vpack.c.bf16 %v8309_v34, %v8308_v23 }
 0x5af   :  { %12385 = vmatpush3.bf16.msra.mxu0 %v13245_v1  ;;  %v8311_v1 = vld [vmem:[#allocation5 + $0x71] sm:$0xff] }
 0x5b0   :  { %12386 = vmatprep.subr.bf16.mxu0 %v13246_v59  ;;  %v8324_v32 = vpack.c.bf16 %v8311_v1, %v8310_v6 }
 0x5b2   :  { %12371 = vmatmul.mubr.bf16.gmra.mrb[164].mxu0 %v7520_v42  ;;  %v13274_v42 = vld [vmem:[%s18175_s11 + $0x210] sm:$0xff]  }
 0x5b3   :  { %12387 = vmatpush3.bf16.msra.mxu0 %v13246_v59  ;;  %12390 = vmatprep.mubr.bf16.mxu0 %v7715_v3  ;;  %v13251_v3 = vld [vmem:[%s18175_s11 + $0x158] sm:$0xff]   ;;  %v13273_v59 = vld [vmem:[%s18175_s11 + $0x208] sm:$0xff]  }
 0x5b4   :  { %12388 = vmatprep.subr.bf16.mxu0 %v13247_v50 }
 0x5b7   :  { %12389 = vmatpush3.bf16.msra.mxu0 %v13247_v50  ;;  %v8313_v50 = vld [vmem:[#allocation5 + $0x91] sm:$0xff] }
 0x5b8   :  { %12406 = vmatprep.subr.bf16.mxu0 %v13248_v16 }
 0x5ba   :  { %12391 = vmatmul.mubr.bf16.vlgmr.msra.gmra.mrb[152].mxu0 %v18628_v38  ;;  %v8325_v38 = vpack.c.bf16 %v8313_v50, %v16879_v25  ;;  %v13277_v25 = vld [vmem:[%s18175_s11 + $0x228] sm:$0xff]  }
 0x5bb   :  { %12407 = vmatpush3.bf16.msra.mxu0 %v13248_v16  ;;  %12394 = vmatprep.mubr.bf16.mxu0 %v18629_v19  ;;  %v8314_v16 = vld [vmem:[#allocation5 + $0xc1] sm:$0xff]  ;;  %v13275_v19 = vld [vmem:[%s18175_s11 + $0x218] sm:$0xff]  }
 0x5bc   :  { %12408 = vmatprep.subr.bf16.mxu0 %v13249_v41 }
 0x5bf   :  { %12409 = vmatpush3.bf16.msra.mxu0 %v13249_v41  ;;  %v8315_v41 = vld [vmem:[#allocation5 + $0xd1] sm:$0xff] }
 0x5c0   :  { %12410 = vmatprep.subr.bf16.mxu0 %v13250_v40 }
 0x5c2   :  { %12395 = vmatmul.mubr.bf16.gmra.mrb[156].mxu0 %v18630_v17  ;;  %v8316_v17 = vld [vmem:[#allocation5 + $0xe1] sm:$0xff] }
 0x5c3   :  { %12411 = vmatpush3.bf16.msra.mxu0 %v13250_v40  ;;  %12398 = vmatprep.mubr.bf16.mxu0 %v18631_v13  ;;  %v8326_v40 = vpack.c.bf16 %v8315_v41, %v8314_v16  ;;  %v8317_v13 = vld [vmem:[#allocation5 + $0xf1] sm:$0xff] }
 0x5c4   :  { %12412 = vmatprep.subr.bf16.mxu0 %v13251_v3 }
 0x5c7   :  { %12413 = vmatpush3.bf16.msra.mxu0 %v13251_v3  ;;  %v13276_v3 = vld [vmem:[%s18175_s11 + $0x220] sm:$0xff]  }
 0x5c8   :  { %12414 = vmatprep.subr.bf16.mxu0 %v13252_v0 }
 0x5ca   :  { %12399 = vmatmul.mubr.bf16.gmra.mrb[160].mxu0 %v18632_v52  ;;  %v8320_v52 = vld [vmem:[#allocation5 + $0x121] sm:$0xff] }
 0x5cb   :  { %12415 = vmatpush3.bf16.msra.mxu0 %v13252_v0  ;;  %12402 = vmatprep.mubr.bf16.mxu0 %v18633_v27  ;;  %v8327_v0 = vpack.c.bf16 %v8317_v13, %v8316_v17  ;;  %v8321_v27 = vld [vmem:[#allocation5 + $0x131] sm:$0xff] }
 0x5cc   :  { %12416 = vmatprep.subr.bf16.mxu0 %v13253_v54 }
 0x5cf   :  { %12417 = vmatpush3.bf16.msra.mxu0 %v13253_v54  ;;  %v13278_v54 = vld [vmem:[%s18175_s11 + $0x230] sm:$0xff]  }
 0x5d0   :  { %12418 = vmatprep.subr.bf16.mxu0 %v13254_v56 }
 0x5d2   :  { %12403 = vmatmul.mubr.bf16.gmra.mrb[164].mxu0 %v16925_v44  ;;  %v17214_v44 = vld [vmem:[#allocation5 + $0x82] sm:$0xff] }
 0x5d3   :  { %12419 = vmatpush3.bf16.msra.mxu0 %v13254_v56  ;;  %12422 = vmatprep.mubr.bf16.mxu0 %v18634_v5  ;;  %v7920_v29 = vpack.c.bf16 %v17214_v44, %v17066_v7  ;;  %v18638_v7 = vpack.c.bf16 %v17004_v57, %v17002_v39  ;;  %v13263_v39 = vld [vmem:[%s18175_s11 + $0x1b8] sm:$0xff]   ;;  %v13264_v57 = vld [vmem:[%s18175_s11 + $0x1c0] sm:$0xff]   ;;  %v8329_v56 = vpack.c.bf16 %v8321_v27, %v8320_v52 }
 0x5d4   :  { %12420 = vmatprep.subr.bf16.mxu0 %v13255_v22 }
 0x5d7   :  { %12421 = vmatpush3.bf16.msra.mxu0 %v13255_v22  ;;  %v13279_v22 = vld [vmem:[%s18175_s11 + $0x238] sm:$0xff]  }
 0x5d8   :  { %12438 = vmatprep.subr.bf16.mxu0 %v13256_v46 }
 0x5da   :  { %12423 = vmatmul.mubr.bf16.vlgmr.msra.gmra.mrb[152].mxu0 %v18635_v47 }
 0x5db   :  { %12439 = vmatpush3.bf16.msra.mxu0 %v13256_v46  ;;  %12426 = vmatprep.mubr.bf16.mxu0 %v18636_v2  ;;  %v8523_v46 = vld [vmem:[#allocation5 + $0x132] sm:$0xff] }
 0x5dc   :  { %12440 = vmatprep.subr.bf16.mxu0 %v13257_v14 }
 0x5df   :  { %12441 = vmatpush3.bf16.msra.mxu0 %v13257_v14  ;;  %v8531_v14 = vpack.c.bf16 %v8523_v46, %v17239_v45 }
 0x5e0   :  { %12442 = vmatprep.subr.bf16.mxu0 %v13258_v43 }
 0x5e2   :  { %12427 = vmatmul.mubr.bf16.gmra.mrb[156].mxu0 %v7920_v29 }
 0x5e3   :  { %12443 = vmatpush3.bf16.msra.mxu0 %v13258_v43  ;;  %12430 = vmatprep.mubr.bf16.mxu0 %v18637_v4 }
 0x5e4   :  { %12444 = vmatprep.subr.bf16.mxu0 %v13259_v21 }
 0x5e7   :  { %12445 = vmatpush3.bf16.msra.mxu0 %v13259_v21 }
 0x5e8   :  { %12446 = vmatprep.subr.bf16.mxu0 %v13260_v26 }
 0x5ea   :  { %12431 = vmatmul.mubr.bf16.gmra.mrb[160].mxu0 %v18638_v7 }
 0x5eb   :  { %12447 = vmatpush3.bf16.msra.mxu0 %v13260_v26  ;;  %12434 = vmatprep.mubr.bf16.mxu0 %v18639_v12 }
 0x5ec   :  { %12448 = vmatprep.subr.bf16.mxu0 %v13261_v11 }
 0x5ef   :  { %12449 = vmatpush3.bf16.msra.mxu0 %v13261_v11 }
 0x5f0   :  { %12450 = vmatprep.subr.bf16.mxu0 %v13262_v8 }
 0x5f2   :  { %12435 = vmatmul.mubr.bf16.gmra.mrb[164].mxu0 %v7924_v58 }
 0x5f3   :  { %12451 = vmatpush3.bf16.msra.mxu0 %v13262_v8  ;;  %12454 = vmatprep.mubr.bf16.mxu0 %v16951_v20  ;;  %v13266_v20 = vld [vmem:[%s18175_s11 + $0x1d0] sm:$0xff]  }
 0x5f4   :  { %12452 = vmatprep.subr.bf16.mxu0 %v13263_v39 }
 0x5f7   :  { %12453 = vmatpush3.bf16.msra.mxu0 %v13263_v39 }
 0x5f8   :  { %12470 = vmatprep.subr.bf16.mxu0 %v13264_v57 }
 0x5fa   :  { %12455 = vmatmul.mubr.bf16.vlgmr.msra.gmra.mrb[152].mxu0 %v16964_v24  ;;  %v13268_v24 = vld [vmem:[%s18175_s11 + $0x1e0] sm:$0xff]  }
 0x5fb   :  { %12471 = vmatpush3.bf16.msra.mxu0 %v13264_v57  ;;  %12458 = vmatprep.mubr.bf16.mxu0 %v16981_v60  ;;  %v13269_v60 = vld [vmem:[%s18175_s11 + $0x1e8] sm:$0xff]  }
 0x5fc   :  { %12472 = vmatprep.subr.bf16.mxu0 %v13265_v61 }
 0x5ff   :  { %12473 = vmatpush3.bf16.msra.mxu0 %v13265_v61 }
 0x600   :  { %12474 = vmatprep.subr.bf16.mxu0 %v13266_v20 }
 0x602   :  { %12459 = vmatmul.mubr.bf16.gmra.mrb[156].mxu0 %v8123_v49 }
 0x603   :  { %12475 = vmatpush3.bf16.msra.mxu0 %v13266_v20  ;;  %12462 = vmatprep.mubr.bf16.mxu0 %v17012_v63  ;;  %v13270_v63 = vld [vmem:[%s18175_s11 + $0x1f0] sm:$0xff]  }
 0x604   :  { %12476 = vmatprep.subr.bf16.mxu0 %v13267_v28 }
 0x607   :  { %12477 = vmatpush3.bf16.msra.mxu0 %v13267_v28 }
 0x608   :  { %12478 = vmatprep.subr.bf16.mxu0 %v13268_v24 }
 0x60a   :  { %12463 = vmatmul.mubr.bf16.gmra.mrb[160].mxu0 %v17025_v51  ;;  %v8322_v51 = vpack.c.bf16 %v8307_v9, %v8306_v15 }
 0x60b   :  { %12479 = vmatpush3.bf16.msra.mxu0 %v13268_v24  ;;  %12466 = vmatprep.mubr.bf16.mxu0 %v17040_v30  ;;  %v13272_v30 = vld [vmem:[%s18175_s11 + $0x200] sm:$0xff]  }
 0x60c   :  { %12480 = vmatprep.subr.bf16.mxu0 %v13269_v60 }
 0x60f   :  { %12481 = vmatpush3.bf16.msra.mxu0 %v13269_v60 }
 0x610   :  { %12482 = vmatprep.subr.bf16.mxu0 %v13270_v63 }
 0x612   :  { %12467 = vmatmul.mubr.bf16.gmra.mrb[164].mxu0 %v8127_v37 }
 0x613   :  { %12483 = vmatpush3.bf16.msra.mxu0 %v13270_v63  ;;  %12486 = vmatprep.mubr.bf16.mxu0 %v8322_v51 }
 0x614   :  { %12484 = vmatprep.subr.bf16.mxu0 %v13271_v10 }
 0x617   :  { %12485 = vmatpush3.bf16.msra.mxu0 %v13271_v10 }
 0x618   :  { %12502 = vmatprep.subr.bf16.mxu0 %v13272_v30 }
 0x61a   :  { %12487 = vmatmul.mubr.bf16.vlgmr.msra.gmra.mrb[152].mxu0 %v8323_v18 }
 0x61b   :  { %12503 = vmatpush3.bf16.msra.mxu0 %v13272_v30  ;;  %12490 = vmatprep.mubr.bf16.mxu0 %v8324_v32 }
 0x61c   :  { %12504 = vmatprep.subr.bf16.mxu0 %v13273_v59 }
 0x61f   :  { %12505 = vmatpush3.bf16.msra.mxu0 %v13273_v59 }
 0x620   :  { %12506 = vmatprep.subr.bf16.mxu0 %v13274_v42 }
 0x622   :  { %12491 = vmatmul.mubr.bf16.gmra.mrb[156].mxu0 %v8325_v38 }
 0x623   :  { %12507 = vmatpush3.bf16.msra.mxu0 %v13274_v42  ;;  %12494 = vmatprep.mubr.bf16.mxu0 %v8326_v40 }
 0x624   :  { %12508 = vmatprep.subr.bf16.mxu0 %v13275_v19 }
 0x627   :  { %12509 = vmatpush3.bf16.msra.mxu0 %v13275_v19 }
 0x628   :  { %12510 = vmatprep.subr.bf16.mxu0 %v13276_v3 }
 0x62a   :  { %12495 = vmatmul.mubr.bf16.gmra.mrb[160].mxu0 %v8327_v0 }
 0x62b   :  { %12511 = vmatpush3.bf16.msra.mxu0 %v13276_v3  ;;  %12498 = vmatprep.mubr.bf16.mxu0 %v16891_v31  ;;  %v8515_v31 = vld [vmem:[#allocation5 + $0x92] sm:$0xff] }
 0x62c   :  { %12512 = vmatprep.subr.bf16.mxu0 %v13277_v25  ;;  %v8527_v5 = vpack.c.bf16 %v8515_v31, %v17214_v44 }
 0x62f   :  { %12513 = vmatpush3.bf16.msra.mxu0 %v13277_v25 }
 0x630   :  { %12514 = vmatprep.subr.bf16.mxu0 %v13278_v54 }
 0x632   :  { %12499 = vmatmul.mubr.bf16.gmra.mrb[164].mxu0 %v8329_v56 }
 0x633   :  { %12515 = vmatpush3.bf16.msra.mxu0 %v13278_v54  ;;  %12518 = vmatprep.mubr.bf16.mxu0 %v17052_v53  ;;  %v13282_v53 = vld [vmem:[%s18179_s15 + $0x30] sm:$0xff]  }
 0x634   :  { %12516 = vmatprep.subr.bf16.mxu0 %v13279_v22 }
 0x637   :  { %12517 = vmatpush3.bf16.msra.mxu0 %v13279_v22 }
 0x63a   :  { %12519 = vmatmul.mubr.bf16.vlgmr.msra.gmra.mrb[152].mxu0 %v17059_v33  ;;  %v13283_v33 = vld [vmem:[%s18179_s15 + $0x38] sm:$0xff]  }
 0x63b   :  { %12522 = vmatprep.mubr.bf16.mxu0 %v17070_v55  ;;  %v13281_v55 = vld [vmem:[%s18179_s15 + $0x28] sm:$0xff]  }
 0x642   :  { %12523 = vmatmul.mubr.bf16.gmra.mrb[156].mxu0 %v8527_v5 }
 0x643   :  { %12526 = vmatprep.mubr.bf16.mxu0 %v17082_v48  ;;  %v13280_v48 = vld [vmem:[%s18179_s15 + $0x20] sm:$0xff]  }
 0x644   :  { %12534 = vmatprep.subr.bf16.mxu1 %v13280_v48 }
 0x645   :  { %12535 = vmatpush3.bf16.msra.mxu1 %v13280_v48 }
 0x646   :  { %12536 = vmatprep.subr.bf16.mxu1 %v13281_v55 }
 0x649   :  { %12537 = vmatpush3.bf16.msra.mxu1 %v13281_v55 }
 0x64a   :  { %12527 = vmatmul.mubr.bf16.gmra.mrb[160].mxu0 %v17089_v35  ;;  %12538 = vmatprep.subr.bf16.mxu1 %v13282_v53  ;;  %v17415_v35 = vld [vmem:[%s18176_s12] ss:$0 sm:$0xff] }
 0x64b   :  { %12530 = vmatprep.mubr.bf16.mxu0 %v17100_v62 }
 0x64d   :  { %12539 = vmatpush3.bf16.msra.mxu1 %v13282_v53 }
 0x64e   :  { %12540 = vmatprep.subr.bf16.mxu1 %v13283_v33 }
 0x651   :  { %12541 = vmatpush3.bf16.msra.mxu1 %v13283_v33 }
 0x652   :  { %12531 = vmatmul.mubr.bf16.gmra.mrb[164].mxu0 %v8531_v14  ;;  %12558 = vmatprep.subr.bf16.mxu1 %v17409_v36 }
 0x70d   :  { %v12520_v62 = vpop.f32.mrb[152].mxu0 }
 0x70e   :  { %v8631_v47 = vpop.f32.mrb[153].mxu0  ;;  %v17418_v2 = vadd.f32 %v12520_v62, %v17415_v35 }
 0x70f   :  { %v17421_v43 = vadd.f32 %v17415_v35, %v8631_v47  ;;  %v12521_v44 = vpop.f32.mrb[154].mxu0 }
 0x710   :  { %v8634_v29 = vpop.f32.mrb[155].mxu0  ;;  %v17426_v4 = vadd.f32 %v12521_v44, %v17415_v35  ;;  %v8776_v11 = vmul.f32 %v17418_v2, %v17418_v2  ;;  %v8739_v58 = vsel %vm8735_vm5, %v17418_v2, 0.0 }
 0x711   :  { %v8774_v21 = vmul.f32 %v17421_v43, %v17421_v43  ;;  %v17429_v26 = vadd.f32 %v17415_v35, %v8634_v29  ;;  %v8736_v7 = vsel %vm8735_vm5, %v17421_v43, 0.0 }
 0x712   :  { %v8777_v57 = vmul.f32 %v17426_v4, %v17426_v4  ;;  %v8793_v60 = vsel %vm8735_vm5, %v8776_v11, 0.0  ;;  %v8741_v63 = vsel %vm8735_vm5, %v17426_v4, 0.0 }
 0x713   :  { %v8737_v12 = vsel %vm8735_vm5, %v17429_v26, 0.0  ;;  %v8775_v8 = vmul.f32 %v17429_v26, %v17429_v26  ;;  %v8790_v39 = vsel %vm8735_vm5, %v8774_v21, 0.0 }
 0x714   :  { %v8738_v45 = vadd.f32 %v8737_v12, %v8736_v7  ;;  %v8795_v23 = vsel %vm8735_vm5, %v8777_v57, 0.0 }
 0x715   :  { %v8791_v61 = vsel %vm8735_vm5, %v8775_v8, 0.0  ;;  %v12524_v20 = vpop.f32.mrb[156].mxu0 }
 0x716   :  { %v8740_v49 = vadd.f32 %v8739_v58, %v8738_v45  ;;  %v8792_v28 = vadd.f32 %v8791_v61, %v8790_v39  ;;  %v8647_v24 = vpop.f32.mrb[157].mxu0  ;;  %v17452_v10 = vadd.f32 %v12524_v20, %v17415_v35 }
 0x717   :  { %v17449_v15 = vadd.f32 %v17415_v35, %v8647_v24  ;;  %v12525_v9 = vpop.f32.mrb[158].mxu0 }
 0x718   :  { %v8794_v37 = vadd.f32 %v8793_v60, %v8792_v28  ;;  %v8742_v51 = vadd.f32 %v8741_v63, %v8740_v49  ;;  %v8650_v30 = vpop.f32.mrb[159].mxu0  ;;  %v17463_v32 = vadd.f32 %v12525_v9, %v17415_v35  ;;  %v8780_v16 = vmul.f32 %v17452_v10, %v17452_v10 }
 0x719   :  { %v8743_v34 = vsel %vm8735_vm5, %v17449_v15, 0.0  ;;  %v8778_v6 = vmul.f32 %v17449_v15, %v17449_v15  ;;  %v17460_v1 = vadd.f32 %v17415_v35, %v8650_v30  ;;  %v8747_v40 = vsel %vm8735_vm5, %v17452_v10, 0.0 }
 0x71a   :  { %v8744_v18 = vadd.f32 %v8743_v34, %v8742_v51  ;;  %v8796_v59 = vadd.f32 %v8795_v23, %v8794_v37  ;;  %v8781_v17 = vmul.f32 %v17463_v32, %v17463_v32  ;;  %v8749_v54 = vsel %vm8735_vm5, %v17463_v32, 0.0 }
 0x71b   :  { %v8797_v42 = vsel %vm8735_vm5, %v8778_v6, 0.0  ;;  %v8745_v50 = vsel %vm8735_vm5, %v17460_v1, 0.0  ;;  %v8779_v19 = vmul.f32 %v17460_v1, %v17460_v1  ;;  %v8801_v22 = vsel %vm8735_vm5, %v8780_v16, 0.0 }
 0x71c   :  { %v8798_v41 = vadd.f32 %v8797_v42, %v8796_v59  ;;  %v8746_v38 = vadd.f32 %v8745_v50, %v8744_v18  ;;  %v8803_v33 = vsel %vm8735_vm5, %v8781_v17, 0.0 }
 0x71d   :  { %v12528_v3 = vpop.f32.mrb[160].mxu0  ;;  %v8799_v0 = vsel %vm8735_vm5, %v8779_v19, 0.0 }
 0x71e   :  { %v8748_v13 = vadd.f32 %v8747_v40, %v8746_v38  ;;  %v8663_v25 = vpop.f32.mrb[161].mxu0  ;;  %v8800_v52 = vadd.f32 %v8799_v0, %v8798_v41  ;;  %v17484_v31 = vadd.f32 %v12528_v3, %v17415_v35 }
 0x71f   :  { %v17480_v27 = vadd.f32 %v17415_v35, %v8663_v25  ;;  %v12529_v56 = vpop.f32.mrb[162].mxu0 }
 0x720   :  { %v8750_v5 = vadd.f32 %v8749_v54, %v8748_v13  ;;  %v8666_v46 = vpop.f32.mrb[163].mxu0  ;;  %v8802_v14 = vadd.f32 %v8801_v22, %v8800_v52  ;;  %v17495_v47 = vadd.f32 %v12529_v56, %v17415_v35  ;;  %v8784_v7 = vmul.f32 %v17484_v31, %v17484_v31 }
 0x721   :  { %v8751_v48 = vsel %vm8735_vm5, %v17480_v27, 0.0  ;;  %v8782_v55 = vmul.f32 %v17480_v27, %v17480_v27  ;;  %v17491_v53 = vadd.f32 %v17415_v35, %v8666_v46  ;;  %v8755_v8 = vsel %vm8735_vm5, %v17484_v31, 0.0 }
 0x722   :  { %v8752_v62 = vadd.f32 %v8751_v48, %v8750_v5  ;;  %v8804_v44 = vadd.f32 %v8803_v33, %v8802_v14  ;;  %v8785_v57 = vmul.f32 %v17495_v47, %v17495_v47  ;;  %v8757_v49 = vsel %vm8735_vm5, %v17495_v47, 0.0 }
 0x723   :  { %v8805_v29 = vsel %vm8735_vm5, %v8782_v55, 0.0  ;;  %v8753_v21 = vsel %vm8735_vm5, %v17491_v53, 0.0  ;;  %v8783_v11 = vmul.f32 %v17491_v53, %v17491_v53  ;;  %v8809_v63 = vsel %vm8735_vm5, %v8784_v7, 0.0 }
 0x724   :  { %v8754_v12 = vadd.f32 %v8753_v21, %v8752_v62  ;;  %v8806_v45 = vadd.f32 %v8805_v29, %v8804_v44  ;;  %v8811_v18 = vsel %vm8735_vm5, %v8785_v57, 0.0 }
 0x725   :  { %v8807_v58 = vsel %vm8735_vm5, %v8783_v11, 0.0  ;;  %v12532_v39 = vpop.f32.mrb[164].mxu0 }
 0x726   :  { %v8756_v61 = vadd.f32 %v8755_v8, %v8754_v12  ;;  %v8679_v20 = vpop.f32.mrb[165].mxu0  ;;  %v8808_v28 = vadd.f32 %v8807_v58, %v8806_v45  ;;  %v17516_v9 = vadd.f32 %v12532_v39, %v17415_v35 }
 0x727   :  { %v17512_v24 = vadd.f32 %v17415_v35, %v8679_v20  ;;  %v12533_v60 = vpop.f32.mrb[166].mxu0 }
 0x728   :  { %v8758_v37 = vadd.f32 %v8757_v49, %v8756_v61  ;;  %v8682_v51 = vpop.f32.mrb[167].mxu0  ;;  %v8810_v30 = vadd.f32 %v8809_v63, %v8808_v28  ;;  %v17525_v42 = vadd.f32 %v12533_v60, %v17415_v35  ;;  %v8788_v19 = vmul.f32 %v17516_v9, %v17516_v9 }
 0x729   :  { %v8759_v23 = vsel %vm8735_vm5, %v17512_v24, 0.0  ;;  %v8786_v34 = vmul.f32 %v17512_v24, %v17512_v24  ;;  %v8730_v6 = vadd.f32 %v17415_v35, %v8682_v51  ;;  %v8763_v3 = vsel %vm8735_vm5, %v17516_v9, 0.0 }
 0x72a   :  { %v8760_v59 = vadd.f32 %v8759_v23, %v8758_v37  ;;  %v8812_v50 = vadd.f32 %v8811_v18, %v8810_v30  ;;  %v8789_v35 = vmul.f32 %v17525_v42, %v17525_v42  ;;  %v8765_v25 = vsel %vm8735_vm5, %v17525_v42, 0.0 }
 0x72b   :  { %v8813_v16 = vsel %vm8735_vm5, %v8786_v34, 0.0  ;;  %v8761_v41 = vsel %vm8735_vm5, %v8730_v6, 0.0  ;;  %v8787_v38 = vmul.f32 %v8730_v6, %v8730_v6  ;;  %v8817_v52 = vsel %vm8735_vm5, %v8788_v19, 0.0 }
 0x72c   :  { %v8762_v40 = vadd.f32 %v8761_v41, %v8760_v59  ;;  %v8814_v17 = vadd.f32 %v8813_v16, %v8812_v50  ;;  %v8819_v5 = vsel %vm8735_vm5, %v8789_v35, 0.0  ;;  %v17592_v41 = vld [vmem:[%s18178_s14] ss:$0 sm:$0xff] }
 0x72d   :  { %v8815_v13 = vsel %vm8735_vm5, %v8787_v38, 0.0 }
 0x72e   :  { %v8764_v0 = vadd.f32 %v8763_v3, %v8762_v40  ;;  %v8816_v54 = vadd.f32 %v8815_v13, %v8814_v17 }
 0x730   :  { %v8766_v56 = vadd.f32 %v8765_v25, %v8764_v0  ;;  %v8818_v22 = vadd.f32 %v8817_v52, %v8816_v54 }
 0x732   :  { %v8767_v46 = vrot.slane %v8766_v56, 4  ;;  %v8820_v14 = vadd.f32 %v8819_v5, %v8818_v22 }
 0x734   :  { %v8768_v48 = vadd.f32 %v8767_v46, %v8766_v56  ;;  %v8821_v55 = vrot.slane %v8820_v14, 4 }
 0x736   :  { %v8769_v33 = vrot.slane %v8768_v48, 2  ;;  %v8822_v62 = vadd.f32 %v8821_v55, %v8820_v14 }
 0x738   :  { %v8770_v44 = vadd.f32 %v8769_v33, %v8768_v48  ;;  %v8823_v29 = vrot.slane %v8822_v62, 2 }
 0x73a   :  { %v8771_v21 = vrot.slane %v8770_v44, 1  ;;  %v8824_v11 = vadd.f32 %v8823_v29, %v8822_v62 }
 0x73c   :  { %v8772_v7 = vadd.f32 %v8771_v21, %v8770_v44  ;;  %v8825_v12 = vrot.slane %v8824_v11, 1 }
 0x73e   :  { %v17540_v8 = vmul.f32 0.0078125, %v8772_v7  ;;  %v8826_v45 = vadd.f32 %v8825_v12, %v8824_v11 }
 0x740   :  { %v8828_v58 = vmul.f32 %v17540_v8, %v17540_v8  ;;  %v8844_v39 = vsub.f32 %v8730_v6, %v17540_v8  ;;  %v8831_v57 = vsub.f32 %v17421_v43, %v17540_v8  ;;  %v8832_v61 = vsub.f32 %v17429_v26, %v17540_v8 }
 0x741   :  { %v8827_v20 = vmul.f32 0.0078125, %v8826_v45  ;;  %v8833_v49 = vsub.f32 %v17418_v2, %v17540_v8  ;;  %v8834_v28 = vsub.f32 %v17426_v4, %v17540_v8  ;;  %v8835_v60 = vsub.f32 %v17449_v15, %v17540_v8 }
 0x742   :  { %v8836_v63 = vsub.f32 %v17460_v1, %v17540_v8  ;;  %v8837_v43 = vsub.f32 %v17452_v10, %v17540_v8  ;;  %v8839_v26 = vsub.f32 %v17480_v27, %v17540_v8  ;;  %v8840_v51 = vsub.f32 %v17491_v53, %v17540_v8  ;;  %v17576_v53 = vld [vmem:[%s18177_s13] ss:$0 sm:$0xff] }
 0x743   :  { %v8829_v37 = vsub.f32 %v8827_v20, %v8828_v58  ;;  %v8841_v4 = vsub.f32 %v17484_v31, %v17540_v8  ;;  %v8842_v15 = vsub.f32 %v17495_v47, %v17540_v8  ;;  %v8843_v1 = vsub.f32 %v17512_v24, %v17540_v8 }
 0x744   :  { %v8845_v30 = vsub.f32 %v17516_v9, %v17540_v8  ;;  %v8838_v27 = vsub.f32 %v17463_v32, %v17540_v8  ;;  %v8866_v31 = vmul.f32 %v17576_v53, %v8844_v39  ;;  %v8853_v47 = vmul.f32 %v17576_v53, %v8831_v57 }
 0x745   :  { %v8830_v2 = vmax.f32 %v8829_v37, 0.0  ;;  %v8854_v23 = vmul.f32 %v17576_v53, %v8832_v61  ;;  %v8855_v24 = vmul.f32 %v17576_v53, %v8833_v49  ;;  %v8856_v9 = vmul.f32 %v17576_v53, %v8834_v28 }
 0x746   :  { %v8857_v34 = vmul.f32 %v17576_v53, %v8835_v60  ;;  %v8858_v32 = vmul.f32 %v17576_v53, %v8836_v63  ;;  %v8859_v6 = vmul.f32 %v17576_v53, %v8837_v43  ;;  %v8861_v18 = vmul.f32 %v17576_v53, %v8839_v26 }
 0x747   :  { %v8869_v10 = vadd.f32 1e-05, %v8830_v2  ;;  %v8862_v59 = vmul.f32 %v17576_v53, %v8840_v51  ;;  %v8863_v50 = vmul.f32 %v17576_v53, %v8841_v4  ;;  %v8864_v38 = vmul.f32 %v17576_v53, %v8842_v15 }
 0x748   :  { %v8865_v19 = vmul.f32 %v17576_v53, %v8843_v1  ;;  %v8867_v40 = vmul.f32 %v17576_v53, %v8845_v30  ;;  %v8860_v3 = vmul.f32 %v17576_v53, %v8838_v27  ;;  %v8846_v63 = vsub.f32 %v17525_v42, %v17540_v8  ;;  %v9015_v8 = vld [vmem:[#allocation6 + $0x1] sm:$0xff] }
 0x749   :  { %13322 = vrsqrt.f32 %v8869_v10 }
 0x74a   :  { %v8868_v1 = vmul.f32 %v17576_v53, %v8846_v63 }
 0x753   :  { %v13323_v16 = vpop.eup %13322 }
 0x754   :  { %v8884_v17 = vmul.f32 %v13323_v16, %v8866_v31  ;;  %v8871_v13 = vmul.f32 %v13323_v16, %v8853_v47  ;;  %v8872_v35 = vmul.f32 %v13323_v16, %v8854_v23  ;;  %v8873_v0 = vmul.f32 %v13323_v16, %v8855_v24 }
 0x755   :  { %v8874_v25 = vmul.f32 %v13323_v16, %v8856_v9  ;;  %v8875_v54 = vmul.f32 %v13323_v16, %v8857_v34  ;;  %v8876_v52 = vmul.f32 %v13323_v16, %v8858_v32  ;;  %v8877_v56 = vmul.f32 %v13323_v16, %v8859_v6 }
 0x756   :  { %v8906_v22 = vadd.f32 %v17592_v41, %v8884_v17  ;;  %v8893_v5 = vadd.f32 %v17592_v41, %v8871_v13  ;;  %v8894_v46 = vadd.f32 %v17592_v41, %v8872_v35  ;;  %v8895_v14 = vadd.f32 %v17592_v41, %v8873_v0  ;;  %v13286_v17 = vld [vmem:[%s18179_s15 + $0x10] sm:$0xff]   ;;  %v9023_v0 = vld [vmem:[#allocation6 + $0xa1] sm:$0xff] }
 0x757   :  { %v8896_v48 = vadd.f32 %v17592_v41, %v8874_v25  ;;  %v8897_v55 = vadd.f32 %v17592_v41, %v8875_v54  ;;  %v8898_v33 = vadd.f32 %v17592_v41, %v8876_v52  ;;  %v8899_v62 = vadd.f32 %v17592_v41, %v8877_v56 }
 0x758   :  { %v8922_v44 = vmax.f32 %v8906_v22, 0.0  ;;  %v8909_v29 = vmax.f32 %v8893_v5, 0.0  ;;  %v8910_v21 = vmax.f32 %v8894_v46, 0.0  ;;  %v8911_v11 = vmax.f32 %v8895_v14, 0.0  ;;  %v13287_v22 = vld [vmem:[%s18179_s15 + $0x18] sm:$0xff]  }
 0x759   :  { %v8912_v7 = vmax.f32 %v8896_v48, 0.0  ;;  %v8913_v12 = vmax.f32 %v8897_v55, 0.0  ;;  %v8914_v45 = vmax.f32 %v8898_v33, 0.0  ;;  %v8915_v58 = vmax.f32 %v8899_v62, 0.0  ;;  %v13288_v48 = vld [vmem:[%s18179_s15 + $0x40] sm:$0xff]  }
 0x75a   :  { %8980 = vst.msk [vmem:[#allocation6 + $0x101] sm:$0xff] %vm8735_vm5, %v8922_v44  ;;  %8967 = vst.msk [vmem:[#allocation6 + $0x11] sm:$0xff] %vm8735_vm5, %v8909_v29  ;;  %v8879_v39 = vmul.f32 %v13323_v16, %v8861_v18  ;;  %v8880_v57 = vmul.f32 %v13323_v16, %v8862_v59  ;;  %v8881_v61 = vmul.f32 %v13323_v16, %v8863_v50  ;;  %v9346_v29 = vld [vmem:[#allocation6 + $0xa2] sm:$0xff] }
 0x75b   :  { %8968 = vst.msk [vmem:[#allocation6 + $0x21] sm:$0xff] %vm8735_vm5, %v8910_v21  ;;  %8969 = vst.msk [vmem:[#allocation6 + $0x31] sm:$0xff] %vm8735_vm5, %v8911_v11  ;;  %v8882_v20 = vmul.f32 %v13323_v16, %v8864_v38  ;;  %v8883_v49 = vmul.f32 %v13323_v16, %v8865_v19  ;;  %v8885_v28 = vmul.f32 %v13323_v16, %v8867_v40  ;;  %v13285_v38 = vld [vmem:[%s18179_s15 + $0x8] sm:$0xff]   ;;  %v8983_v11 = vld [vmem:[#allocation6] sm:$0xff] }
 0x75c   :  { %8970 = vst.msk [vmem:[#allocation6 + $0x41] sm:$0xff] %vm8735_vm5, %v8912_v7  ;;  %8971 = vst.msk [vmem:[#allocation6 + $0x51] sm:$0xff] %vm8735_vm5, %v8913_v12  ;;  %v8878_v60 = vmul.f32 %v13323_v16, %v8860_v3  ;;  %v8901_v37 = vadd.f32 %v17592_v41, %v8879_v39  ;;  %v8902_v43 = vadd.f32 %v17592_v41, %v8880_v57 }
 0x75d   :  { %8972 = vst.msk [vmem:[#allocation6 + $0x61] sm:$0xff] %vm8735_vm5, %v8914_v45  ;;  %8973 = vst.msk [vmem:[#allocation6 + $0x71] sm:$0xff] %vm8735_vm5, %v8915_v58  ;;  %v8903_v26 = vadd.f32 %v17592_v41, %v8881_v61  ;;  %v8904_v51 = vadd.f32 %v17592_v41, %v8882_v20  ;;  %v8905_v2 = vadd.f32 %v17592_v41, %v8883_v49  ;;  %v13293_v49 = vld [vmem:[%s18179_s15 + $0x68] sm:$0xff]  }
 0x75e   :  { %v8907_v4 = vadd.f32 %v17592_v41, %v8885_v28  ;;  %v8900_v15 = vadd.f32 %v17592_v41, %v8878_v60  ;;  %v8917_v30 = vmax.f32 %v8901_v37, 0.0  ;;  %v8918_v10 = vmax.f32 %v8902_v43, 0.0 }
 0x75f   :  { %v8919_v27 = vmax.f32 %v8903_v26, 0.0  ;;  %v8920_v42 = vmax.f32 %v8904_v51, 0.0  ;;  %v8921_v31 = vmax.f32 %v8905_v2, 0.0  ;;  %v8886_v24 = vmul.f32 %v13323_v16, %v8868_v1  ;;  %v13289_v26 = vld [vmem:[%s18179_s15 + $0x48] sm:$0xff]   ;;  %v13290_v1 = vld [vmem:[%s18179_s15 + $0x50] sm:$0xff]  }
 0x760   :  { %v8923_v47 = vmax.f32 %v8907_v4, 0.0  ;;  %v8916_v23 = vmax.f32 %v8900_v15, 0.0  ;;  %8975 = vst.msk [vmem:[#allocation6 + $0xb1] sm:$0xff] %vm8735_vm5, %v8917_v30  ;;  %8976 = vst.msk [vmem:[#allocation6 + $0xc1] sm:$0xff] %vm8735_vm5, %v8918_v10  ;;  %v13297_v16 = vld [vmem:[%s18179_s15 + $0x88] sm:$0xff]  }
 0x761   :  { %8977 = vst.msk [vmem:[#allocation6 + $0xd1] sm:$0xff] %vm8735_vm5, %v8919_v27  ;;  %8978 = vst.msk [vmem:[#allocation6 + $0xe1] sm:$0xff] %vm8735_vm5, %v8920_v42  ;;  %v17628_v9 = vld [vmem:[#allocation6 + $0x11] sm:$0xff]  ;;  %v8908_v32 = vadd.f32 %v17592_v41, %v8886_v24  ;;  %v17702_v33 = vld [vmem:[#allocation6 + $0x101] sm:$0xff] }
 0x762   :  { %v17630_v53 = vld [vmem:[#allocation6 + $0x21] sm:$0xff]  ;;  %v17632_v34 = vld [vmem:[#allocation6 + $0x31] sm:$0xff]  ;;  %8979 = vst.msk [vmem:[#allocation6 + $0xf1] sm:$0xff] %vm8735_vm5, %v8921_v31  ;;  %8981 = vst.msk [vmem:[#allocation6 + $0x111] sm:$0xff] %vm8735_vm5, %v8923_v47  ;;  %v9031_v6 = vpack.c.bf16 %v17628_v9, %v9015_v8 }
 0x763   :  { %8974 = vst.msk [vmem:[#allocation6 + $0x81] sm:$0xff] %vm8735_vm5, %v8916_v23  ;;  %v17641_v18 = vpack.c.bf16 %v17632_v34, %v17630_v53  ;;  %v17643_v59 = vld [vmem:[#allocation6 + $0x41] sm:$0xff]  ;;  %v17645_v50 = vld [vmem:[#allocation6 + $0x51] sm:$0xff]  ;;  %v8924_v19 = vmax.f32 %v8908_v32, 0.0 }
 0x764   :  { %12542 = vmatprep.mubr.msk.bf16.mxu1 %vm8735_vm5, %v9031_v6  ;;  %v17657_v40 = vpack.c.bf16 %v17645_v50, %v17643_v59  ;;  %v17659_v3 = vld [vmem:[#allocation6 + $0x61] sm:$0xff]  ;;  %v17672_v35 = vld [vmem:[#allocation6 + $0x71] sm:$0xff] }
 0x765   :  { %12543 = vmatmul.mubr.msk.bf16.vlgmr.msra.gmra.mrb[144].mxu1 %vm8735_vm5, %v17641_v18  ;;  %8982 = vst.msk [vmem:[#allocation6 + $0x121] sm:$0xff] %vm8735_vm5, %v8924_v19  ;;  %v17720_v7 = vld [vmem:[#allocation6 + $0x10] sm:$0xff]  ;;  %v17724_v45 = vld [vmem:[#allocation6 + $0x22] sm:$0xff]  ;;  %v13291_v23 = vld [vmem:[%s18179_s15 + $0x58] sm:$0xff]  }
 0x766   :  { %12559 = vmatpush3.bf16.msra.mxu1 %v17409_v36  ;;  %12546 = vmatprep.mubr.msk.bf16.mxu1 %vm8735_vm5, %v17657_v40  ;;  %v17680_v36 = vpack.c.bf16 %v17672_v35, %v17659_v3  ;;  %v17722_v12 = vld [vmem:[#allocation6 + $0x12] sm:$0xff]  ;;  %v17732_v57 = vld [vmem:[#allocation6 + $0x42] sm:$0xff]  ;;  %v8999_v61 = vpack.c.bf16 %v17720_v7, %v8983_v11 }
 0x767   :  { %12560 = vmatprep.subr.bf16.mxu1 %v13285_v38  ;;  %v17674_v25 = vld [vmem:[#allocation6 + $0xb1] sm:$0xff]  ;;  %v17676_v54 = vld [vmem:[#allocation6 + $0xc1] sm:$0xff] }
 0x768   :  { %v17682_v52 = vld [vmem:[#allocation6 + $0xd1] sm:$0xff]  ;;  %v17684_v56 = vld [vmem:[#allocation6 + $0xe1] sm:$0xff]  ;;  %v9035_v5 = vpack.c.bf16 %v17674_v25, %v9023_v0 }
 0x769   :  { %v17700_v55 = vld [vmem:[#allocation6 + $0xf1] sm:$0xff]  ;;  %v17706_v62 = vpack.c.bf16 %v17682_v52, %v17676_v54  ;;  %v17742_v28 = vld [vmem:[#allocation6 + $0x20] sm:$0xff] }
 0x76a   :  { %12561 = vmatpush3.bf16.msra.mxu1 %v13285_v38  ;;  %v17710_v44 = vpack.c.bf16 %v17700_v55, %v17684_v56  ;;  %v17718_v21 = vld [vmem:[#allocation6 + $0x111] sm:$0xff]  ;;  %v17746_v63 = vld [vmem:[#allocation6 + $0x40] sm:$0xff] }
 0x76b   :  { %12562 = vmatprep.subr.bf16.mxu1 %v13286_v17  ;;  %v17728_v58 = vpack.c.bf16 %v17718_v21, %v17702_v33  ;;  %v17730_v39 = vld [vmem:[#allocation6 + $0x32] sm:$0xff]  ;;  %v17759_v2 = vld [vmem:[#allocation6 + $0x62] sm:$0xff] }
 0x76c   :  { %v17744_v60 = vld [vmem:[#allocation6 + $0x30] sm:$0xff]  ;;  %v17774_v30 = vld [vmem:[#allocation6 + $0x60] sm:$0xff] }
 0x76d   :  { %12547 = vmatmul.mubr.msk.bf16.gmra.mrb[148].mxu1 %vm8735_vm5, %v17680_v36  ;;  %v17748_v37 = vld [vmem:[#allocation6 + $0x50] sm:$0xff]  ;;  %v17752_v43 = vpack.c.bf16 %v17744_v60, %v17742_v28  ;;  %v8991_v27 = vld [vmem:[#allocation6 + $0xa0] sm:$0xff]  ;;  %v9549_v41 = vpack.c.bf16 %v17746_v63, %v17744_v60 }
 0x76e   :  { %12550 = vmatprep.mubr.msk.bf16.mxu1 %vm8735_vm5, %v9035_v5  ;;  %12563 = vmatpush3.bf16.msra.mxu1 %v13286_v17  ;;  %v17757_v51 = vld [vmem:[#allocation6 + $0x52] sm:$0xff]  ;;  %v17763_v4 = vpack.c.bf16 %v17748_v37, %v17746_v63  ;;  %v17782_v31 = vld [vmem:[#allocation6 + $0xc2] sm:$0xff] }
 0x76f   :  { %12564 = vmatprep.subr.bf16.mxu1 %v13287_v22  ;;  %v17776_v10 = vld [vmem:[#allocation6 + $0x70] sm:$0xff]  ;;  %v17793_v32 = vld [vmem:[#allocation6 + $0xe2] sm:$0xff]  ;;  %v17853_v20 = vpack.c.bf16 %v17757_v51, %v17732_v57  ;;  %v13299_v63 = vld [vmem:[%s18179_s15 + $0x98] sm:$0xff]  }
 0x770   :  { %v17778_v42 = vld [vmem:[#allocation6 + $0xb0] sm:$0xff]  ;;  %v17786_v47 = vpack.c.bf16 %v17776_v10, %v17774_v30  ;;  %v13292_v17 = vld [vmem:[%s18179_s15 + $0x60] sm:$0xff]  }
 0x771   :  { %v17780_v8 = vld [vmem:[#allocation6 + $0xb2] sm:$0xff]  ;;  %v9003_v6 = vpack.c.bf16 %v17778_v42, %v8991_v27  ;;  %v17806_v0 = vld [vmem:[#allocation6 + $0xc0] sm:$0xff]  ;;  %v17846_v27 = vpack.c.bf16 %v17730_v39, %v17724_v45 }
 0x772   :  { %12565 = vmatpush3.bf16.msra.mxu1 %v13287_v22  ;;  %v17791_v24 = vld [vmem:[#allocation6 + $0xd2] sm:$0xff]  ;;  %v17810_v5 = vld [vmem:[#allocation6 + $0xe0] sm:$0xff]  ;;  %v9358_v46 = vpack.c.bf16 %v17780_v8, %v9346_v29 }
 0x773   :  { %12582 = vmatprep.subr.bf16.mxu1 %v13288_v48  ;;  %v17808_v22 = vld [vmem:[#allocation6 + $0xd0] sm:$0xff]  ;;  %v9338_v19 = vld [vmem:[#allocation6 + $0x2] sm:$0xff]  ;;  %v17880_v13 = vpack.c.bf16 %v17791_v24, %v17782_v31 }
 0x774   :  { %v17814_v11 = vld [vmem:[#allocation6 + $0xf2] sm:$0xff]  ;;  %v9354_v15 = vpack.c.bf16 %v17722_v12, %v9338_v19 }
 0x775   :  { %12551 = vmatmul.mubr.msk.bf16.gmra.mrb[152].mxu1 %vm8735_vm5, %v17706_v62  ;;  %v17862_v19 = vld [vmem:[#allocation6 + $0x72] sm:$0xff]  ;;  %v17884_v29 = vpack.c.bf16 %v17814_v11, %v17793_v32 }
 0x776   :  { %12554 = vmatprep.mubr.msk.bf16.mxu1 %vm8735_vm5, %v17710_v44  ;;  %v17866_v14 = vpack.c.bf16 %v17862_v19, %v17759_v2 }
 0x777   :  { %18640 = vst [vmem:[#allocation54_spill] sm:$0xff] %v17884_v29 }
 0x77d   :  { %12555 = vmatmul.mubr.msk.bf16.gmra.mrb[156].mxu1 %vm8735_vm5, %v17728_v58 }
 0x77e   :  { %12566 = vmatprep.mubr.msk.bf16.mxu1 %vm8735_vm5, %v8999_v61  ;;  %v17816_v61 = vld [vmem:[#allocation6 + $0x102] sm:$0xff] }
 0x785   :  { %12567 = vmatmul.mubr.msk.bf16.vlgmr.msra.gmra.mrb[144].mxu1 %vm8735_vm5, %v17752_v43 }
 0x786   :  { %12583 = vmatpush3.bf16.msra.mxu1 %v13288_v48  ;;  %12570 = vmatprep.mubr.msk.bf16.mxu1 %vm8735_vm5, %v17763_v4  ;;  %v17812_v48 = vld [vmem:[#allocation6 + $0xf0] sm:$0xff] }
 0x787   :  { %12584 = vmatprep.subr.bf16.mxu1 %v13289_v26 }
 0x78a   :  { %12585 = vmatpush3.bf16.msra.mxu1 %v13289_v26  ;;  %v17820_v26 = vpack.c.bf16 %v17808_v22, %v17806_v0 }
 0x78b   :  { %12586 = vmatprep.subr.bf16.mxu1 %v13290_v1 }
 0x78d   :  { %12571 = vmatmul.mubr.msk.bf16.gmra.mrb[148].mxu1 %vm8735_vm5, %v17786_v47 }
 0x78e   :  { %12574 = vmatprep.mubr.msk.bf16.mxu1 %vm8735_vm5, %v9003_v6  ;;  %12587 = vmatpush3.bf16.msra.mxu1 %v13290_v1  ;;  %v17824_v1 = vpack.c.bf16 %v17812_v48, %v17810_v5  ;;  %v17834_v6 = vld [vmem:[#allocation6 + $0x110] sm:$0xff] }
 0x78f   :  { %12588 = vmatprep.subr.bf16.mxu1 %v13291_v23 }
 0x792   :  { %12589 = vmatpush3.bf16.msra.mxu1 %v13291_v23  ;;  %v17832_v23 = vld [vmem:[#allocation6 + $0x100] sm:$0xff] }
 0x793   :  { %12606 = vmatprep.subr.bf16.mxu1 %v13292_v17  ;;  %v17838_v38 = vpack.c.bf16 %v17834_v6, %v17832_v23 }
 0x795   :  { %12575 = vmatmul.mubr.msk.bf16.gmra.mrb[152].mxu1 %vm8735_vm5, %v17820_v26 }
 0x796   :  { %12578 = vmatprep.mubr.msk.bf16.mxu1 %vm8735_vm5, %v17824_v1 }
 0x79d   :  { %12579 = vmatmul.mubr.msk.bf16.gmra.mrb[156].mxu1 %vm8735_vm5, %v17838_v38 }
 0x79e   :  { %12590 = vmatprep.mubr.msk.bf16.mxu1 %vm8735_vm5, %v9354_v15  ;;  %v13294_v15 = vld [vmem:[%s18179_s15 + $0x70] sm:$0xff]  }
 0x7a5   :  { %12591 = vmatmul.mubr.msk.bf16.vlgmr.msra.gmra.mrb[144].mxu1 %vm8735_vm5, %v17846_v27 }
 0x7a6   :  { %12607 = vmatpush3.bf16.msra.mxu1 %v13292_v17  ;;  %12594 = vmatprep.mubr.msk.bf16.mxu1 %vm8735_vm5, %v17853_v20  ;;  %v13295_v17 = vld [vmem:[%s18179_s15 + $0x78] sm:$0xff]  }
 0x7a7   :  { %12608 = vmatprep.subr.bf16.mxu1 %v13293_v49 }
 0x7aa   :  { %12609 = vmatpush3.bf16.msra.mxu1 %v13293_v49  ;;  %v13296_v49 = vld [vmem:[%s18179_s15 + $0x80] sm:$0xff]  }
 0x7ab   :  { %12610 = vmatprep.subr.bf16.mxu1 %v13294_v15 }
 0x7ad   :  { %12595 = vmatmul.mubr.msk.bf16.gmra.mrb[148].mxu1 %vm8735_vm5, %v17866_v14 }
 0x7ae   :  { %12598 = vmatprep.mubr.msk.bf16.mxu1 %vm8735_vm5, %v9358_v46  ;;  %12611 = vmatpush3.bf16.msra.mxu1 %v13294_v15  ;;  %v17890_v46 = vld [vmem:[#allocation6 + $0x112] sm:$0xff] }
 0x7af   :  { %12612 = vmatprep.subr.bf16.mxu1 %v13295_v17  ;;  %v17894_v15 = vpack.c.bf16 %v17890_v46, %v17816_v61 }
 0x7b2   :  { %12613 = vmatpush3.bf16.msra.mxu1 %v13295_v17  ;;  %v9548_v17 = vpack.c.bf16 %v17742_v28, %v17720_v7  ;;  %v13298_v7 = vld [vmem:[%s18179_s15 + $0x90] sm:$0xff]   ;;  %v17913_v28 = vld [vmem:[#allocation6 + $0x80] sm:$0xff] }
 0x7b3   :  { %12630 = vmatprep.subr.bf16.mxu1 %v13296_v49  ;;  %v9551_v60 = vpack.c.bf16 %v17913_v28, %v17776_v10  ;;  %v17933_v10 = vld [vmem:[#allocation6 + $0x120] sm:$0xff] }
 0x7b5   :  { %12599 = vmatmul.mubr.msk.bf16.gmra.mrb[152].mxu1 %vm8735_vm5, %v17880_v13 }
 0x7b6   :  { %12602 = vmatprep.mubr.msk.bf16.mxu1 %vm8735_vm5, %v17884_v29  ;;  %v9550_v29 = vpack.c.bf16 %v17774_v30, %v17748_v37  ;;  %v9553_v37 = vpack.c.bf16 %v17810_v5, %v17808_v22  ;;  %v9554_v30 = vpack.c.bf16 %v17832_v23, %v17812_v48  ;;  %v13301_v22 = vld [vmem:[%s18179_s15 + $0xa8] sm:$0xff]   ;;  %v18642_v5 = vpack.c.bf16 %v17643_v59, %v17632_v34  ;;  %v13303_v34 = vld [vmem:[%s18179_s15 + $0xb8] sm:$0xff]  }
 0x7b7   :  { %v18643_v48 = vpack.c.bf16 %v17659_v3, %v17645_v50  ;;  %v18644_v59 = vpack.c.bf16 %v17676_v54, %v17674_v25  ;;  %v13304_v50 = vld [vmem:[%s18179_s15 + $0xc0] sm:$0xff]   ;;  %v18645_v3 = vpack.c.bf16 %v17684_v56, %v17682_v52  ;;  %v13305_v52 = vld [vmem:[%s18179_s15 + $0xc8] sm:$0xff]   ;;  %v18648_v56 = vpack.c.bf16 %v17732_v57, %v17730_v39 }
 0x7b8   :  { %v17979_v25 = vld [vmem:[#allocation6 + $0x121] sm:$0xff]  ;;  %v18650_v39 = vpack.c.bf16 %v17782_v31, %v17780_v8 }
 0x7b9   :  { %v9749_v54 = vpack.c.bf16 %v17979_v25, %v17718_v21  ;;  %v18002_v21 = vld [vmem:[#allocation6 + $0x82] sm:$0xff] }
 0x7ba   :  { %v13308_v57 = vld [vmem:[%s18179_s15 + $0xe0] sm:$0xff]  }
 0x7bb   :  { %v9935_v8 = vld [vmem:[#allocation6 + $0x122] sm:$0xff] }
 0x7bc   :  { %v9943_v31 = vpack.c.bf16 %v9935_v8, %v17890_v46 }
 0x7bd   :  { %12603 = vmatmul.mubr.msk.bf16.gmra.mrb[156].mxu1 %vm8735_vm5, %v17894_v15 }
 0x7be   :  { %12614 = vmatprep.mubr.msk.bf16.mxu1 %vm8735_vm5, %v9548_v17 }
 0x7c5   :  { %12615 = vmatmul.mubr.msk.bf16.vlgmr.msra.gmra.mrb[144].mxu1 %vm8735_vm5, %v9549_v41  ;;  %v9552_v41 = vpack.c.bf16 %v17806_v0, %v17778_v42  ;;  %v9555_v42 = vpack.c.bf16 %v17933_v10, %v17834_v6  ;;  %v18641_v0 = vpack.c.bf16 %v17630_v53, %v17628_v9  ;;  %v13302_v9 = vld [vmem:[%s18179_s15 + $0xb0] sm:$0xff]   ;;  %v17956_v53 = vld [vmem:[#allocation6 + $0x81] sm:$0xff]  ;;  %v18647_v6 = vpack.c.bf16 %v17724_v45, %v17722_v12  ;;  %v13307_v45 = vld [vmem:[%s18179_s15 + $0xd8] sm:$0xff]  }
 0x7c6   :  { %12631 = vmatpush3.bf16.msra.mxu1 %v13296_v49  ;;  %12618 = vmatprep.mubr.msk.bf16.mxu1 %vm8735_vm5, %v9550_v29  ;;  %v9745_v23 = vpack.c.bf16 %v17956_v53, %v17672_v35  ;;  %v18646_v35 = vpack.c.bf16 %v17702_v33, %v17700_v55  ;;  %v18649_v55 = vpack.c.bf16 %v17759_v2, %v17757_v51  ;;  %v13306_v33 = vld [vmem:[%s18179_s15 + $0xd0] sm:$0xff]   ;;  %v13315_v49 = vld [vmem:[%s18179_s15 + $0x118] sm:$0xff]  }
 0x7c7   :  { %12632 = vmatprep.subr.bf16.mxu1 %v13297_v16  ;;  %v9939_v12 = vpack.c.bf16 %v18002_v21, %v17862_v19  ;;  %v18651_v51 = vpack.c.bf16 %v17793_v32, %v17791_v24  ;;  %v18652_v2 = vpack.c.bf16 %v17816_v61, %v17814_v11  ;;  %v13309_v19 = vld [vmem:[%s18179_s15 + $0xe8] sm:$0xff]   ;;  %v13310_v24 = vld [vmem:[%s18179_s15 + $0xf0] sm:$0xff]   ;;  %v13311_v11 = vld [vmem:[%s18179_s15 + $0xf8] sm:$0xff]  }
 0x7c8   :  { %v10122_v32 = vld [vmem:[#allocation6 + $0x90] sm:$0xff] }
 0x7ca   :  { %12633 = vmatpush3.bf16.msra.mxu1 %v13297_v16  ;;  %v13300_v16 = vld [vmem:[%s18179_s15 + $0xa0] sm:$0xff]  }
 0x7cb   :  { %12634 = vmatprep.subr.bf16.mxu1 %v13298_v7 }
 0x7cd   :  { %12619 = vmatmul.mubr.msk.bf16.gmra.mrb[148].mxu1 %vm8735_vm5, %v9551_v60 }
 0x7ce   :  { %12622 = vmatprep.mubr.msk.bf16.mxu1 %vm8735_vm5, %v9552_v41  ;;  %12635 = vmatpush3.bf16.msra.mxu1 %v13298_v7 }
 0x7cf   :  { %12636 = vmatprep.subr.bf16.mxu1 %v13299_v63 }
 0x7d2   :  { %12637 = vmatpush3.bf16.msra.mxu1 %v13299_v63 }
 0x7d3   :  { %12654 = vmatprep.subr.bf16.mxu1 %v13300_v16 }
 0x7d5   :  { %12623 = vmatmul.mubr.msk.bf16.gmra.mrb[152].mxu1 %vm8735_vm5, %v9553_v37 }
 0x7d6   :  { %12626 = vmatprep.mubr.msk.bf16.mxu1 %vm8735_vm5, %v9554_v30 }
 0x7dd   :  { %12627 = vmatmul.mubr.msk.bf16.gmra.mrb[156].mxu1 %vm8735_vm5, %v9555_v42 }
 0x7de   :  { %12638 = vmatprep.mubr.msk.bf16.mxu1 %vm8735_vm5, %v18641_v0 }
 0x7e5   :  { %12639 = vmatmul.mubr.msk.bf16.vlgmr.msra.gmra.mrb[144].mxu1 %vm8735_vm5, %v18642_v5 }
 0x7e6   :  { %12655 = vmatpush3.bf16.msra.mxu1 %v13300_v16  ;;  %12642 = vmatprep.mubr.msk.bf16.mxu1 %vm8735_vm5, %v18643_v48 }
 0x7e7   :  { %12656 = vmatprep.subr.bf16.mxu1 %v13301_v22 }
 0x7ea   :  { %12657 = vmatpush3.bf16.msra.mxu1 %v13301_v22 }
 0x7eb   :  { %12658 = vmatprep.subr.bf16.mxu1 %v13302_v9 }
 0x7ed   :  { %12643 = vmatmul.mubr.msk.bf16.gmra.mrb[148].mxu1 %vm8735_vm5, %v9745_v23 }
 0x7ee   :  { %12646 = vmatprep.mubr.msk.bf16.mxu1 %vm8735_vm5, %v18644_v59  ;;  %12659 = vmatpush3.bf16.msra.mxu1 %v13302_v9 }
 0x7ef   :  { %12660 = vmatprep.subr.bf16.mxu1 %v13303_v34 }
 0x7f2   :  { %12661 = vmatpush3.bf16.msra.mxu1 %v13303_v34 }
 0x7f3   :  { %12678 = vmatprep.subr.bf16.mxu1 %v13304_v50 }
 0x7f5   :  { %12647 = vmatmul.mubr.msk.bf16.gmra.mrb[152].mxu1 %vm8735_vm5, %v18645_v3 }
 0x7f6   :  { %12650 = vmatprep.mubr.msk.bf16.mxu1 %vm8735_vm5, %v18646_v35 }
 0x7fd   :  { %12651 = vmatmul.mubr.msk.bf16.gmra.mrb[156].mxu1 %vm8735_vm5, %v9749_v54 }
 0x7fe   :  { %12662 = vmatprep.mubr.msk.bf16.mxu1 %vm8735_vm5, %v18647_v6 }
 0x805   :  { %12663 = vmatmul.mubr.msk.bf16.vlgmr.msra.gmra.mrb[144].mxu1 %vm8735_vm5, %v18648_v56 }
 0x806   :  { %12679 = vmatpush3.bf16.msra.mxu1 %v13304_v50  ;;  %12666 = vmatprep.mubr.msk.bf16.mxu1 %vm8735_vm5, %v18649_v55 }
 0x807   :  { %12680 = vmatprep.subr.bf16.mxu1 %v13305_v52 }
 0x80a   :  { %12681 = vmatpush3.bf16.msra.mxu1 %v13305_v52 }
 0x80b   :  { %12682 = vmatprep.subr.bf16.mxu1 %v13306_v33 }
 0x80d   :  { %12667 = vmatmul.mubr.msk.bf16.gmra.mrb[148].mxu1 %vm8735_vm5, %v9939_v12 }
 0x80e   :  { %12670 = vmatprep.mubr.msk.bf16.mxu1 %vm8735_vm5, %v18650_v39  ;;  %12683 = vmatpush3.bf16.msra.mxu1 %v13306_v33 }
 0x80f   :  { %12684 = vmatprep.subr.bf16.mxu1 %v13307_v45 }
 0x812   :  { %12685 = vmatpush3.bf16.msra.mxu1 %v13307_v45 }
 0x813   :  { %12702 = vmatprep.subr.bf16.mxu1 %v13308_v57 }
 0x815   :  { %12671 = vmatmul.mubr.msk.bf16.gmra.mrb[152].mxu1 %vm8735_vm5, %v18651_v51 }
 0x816   :  { %12674 = vmatprep.mubr.msk.bf16.mxu1 %vm8735_vm5, %v18652_v2 }
 0x81d   :  { %12675 = vmatmul.mubr.msk.bf16.gmra.mrb[156].mxu1 %vm8735_vm5, %v9943_v31 }
 0x81e   :  { %12686 = vmatprep.mubr.msk.bf16.mxu1 %vm8735_vm5, %v17752_v43  ;;  %v10134_v43 = vpack.c.bf16 %v10122_v32, %v17913_v28 }
 0x825   :  { %12687 = vmatmul.mubr.msk.bf16.vlgmr.msra.gmra.mrb[144].mxu1 %vm8735_vm5, %v17763_v4  ;;  %v13312_v4 = vld [vmem:[%s18179_s15 + $0x100] sm:$0xff]  }
 0x826   :  { %12703 = vmatpush3.bf16.msra.mxu1 %v13308_v57  ;;  %12690 = vmatprep.mubr.msk.bf16.mxu1 %vm8735_vm5, %v17786_v47  ;;  %v10130_v47 = vld [vmem:[#allocation6 + $0x130] sm:$0xff] }
 0x827   :  { %12704 = vmatprep.subr.bf16.mxu1 %v13309_v19  ;;  %v10138_v61 = vpack.c.bf16 %v10130_v47, %v17933_v10 }
 0x82a   :  { %12705 = vmatpush3.bf16.msra.mxu1 %v13309_v19 }
 0x82b   :  { %12706 = vmatprep.subr.bf16.mxu1 %v13310_v24 }
 0x82d   :  { %12691 = vmatmul.mubr.msk.bf16.gmra.mrb[148].mxu1 %vm8735_vm5, %v10134_v43 }
 0x82e   :  { %12694 = vmatprep.mubr.msk.bf16.mxu1 %vm8735_vm5, %v17820_v26  ;;  %12707 = vmatpush3.bf16.msra.mxu1 %v13310_v24  ;;  %v13313_v26 = vld [vmem:[%s18179_s15 + $0x108] sm:$0xff]  }
 0x82f   :  { %12708 = vmatprep.subr.bf16.mxu1 %v13311_v11 }
 0x832   :  { %12709 = vmatpush3.bf16.msra.mxu1 %v13311_v11 }
 0x833   :  { %12726 = vmatprep.subr.bf16.mxu1 %v13312_v4 }
 0x835   :  { %12695 = vmatmul.mubr.msk.bf16.gmra.mrb[152].mxu1 %vm8735_vm5, %v17824_v1  ;;  %v10316_v1 = vld [vmem:[#allocation6 + $0x91] sm:$0xff] }
 0x836   :  { %12698 = vmatprep.mubr.msk.bf16.mxu1 %vm8735_vm5, %v17838_v38  ;;  %v13314_v38 = vld [vmem:[%s18179_s15 + $0x110] sm:$0xff]  }
 0x83d   :  { %12699 = vmatmul.mubr.msk.bf16.gmra.mrb[156].mxu1 %vm8735_vm5, %v10138_v61 }
 0x83e   :  { %12710 = vmatprep.mubr.msk.bf16.mxu1 %vm8735_vm5, %v17641_v18  ;;  %v10328_v18 = vpack.c.bf16 %v10316_v1, %v17956_v53 }
 0x845   :  { %12711 = vmatmul.mubr.msk.bf16.vlgmr.msra.gmra.mrb[144].mxu1 %vm8735_vm5, %v17657_v40  ;;  %v10324_v40 = vld [vmem:[#allocation6 + $0x131] sm:$0xff] }
 0x846   :  { %12727 = vmatpush3.bf16.msra.mxu1 %v13312_v4  ;;  %12714 = vmatprep.mubr.msk.bf16.mxu1 %vm8735_vm5, %v17680_v36  ;;  %v10332_v36 = vpack.c.bf16 %v10324_v40, %v17979_v25 }
 0x847   :  { %12728 = vmatprep.subr.bf16.mxu1 %v13313_v26 }
 0x84a   :  { %12729 = vmatpush3.bf16.msra.mxu1 %v13313_v26 }
 0x84b   :  { %12730 = vmatprep.subr.bf16.mxu1 %v13314_v38 }
 0x84d   :  { %12715 = vmatmul.mubr.msk.bf16.gmra.mrb[148].mxu1 %vm8735_vm5, %v10328_v18 }
 0x84e   :  { %12718 = vmatprep.mubr.msk.bf16.mxu1 %vm8735_vm5, %v17706_v62  ;;  %12731 = vmatpush3.bf16.msra.mxu1 %v13314_v38  ;;  %v10510_v62 = vld [vmem:[#allocation6 + $0x92] sm:$0xff] }
 0x84f   :  { %12732 = vmatprep.subr.bf16.mxu1 %v13315_v49 }
 0x852   :  { %12733 = vmatpush3.bf16.msra.mxu1 %v13315_v49 }
 0x855   :  { %12719 = vmatmul.mubr.msk.bf16.gmra.mrb[152].mxu1 %vm8735_vm5, %v17710_v44  ;;  %v10522_v44 = vpack.c.bf16 %v10510_v62, %v18002_v21 }
 0x856   :  { %12722 = vmatprep.mubr.msk.bf16.mxu1 %vm8735_vm5, %v17728_v58  ;;  %v18653_v58 = vld [vmem:[#allocation54_spill] sm:$0xff] }
 0x85d   :  { %12723 = vmatmul.mubr.msk.bf16.gmra.mrb[156].mxu1 %vm8735_vm5, %v10332_v36 }
 0x85e   :  { %12734 = vmatprep.mubr.msk.bf16.mxu1 %vm8735_vm5, %v17846_v27  ;;  %v10518_v27 = vld [vmem:[#allocation6 + $0x132] sm:$0xff] }
 0x85f   :  { %v10526_v29 = vpack.c.bf16 %v10518_v27, %v9935_v8 }
 0x865   :  { %12735 = vmatmul.mubr.msk.bf16.vlgmr.msra.gmra.mrb[144].mxu1 %vm8735_vm5, %v17853_v20 }
 0x866   :  { %12738 = vmatprep.mubr.msk.bf16.mxu1 %vm8735_vm5, %v17866_v14  ;;  %v18098_v14 = vld [vmem:[%s18180_s16] ss:$0 sm:$0xff] }
 0x86d   :  { %12739 = vmatmul.mubr.msk.bf16.gmra.mrb[148].mxu1 %vm8735_vm5, %v10522_v44 }
 0x86e   :  { %12742 = vmatprep.mubr.msk.bf16.mxu1 %vm8735_vm5, %v17880_v13 }
 0x875   :  { %12743 = vmatmul.mubr.msk.bf16.gmra.mrb[152].mxu1 %vm8735_vm5, %v18653_v58 }
 0x876   :  { %12746 = vmatprep.mubr.msk.bf16.mxu1 %vm8735_vm5, %v17894_v15 }
 0x87d   :  { %12747 = vmatmul.mubr.msk.bf16.gmra.mrb[156].mxu1 %vm8735_vm5, %v10526_v29 }
 0x938   :  { %v12736_v20 = vpop.f32.mrb[144].mxu1 }
 0x939   :  { %v10706_v46 = vadd.f32 %v12736_v20, %v18098_v14  ;;  %v10618_v17 = vpop.f32.mrb[145].mxu1 }
 0x93a   :  { %v10704_v13 = vadd.f32 %v18098_v14, %v10618_v17  ;;  %v12737_v7 = vpop.f32.mrb[146].mxu1 }
 0x93b   :  { %v11386_v28 = vmul.f32 -1.442695, %v10706_v46  ;;  %v10707_v60 = vadd.f32 %v12737_v7, %v18098_v14  ;;  %v10621_v15 = vpop.f32.mrb[147].mxu1 }
 0x93c   :  { %v11384_v63 = vmul.f32 -1.442695, %v10704_v13  ;;  %v10705_v41 = vadd.f32 %v18098_v14, %v10621_v15 }
 0x93d   :  { %13324 = vpow2.f32 %v11386_v28  ;;  %v11387_v16 = vmul.f32 -1.442695, %v10707_v60 }
 0x93e   :  { %13326 = vpow2.f32 %v11384_v63  ;;  %v11385_v37 = vmul.f32 -1.442695, %v10705_v41 }
 0x93f   :  { %13328 = vpow2.f32 %v11387_v16 }
 0x940   :  { %13330 = vpow2.f32 %v11385_v37  ;;  %v12740_v30 = vpop.f32.mrb[148].mxu1 }
 0x941   :  { %v10710_v10 = vadd.f32 %v12740_v30, %v18098_v14  ;;  %v10634_v42 = vpop.f32.mrb[149].mxu1 }
 0x942   :  { %v10708_v0 = vadd.f32 %v18098_v14, %v10634_v42  ;;  %v12741_v22 = vpop.f32.mrb[150].mxu1 }
 0x943   :  { %v11390_v5 = vmul.f32 -1.442695, %v10710_v10  ;;  %v10711_v48 = vadd.f32 %v12741_v22, %v18098_v14  ;;  %v10637_v9 = vpop.f32.mrb[151].mxu1 }
 0x944   :  { %v11388_v53 = vmul.f32 -1.442695, %v10708_v0  ;;  %v10709_v23 = vadd.f32 %v18098_v14, %v10637_v9 }
 0x945   :  { %13332 = vpow2.f32 %v11390_v5  ;;  %v11391_v34 = vmul.f32 -1.442695, %v10711_v48 }
 0x946   :  { %13334 = vpow2.f32 %v11388_v53  ;;  %v11389_v59 = vmul.f32 -1.442695, %v10709_v23 }
 0x947   :  { %v13325_v50 = vpop.eup %13324  ;;  %13336 = vpow2.f32 %v11391_v34 }
 0x948   :  { %v13327_v3 = vpop.eup %13326  ;;  %v10770_v35 = vadd.f32 1.0, %v13325_v50  ;;  %13338 = vpow2.f32 %v11389_v59  ;;  %v12744_v25 = vpop.f32.mrb[152].mxu1 }
 0x949   :  { %v13329_v54 = vpop.eup %13328  ;;  %v10768_v6 = vadd.f32 1.0, %v13327_v3  ;;  %v10714_v52 = vadd.f32 %v12744_v25, %v18098_v14  ;;  %v10650_v56 = vpop.f32.mrb[153].mxu1 }
 0x94a   :  { %v13331_v55 = vpop.eup %13330  ;;  %13340 = vrcp.f32 %v10770_v35  ;;  %v10771_v33 = vadd.f32 1.0, %v13329_v54  ;;  %v10712_v21 = vadd.f32 %v18098_v14, %v10650_v56  ;;  %v12745_v12 = vpop.f32.mrb[154].mxu1 }
 0x94b   :  { %13342 = vrcp.f32 %v10768_v6  ;;  %v10769_v45 = vadd.f32 1.0, %v13331_v55  ;;  %v11394_v39 = vmul.f32 -1.442695, %v10714_v52  ;;  %v10715_v57 = vadd.f32 %v12745_v12, %v18098_v14  ;;  %v10653_v51 = vpop.f32.mrb[155].mxu1 }
 0x94c   :  { %13344 = vrcp.f32 %v10771_v33  ;;  %v11392_v2 = vmul.f32 -1.442695, %v10712_v21  ;;  %v10713_v8 = vadd.f32 %v18098_v14, %v10653_v51 }
 0x94d   :  { %13346 = vrcp.f32 %v10769_v45  ;;  %v11395_v31 = vmul.f32 -1.442695, %v10715_v57 }
 0x94e   :  { %13348 = vpow2.f32 %v11394_v39  ;;  %v11393_v19 = vmul.f32 -1.442695, %v10713_v8 }
 0x94f   :  { %v13333_v24 = vpop.eup %13332  ;;  %13350 = vpow2.f32 %v11392_v2 }
 0x950   :  { %v13335_v32 = vpop.eup %13334  ;;  %v10774_v43 = vadd.f32 1.0, %v13333_v24  ;;  %13352 = vpow2.f32 %v11395_v31  ;;  %v12748_v11 = vpop.f32.mrb[156].mxu1 }
 0x951   :  { %v13337_v4 = vpop.eup %13336  ;;  %v10772_v47 = vadd.f32 1.0, %v13335_v32  ;;  %13354 = vpow2.f32 %v11393_v19  ;;  %v10718_v61 = vadd.f32 %v12748_v11, %v18098_v14  ;;  %v10666_v26 = vpop.f32.mrb[157].mxu1 }
 0x952   :  { %v13339_v38 = vpop.eup %13338  ;;  %13356 = vrcp.f32 %v10774_v43  ;;  %v10775_v1 = vadd.f32 1.0, %v13337_v4  ;;  %v10716_v18 = vadd.f32 %v18098_v14, %v10666_v26  ;;  %v12749_v49 = vpop.f32.mrb[158].mxu1 }
 0x953   :  { %13358 = vrcp.f32 %v10772_v47  ;;  %v10773_v40 = vadd.f32 1.0, %v13339_v38  ;;  %v11398_v36 = vmul.f32 -1.442695, %v10718_v61  ;;  %v10719_v62 = vadd.f32 %v12749_v49, %v18098_v14  ;;  %v10669_v44 = vpop.f32.mrb[159].mxu1 }
 0x954   :  { %v13341_v58 = vpop.eup %13340  ;;  %13360 = vrcp.f32 %v10775_v1  ;;  %v11396_v27 = vmul.f32 -1.442695, %v10716_v18  ;;  %v10717_v29 = vadd.f32 %v18098_v14, %v10669_v44 }
 0x955   :  { %v13343_v20 = vpop.eup %13342  ;;  %10818 = vst [vmem:[%s18181_s17 + $0x10] sm:$0xff] %v13341_v58  ;;  %13362 = vrcp.f32 %v10773_v40  ;;  %v11399_v46 = vmul.f32 -1.442695, %v10719_v62 }
 0x956   :  { %v13345_v17 = vpop.eup %13344  ;;  %10816 = vst [vmem:[%s18181_s17] sm:$0xff] %v13343_v20  ;;  %13364 = vpow2.f32 %v11398_v36  ;;  %v11397_v13 = vmul.f32 -1.442695, %v10717_v29 }
 0x957   :  { %v13347_v7 = vpop.eup %13346  ;;  %10819 = vst [vmem:[%s18181_s17 + $0x18] sm:$0xff] %v13345_v17  ;;  %13366 = vpow2.f32 %v11396_v27 }
 0x958   :  { %v13349_v14 = vpop.eup %13348  ;;  %10817 = vst [vmem:[%s18181_s17 + $0x8] sm:$0xff] %v13347_v7  ;;  %13368 = vpow2.f32 %v11399_v46 }
 0x959   :  { %v13351_v28 = vpop.eup %13350  ;;  %v10778_v60 = vadd.f32 1.0, %v13349_v14  ;;  %13370 = vpow2.f32 %v11397_v13 }
 0x95a   :  { %v13353_v15 = vpop.eup %13352  ;;  %v10776_v63 = vadd.f32 1.0, %v13351_v28 }
 0x95b   :  { %v13355_v41 = vpop.eup %13354  ;;  %13372 = vrcp.f32 %v10778_v60  ;;  %v10779_v16 = vadd.f32 1.0, %v13353_v15 }
 0x95c   :  { %v13357_v37 = vpop.eup %13356  ;;  %13374 = vrcp.f32 %v10776_v63  ;;  %v10777_v30 = vadd.f32 1.0, %v13355_v41 }
 0x95d   :  { %v13359_v10 = vpop.eup %13358  ;;  %10822 = vst [vmem:[%s18181_s17 + $0x30] sm:$0xff] %v13357_v37  ;;  %13376 = vrcp.f32 %v10779_v16 }
 0x95e   :  { %v13361_v42 = vpop.eup %13360  ;;  %10820 = vst [vmem:[%s18181_s17 + $0x20] sm:$0xff] %v13359_v10  ;;  %13378 = vrcp.f32 %v10777_v30 }
 0x95f   :  { %v13363_v0 = vpop.eup %13362  ;;  %10823 = vst [vmem:[%s18181_s17 + $0x38] sm:$0xff] %v13361_v42 }
 0x960   :  { %v13365_v22 = vpop.eup %13364  ;;  %10821 = vst [vmem:[%s18181_s17 + $0x28] sm:$0xff] %v13363_v0 }
 0x961   :  { %v13367_v5 = vpop.eup %13366  ;;  %v10782_v48 = vadd.f32 1.0, %v13365_v22 }
 0x962   :  { %v13369_v9 = vpop.eup %13368  ;;  %v10780_v53 = vadd.f32 1.0, %v13367_v5 }
 0x963   :  { %v13371_v23 = vpop.eup %13370  ;;  %13380 = vrcp.f32 %v10782_v48  ;;  %v10783_v34 = vadd.f32 1.0, %v13369_v9 }
 0x964   :  { %13382 = vrcp.f32 %v10780_v53  ;;  %v10781_v59 = vadd.f32 1.0, %v13371_v23 }
 0x965   :  { %v13373_v50 = vpop.eup %13372  ;;  %13384 = vrcp.f32 %v10783_v34 }
 0x966   :  { %v13375_v3 = vpop.eup %13374  ;;  %10826 = vst [vmem:[%s18181_s17 + $0x50] sm:$0xff] %v13373_v50  ;;  %13386 = vrcp.f32 %v10781_v59 }
 0x967   :  { %v13377_v35 = vpop.eup %13376  ;;  %10824 = vst [vmem:[%s18181_s17 + $0x40] sm:$0xff] %v13375_v3 }
 0x968   :  { %v13379_v25 = vpop.eup %13378  ;;  %10827 = vst [vmem:[%s18181_s17 + $0x58] sm:$0xff] %v13377_v35 }
 0x969   :  { %10825 = vst [vmem:[%s18181_s17 + $0x48] sm:$0xff] %v13379_v25 }
 0x96d   :  { %v13381_v54 = vpop.eup %13380 }
 0x96e   :  { %v13383_v6 = vpop.eup %13382  ;;  %10830 = vst [vmem:[%s18181_s17 + $0x70] sm:$0xff] %v13381_v54 }
 0x96f   :  { %v13385_v52 = vpop.eup %13384  ;;  %10828 = vst [vmem:[%s18181_s17 + $0x60] sm:$0xff] %v13383_v6 }
 0x970   :  { %v13387_v56 = vpop.eup %13386  ;;  %10831 = vst [vmem:[%s18181_s17 + $0x78] sm:$0xff] %v13385_v52 }
 0x971   :  { %10829 = vst [vmem:[%s18181_s17 + $0x68] sm:$0xff] %v13387_v56 }
 0x972   :  { %10836 = vsyncpa [#allocation8], 1 }

</bundles_post_ra>
